<compile_context>
chip_gen: v7x
topology: tpu7x:2x2x1
jax: 0.10.0
libtpu: 0.0.40
codegen_flags: <defaults>
</compile_context>

<pallas_src>
import jax
import jax.numpy as jnp
from jax import lax
from jax.experimental import pallas as pl
from jax.experimental.pallas import tpu as pltpu


# ----------------------------------------------------------------------------
# Fused kernel: im2col + single bf16 MXU matmul + bias + LayerNorm(C) + FiLM +
#               LeakyReLU(0.01).  One batch element per grid step.
# ----------------------------------------------------------------------------
def conv_ln_film_lrelu_kernel(x_ref, w_ref, b_ref, scale_ref, shift_ref, o_ref, xp_ref):
    # x_ref     : (1, D, H, W, Cin)   bf16 (un-padded)
    # w_ref     : (Cout, 27*Cin)      bf16 (rows = cout, cols ordered (kd, kh, kw, cin))
    # b_ref     : (Cout, 1)           f32
    # scale_ref : (1, Cout, 1)        f32
    # shift_ref : (1, Cout, 1)        f32
    # o_ref     : (1, Cout, D*H*W)    f32  (lane-dense output slab, == NCDHW-flat)
    # xp_ref    : (D+2, H+2, W+4, Cin) f32 VMEM scratch holding the zero-halo'd input
    _, D, H, W, Cin = x_ref.shape
    Cout = o_ref.shape[1]
    DHW = D * H * W

    # ---- build the halo'd input in VMEM (no HBM jnp.pad round trip) -------------
    # Interior is placed at W-offset 2 so the store stays tile-friendly; zeroing the
    # whole (tiny) scratch every step keeps it correct under megacore sharding.
    xp_ref[...] = jnp.zeros_like(xp_ref)
    xp_ref[1:D + 1, 1:H + 1, 2:W + 2, :] = x_ref[0].astype(xp_ref.dtype)
    xp = xp_ref[...]

    # ---- im2col: one (D*H*W, 27*Cin) patch matrix ------------------------------
    # Column order (kd, kh, kw, cin) matches the wrapper's (27*Cin, Cout) weight reshape.
    cols = []
    for kd in range(3):
        for kh in range(3):
            for kw in range(3):
                tap = xp[kd:kd + D, kh:kh + H, kw + 1:kw + 1 + W, :]   # (D, H, W, Cin)
                cols.append(tap.reshape(DHW, Cin))
    patch = jnp.concatenate(cols, axis=1).astype(jnp.bfloat16)         # (DHW, 27*Cin)

    # ---- one K-dense MXU matmul, NT form → lane-dense (Cout, DHW) f32 acc -------
    acc = lax.dot_general(
        w_ref[...], patch,
        dimension_numbers=(((1,), (1,)), ((), ())),   # contract the 27*Cin dim of both
        preferred_element_type=jnp.float32,
    )                                                                  # (Cout, DHW)
    acc = acc + b_ref[...]                                             # conv bias

    # ---- ChannelwiseLayerNorm over channels (= rows), eps=1e-5, no affine -------
    mean = jnp.mean(acc, axis=0, keepdims=True)                        # (1, DHW)
    var = jnp.mean((acc - mean) ** 2, axis=0, keepdims=True)
    y = (acc - mean) * lax.rsqrt(var + 1e-5)                           # rsqrt → EUP slot

    # ---- FiLM conditioning:  y * (scale + 1) + shift  (per-channel) -------------
    y = y * (scale_ref[0] + 1.0) + shift_ref[0]

    # ---- LeakyReLU (negative_slope = 0.01, PyTorch default) ---------------------
    y = jnp.where(y > 0, y, 0.01 * y)

    # Fully lane-dense store (DHW is a multiple of 128 for these shapes).
    o_ref[...] = y[None].astype(o_ref.dtype)


# ----------------------------------------------------------------------------
# Wrapper: weight/bias/FiLM prep (tiny, plain-JAX glue) + pallas_call plumbing.
# ----------------------------------------------------------------------------
def conv_layer3d_forward(x_ndhwc, lead, params):
    """x_ndhwc: (B, D, H, W, Cin) f32 (TPU layout of PyTorch's NCDHW input)
       lead   : (B, cond_dim)     f32
       returns: (B, Cout, D, H, W) f32   (PyTorch NCDHW layout, zero-cost reshape)"""
    B, D, H, W, Cin = x_ndhwc.shape
    conv_w = params["conv_w"]                         # (3, 3, 3, Cin, Cout)  DHWIO
    Cout = conv_w.shape[-1]
    DHW = D * H * W
    K = 27 * Cin

    # Weight as one 2D (Cout, 27*Cin) bf16 slab (reshape/transpose paid once in XLA).
    w_t = jnp.transpose(conv_w.reshape(K, Cout)).astype(jnp.bfloat16)  # (Cout, K)
    bias = params["conv_b"].reshape(Cout, 1).astype(jnp.float32)

    # cond MLP:  ReLU -> Linear(cond_dim, 2*Cout)   (tiny, kept as plain-JAX glue)
    h = jnp.maximum(lead, 0.0) @ params["mlp_w"].T + params["mlp_b"]   # (B, 2*Cout)
    scale = h[:, :Cout, None].astype(jnp.float32)                      # (B, Cout, 1)
    shift = h[:, Cout:, None].astype(jnp.float32)
    # replicate_each_t == B / B == 1 in the reference forward, so the repeat is identity.

    x_bf16 = x_ndhwc.astype(jnp.bfloat16)             # halve HBM→VMEM input bytes

    # TODO(synk): for production volumes, tile the D (and/or H) axis with a +1 halo
    # (overlapping index_map or in-kernel DMA) so the per-step block fits v7x's 64 MiB
    # VMEM and the grid has enough steps for real DMA pipelining / megacore sharding.
    out_flat = pl.pallas_call(
        conv_ln_film_lrelu_kernel,
        out_shape=jax.ShapeDtypeStruct((B, Cout, DHW), jnp.float32),
        grid_spec=pltpu.PrefetchScalarGridSpec(
            num_scalar_prefetch=0,
            grid=(B,),
            in_specs=[
                pl.BlockSpec((1, D, H, W, Cin), lambda b: (b, 0, 0, 0, 0)),
                pl.BlockSpec((Cout, K), lambda b: (0, 0)),
                pl.BlockSpec((Cout, 1), lambda b: (0, 0)),
                pl.BlockSpec((1, Cout, 1), lambda b: (b, 0, 0)),
                pl.BlockSpec((1, Cout, 1), lambda b: (b, 0, 0)),
            ],
            out_specs=pl.BlockSpec((1, Cout, DHW), lambda b: (b, 0, 0)),
            scratch_shapes=[pltpu.VMEM((D + 2, H + 2, W + 4, Cin), jnp.float32)],
        ),
        compiler_params=pltpu.CompilerParams(dimension_semantics=("parallel",)),
    )(x_bf16, w_t, bias, scale, shift)

    # (B, Cout, D*H*W) -> (B, Cout, D, H, W): contiguous reshape, no data movement.
    return out_flat.reshape(B, Cout, D, H, W)


# ----------------------------------------------------------------------------
# Pure-JAX f32 reference (same semantics as the PyTorch module) for verification
# ----------------------------------------------------------------------------
def reference_forward(x_ndhwc, lead, params):
    Cout = params["conv_w"].shape[-1]
    y = lax.conv_general_dilated(
        x_ndhwc, params["conv_w"],
        window_strides=(1, 1, 1),
        padding=((1, 1), (1, 1), (1, 1)),
        dimension_numbers=("NDHWC", "DHWIO", "NDHWC"),
    ) + params["conv_b"]
    mean = jnp.mean(y, axis=-1, keepdims=True)
    var = jnp.mean((y - mean) ** 2, axis=-1, keepdims=True)
    y = (y - mean) / jnp.sqrt(var + 1e-5)
    h = jnp.maximum(lead, 0.0) @ params["mlp_w"].T + params["mlp_b"]
    scale = h[:, :Cout].reshape(-1, 1, 1, 1, Cout)
    shift = h[:, Cout:].reshape(-1, 1, 1, 1, Cout)
    y = y * (scale + 1.0) + shift
    return jnp.where(y > 0, y, 0.01 * y)                 # NDHWC


if __name__ == "__main__":
    # Small shapes consistent with the module: ConvLayer3d(in_dim=4, out_dim=8, cond_dim=16)
    # PyTorch-convention input x: (B, Cin, D, H, W) = (2, 4, 4, 8, 8);  lead: (2, 16)
    B, Cin, Cout, D, H, W, cond_dim = 2, 4, 8, 4, 8, 8, 16

    key = jax.random.PRNGKey(0)
    kx, kl, kw, kb, kmw, kmb = jax.random.split(key, 6)

    x_ncdhw = jax.random.normal(kx, (B, Cin, D, H, W), jnp.float32)     # PyTorch NCDHW
    lead = jax.random.normal(kl, (B, cond_dim), jnp.float32)

    params = {
        "conv_w": 0.1 * jax.random.normal(kw, (3, 3, 3, Cin, Cout), jnp.float32),
        "conv_b": 0.1 * jax.random.normal(kb, (Cout,), jnp.float32),
        "mlp_w": 0.1 * jax.random.normal(kmw, (2 * Cout, cond_dim), jnp.float32),
        "mlp_b": 0.1 * jax.random.normal(kmb, (2 * Cout,), jnp.float32),
    }

    # NCDHW -> NDHWC for the TPU kernel input
    x_ndhwc = jnp.transpose(x_ncdhw, (0, 2, 3, 4, 1))

    out = conv_layer3d_forward(x_ndhwc, lead, params)      # (B, Cout, D, H, W)
    out = jax.block_until_ready(out)

    ref_ndhwc = reference_forward(x_ndhwc, lead, params)
    ref = jax.block_until_ready(jnp.transpose(ref_ndhwc, (0, 4, 1, 2, 3)))

    assert out.shape == (B, Cout, D, H, W)
    # bf16 MXU inputs with f32 accumulation → relaxed tolerance vs. the f32 reference.
    assert jnp.allclose(out, ref, atol=5e-2, rtol=5e-2), "mismatch vs reference"

    print("KERNEL_OK")
</pallas_src>

<mosaic_0001>
module attributes {stable_mosaic.version = 11 : i64} {
  func.func @conv_ln_film_lrelu_kernel(%arg0: i32, %arg1: memref<1x4x8x8x4xbf16, #tpu.memory_space<vmem>>, %arg2: memref<8x108xbf16, #tpu.memory_space<vmem>>, %arg3: memref<8x1xf32, #tpu.memory_space<vmem>>, %arg4: memref<1x8x1xf32, #tpu.memory_space<vmem>>, %arg5: memref<1x8x1xf32, #tpu.memory_space<vmem>>, %arg6: memref<1x8x256xf32, #tpu.memory_space<vmem>>, %arg7: memref<6x10x12x4xf32, #tpu.memory_space<vmem>>) attributes {dimension_semantics = [#tpu.dimension_semantics<parallel>], iteration_bounds = array<i64: 2>, scalar_prefetch = 0 : i64, scratch_operands = 1 : i64, tpu.core_type = #tpu.core_type<tc>, window_params = [{transform_indices = @transform_0, window_bounds = array<i64: 1, 4, 8, 8, 4>}, {pipeline_mode = #tpu.pipeline_mode<synchronous>, transform_indices = @transform_1, window_bounds = array<i64: 8, 108>}, {pipeline_mode = #tpu.pipeline_mode<synchronous>, transform_indices = @transform_2, window_bounds = array<i64: 8, 1>}, {transform_indices = @transform_3, window_bounds = array<i64: 1, 8, 1>}, {transform_indices = @transform_4, window_bounds = array<i64: 1, 8, 1>}, {transform_indices = @transform_5, window_bounds = array<i64: 1, 8, 256>}]} {
    %cst = arith.constant 0.000000e+00 : f32
    %0 = vector.broadcast %cst : f32 to vector<6x10x12x4xf32>
    %c0 = arith.constant 0 : index
    %c0_0 = arith.constant 0 : index
    %c0_1 = arith.constant 0 : index
    %c0_2 = arith.constant 0 : index
    %1 = vector.load %arg7[%c0, %c0_0, %c0_1, %c0_2] : memref<6x10x12x4xf32, #tpu.memory_space<vmem>>, vector<6x10x12x4xf32>
    tpu.vector_store %arg7[%c0, %c0_0, %c0_1, %c0_2], %0 {strides = array<i32>} : memref<6x10x12x4xf32, #tpu.memory_space<vmem>>, vector<6x10x12x4xf32>,
    %c0_3 = arith.constant 0 : index
    %c0_4 = arith.constant 0 : index
    %c0_5 = arith.constant 0 : index
    %c0_6 = arith.constant 0 : index
    %c0_7 = arith.constant 0 : index
    %2 = vector.load %arg1[%c0_3, %c0_4, %c0_5, %c0_6, %c0_7] : memref<1x4x8x8x4xbf16, #tpu.memory_space<vmem>>, vector<1x4x8x8x4xbf16>
    %3 = vector.shape_cast %2 : vector<1x4x8x8x4xbf16> to vector<4x8x8x4xbf16>
    %4 = arith.extf %3 : vector<4x8x8x4xbf16> to vector<4x8x8x4xf32>
    %c1 = arith.constant 1 : index
    %c1_8 = arith.constant 1 : index
    %c2 = arith.constant 2 : index
    %c0_9 = arith.constant 0 : index
    %5 = vector.load %arg7[%c1, %c1_8, %c2, %c0_9] : memref<6x10x12x4xf32, #tpu.memory_space<vmem>>, vector<4x8x8x4xf32>
    tpu.vector_store %arg7[%c1, %c1_8, %c2, %c0_9], %4 {strides = array<i32>} : memref<6x10x12x4xf32, #tpu.memory_space<vmem>>, vector<4x8x8x4xf32>,
    %c0_10 = arith.constant 0 : index
    %c0_11 = arith.constant 0 : index
    %c0_12 = arith.constant 0 : index
    %c0_13 = arith.constant 0 : index
    %6 = vector.load %arg7[%c0_10, %c0_11, %c0_12, %c0_13] : memref<6x10x12x4xf32, #tpu.memory_space<vmem>>, vector<6x10x12x4xf32>
    %7 = vector.extract_strided_slice %6 {offsets = [0, 0, 1, 0], sizes = [4, 8, 8, 4], strides = [1, 1, 1, 1]} : vector<6x10x12x4xf32> to vector<4x8x8x4xf32>
    %8 = vector.shape_cast %7 : vector<4x8x8x4xf32> to vector<256x4xf32>
    %9 = vector.extract_strided_slice %6 {offsets = [0, 0, 2, 0], sizes = [4, 8, 8, 4], strides = [1, 1, 1, 1]} : vector<6x10x12x4xf32> to vector<4x8x8x4xf32>
    %10 = vector.shape_cast %9 : vector<4x8x8x4xf32> to vector<256x4xf32>
    %11 = vector.extract_strided_slice %6 {offsets = [0, 0, 3, 0], sizes = [4, 8, 8, 4], strides = [1, 1, 1, 1]} : vector<6x10x12x4xf32> to vector<4x8x8x4xf32>
    %12 = vector.shape_cast %11 : vector<4x8x8x4xf32> to vector<256x4xf32>
    %13 = vector.extract_strided_slice %6 {offsets = [0, 1, 1, 0], sizes = [4, 8, 8, 4], strides = [1, 1, 1, 1]} : vector<6x10x12x4xf32> to vector<4x8x8x4xf32>
    %14 = vector.shape_cast %13 : vector<4x8x8x4xf32> to vector<256x4xf32>
    %15 = vector.extract_strided_slice %6 {offsets = [0, 1, 2, 0], sizes = [4, 8, 8, 4], strides = [1, 1, 1, 1]} : vector<6x10x12x4xf32> to vector<4x8x8x4xf32>
    %16 = vector.shape_cast %15 : vector<4x8x8x4xf32> to vector<256x4xf32>
    %17 = vector.extract_strided_slice %6 {offsets = [0, 1, 3, 0], sizes = [4, 8, 8, 4], strides = [1, 1, 1, 1]} : vector<6x10x12x4xf32> to vector<4x8x8x4xf32>
    %18 = vector.shape_cast %17 : vector<4x8x8x4xf32> to vector<256x4xf32>
    %19 = vector.extract_strided_slice %6 {offsets = [0, 2, 1, 0], sizes = [4, 8, 8, 4], strides = [1, 1, 1, 1]} : vector<6x10x12x4xf32> to vector<4x8x8x4xf32>
    %20 = vector.shape_cast %19 : vector<4x8x8x4xf32> to vector<256x4xf32>
    %21 = vector.extract_strided_slice %6 {offsets = [0, 2, 2, 0], sizes = [4, 8, 8, 4], strides = [1, 1, 1, 1]} : vector<6x10x12x4xf32> to vector<4x8x8x4xf32>
    %22 = vector.shape_cast %21 : vector<4x8x8x4xf32> to vector<256x4xf32>
    %23 = vector.extract_strided_slice %6 {offsets = [0, 2, 3, 0], sizes = [4, 8, 8, 4], strides = [1, 1, 1, 1]} : vector<6x10x12x4xf32> to vector<4x8x8x4xf32>
    %24 = vector.shape_cast %23 : vector<4x8x8x4xf32> to vector<256x4xf32>
    %25 = vector.extract_strided_slice %6 {offsets = [1, 0, 1, 0], sizes = [4, 8, 8, 4], strides = [1, 1, 1, 1]} : vector<6x10x12x4xf32> to vector<4x8x8x4xf32>
    %26 = vector.shape_cast %25 : vector<4x8x8x4xf32> to vector<256x4xf32>
    %27 = vector.extract_strided_slice %6 {offsets = [1, 0, 2, 0], sizes = [4, 8, 8, 4], strides = [1, 1, 1, 1]} : vector<6x10x12x4xf32> to vector<4x8x8x4xf32>
    %28 = vector.shape_cast %27 : vector<4x8x8x4xf32> to vector<256x4xf32>
    %29 = vector.extract_strided_slice %6 {offsets = [1, 0, 3, 0], sizes = [4, 8, 8, 4], strides = [1, 1, 1, 1]} : vector<6x10x12x4xf32> to vector<4x8x8x4xf32>
    %30 = vector.shape_cast %29 : vector<4x8x8x4xf32> to vector<256x4xf32>
    %31 = vector.extract_strided_slice %6 {offsets = [1, 1, 1, 0], sizes = [4, 8, 8, 4], strides = [1, 1, 1, 1]} : vector<6x10x12x4xf32> to vector<4x8x8x4xf32>
    %32 = vector.shape_cast %31 : vector<4x8x8x4xf32> to vector<256x4xf32>
    %33 = vector.extract_strided_slice %6 {offsets = [1, 1, 2, 0], sizes = [4, 8, 8, 4], strides = [1, 1, 1, 1]} : vector<6x10x12x4xf32> to vector<4x8x8x4xf32>
    %34 = vector.shape_cast %33 : vector<4x8x8x4xf32> to vector<256x4xf32>
    %35 = vector.extract_strided_slice %6 {offsets = [1, 1, 3, 0], sizes = [4, 8, 8, 4], strides = [1, 1, 1, 1]} : vector<6x10x12x4xf32> to vector<4x8x8x4xf32>
    %36 = vector.shape_cast %35 : vector<4x8x8x4xf32> to vector<256x4xf32>
    %37 = vector.extract_strided_slice %6 {offsets = [1, 2, 1, 0], sizes = [4, 8, 8, 4], strides = [1, 1, 1, 1]} : vector<6x10x12x4xf32> to vector<4x8x8x4xf32>
    %38 = vector.shape_cast %37 : vector<4x8x8x4xf32> to vector<256x4xf32>
    %39 = vector.extract_strided_slice %6 {offsets = [1, 2, 2, 0], sizes = [4, 8, 8, 4], strides = [1, 1, 1, 1]} : vector<6x10x12x4xf32> to vector<4x8x8x4xf32>
    %40 = vector.shape_cast %39 : vector<4x8x8x4xf32> to vector<256x4xf32>
    %41 = vector.extract_strided_slice %6 {offsets = [1, 2, 3, 0], sizes = [4, 8, 8, 4], strides = [1, 1, 1, 1]} : vector<6x10x12x4xf32> to vector<4x8x8x4xf32>
    %42 = vector.shape_cast %41 : vector<4x8x8x4xf32> to vector<256x4xf32>
    %43 = vector.extract_strided_slice %6 {offsets = [2, 0, 1, 0], sizes = [4, 8, 8, 4], strides = [1, 1, 1, 1]} : vector<6x10x12x4xf32> to vector<4x8x8x4xf32>
    %44 = vector.shape_cast %43 : vector<4x8x8x4xf32> to vector<256x4xf32>
    %45 = vector.extract_strided_slice %6 {offsets = [2, 0, 2, 0], sizes = [4, 8, 8, 4], strides = [1, 1, 1, 1]} : vector<6x10x12x4xf32> to vector<4x8x8x4xf32>
    %46 = vector.shape_cast %45 : vector<4x8x8x4xf32> to vector<256x4xf32>
    %47 = vector.extract_strided_slice %6 {offsets = [2, 0, 3, 0], sizes = [4, 8, 8, 4], strides = [1, 1, 1, 1]} : vector<6x10x12x4xf32> to vector<4x8x8x4xf32>
    %48 = vector.shape_cast %47 : vector<4x8x8x4xf32> to vector<256x4xf32>
    %49 = vector.extract_strided_slice %6 {offsets = [2, 1, 1, 0], sizes = [4, 8, 8, 4], strides = [1, 1, 1, 1]} : vector<6x10x12x4xf32> to vector<4x8x8x4xf32>
    %50 = vector.shape_cast %49 : vector<4x8x8x4xf32> to vector<256x4xf32>
    %51 = vector.extract_strided_slice %6 {offsets = [2, 1, 2, 0], sizes = [4, 8, 8, 4], strides = [1, 1, 1, 1]} : vector<6x10x12x4xf32> to vector<4x8x8x4xf32>
    %52 = vector.shape_cast %51 : vector<4x8x8x4xf32> to vector<256x4xf32>
    %53 = vector.extract_strided_slice %6 {offsets = [2, 1, 3, 0], sizes = [4, 8, 8, 4], strides = [1, 1, 1, 1]} : vector<6x10x12x4xf32> to vector<4x8x8x4xf32>
    %54 = vector.shape_cast %53 : vector<4x8x8x4xf32> to vector<256x4xf32>
    %55 = vector.extract_strided_slice %6 {offsets = [2, 2, 1, 0], sizes = [4, 8, 8, 4], strides = [1, 1, 1, 1]} : vector<6x10x12x4xf32> to vector<4x8x8x4xf32>
    %56 = vector.shape_cast %55 : vector<4x8x8x4xf32> to vector<256x4xf32>
    %57 = vector.extract_strided_slice %6 {offsets = [2, 2, 2, 0], sizes = [4, 8, 8, 4], strides = [1, 1, 1, 1]} : vector<6x10x12x4xf32> to vector<4x8x8x4xf32>
    %58 = vector.shape_cast %57 : vector<4x8x8x4xf32> to vector<256x4xf32>
    %59 = vector.extract_strided_slice %6 {offsets = [2, 2, 3, 0], sizes = [4, 8, 8, 4], strides = [1, 1, 1, 1]} : vector<6x10x12x4xf32> to vector<4x8x8x4xf32>
    %60 = vector.shape_cast %59 : vector<4x8x8x4xf32> to vector<256x4xf32>
    %61 = tpu.concatenate %8, %10, %12, %14, %16, %18, %20, %22, %24, %26, %28, %30, %32, %34, %36, %38 in 1 : vector<256x4xf32>, vector<256x4xf32>, vector<256x4xf32>, vector<256x4xf32>, vector<256x4xf32>, vector<256x4xf32>, vector<256x4xf32>, vector<256x4xf32>, vector<256x4xf32>, vector<256x4xf32>, vector<256x4xf32>, vector<256x4xf32>, vector<256x4xf32>, vector<256x4xf32>, vector<256x4xf32>, vector<256x4xf32> -> vector<256x64xf32>
    %62 = tpu.concatenate %40, %42, %44, %46, %48, %50, %52, %54, %56, %58, %60 in 1 : vector<256x4xf32>, vector<256x4xf32>, vector<256x4xf32>, vector<256x4xf32>, vector<256x4xf32>, vector<256x4xf32>, vector<256x4xf32>, vector<256x4xf32>, vector<256x4xf32>, vector<256x4xf32>, vector<256x4xf32> -> vector<256x44xf32>
    %63 = tpu.concatenate %61, %62 in 1 : vector<256x64xf32>, vector<256x44xf32> -> vector<256x108xf32>
    %64 = arith.truncf %63 : vector<256x108xf32> to vector<256x108xbf16>
    %c0_14 = arith.constant 0 : index
    %c0_15 = arith.constant 0 : index
    %65 = vector.load %arg2[%c0_14, %c0_15] : memref<8x108xbf16, #tpu.memory_space<vmem>>, vector<8x108xbf16>
    %cst_16 = arith.constant dense<0.000000e+00> : vector<8x256xf32>
    %66 = tpu.matmul %65, %64, %cst_16 {dimension_numbers = #tpu.dot_dimension_numbers<[1], [1], [0], [0], [0, 0, 1, 0], [], []>} : vector<8x108xbf16>, vector<256x108xbf16>, vector<8x256xf32> -> vector<8x256xf32>
    %c0_17 = arith.constant 0 : index
    %c0_18 = arith.constant 0 : index
    %67 = vector.load %arg3[%c0_17, %c0_18] : memref<8x1xf32, #tpu.memory_space<vmem>>, vector<8x1xf32>
    %68 = vector.broadcast %67 : vector<8x1xf32> to vector<8x256xf32>
    %69 = arith.addf %66, %68 : vector<8x256xf32>
    %cst_19 = arith.constant dense<0.000000e+00> : vector<256xf32>
    %70 = vector.multi_reduction <add>, %69, %cst_19 [0] : vector<8x256xf32> to vector<256xf32>
    %71 = vector.shape_cast %70 : vector<256xf32> to vector<1x256xf32>
    %cst_20 = arith.constant 8.000000e+00 : f32
    %72 = vector.broadcast %cst_20 : f32 to vector<1x256xf32>
    %73 = arith.divf %71, %72 : vector<1x256xf32>
    %74 = vector.broadcast %73 : vector<1x256xf32> to vector<8x256xf32>
    %75 = arith.subf %69, %74 : vector<8x256xf32>
    %76 = arith.mulf %75, %75 : vector<8x256xf32>
    %cst_21 = arith.constant dense<0.000000e+00> : vector<256xf32>
    %77 = vector.multi_reduction <add>, %76, %cst_21 [0] : vector<8x256xf32> to vector<256xf32>
    %78 = vector.shape_cast %77 : vector<256xf32> to vector<1x256xf32>
    %cst_22 = arith.constant 8.000000e+00 : f32
    %79 = vector.broadcast %cst_22 : f32 to vector<1x256xf32>
    %80 = arith.divf %78, %79 : vector<1x256xf32>
    %81 = vector.broadcast %73 : vector<1x256xf32> to vector<8x256xf32>
    %82 = arith.subf %69, %81 : vector<8x256xf32>
    %cst_23 = arith.constant 9.99999974E-6 : f32
    %83 = vector.broadcast %cst_23 : f32 to vector<1x256xf32>
    %84 = arith.addf %80, %83 : vector<1x256xf32>
    %85 = math.rsqrt %84 : vector<1x256xf32>
    %86 = vector.broadcast %85 : vector<1x256xf32> to vector<8x256xf32>
    %87 = arith.mulf %82, %86 : vector<8x256xf32>
    %c0_24 = arith.constant 0 : index
    %c0_25 = arith.constant 0 : index
    %c0_26 = arith.constant 0 : index
    %88 = vector.load %arg4[%c0_24, %c0_25, %c0_26] : memref<1x8x1xf32, #tpu.memory_space<vmem>>, vector<1x8x1xf32>
    %89 = vector.shape_cast %88 : vector<1x8x1xf32> to vector<8x1xf32>
    %cst_27 = arith.constant 1.000000e+00 : f32
    %90 = vector.broadcast %cst_27 : f32 to vector<8x1xf32>
    %91 = arith.addf %89, %90 : vector<8x1xf32>
    %92 = vector.broadcast %91 : vector<8x1xf32> to vector<8x256xf32>
    %93 = arith.mulf %87, %92 : vector<8x256xf32>
    %c0_28 = arith.constant 0 : index
    %c0_29 = arith.constant 0 : index
    %c0_30 = arith.constant 0 : index
    %94 = vector.load %arg5[%c0_28, %c0_29, %c0_30] : memref<1x8x1xf32, #tpu.memory_space<vmem>>, vector<1x8x1xf32>
    %95 = vector.shape_cast %94 : vector<1x8x1xf32> to vector<8x1xf32>
    %96 = vector.broadcast %95 : vector<8x1xf32> to vector<8x256xf32>
    %97 = arith.addf %93, %96 : vector<8x256xf32>
    %cst_31 = arith.constant 0.000000e+00 : f32
    %98 = vector.broadcast %cst_31 : f32 to vector<8x256xf32>
    %99 = arith.cmpf ogt, %97, %98 : vector<8x256xf32>
    %cst_32 = arith.constant 0.00999999977 : f32
    %100 = vector.broadcast %cst_32 : f32 to vector<8x256xf32>
    %101 = arith.mulf %100, %97 : vector<8x256xf32>
    %102 = arith.select %99, %97, %101 : vector<8x256xi1>, vector<8x256xf32>
    %103 = vector.shape_cast %102 : vector<8x256xf32> to vector<1x8x256xf32>
    %c0_33 = arith.constant 0 : index
    %c0_34 = arith.constant 0 : index
    %c0_35 = arith.constant 0 : index
    %104 = vector.load %arg6[%c0_33, %c0_34, %c0_35] : memref<1x8x256xf32, #tpu.memory_space<vmem>>, vector<1x8x256xf32>
    tpu.vector_store %arg6[%c0_33, %c0_34, %c0_35], %103 {strides = array<i32>} : memref<1x8x256xf32, #tpu.memory_space<vmem>>, vector<1x8x256xf32>,
    return
  }
  func.func @transform_0(%arg0: i32) -> (i32, i32, i32, i32, i32) {
    %c0_i32 = arith.constant 0 : i32
    %c0_i32_0 = arith.constant 0 : i32
    %c0_i32_1 = arith.constant 0 : i32
    %c0_i32_2 = arith.constant 0 : i32
    %c0_i32_3 = arith.constant 0 : i32
    return %arg0, %c0_i32, %c0_i32_0, %c0_i32_1, %c0_i32_2 : i32, i32, i32, i32, i32
  }
  func.func @transform_1(%arg0: i32) -> (i32, i32) {
    %c0_i32 = arith.constant 0 : i32
    %c0_i32_0 = arith.constant 0 : i32
    %c0_i32_1 = arith.constant 0 : i32
    return %c0_i32, %c0_i32_0 : i32, i32
  }
  func.func @transform_2(%arg0: i32) -> (i32, i32) {
    %c0_i32 = arith.constant 0 : i32
    %c0_i32_0 = arith.constant 0 : i32
    %c0_i32_1 = arith.constant 0 : i32
    return %c0_i32, %c0_i32_0 : i32, i32
  }
  func.func @transform_3(%arg0: i32) -> (i32, i32, i32) {
    %c0_i32 = arith.constant 0 : i32
    %c0_i32_0 = arith.constant 0 : i32
    %c0_i32_1 = arith.constant 0 : i32
    return %arg0, %c0_i32, %c0_i32_0 : i32, i32, i32
  }
  func.func @transform_4(%arg0: i32) -> (i32, i32, i32) {
    %c0_i32 = arith.constant 0 : i32
    %c0_i32_0 = arith.constant 0 : i32
    %c0_i32_1 = arith.constant 0 : i32
    return %arg0, %c0_i32, %c0_i32_0 : i32, i32, i32
  }
  func.func @transform_5(%arg0: i32) -> (i32, i32, i32) {
    %c0_i32 = arith.constant 0 : i32
    %c0_i32_0 = arith.constant 0 : i32
    %c0_i32_1 = arith.constant 0 : i32
    return %arg0, %c0_i32, %c0_i32_0 : i32, i32, i32
  }
}

</mosaic_0001>

<bundles_post_ra>
// kernel: tpu_custom_call.1
= control target key start
LH: loop header
LB: loop body
LE: loop exit
PB: predicated region body
PF: predicated region fallthrough
CT: control target
= control target key end

     0   :  { %10 = vsyncpa [#allocation4], 0  ;;  %s12986_s0 = inlined_call_operand.vmem [shape: bf16[2,4,8,8,4], index: 0, kind: input, shape index: {}]   ;;  %s12987_s1 = inlined_call_operand.vmem [shape: bf16[8,108], index: 1, kind: input, shape index: {}]   ;;  %s12988_s2 = inlined_call_operand.vmem [shape: f32[8,1], index: 2, kind: input, shape index: {}]   ;;  %s12989_s3 = inlined_call_operand.vmem [shape: f32[2,8,1], index: 3, kind: input, shape index: {}]   ;;  %s12990_s4 = inlined_call_operand.vmem [shape: f32[2,8,1], index: 4, kind: input, shape index: {}]   ;;  %s12991_s5 = inlined_call_operand.hbm [shape: f32[2,8,256], index: 5, kind: output, shape index: {}]  }
   0x1   :  { %12 = vsyncpa [#allocation4 + $0x1], 0  ;;  %s7361_s18 = smov 0   ;;  %s7363_s19 = smov 0  }
   0x2   :  { %s7365_s20 = smov 0   ;;  %s7367_s21 = smov 0  }
   0x3 LB: > { %s7382_s22 = sadd.s32 4294967295, %s7310_s21   ;;  %s4977_s23 = sadd.s32 4294967294, %s7310_s21   ;;  %s7310_s21 = sphi %s7367_s21, %s14919_s21   ;;  %s7306_s20 = sphi %s7365_s20, %s14918_s20   ;;  %s7302_s19 = sphi %s7363_s19, %s14917_s19   ;;  %s7298_s18 = sphi %s7361_s18, %s14916_s18  }
   0x4   : > { %s7386_s24 = sadd.s32 1, %s7310_s21   ;;  %s145_s25 = sadd.s32 1, %s7306_s20 }
   0x5   : > { %s142_s26 = ssub.s32 %s7310_s21, %s7386_s24  ;;  %p155_p0 = scmp.ne.s32.totalorder %s7306_s20, %s7302_s19 }
   0x6   : > { %p143_p1 = scmp.eq.s32.totalorder %s142_s26, 0  ;;  %p156_p2 = scmp.eq.s32.totalorder %s7382_s22, 1 }
   0x7   : > { %p161_p3 = scmp.ne.s32.totalorder %s7302_s19, %s7298_s18  ;;  %p162_p4 = scmp.eq.s32.totalorder %s4977_s23, 1 }
   0x8   : > { %s7397_s27 = scalar_select %p143_p1, %s7306_s20, %s145_s25  }
   0x9   : > { %p7399_p5 = por %p156_p2, %p155_p0  ;;  %p7403_p6 = por %p162_p4, %p161_p3 }
   0xa   : > { %p4980_p7 = scmp.ge.s32.totalorder %s7310_s21, 1  ;;  %p208_p8 = scmp.lt.s32.totalorder %s7310_s21, 3 }
   0xc   : > { %p209_p9 = pnand %p4980_p7, %p208_p8 }
   0xe   : > { %212 = sbr.rel (%p209_p9) target bundleno = 1433 (0x599), region = 40 }
  0x15   : > { %vm258_vm0 = vcmask 31744   ;;  %vm260_vm1 = vcmask 27648   ;;  %p244_p10 = scmp.lt.s32.totalorder %s7382_s22, 1  ;;  %v7312_v0 = vmov 0.0   ;;  %vm790_vm2 = vcmask 1045504   ;;  %s7313_s10 = smov 4  }
  0x16   : > { %268 = vst.msk [vmem:[#allocation2 + $0x40] sm:$0xff] %vm258_vm0, %v7312_v0  ;;  %270 = vst.msk [vmem:[#allocation2 + $0x50] sm:$0xff] %vm258_vm0, %v7312_v0  ;;  %vm887_vm3 = vcmask 1044480   ;;  %s7314_s11 = smov 8   ;;  %vm661_vm4 = vcmask 1046528   ;;  %s7315_s12 = smov 12  }
  0x17   : > { %269 = vst.msk [vmem:[#allocation2 + $0x48] sm:$0xf] %vm260_vm1, %v7312_v0  ;;  %271 = vst.msk [vmem:[#allocation2 + $0x58] sm:$0xf] %vm260_vm1, %v7312_v0  ;;  %s7653_s30 = scalar_select %p244_p10, %s7382_s22, 1  ;;  %vm2796_vm5 = vcmask 64512  }
  0x18   : > { %259 = vst.msk [vmem:[#allocation2] sm:$0xff] %vm258_vm0, %v7312_v0  ;;  %262 = vst.msk [vmem:[#allocation2 + $0x10] sm:$0xff] %vm258_vm0, %v7312_v0  ;;  %s7316_s13 = smov 16   ;;  %s7317_s14 = smov 20   ;;  %vm2829_vm6 = vcmask 97280   ;;  %vm2862_vm7 = vcmask 130048  }
  0x19   : > { %261 = vst.msk [vmem:[#allocation2 + $0x8] sm:$0xf] %vm260_vm1, %v7312_v0  ;;  %263 = vst.msk [vmem:[#allocation2 + $0x18] sm:$0xf] %vm260_vm1, %v7312_v0  ;;  %s4992_s6 = sshll.u32 %s7653_s30, 7  ;;  %s7318_s15 = smov 24  }
  0x1a   : > { %264 = vst.msk [vmem:[#allocation2 + $0x20] sm:$0xff] %vm258_vm0, %v7312_v0  ;;  %266 = vst.msk [vmem:[#allocation2 + $0x30] sm:$0xff] %vm258_vm0, %v7312_v0  ;;  %s7659_s9 = scalar_lea.vmem %s12986_s0, %s4992_s6  ;;  %s7319_s16 = smov 28   ;;  %vm2895_vm8 = vcmask 162816   ;;  %vm2928_vm9 = vcmask 195584   ;;  %vm2961_vm10 = vcmask 228352  }
  0x1b   : > { %265 = vst.msk [vmem:[#allocation2 + $0x28] sm:$0xf] %vm260_vm1, %v7312_v0  ;;  %267 = vst.msk [vmem:[#allocation2 + $0x38] sm:$0xf] %vm260_vm1, %v7312_v0  ;;  %v4995_v1 = vld [vmem:[%s7659_s9] sm:$0xff]   ;;  %v5058_v2 = vld [vmem:[%s7659_s9 + $0x8] sm:$0xff]  }
  0x1c   : > { %272 = vst.msk [vmem:[#allocation2 + $0x60] sm:$0xff] %vm258_vm0, %v7312_v0  ;;  %274 = vst.msk [vmem:[#allocation2 + $0x70] sm:$0xff] %vm258_vm0, %v7312_v0  ;;  %v5059_v3 = vld [vmem:[%s7659_s9 + $0x10] sm:$0xff]   ;;  %v4997_v4 = vunpack.c.h.bf16 %v4995_v1  ;;  %v5000_v5 = vunpack.c.l.bf16 %v5058_v2  ;;  %v4996_v6 = vunpack.c.l.bf16 %v4995_v1  ;;  %v5060_v8 = vld [vmem:[%s7659_s9 + $0x18] sm:$0xff]   ;;  %v5001_v15 = vunpack.c.h.bf16 %v5058_v2  ;;  %s7320_s17 = smov 32   ;;  %s7321_s23 = smov 36  }
  0x1d   : > { %273 = vst.msk [vmem:[#allocation2 + $0x68] sm:$0xf] %vm260_vm1, %v7312_v0  ;;  %275 = vst.msk [vmem:[#allocation2 + $0x78] sm:$0xf] %vm260_vm1, %v7312_v0  ;;  %v5005_v7 = vunpack.c.h.bf16 %v5059_v3  ;;  %v5061_v9 = vld [vmem:[%s7659_s9 + $0x20] sm:$0xff]   ;;  %v5062_v10 = vld [vmem:[%s7659_s9 + $0x28] sm:$0xff]   ;;  %v5008_v14 = vunpack.c.l.bf16 %v5060_v8  ;;  %v5004_v16 = vunpack.c.l.bf16 %v5059_v3  ;;  %v5009_v30 = vunpack.c.h.bf16 %v5060_v8 }
  0x1e   : > { %276 = vst.msk [vmem:[#allocation2 + $0x80] sm:$0xff] %vm258_vm0, %v7312_v0  ;;  %278 = vst.msk [vmem:[#allocation2 + $0x90] sm:$0xff] %vm258_vm0, %v7312_v0  ;;  %v7667_v11 = vld [vmem:[#allocation2 + $0x40] sm:$0xff]  ;;  %v7669_v12 = vld [vmem:[#allocation2 + $0x48] sm:$0xf]  ;;  %v5013_v17 = vunpack.c.h.bf16 %v5061_v9  ;;  %v5016_v23 = vunpack.c.l.bf16 %v5062_v10  ;;  %v5012_v28 = vunpack.c.l.bf16 %v5061_v9  ;;  %v5017_v29 = vunpack.c.h.bf16 %v5062_v10  ;;  %s7322_s25 = smov 40  }
  0x1f   : > { %277 = vst.msk [vmem:[#allocation2 + $0x88] sm:$0xf] %vm260_vm1, %v7312_v0  ;;  %279 = vst.msk [vmem:[#allocation2 + $0x98] sm:$0xf] %vm260_vm1, %v7312_v0  ;;  %v7671_v13 = vld [vmem:[#allocation2 + $0x50] sm:$0xff]  ;;  %v803_v19 = vrot.slane %v7667_v11, 2 }
  0x20   : > { %280 = vst.msk [vmem:[#allocation2 + $0xa0] sm:$0xff] %vm258_vm0, %v7312_v0  ;;  %282 = vst.msk [vmem:[#allocation2 + $0xb0] sm:$0xff] %vm258_vm0, %v7312_v0  ;;  %v7673_v18 = vld [vmem:[#allocation2 + $0x58] sm:$0xf]  ;;  %v804_v20 = vrot.slane %v7669_v12, 2  ;;  %v806_v21 = vrot.slane %v7671_v13, 2 }
  0x21   : > { %281 = vst.msk [vmem:[#allocation2 + $0xa8] sm:$0xf] %vm260_vm1, %v7312_v0  ;;  %283 = vst.msk [vmem:[#allocation2 + $0xb8] sm:$0xf] %vm260_vm1, %v7312_v0  ;;  %v7678_v22 = vld [vmem:[#allocation2 + $0x10] sm:$0xff]  ;;  %v807_v24 = vrot.slane %v7673_v18, 2 }
  0x22   : > { %284 = vst.msk [vmem:[#allocation2 + $0xc0] sm:$0xff] %vm258_vm0, %v7312_v0  ;;  %286 = vst.msk [vmem:[#allocation2 + $0xd0] sm:$0xff] %vm258_vm0, %v7312_v0  ;;  %v7685_v25 = vld [vmem:[#allocation2 + $0x8] sm:$0xf]  ;;  %v7687_v26 = vld [vmem:[#allocation2 + $0x18] sm:$0xf]  ;;  %v7696_v31 = vsel %vm790_vm2, %v803_v19, %v804_v20 }
  0x23   : > { %285 = vst.msk [vmem:[#allocation2 + $0xc8] sm:$0xf] %vm260_vm1, %v7312_v0  ;;  %287 = vst.msk [vmem:[#allocation2 + $0xd8] sm:$0xf] %vm260_vm1, %v7312_v0  ;;  %v7689_v27 = vld [vmem:[#allocation2 + $0x20] sm:$0xff]  ;;  %v792_v33 = vrot.slane %v7685_v25, 2  ;;  %v7706_v36 = vsel %vm790_vm2, %v806_v21, %v807_v24 }
  0x24   : > { %288 = vst.msk [vmem:[#allocation2 + $0xe0] sm:$0xff] %vm258_vm0, %v7312_v0  ;;  %290 = vst.msk [vmem:[#allocation2 + $0xf0] sm:$0xff] %vm258_vm0, %v7312_v0  ;;  %v7698_v32 = vld [vmem:[#allocation2 + $0x28] sm:$0xf]  ;;  %v794_v34 = vrot.slane %v7678_v22, 2  ;;  %v7702_v35 = vld [vmem:[#allocation2] sm:$0xff]  ;;  %v7720_v42 = vpack.i.bf16 %v7706_v36, %v7696_v31 }
  0x25   : > { %289 = vst.msk [vmem:[#allocation2 + $0xe8] sm:$0xf] %vm260_vm1, %v7312_v0  ;;  %291 = vst.msk [vmem:[#allocation2 + $0xf8] sm:$0xf] %vm260_vm1, %v7312_v0  ;;  %v795_v37 = vrot.slane %v7687_v26, 2  ;;  %v797_v38 = vrot.slane %v7689_v27, 2 }
  0x26   : > { %292 = vst.msk [vmem:[#allocation2 + $0x100] sm:$0xff] %vm258_vm0, %v7312_v0  ;;  %294 = vst.msk [vmem:[#allocation2 + $0x110] sm:$0xff] %vm258_vm0, %v7312_v0  ;;  %v798_v39 = vrot.slane %v7698_v32, 2  ;;  %v7711_v40 = vld [vmem:[#allocation2 + $0x60] sm:$0xff]  ;;  %v7713_v41 = vld [vmem:[#allocation2 + $0x68] sm:$0xf]  ;;  %5167 = vrot.lane.b32.xlu1 %v7720_v42, %s7313_s10 }
  0x27   : > { %293 = vst.msk [vmem:[#allocation2 + $0x108] sm:$0xf] %vm260_vm1, %v7312_v0  ;;  %295 = vst.msk [vmem:[#allocation2 + $0x118] sm:$0xf] %vm260_vm1, %v7312_v0  ;;  %v791_v43 = vrot.slane %v7702_v35, 2  ;;  %v7723_v44 = vld [vmem:[#allocation2 + $0x70] sm:$0xff]  ;;  %v7729_v47 = vsel %vm790_vm2, %v794_v34, %v795_v37 }
  0x28   : > { %296 = vst.msk [vmem:[#allocation2 + $0x120] sm:$0xff] %vm258_vm0, %v7312_v0  ;;  %298 = vst.msk [vmem:[#allocation2 + $0x130] sm:$0xff] %vm258_vm0, %v7312_v0  ;;  %v7725_v45 = vld [vmem:[#allocation2 + $0x78] sm:$0xf]  ;;  %v809_v46 = vrot.slane %v7711_v40, 2  ;;  %v810_v48 = vrot.slane %v7713_v41, 2  ;;  %v7747_v57 = vsel %vm790_vm2, %v797_v38, %v798_v39 }
  0x29   : > { %297 = vst.msk [vmem:[#allocation2 + $0x128] sm:$0xf] %vm260_vm1, %v7312_v0  ;;  %299 = vst.msk [vmem:[#allocation2 + $0x138] sm:$0xf] %vm260_vm1, %v7312_v0  ;;  %v812_v49 = vrot.slane %v7723_v44, 2  ;;  %v7733_v50 = vld [vmem:[#allocation2 + $0x30] sm:$0xff]  ;;  %v793_v52 = vsel %vm790_vm2, %v791_v43, %v792_v33 }
  0x2a   : > { %300 = vst.msk [vmem:[#allocation2 + $0x140] sm:$0xff] %vm258_vm0, %v7312_v0  ;;  %302 = vst.msk [vmem:[#allocation2 + $0x150] sm:$0xff] %vm258_vm0, %v7312_v0  ;;  %v7735_v51 = vld [vmem:[#allocation2 + $0x38] sm:$0xf]  ;;  %v813_v53 = vrot.slane %v7725_v45, 2  ;;  %v800_v54 = vrot.slane %v7733_v50, 2  ;;  %v5156_v58 = vpack.i.bf16 %v7729_v47, %v793_v52  ;;  %v7751_v59 = vsel %vm790_vm2, %v809_v46, %v810_v48 }
  0x2b   : > { %301 = vst.msk [vmem:[#allocation2 + $0x148] sm:$0xf] %vm260_vm1, %v7312_v0  ;;  %303 = vst.msk [vmem:[#allocation2 + $0x158] sm:$0xf] %vm260_vm1, %v7312_v0  ;;  %v7742_v55 = vld [vmem:[#allocation2 + $0xa0] sm:$0xff]  ;;  %v801_v60 = vrot.slane %v7735_v51, 2 }
  0x2c   : > { %304 = vst.msk [vmem:[#allocation2 + $0x160] sm:$0xff] %vm258_vm0, %v7312_v0  ;;  %306 = vst.msk [vmem:[#allocation2 + $0x170] sm:$0xff] %vm258_vm0, %v7312_v0  ;;  %v7744_v56 = vld [vmem:[#allocation2 + $0xa8] sm:$0xf]  ;;  %5157 = vrot.lane.b32.xlu0 %v5156_v58, %s7313_s10  ;;  %s7323_s26 = smov 44   ;;  %s7324_s6 = smov 48  }
  0x2d   : > { %305 = vst.msk [vmem:[#allocation2 + $0x168] sm:$0xf] %vm260_vm1, %v7312_v0  ;;  %307 = vst.msk [vmem:[#allocation2 + $0x178] sm:$0xf] %vm260_vm1, %v7312_v0  ;;  %v816_v19 = vrot.slane %v7744_v56, 2  ;;  %s7325_s7 = smov 52  }
  0x2e   : > { %308 = vst.msk [vmem:[#allocation2 + $0x180] sm:$0xff] %vm258_vm0, %v7312_v0  ;;  %310 = vst.msk [vmem:[#allocation2 + $0x190] sm:$0xff] %vm258_vm0, %v7312_v0  ;;  %s7326_s8 = smov 56   ;;  %vm2994_vm11 = vcmask 261120   ;;  %vm13633_vm12 = vcmask 293888   ;;  %vm13632_vm13 = vcmask 326656  }
  0x2f   : > { %309 = vst.msk [vmem:[#allocation2 + $0x188] sm:$0xf] %vm260_vm1, %v7312_v0  ;;  %311 = vst.msk [vmem:[#allocation2 + $0x198] sm:$0xf] %vm260_vm1, %v7312_v0  ;;  %vm13631_vm14 = vcmask 359424   ;;  %vm13634_vm15 = vcmask 392192  }
  0x30   : > { %312 = vst.msk [vmem:[#allocation2 + $0x1a0] sm:$0xff] %vm258_vm0, %v7312_v0  ;;  %314 = vst.msk [vmem:[#allocation2 + $0x1b0] sm:$0xff] %vm258_vm0, %v7312_v0 }
  0x31   : > { %313 = vst.msk [vmem:[#allocation2 + $0x1a8] sm:$0xf] %vm260_vm1, %v7312_v0  ;;  %315 = vst.msk [vmem:[#allocation2 + $0x1b8] sm:$0xf] %vm260_vm1, %v7312_v0 }
  0x32   : > { %316 = vst.msk [vmem:[#allocation2 + $0x1c0] sm:$0xff] %vm258_vm0, %v7312_v0  ;;  %318 = vst.msk [vmem:[#allocation2 + $0x1d0] sm:$0xff] %vm258_vm0, %v7312_v0 }
  0x33   : > { %317 = vst.msk [vmem:[#allocation2 + $0x1c8] sm:$0xf] %vm260_vm1, %v7312_v0  ;;  %319 = vst.msk [vmem:[#allocation2 + $0x1d8] sm:$0xf] %vm260_vm1, %v7312_v0 }
  0x34   : > { %320 = vst.msk [vmem:[#allocation2 + $0x1e0] sm:$0xff] %vm258_vm0, %v7312_v0  ;;  %322 = vst.msk [vmem:[#allocation2 + $0x1f0] sm:$0xff] %vm258_vm0, %v7312_v0 }
  0x35   : > { %321 = vst.msk [vmem:[#allocation2 + $0x1e8] sm:$0xf] %vm260_vm1, %v7312_v0  ;;  %323 = vst.msk [vmem:[#allocation2 + $0x1f8] sm:$0xf] %vm260_vm1, %v7312_v0 }
  0x36   : > { %324 = vst.msk [vmem:[#allocation2 + $0x200] sm:$0xff] %vm258_vm0, %v7312_v0  ;;  %326 = vst.msk [vmem:[#allocation2 + $0x210] sm:$0xff] %vm258_vm0, %v7312_v0 }
  0x37   : > { %325 = vst.msk [vmem:[#allocation2 + $0x208] sm:$0xf] %vm260_vm1, %v7312_v0  ;;  %327 = vst.msk [vmem:[#allocation2 + $0x218] sm:$0xf] %vm260_vm1, %v7312_v0 }
  0x38   : > { %328 = vst.msk [vmem:[#allocation2 + $0x220] sm:$0xff] %vm258_vm0, %v7312_v0  ;;  %330 = vst.msk [vmem:[#allocation2 + $0x230] sm:$0xff] %vm258_vm0, %v7312_v0 }
  0x39   : > { %329 = vst.msk [vmem:[#allocation2 + $0x228] sm:$0xf] %vm260_vm1, %v7312_v0  ;;  %331 = vst.msk [vmem:[#allocation2 + $0x238] sm:$0xf] %vm260_vm1, %v7312_v0 }
  0x3a   : > { %332 = vst.msk [vmem:[#allocation2 + $0x240] sm:$0xff] %vm258_vm0, %v7312_v0  ;;  %334 = vst.msk [vmem:[#allocation2 + $0x250] sm:$0xff] %vm258_vm0, %v7312_v0 }
  0x3b   : > { %333 = vst.msk [vmem:[#allocation2 + $0x248] sm:$0xf] %vm260_vm1, %v7312_v0  ;;  %335 = vst.msk [vmem:[#allocation2 + $0x258] sm:$0xf] %vm260_vm1, %v7312_v0 }
  0x3c   : > { %336 = vst.msk [vmem:[#allocation2 + $0x260] sm:$0xff] %vm258_vm0, %v7312_v0  ;;  %338 = vst.msk [vmem:[#allocation2 + $0x270] sm:$0xff] %vm258_vm0, %v7312_v0 }
  0x3d   : > { %337 = vst.msk [vmem:[#allocation2 + $0x268] sm:$0xf] %vm260_vm1, %v7312_v0  ;;  %339 = vst.msk [vmem:[#allocation2 + $0x278] sm:$0xf] %vm260_vm1, %v7312_v0 }
  0x3e   : > { %340 = vst.msk [vmem:[#allocation2 + $0x280] sm:$0xff] %vm258_vm0, %v7312_v0  ;;  %342 = vst.msk [vmem:[#allocation2 + $0x290] sm:$0xff] %vm258_vm0, %v7312_v0 }
  0x3f   : > { %341 = vst.msk [vmem:[#allocation2 + $0x288] sm:$0xf] %vm260_vm1, %v7312_v0  ;;  %343 = vst.msk [vmem:[#allocation2 + $0x298] sm:$0xf] %vm260_vm1, %v7312_v0 }
  0x40   : > { %344 = vst.msk [vmem:[#allocation2 + $0x2a0] sm:$0xff] %vm258_vm0, %v7312_v0  ;;  %346 = vst.msk [vmem:[#allocation2 + $0x2b0] sm:$0xff] %vm258_vm0, %v7312_v0 }
  0x41   : > { %345 = vst.msk [vmem:[#allocation2 + $0x2a8] sm:$0xf] %vm260_vm1, %v7312_v0  ;;  %347 = vst.msk [vmem:[#allocation2 + $0x2b8] sm:$0xf] %vm260_vm1, %v7312_v0 }
  0x42   : > { %348 = vst.msk [vmem:[#allocation2 + $0x2c0] sm:$0xff] %vm258_vm0, %v7312_v0  ;;  %350 = vst.msk [vmem:[#allocation2 + $0x2d0] sm:$0xff] %vm258_vm0, %v7312_v0 }
  0x43   : > { %349 = vst.msk [vmem:[#allocation2 + $0x2c8] sm:$0xf] %vm260_vm1, %v7312_v0  ;;  %351 = vst.msk [vmem:[#allocation2 + $0x2d8] sm:$0xf] %vm260_vm1, %v7312_v0 }
  0x44   : > { %352 = vst.msk [vmem:[#allocation2 + $0x2e0] sm:$0xff] %vm258_vm0, %v7312_v0  ;;  %354 = vst.msk [vmem:[#allocation2 + $0x2f0] sm:$0xff] %vm258_vm0, %v7312_v0 }
  0x45   : > { %353 = vst.msk [vmem:[#allocation2 + $0x2e8] sm:$0xf] %vm260_vm1, %v7312_v0  ;;  %355 = vst.msk [vmem:[#allocation2 + $0x2f8] sm:$0xf] %vm260_vm1, %v7312_v0 }
  0x46   : > { %356 = vst.msk [vmem:[#allocation2 + $0x300] sm:$0xff] %vm258_vm0, %v7312_v0  ;;  %358 = vst.msk [vmem:[#allocation2 + $0x310] sm:$0xff] %vm258_vm0, %v7312_v0 }
  0x47   : > { %357 = vst.msk [vmem:[#allocation2 + $0x308] sm:$0xf] %vm260_vm1, %v7312_v0  ;;  %359 = vst.msk [vmem:[#allocation2 + $0x318] sm:$0xf] %vm260_vm1, %v7312_v0 }
  0x48   : > { %360 = vst.msk [vmem:[#allocation2 + $0x320] sm:$0xff] %vm258_vm0, %v7312_v0  ;;  %362 = vst.msk [vmem:[#allocation2 + $0x330] sm:$0xff] %vm258_vm0, %v7312_v0 }
  0x49   : > { %361 = vst.msk [vmem:[#allocation2 + $0x328] sm:$0xf] %vm260_vm1, %v7312_v0  ;;  %363 = vst.msk [vmem:[#allocation2 + $0x338] sm:$0xf] %vm260_vm1, %v7312_v0 }
  0x4a   : > { %364 = vst.msk [vmem:[#allocation2 + $0x340] sm:$0xff] %vm258_vm0, %v7312_v0  ;;  %366 = vst.msk [vmem:[#allocation2 + $0x350] sm:$0xff] %vm258_vm0, %v7312_v0 }
  0x4b   : > { %365 = vst.msk [vmem:[#allocation2 + $0x348] sm:$0xf] %vm260_vm1, %v7312_v0  ;;  %367 = vst.msk [vmem:[#allocation2 + $0x358] sm:$0xf] %vm260_vm1, %v7312_v0 }
  0x4c   : > { %368 = vst.msk [vmem:[#allocation2 + $0x360] sm:$0xff] %vm258_vm0, %v7312_v0  ;;  %370 = vst.msk [vmem:[#allocation2 + $0x370] sm:$0xff] %vm258_vm0, %v7312_v0 }
  0x4d   : > { %369 = vst.msk [vmem:[#allocation2 + $0x368] sm:$0xf] %vm260_vm1, %v7312_v0  ;;  %371 = vst.msk [vmem:[#allocation2 + $0x378] sm:$0xf] %vm260_vm1, %v7312_v0 }
  0x4e   : > { %372 = vst.msk [vmem:[#allocation2 + $0x380] sm:$0xff] %vm258_vm0, %v7312_v0  ;;  %374 = vst.msk [vmem:[#allocation2 + $0x390] sm:$0xff] %vm258_vm0, %v7312_v0 }
  0x4f   : > { %373 = vst.msk [vmem:[#allocation2 + $0x388] sm:$0xf] %vm260_vm1, %v7312_v0  ;;  %375 = vst.msk [vmem:[#allocation2 + $0x398] sm:$0xf] %vm260_vm1, %v7312_v0 }
  0x50   : > { %376 = vst.msk [vmem:[#allocation2 + $0x3a0] sm:$0xff] %vm258_vm0, %v7312_v0  ;;  %378 = vst.msk [vmem:[#allocation2 + $0x3b0] sm:$0xff] %vm258_vm0, %v7312_v0 }
  0x51   : > { %377 = vst.msk [vmem:[#allocation2 + $0x3a8] sm:$0xf] %vm260_vm1, %v7312_v0  ;;  %379 = vst.msk [vmem:[#allocation2 + $0x3b8] sm:$0xf] %vm260_vm1, %v7312_v0  ;;  %v7761_v0 = vsel %vm790_vm2, %v812_v49, %v813_v53  ;;  %v7823_v49 = vld [vmem:[#allocation2 + $0x140] sm:$0xff]  ;;  %vm13521_vm1 = vcmask 424960  }
  0x52   : > { %13637 = vst [vmem:[#allocation6_spill] sm:$0xff] %v7671_v13  ;;  %13638 = vst [vmem:[#allocation7_spill] sm:$0xff] %v7673_v18 }
  0x53   : > { %446 = vst.msk [vmem:[#allocation2 + $0xc2] sm:$0xff] %vm258_vm0, %v4997_v4  ;;  %447 = vst.msk [vmem:[#allocation2 + $0xd2] sm:$0xff] %vm258_vm0, %v5000_v5 }
  0x54   : > { %445 = vst.msk [vmem:[#allocation2 + $0xb2] sm:$0xff] %vm258_vm0, %v4996_v6  ;;  %450 = vst.msk [vmem:[#allocation2 + $0x102] sm:$0xff] %vm258_vm0, %v5005_v7  ;;  %v7773_v6 = vpack.i.bf16 %v7761_v0, %v7751_v59  ;;  %v7776_v7 = vsel %vm790_vm2, %v800_v54, %v801_v60 }
  0x55   : > { %13639 = vst [vmem:[#allocation8_spill] sm:$0xff] %v7685_v25  ;;  %13640 = vst [vmem:[#allocation9_spill] sm:$0xff] %v7689_v27 }
  0x56   : > { %451 = vst.msk [vmem:[#allocation2 + $0x112] sm:$0xff] %vm258_vm0, %v5008_v14  ;;  %448 = vst.msk [vmem:[#allocation2 + $0xe2] sm:$0xff] %vm258_vm0, %v5001_v15  ;;  %v7787_v15 = vpack.i.bf16 %v7776_v7, %v7747_v57  ;;  %5172 = vrot.lane.b32.xlu1 %v7773_v6, %s7313_s10 }
  0x57   : > { %449 = vst.msk [vmem:[#allocation2 + $0xf2] sm:$0xff] %vm258_vm0, %v5004_v16  ;;  %454 = vst.msk [vmem:[#allocation2 + $0x162] sm:$0xff] %vm258_vm0, %v5013_v17  ;;  %v815_v17 = vrot.slane %v7742_v55, 2 }
  0x58   : > { %13641 = vst [vmem:[#allocation10_spill] sm:$0xff] %v7696_v31  ;;  %13642 = vst [vmem:[#allocation11_spill] sm:$0xff] %v7698_v32  ;;  %5162 = vrot.lane.b32.xlu0 %v7787_v15, %s7313_s10 }
  0x59   : > { %13643 = vst [vmem:[#allocation12_spill] sm:$0xff] %v7702_v35  ;;  %455 = vst.msk [vmem:[#allocation2 + $0x172] sm:$0xff] %vm258_vm0, %v5016_v23  ;;  %v817_v37 = vsel %vm790_vm2, %v815_v17, %v816_v19  ;;  %v7846_v19 = vld [vmem:[#allocation2 + $0x148] sm:$0xf] }
  0x5a   : > { %13644 = vst [vmem:[#allocation13_spill] sm:$0xff] %v7706_v36  ;;  %453 = vst.msk [vmem:[#allocation2 + $0x152] sm:$0xff] %vm258_vm0, %v5012_v28  ;;  %v7754_v61 = vld [vmem:[#allocation2 + $0xc0] sm:$0xff]  ;;  %v7756_v62 = vld [vmem:[#allocation2 + $0xc8] sm:$0xf] }
  0x5b   : > { %456 = vst.msk [vmem:[#allocation2 + $0x182] sm:$0xff] %vm258_vm0, %v5017_v29  ;;  %452 = vst.msk [vmem:[#allocation2 + $0x122] sm:$0xff] %vm258_vm0, %v5009_v30  ;;  %v7758_v63 = vld [vmem:[#allocation2 + $0xd0] sm:$0xff]  ;;  %v7763_v1 = vld [vmem:[#allocation2 + $0xd8] sm:$0xf]  ;;  %v821_v2 = vrot.slane %v7754_v61, 2 }
  0x5c   : > { %13645 = vst [vmem:[#allocation14_spill] sm:$0xff] %v7720_v42  ;;  %13646 = vst [vmem:[#allocation15_spill] sm:$0xff] %v7729_v47  ;;  %v822_v3 = vrot.slane %v7756_v62, 2  ;;  %v824_v4 = vrot.slane %v7758_v63, 2  ;;  %v7768_v5 = vld [vmem:[#allocation2 + $0xb0] sm:$0xff]  ;;  %v825_v8 = vrot.slane %v7763_v1, 2 }
  0x5d   : > { %13647 = vst [vmem:[#allocation16_spill] sm:$0xff] %v7733_v50  ;;  %13648 = vst [vmem:[#allocation17_spill] sm:$0xff] %v7735_v51  ;;  %v7779_v9 = vld [vmem:[#allocation2 + $0xb8] sm:$0xf]  ;;  %v7781_v10 = vld [vmem:[#allocation2 + $0x100] sm:$0xff]  ;;  %v818_v24 = vrot.slane %v7768_v5, 2 }
  0x5e   : > { %13649 = vst [vmem:[#allocation18_spill] sm:$0xff] %v7742_v55  ;;  %13650 = vst [vmem:[#allocation19_spill] sm:$0xff] %v7744_v56  ;;  %v7783_v14 = vld [vmem:[#allocation2 + $0x110] sm:$0xff]  ;;  %v7790_v16 = vsel %vm790_vm2, %v821_v2, %v822_v3  ;;  %v7794_v20 = vld [vmem:[#allocation2 + $0x108] sm:$0xf]  ;;  %v7801_v23 = vsel %vm790_vm2, %v824_v4, %v825_v8  ;;  %v819_v28 = vrot.slane %v7779_v9, 2 }
  0x5f   : > { %13651 = vst [vmem:[#allocation20_spill] sm:$0xff] %v7747_v57  ;;  %13652 = vst [vmem:[#allocation21_spill] sm:$0xff] %v7751_v59  ;;  %v7796_v21 = vld [vmem:[#allocation2 + $0x118] sm:$0xf]  ;;  %v833_v29 = vrot.slane %v7781_v10, 2  ;;  %v7806_v30 = vld [vmem:[#allocation2 + $0xe0] sm:$0xff]  ;;  %v7812_v34 = vpack.i.bf16 %v7801_v23, %v7790_v16 }
  0x60   : > { %13653 = vst [vmem:[#allocation22_spill] sm:$0xff] %v7756_v62  ;;  %13654 = vst [vmem:[#allocation23_spill] sm:$0xff] %v7761_v0  ;;  %v7808_v33 = vld [vmem:[#allocation2 + $0xe8] sm:$0xf]  ;;  %v834_v38 = vrot.slane %v7794_v20, 2  ;;  %v836_v39 = vrot.slane %v7783_v14, 2  ;;  %v7828_v52 = vsel %vm790_vm2, %v818_v24, %v819_v28 }
  0x61   : > { %13655 = vst [vmem:[#allocation24_spill] sm:$0xff] %v7773_v6  ;;  %13656 = vst [vmem:[#allocation25_spill] sm:$0xff] %v7776_v7  ;;  %v7817_v43 = vld [vmem:[#allocation2 + $0xf0] sm:$0xff]  ;;  %v7819_v46 = vld [vmem:[#allocation2 + $0xf8] sm:$0xf]  ;;  %v837_v53 = vrot.slane %v7796_v21, 2  ;;  %v7838_v3 = vpack.i.bf16 %v7828_v52, %v817_v37  ;;  %5182 = vrot.lane.b32.xlu1 %v7812_v34, %s7313_s10 }
  0x62   : > { %13657 = vst [vmem:[#allocation26_spill] sm:$0xff] %v7781_v10  ;;  %13658 = vst [vmem:[#allocation27_spill] sm:$0xff] %v7787_v15  ;;  %v7821_v48 = vld [vmem:[#allocation2 + $0x160] sm:$0xff]  ;;  %v827_v54 = vrot.slane %v7806_v30, 2  ;;  %v828_v58 = vrot.slane %v7808_v33, 2  ;;  %v7835_v2 = vld [vmem:[#allocation2 + $0x170] sm:$0xff]  ;;  %v7841_v4 = vsel %vm790_vm2, %v833_v29, %v834_v38 }
  0x63   : > { %13659 = vst [vmem:[#allocation28_spill] sm:$0xff] %v7790_v16  ;;  %13660 = vst [vmem:[#allocation29_spill] sm:$0xff] %v7794_v20  ;;  %v7833_v60 = vld [vmem:[#allocation2 + $0x168] sm:$0xf]  ;;  %v830_v8 = vrot.slane %v7817_v43, 2  ;;  %v7848_v24 = vld [vmem:[#allocation2 + $0x150] sm:$0xff]  ;;  %v7853_v28 = vsel %vm790_vm2, %v836_v39, %v837_v53  ;;  %5177 = vrot.lane.b32.xlu0 %v7838_v3, %s7313_s10 }
  0x64   : > { %13661 = vst [vmem:[#allocation30_spill] sm:$0xff] %v7801_v23  ;;  %13662 = vst [vmem:[#allocation31_spill] sm:$0xff] %v7812_v34  ;;  %v7844_v17 = vld [vmem:[#allocation2 + $0x178] sm:$0xf]  ;;  %v7856_v37 = vsel %vm790_vm2, %v827_v54, %v828_v58  ;;  %v831_v29 = vrot.slane %v7819_v46, 2  ;;  %v845_v38 = vrot.slane %v7821_v48, 2  ;;  %v7864_v15 = vpack.i.bf16 %v7853_v28, %v7841_v4 }
  0x65   : > { %13663 = vst [vmem:[#allocation32_spill] sm:$0xff] %v7828_v52  ;;  %13664 = vst [vmem:[#allocation33_spill] sm:$0xff] %v7838_v3  ;;  %v7860_v6 = vld [vmem:[#allocation2 + $0x158] sm:$0xf]  ;;  %v846_v42 = vrot.slane %v7833_v60, 2  ;;  %v848_v34 = vrot.slane %v7835_v2, 2 }
  0x66   : > { %13665 = vst [vmem:[#allocation34_spill] sm:$0xff] %v7841_v4  ;;  %13666 = vst [vmem:[#allocation35_spill] sm:$0xff] %v7853_v28  ;;  %v849_v39 = vrot.slane %v7844_v17, 2  ;;  %v5063_v53 = vld [vmem:[%s7659_s9 + $0x30] sm:$0xff]   ;;  %v7871_v54 = vld [vmem:[%s7659_s9 + $0x38] sm:$0xff]   ;;  %v7876_v58 = vsel %vm790_vm2, %v830_v8, %v831_v29  ;;  %v839_v4 = vrot.slane %v7823_v49, 2  ;;  %5192 = vrot.lane.b32.xlu1 %v7864_v15, %s7313_s10 }
  0x67   : > { %13667 = vst [vmem:[#allocation36_spill] sm:$0xff] %v7856_v37  ;;  %13668 = vst [vmem:[#allocation37_spill] sm:$0xff] %v7864_v15  ;;  %v840_v28 = vrot.slane %v7846_v19, 2  ;;  %v842_v16 = vrot.slane %v7848_v24, 2  ;;  %v7881_v52 = vld [vmem:[#allocation2 + $0x180] sm:$0xff]  ;;  %v7887_v59 = vpack.i.bf16 %v7876_v58, %v7856_v37  ;;  %v7890_v3 = vsel %vm790_vm2, %v845_v38, %v846_v42  ;;  %v5066_v0 = vld [vmem:[%s7659_s9 + $0x48] sm:$0xff]  }
  0x68   : > { %13669 = vst [vmem:[#allocation38_spill] sm:$0xff] %v7876_v58  ;;  %13670 = vst [vmem:[#allocation39_spill] sm:$0xff] %v7881_v52  ;;  %v7883_v23 = vld [vmem:[#allocation2 + $0x188] sm:$0xf]  ;;  %v7893_v8 = vsel %vm790_vm2, %v848_v34, %v849_v39  ;;  %v843_v29 = vrot.slane %v7860_v6, 2  ;;  %v5065_v36 = vld [vmem:[%s7659_s9 + $0x40] sm:$0xff]   ;;  %v5021_v37 = vunpack.c.h.bf16 %v5063_v53  ;;  %v5024_v42 = vunpack.c.l.bf16 %v7871_v54 }
  0x69   : > { %13671 = vst [vmem:[#allocation40_spill] sm:$0xff] %v7883_v23  ;;  %13672 = vst [vmem:[#allocation41_spill] sm:$0xff] %v7887_v59  ;;  %v7902_v57 = vpack.i.bf16 %v7893_v8, %v7890_v3  ;;  %v841_v58 = vsel %vm790_vm2, %v839_v4, %v840_v28  ;;  %v5067_v38 = vld [vmem:[%s7659_s9 + $0x50] sm:$0xff]   ;;  %v5020_v39 = vunpack.c.l.bf16 %v5063_v53  ;;  %v851_v47 = vrot.slane %v7881_v52, 2  ;;  %v7913_v7 = vld [vmem:[%s7659_s9 + $0x58] sm:$0xff]   ;;  %5187 = vrot.lane.b32.xlu0 %v7887_v59, %s7313_s10 }
  0x6a   : > { %13673 = vst [vmem:[#allocation42_spill] sm:$0xff] %v7890_v3  ;;  %13674 = vst [vmem:[#allocation43_spill] sm:$0xff] %v7893_v8  ;;  %v7908_v34 = vsel %vm790_vm2, %v842_v16, %v843_v29  ;;  %v852_v31 = vrot.slane %v7883_v23, 2  ;;  %v5029_v4 = vunpack.c.h.bf16 %v5065_v36  ;;  %v5032_v16 = vunpack.c.l.bf16 %v5066_v0  ;;  %v7922_v53 = vld [vmem:[#allocation2 + $0x1e0] sm:$0xff]  ;;  %v7924_v29 = vld [vmem:[#allocation2 + $0x1e8] sm:$0xf] }
  0x6b   : > { %13675 = vst [vmem:[#allocation44_spill] sm:$0xff] %v7902_v57  ;;  %13676 = vst [vmem:[#allocation45_spill] sm:$0xff] %v7908_v34  ;;  %v7918_v15 = vpack.i.bf16 %v7908_v34, %v841_v58  ;;  %v5028_v28 = vunpack.c.l.bf16 %v5065_v36  ;;  %v5037_v3 = vunpack.c.h.bf16 %v5067_v38  ;;  %5202 = vrot.lane.b32.xlu1 %v7902_v57, %s7313_s10  ;;  %v5033_v58 = vunpack.c.h.bf16 %v5066_v0 }
  0x6c   : > { %458 = vst.msk [vmem:[#allocation2 + $0x1a2] sm:$0xff] %vm258_vm0, %v5021_v37  ;;  %459 = vst.msk [vmem:[#allocation2 + $0x1b2] sm:$0xff] %vm258_vm0, %v5024_v42  ;;  %v5040_v37 = vunpack.c.l.bf16 %v7913_v7  ;;  %v5036_v36 = vunpack.c.l.bf16 %v5067_v38  ;;  %v863_v42 = vrot.slane %v7922_v53, 2  ;;  %v864_v59 = vrot.slane %v7924_v29, 2 }
  0x6d   : > { %13677 = vst [vmem:[#allocation46_spill] sm:$0xff] %v7918_v15  ;;  %13678 = vst [vmem:[#allocation47_spill] sm:$0xff] %v7922_v53  ;;  %v895_v57 = vrot.slane %v7698_v32, 3  ;;  %5197 = vrot.lane.b32.xlu0 %v7918_v15, %s7313_s10  ;;  %v897_v0 = vrot.slane %v7733_v50, 3  ;;  %v888_v38 = vrot.slane %v7702_v35, 3 }
  0x6e   : > { %13679 = vst [vmem:[#allocation48_spill] sm:$0xff] %v7924_v29  ;;  %457 = vst.msk [vmem:[#allocation2 + $0x192] sm:$0xff] %vm258_vm0, %v5020_v39  ;;  %v894_v39 = vrot.slane %v7689_v27, 3  ;;  %v865_v8 = vsel %vm790_vm2, %v863_v42, %v864_v59  ;;  %v5025_v27 = vunpack.c.h.bf16 %v7871_v54 }
  0x6f   : > { %462 = vst.msk [vmem:[#allocation2 + $0x202] sm:$0xff] %vm258_vm0, %v5029_v4  ;;  %463 = vst.msk [vmem:[#allocation2 + $0x212] sm:$0xff] %vm258_vm0, %v5032_v16  ;;  %v7941_v4 = vsel %vm790_vm2, %v851_v47, %v852_v31  ;;  %v889_v16 = vrot.slane %v7685_v25, 3 }
  0x70   : > { %461 = vst.msk [vmem:[#allocation2 + $0x1f2] sm:$0xff] %vm258_vm0, %v5028_v28  ;;  %466 = vst.msk [vmem:[#allocation2 + $0x242] sm:$0xff] %vm258_vm0, %v5037_v3  ;;  %v898_v3 = vrot.slane %v7735_v51, 3  ;;  %v7963_v35 = vsel %vm887_vm3, %v894_v39, %v895_v57  ;;  %v5041_v51 = vunpack.c.h.bf16 %v7913_v7 }
  0x71   : > { %13680 = vst [vmem:[#allocation49_spill] sm:$0xff] %v7941_v4  ;;  %467 = vst.msk [vmem:[#allocation2 + $0x252] sm:$0xff] %vm258_vm0, %v5040_v37  ;;  %v7997_v23 = vsel %vm887_vm3, %v888_v38, %v889_v16 }
  0x72   : > { %464 = vst.msk [vmem:[#allocation2 + $0x222] sm:$0xff] %vm258_vm0, %v5033_v58  ;;  %465 = vst.msk [vmem:[#allocation2 + $0x232] sm:$0xff] %vm258_vm0, %v5036_v36  ;;  %v7984_v28 = vsel %vm887_vm3, %v897_v0, %v898_v3 }
  0x73   : > { %v7955_v36 = vld [vmem:[#allocation2 + $0x1a0] sm:$0xff]  ;;  %v7957_v15 = vld [vmem:[#allocation2 + $0x1a8] sm:$0xf]  ;;  %v7959_v34 = vld [vmem:[#allocation2 + $0x1b0] sm:$0xff]  ;;  %13682 = vst [vmem:[#allocation51_spill] sm:$0xff] %v7963_v35 }
  0x74   : > { %13681 = vst [vmem:[#allocation50_spill] sm:$0xff] %v7957_v15  ;;  %v7967_v47 = vld [vmem:[#allocation2 + $0x1b8] sm:$0xf]  ;;  %v857_v37 = vrot.slane %v7955_v36, 2  ;;  %v858_v58 = vrot.slane %v7957_v15, 2  ;;  %v860_v25 = vrot.slane %v7959_v34, 2 }
  0x75   : > { %v7972_v32 = vld [vmem:[#allocation2 + $0x190] sm:$0xff]  ;;  %v861_v59 = vrot.slane %v7967_v47, 2  ;;  %v7976_v57 = vld [vmem:[#allocation2 + $0x198] sm:$0xf]  ;;  %13687 = vst [vmem:[#allocation56_spill] sm:$0xff] %v7984_v28  ;;  %460 = vst.msk [vmem:[#allocation2 + $0x1c2] sm:$0xff] %vm258_vm0, %v5025_v27 }
  0x76   : > { %13683 = vst [vmem:[#allocation52_spill] sm:$0xff] %v7972_v32  ;;  %13684 = vst [vmem:[#allocation53_spill] sm:$0xff] %v7976_v57  ;;  %v854_v42 = vrot.slane %v7972_v32, 2  ;;  %v7979_v39 = vld [vmem:[#allocation2 + $0x200] sm:$0xff]  ;;  %v7981_v31 = vld [vmem:[#allocation2 + $0x210] sm:$0xff]  ;;  %v7988_v50 = vsel %vm790_vm2, %v857_v37, %v858_v58  ;;  %v855_v54 = vrot.slane %v7976_v57, 2 }
  0x77   : > { %13685 = vst [vmem:[#allocation54_spill] sm:$0xff] %v7979_v39  ;;  %13686 = vst [vmem:[#allocation55_spill] sm:$0xff] %v7981_v31  ;;  %v7991_v29 = vld [vmem:[#allocation2 + $0x208] sm:$0xf]  ;;  %v7993_v53 = vld [vmem:[#allocation2 + $0x218] sm:$0xf]  ;;  %v8001_v0 = vsel %vm790_vm2, %v860_v25, %v861_v59 }
  0x78   : > { %13688 = vst [vmem:[#allocation57_spill] sm:$0xff] %v7988_v50  ;;  %13689 = vst [vmem:[#allocation58_spill] sm:$0xff] %v7991_v29  ;;  %v869_v32 = vrot.slane %v7979_v39, 2  ;;  %v870_v7 = vrot.slane %v7991_v29, 2  ;;  %v872_v3 = vrot.slane %v7981_v31, 2  ;;  %v873_v37 = vrot.slane %v7993_v53, 2 }
  0x79   : > { %13690 = vst [vmem:[#allocation59_spill] sm:$0xff] %v7993_v53  ;;  %13691 = vst [vmem:[#allocation60_spill] sm:$0xff] %v8001_v0  ;;  %v8006_v58 = vld [vmem:[#allocation2 + $0x1f0] sm:$0xff]  ;;  %v8008_v57 = vld [vmem:[#allocation2 + $0x1f8] sm:$0xf]  ;;  %v8013_v38 = vpack.i.bf16 %v8001_v0, %v7988_v50  ;;  %v8016_v27 = vsel %vm790_vm2, %v854_v42, %v855_v54 }
  0x7a   : > { %13692 = vst [vmem:[#allocation61_spill] sm:$0xff] %v8006_v58  ;;  %13693 = vst [vmem:[#allocation62_spill] sm:$0xff] %v8008_v57  ;;  %v866_v25 = vrot.slane %v8006_v58, 2  ;;  %v867_v16 = vrot.slane %v8008_v57, 2  ;;  %v8020_v59 = vld [vmem:[#allocation2 + $0x240] sm:$0xff]  ;;  %v8024_v31 = vld [vmem:[#allocation2 + $0x250] sm:$0xff]  ;;  %v8031_v50 = vsel %vm790_vm2, %v869_v32, %v870_v7  ;;  %v8034_v42 = vsel %vm790_vm2, %v872_v3, %v873_v37 }
  0x7b   : > { %468 = vst.msk [vmem:[#allocation2 + $0x262] sm:$0xff] %vm258_vm0, %v5041_v51  ;;  %13694 = vst [vmem:[#allocation63_spill] sm:$0xff] %v8013_v38  ;;  %v8022_v53 = vld [vmem:[#allocation2 + $0x248] sm:$0xf]  ;;  %v8028_v51 = vpack.i.bf16 %v8016_v27, %v7941_v4  ;;  %v8036_v54 = vld [vmem:[#allocation2 + $0x258] sm:$0xf]  ;;  %5212 = vrot.lane.b32.xlu1 %v8013_v38, %s7313_s10 }
  0x7c   : > { %13695 = vst [vmem:[#allocation64_spill] sm:$0xff] %v8016_v27  ;;  %13696 = vst [vmem:[#allocation65_spill] sm:$0xff] %v8020_v59  ;;  %v881_v0 = vrot.slane %v8020_v59, 2  ;;  %v8039_v57 = vld [vmem:[#allocation2 + $0x220] sm:$0xff]  ;;  %v8041_v58 = vld [vmem:[#allocation2 + $0x228] sm:$0xf]  ;;  %v8047_v27 = vpack.i.bf16 %v8034_v42, %v8031_v50  ;;  %v8050_v32 = vsel %vm790_vm2, %v866_v25, %v867_v16 }
  0x7d   : > { %13697 = vst [vmem:[#allocation66_spill] sm:$0xff] %v8022_v53  ;;  %13698 = vst [vmem:[#allocation67_spill] sm:$0xff] %v8024_v31  ;;  %v882_v7 = vrot.slane %v8022_v53, 2  ;;  %v884_v3 = vrot.slane %v8024_v31, 2  ;;  %v8054_v37 = vld [vmem:[#allocation2 + $0x230] sm:$0xff]  ;;  %5207 = vrot.lane.b32.xlu0 %v8028_v51, %s7313_s10  ;;  %v8061_v38 = vpack.i.bf16 %v8050_v32, %v865_v8  ;;  %v876_v25 = vrot.slane %v8041_v58, 2 }
  0x7e   : > { %13699 = vst [vmem:[#allocation68_spill] sm:$0xff] %v8028_v51  ;;  %13700 = vst [vmem:[#allocation69_spill] sm:$0xff] %v8031_v50  ;;  %v8056_v4 = vld [vmem:[#allocation2 + $0x238] sm:$0xf]  ;;  %v885_v50 = vrot.slane %v8036_v54, 2  ;;  %v878_v31 = vrot.slane %v8054_v37, 2 }
  0x7f   : > { %13701 = vst [vmem:[#allocation70_spill] sm:$0xff] %v8034_v42  ;;  %13702 = vst [vmem:[#allocation71_spill] sm:$0xff] %v8039_v57  ;;  %v875_v42 = vrot.slane %v8039_v57, 2  ;;  %v8067_v16 = vsel %vm790_vm2, %v881_v0, %v882_v7  ;;  %v879_v53 = vrot.slane %v8056_v4, 2  ;;  %v901_v59 = vrot.slane %v7669_v12, 3  ;;  %5222 = vrot.lane.b32.xlu1 %v8047_v27, %s7313_s10 }
  0x80   : > { %13703 = vst [vmem:[#allocation72_spill] sm:$0xff] %v8047_v27  ;;  %13704 = vst [vmem:[#allocation73_spill] sm:$0xff] %v8050_v32  ;;  %v8073_v51 = vsel %vm790_vm2, %v884_v3, %v885_v50  ;;  %v903_v32 = vrot.slane %v7671_v13, 3  ;;  %v904_v57 = vrot.slane %v7673_v18, 3  ;;  %v13711_v50 = vrot.slane %v7687_v26, 3 }
  0x81   : > { %13705 = vst [vmem:[#allocation74_spill] sm:$0xff] %v8061_v38  ;;  %13706 = vst [vmem:[#allocation75_spill] sm:$0xff] %v8067_v16  ;;  %v8076_v8 = vsel %vm790_vm2, %v875_v42, %v876_v25  ;;  %v8084_v0 = vpack.i.bf16 %v8073_v51, %v8067_v16  ;;  %v8087_v7 = vsel %vm790_vm2, %v878_v31, %v879_v53  ;;  %v13712_v3 = vrot.slane %v7678_v22, 3 }
  0x82   : > { %13707 = vst [vmem:[#allocation76_spill] sm:$0xff] %v8073_v51  ;;  %13708 = vst [vmem:[#allocation77_spill] sm:$0xff] %v8076_v8  ;;  %v13714_v25 = vrot.slane %v7713_v41, 3  ;;  %v13715_v18 = vrot.slane %v7711_v40, 3  ;;  %5217 = vrot.lane.b32.xlu0 %v8061_v38, %s7313_s10  ;;  %v8107_v53 = vpack.i.bf16 %v8087_v7, %v8076_v8  ;;  %v13718_v31 = vrot.slane %v7725_v45, 3 }
  0x83   : > { %13709 = vst [vmem:[#allocation78_spill] sm:$0xff] %v8084_v0  ;;  %13710 = vst [vmem:[#allocation79_spill] sm:$0xff] %v8087_v7  ;;  %v8094_v42 = vsel %vm887_vm3, %v13712_v3, %v13711_v50  ;;  %v13719_v16 = vrot.slane %v7723_v44, 3  ;;  %v13721_v3 = vrot.slane %v7667_v11, 3  ;;  %v919_v38 = vrot.slane %v7756_v62, 3  ;;  %5232 = vrot.lane.b32.xlu1 %v8084_v0, %s7313_s10 }
  0x84   : > { %13713 = vst [vmem:[#allocation80_spill] sm:$0xff] %v8094_v42  ;;  %v8101_v27 = vsel %vm887_vm3, %v13715_v18, %v13714_v25  ;;  %13717 = vst [vmem:[#allocation82_spill] sm:$0xff] %v8107_v53  ;;  %v918_v18 = vrot.slane %v7754_v61, 3  ;;  %v8123_v25 = vsel %vm887_vm3, %v903_v32, %v904_v57  ;;  %v921_v7 = vrot.slane %v7758_v63, 3 }
  0x85   : > { %13716 = vst [vmem:[#allocation81_spill] sm:$0xff] %v8101_v27  ;;  %v8114_v50 = vsel %vm887_vm3, %v13719_v16, %v13718_v31  ;;  %v8119_v51 = vsel %vm887_vm3, %v13721_v3, %v901_v59  ;;  %13723 = vst [vmem:[#allocation85_spill] sm:$0xff] %v8123_v25  ;;  %v922_v8 = vrot.slane %v7763_v1, 3  ;;  %v912_v13 = vrot.slane %v7742_v55, 3 }
  0x86   : > { %13720 = vst [vmem:[#allocation83_spill] sm:$0xff] %v8114_v50  ;;  %13722 = vst [vmem:[#allocation84_spill] sm:$0xff] %v8119_v51  ;;  %v913_v16 = vrot.slane %v7744_v56, 3  ;;  %v915_v31 = vrot.slane %v7768_v5, 3  ;;  %v916_v59 = vrot.slane %v7779_v9, 3  ;;  %v8136_v57 = vpack.i.bf16 %v7984_v28, %v7963_v35  ;;  %5227 = vrot.lane.b32.xlu0 %v8107_v53, %s7313_s10 }
  0x87   : > { %v930_v32 = vrot.slane %v7781_v10, 3  ;;  %v931_v3 = vrot.slane %v7794_v20, 3  ;;  %v933_v62 = vrot.slane %v7783_v14, 3  ;;  %v5236_v56 = vpack.i.bf16 %v8094_v42, %v7997_v23 }
  0x88   : > { %13724 = vst [vmem:[#allocation86_spill] sm:$0xff] %v8136_v57  ;;  %v8147_v55 = vpack.i.bf16 %v8114_v50, %v8101_v27  ;;  %v934_v0 = vrot.slane %v7796_v21, 3  ;;  %v924_v35 = vrot.slane %v7806_v30, 3  ;;  %v8153_v28 = vpack.i.bf16 %v8123_v25, %v8119_v51  ;;  %5242 = vrot.lane.b32.xlu1 %v8136_v57, %s7314_s11  ;;  %v13743_v25 = vld [vmem:[#allocation53_spill] sm:$0xff] }
  0x89   : > { %v8156_v20 = vsel %vm887_vm3, %v918_v18, %v919_v38  ;;  %v8159_v53 = vsel %vm887_vm3, %v921_v7, %v922_v8  ;;  %v925_v23 = vrot.slane %v7808_v33, 3  ;;  %v914_v42 = vsel %vm887_vm3, %v912_v13, %v913_v16 }
  0x8a   : > { %13725 = vst [vmem:[#allocation87_spill] sm:$0xff] %v8147_v55  ;;  %13726 = vst [vmem:[#allocation88_spill] sm:$0xff] %v8153_v28  ;;  %v8164_v27 = vsel %vm887_vm3, %v915_v31, %v916_v59  ;;  %v927_v50 = vrot.slane %v7817_v43, 3  ;;  %v928_v10 = vrot.slane %v7819_v46, 3  ;;  %v8171_v38 = vsel %vm887_vm3, %v930_v32, %v931_v3  ;;  %5237 = vrot.lane.b32.xlu0 %v5236_v56, %s7314_s11 }
  0x8b   : > { %13727 = vst [vmem:[#allocation89_spill] sm:$0xff] %v8156_v20  ;;  %13728 = vst [vmem:[#allocation90_spill] sm:$0xff] %v8159_v53  ;;  %v8174_v8 = vsel %vm887_vm3, %v933_v62, %v934_v0  ;;  %v8177_v7 = vsel %vm887_vm3, %v924_v35, %v925_v23  ;;  %v942_v13 = vrot.slane %v7821_v48, 3  ;;  %v943_v16 = vrot.slane %v7833_v60, 3 }
  0x8c   : > { %13729 = vst [vmem:[#allocation91_spill] sm:$0xff] %v8164_v27  ;;  %13730 = vst [vmem:[#allocation92_spill] sm:$0xff] %v8171_v38  ;;  %v8182_v18 = vsel %vm887_vm3, %v927_v50, %v928_v10  ;;  %v945_v31 = vrot.slane %v7835_v2, 3  ;;  %v946_v59 = vrot.slane %v7844_v17, 3  ;;  %v936_v32 = vrot.slane %v7823_v49, 3  ;;  %5252 = vrot.lane.b32.xlu1 %v8147_v55, %s7314_s11 }
  0x8d   : > { %13731 = vst [vmem:[#allocation93_spill] sm:$0xff] %v8174_v8  ;;  %13732 = vst [vmem:[#allocation94_spill] sm:$0xff] %v8177_v7  ;;  %v937_v62 = vrot.slane %v7846_v19, 3  ;;  %v939_v35 = vrot.slane %v7848_v24, 3  ;;  %v940_v0 = vrot.slane %v7860_v6, 3  ;;  %v8193_v56 = vpack.i.bf16 %v8159_v53, %v8156_v20 }
  0x8e   : > { %13733 = vst [vmem:[#allocation95_spill] sm:$0xff] %v8182_v18  ;;  %v8196_v10 = vpack.i.bf16 %v8164_v27, %v914_v42  ;;  %v954_v50 = vrot.slane %v7955_v36, 3  ;;  %v955_v3 = vrot.slane %v7957_v15, 3  ;;  %v8204_v49 = vpack.i.bf16 %v8174_v8, %v8171_v38  ;;  %5247 = vrot.lane.b32.xlu0 %v8153_v28, %s7314_s11  ;;  %v13740_v8 = vld [vmem:[#allocation40_spill] sm:$0xff] }
  0x8f   : > { %13734 = vst [vmem:[#allocation96_spill] sm:$0xff] %v8193_v56  ;;  %v8208_v19 = vpack.i.bf16 %v8182_v18, %v8177_v7  ;;  %v957_v23 = vrot.slane %v7959_v34, 3  ;;  %v958_v42 = vrot.slane %v7967_v47, 3  ;;  %v8215_v57 = vsel %vm887_vm3, %v942_v13, %v943_v16  ;;  %v13742_v7 = vld [vmem:[#allocation52_spill] sm:$0xff] }
  0x90   : > { %13735 = vst [vmem:[#allocation97_spill] sm:$0xff] %v8196_v10  ;;  %13736 = vst [vmem:[#allocation98_spill] sm:$0xff] %v8204_v49  ;;  %v8218_v55 = vsel %vm887_vm3, %v945_v31, %v946_v59  ;;  %v948_v38 = vrot.slane %v7881_v52, 3  ;;  %v949_v20 = vrot.slane %v13740_v8, 3  ;;  %v938_v18 = vsel %vm887_vm3, %v936_v32, %v937_v62  ;;  %5262 = vrot.lane.b32.xlu1 %v8193_v56, %s7314_s11  ;;  %v13746_v59 = vld [vmem:[#allocation55_spill] sm:$0xff]  ;;  %v13749_v52 = vld [vmem:[#allocation48_spill] sm:$0xff] }
  0x91   : > { %13737 = vst [vmem:[#allocation99_spill] sm:$0xff] %v8208_v19  ;;  %13738 = vst [vmem:[#allocation100_spill] sm:$0xff] %v8215_v57  ;;  %v8224_v27 = vsel %vm887_vm3, %v939_v35, %v940_v0  ;;  %v951_v53 = vrot.slane %v13742_v7, 3  ;;  %v952_v51 = vrot.slane %v13743_v25, 3  ;;  %v8229_v28 = vsel %vm887_vm3, %v954_v50, %v955_v3  ;;  %v13747_v62 = vld [vmem:[#allocation59_spill] sm:$0xff]  ;;  %v13753_v56 = vld [vmem:[#allocation62_spill] sm:$0xff] }
  0x92   : > { %13739 = vst [vmem:[#allocation101_spill] sm:$0xff] %v8218_v55  ;;  %13741 = vst [vmem:[#allocation102_spill] sm:$0xff] %v8224_v27  ;;  %v8232_v13 = vsel %vm887_vm3, %v957_v23, %v958_v42  ;;  %v966_v16 = vrot.slane %v7979_v39, 3  ;;  %v967_v31 = vrot.slane %v7991_v29, 3  ;;  %v969_v32 = vrot.slane %v13746_v59, 3  ;;  %v13748_v0 = vld [vmem:[#allocation47_spill] sm:$0xff]  ;;  %5257 = vrot.lane.b32.xlu0 %v8196_v10, %s7314_s11 }
  0x93   : > { %13744 = vst [vmem:[#allocation52_spill] sm:$0xff] %v8229_v28  ;;  %13745 = vst [vmem:[#allocation53_spill] sm:$0xff] %v8232_v13  ;;  %v970_v35 = vrot.slane %v13747_v62, 3  ;;  %v960_v8 = vrot.slane %v13748_v0, 3  ;;  %v961_v15 = vrot.slane %v13749_v52, 3  ;;  %v8245_v50 = vsel %vm887_vm3, %v948_v38, %v949_v20  ;;  %v13752_v23 = vld [vmem:[#allocation61_spill] sm:$0xff] }
  0x94   : > { %13750 = vst [vmem:[#allocation47_spill] sm:$0xff] %v8245_v50  ;;  %v8248_v3 = vsel %vm887_vm3, %v951_v53, %v952_v51  ;;  %v963_v42 = vrot.slane %v13752_v23, 3  ;;  %v964_v29 = vrot.slane %v13753_v56, 3  ;;  %v8254_v39 = vpack.i.bf16 %v8218_v55, %v8215_v57  ;;  %v13755_v0 = vld [vmem:[#allocation65_spill] sm:$0xff]  ;;  %v13756_v52 = vld [vmem:[#allocation66_spill] sm:$0xff]  ;;  %v13759_v51 = vld [vmem:[#allocation67_spill] sm:$0xff]  ;;  %5272 = vrot.lane.b32.xlu1 %v8204_v49, %s7314_s11 }
  0x95   : > { %13751 = vst [vmem:[#allocation48_spill] sm:$0xff] %v8248_v3  ;;  %v978_v62 = vrot.slane %v13755_v0, 3  ;;  %v979_v59 = vrot.slane %v13756_v52, 3  ;;  %v8259_v10 = vpack.i.bf16 %v8224_v27, %v938_v18  ;;  %v8263_v20 = vpack.i.bf16 %v8232_v13, %v8229_v28  ;;  %v13761_v27 = vld [vmem:[#allocation71_spill] sm:$0xff] }
  0x96   : > { %13754 = vst [vmem:[#allocation61_spill] sm:$0xff] %v8254_v39  ;;  %v981_v53 = vrot.slane %v13759_v51, 3  ;;  %v982_v38 = vrot.slane %v8036_v54, 3  ;;  %v8271_v57 = vpack.i.bf16 %v8248_v3, %v8245_v50  ;;  %v8274_v55 = vsel %vm887_vm3, %v966_v16, %v967_v31  ;;  %5267 = vrot.lane.b32.xlu0 %v8208_v19, %s7314_s11  ;;  %v13762_v50 = vld [vmem:[#allocation16_spill] sm:$0xff] }
  0x97   : > { %13757 = vst [vmem:[#allocation62_spill] sm:$0xff] %v8259_v10  ;;  %13758 = vst [vmem:[#allocation65_spill] sm:$0xff] %v8263_v20  ;;  %v8277_v18 = vsel %vm887_vm3, %v969_v32, %v970_v35  ;;  %v962_v28 = vsel %vm887_vm3, %v960_v8, %v961_v15  ;;  %v8283_v13 = vsel %vm887_vm3, %v963_v42, %v964_v29  ;;  %v972_v3 = vrot.slane %v13761_v27, 3  ;;  %v13763_v32 = vld [vmem:[#allocation17_spill] sm:$0xff] }
  0x98   : > { %13760 = vst [vmem:[#allocation67_spill] sm:$0xff] %v8271_v57  ;;  %v8286_v49 = vsel %vm887_vm3, %v978_v62, %v979_v59  ;;  %v671_v52 = vrot.slane %v13762_v50, 1  ;;  %v8291_v16 = vsel %vm887_vm3, %v981_v53, %v982_v38  ;;  %v973_v31 = vrot.slane %v8041_v58, 3  ;;  %5282 = vrot.lane.b32.xlu1 %v8254_v39, %s7314_s11  ;;  %v13765_v53 = vld [vmem:[#allocation9_spill] sm:$0xff] }
  0x99   : > { %v672_v15 = vrot.slane %v13763_v32, 1  ;;  %v674_v8 = vrot.slane %v7667_v11, 1  ;;  %v975_v35 = vrot.slane %v8054_v37, 3  ;;  %v675_v29 = vrot.slane %v7669_v12, 1  ;;  %v13766_v32 = vld [vmem:[#allocation11_spill] sm:$0xff] }
  0x9a   : > { %v665_v59 = vrot.slane %v7678_v22, 1  ;;  %v666_v62 = vrot.slane %v7687_v26, 1  ;;  %v976_v50 = vrot.slane %v8056_v4, 3  ;;  %v668_v38 = vrot.slane %v13765_v53, 1  ;;  %5277 = vrot.lane.b32.xlu0 %v8259_v10, %s7314_s11  ;;  %v8325_v53 = vld [vmem:[#allocation2 + $0x80] sm:$0xff] }
  0x9b   : > { %v8304_v42 = vsel %vm661_vm4, %v671_v52, %v672_v15  ;;  %v669_v11 = vrot.slane %v13766_v32, 1  ;;  %v8311_v12 = vsel %vm661_vm4, %v674_v8, %v675_v29  ;;  %v683_v26 = vrot.slane %v7723_v44, 1  ;;  %v13775_v10 = vld [vmem:[#allocation22_spill] sm:$0xff] }
  0x9c   : > { %13764 = vst [vmem:[#allocation71_spill] sm:$0xff] %v8304_v42  ;;  %13767 = vst [vmem:[#allocation16_spill] sm:$0xff] %v8311_v12  ;;  %v8314_v22 = vsel %vm661_vm4, %v665_v59, %v666_v62  ;;  %v684_v39 = vrot.slane %v7725_v45, 1  ;;  %v8320_v52 = vpack.i.bf16 %v8277_v18, %v8274_v55  ;;  %v8328_v32 = vpack.i.bf16 %v8283_v13, %v962_v28  ;;  %v8344_v59 = vld [vmem:[#allocation2 + $0x88] sm:$0xf] }
  0x9d   : > { %13768 = vst [vmem:[#allocation17_spill] sm:$0xff] %v8314_v22  ;;  %v8323_v15 = vsel %vm661_vm4, %v668_v38, %v669_v11  ;;  %v8332_v8 = vpack.i.bf16 %v8291_v16, %v8286_v49  ;;  %5292 = vrot.lane.b32.xlu1 %v8263_v20, %s7314_s11  ;;  %v8342_v29 = vsel %vm887_vm3, %v972_v3, %v973_v31  ;;  %v680_v28 = vrot.slane %v7711_v40, 1 }
  0x9e   : > { %13769 = vst [vmem:[#allocation9_spill] sm:$0xff] %v8320_v52  ;;  %13770 = vst [vmem:[#allocation11_spill] sm:$0xff] %v8323_v15  ;;  %v5316_v44 = vpack.i.bf16 %v8323_v15, %v8314_v22  ;;  %v8337_v45 = vsel %vm661_vm4, %v683_v26, %v684_v39  ;;  %v681_v62 = vrot.slane %v7713_v41, 1  ;;  %v695_v38 = vrot.slane %v7758_v63, 1  ;;  %5287 = vrot.lane.b32.xlu0 %v8271_v57, %s7314_s11 }
  0x9f   : > { %13771 = vst [vmem:[#allocation103_spill] sm:$0xff] %v8328_v32  ;;  %13772 = vst [vmem:[#allocation104_spill] sm:$0xff] %v8332_v8  ;;  %v8352_v39 = vsel %vm887_vm3, %v975_v35, %v976_v50  ;;  %v992_v11 = vrot.slane %v8325_v53, 1  ;;  %v696_v26 = vrot.slane %v7763_v1, 1  ;;  %v698_v3 = vrot.slane %v7806_v30, 1 }
  0xa0   : > { %13773 = vst [vmem:[#allocation105_spill] sm:$0xff] %v8337_v45  ;;  %v8358_v31 = vsel %vm661_vm4, %v680_v28, %v681_v62  ;;  %v699_v40 = vrot.slane %v7808_v33, 1  ;;  %v689_v41 = vrot.slane %v7768_v5, 1  ;;  %v690_v63 = vrot.slane %v7779_v9, 1  ;;  %v13780_v62 = vld [vmem:[#allocation7_spill] sm:$0xff] }
  0xa1   : > { %13774 = vst [vmem:[#allocation106_spill] sm:$0xff] %v8358_v31  ;;  %v993_v22 = vrot.slane %v8344_v59, 1  ;;  %v8365_v35 = vsel %vm661_vm4, %v695_v38, %v696_v26  ;;  %v692_v50 = vrot.slane %v7754_v61, 1  ;;  %v693_v1 = vrot.slane %v13775_v10, 1  ;;  %5302 = vrot.lane.b32.xlu1 %v8320_v52, %s7314_s11  ;;  %v13779_v10 = vld [vmem:[#allocation6_spill] sm:$0xff] }
  0xa2   : > { %v8372_v30 = vsel %vm661_vm4, %v698_v3, %v699_v40  ;;  %v8375_v33 = vsel %vm661_vm4, %v689_v41, %v690_v63  ;;  %v707_v5 = vrot.slane %v7783_v14, 1  ;;  %v708_v9 = vrot.slane %v7796_v21, 1  ;;  %5297 = vrot.lane.b32.xlu0 %v8328_v32, %s7314_s11  ;;  %v8395_v40 = vld [vmem:[#allocation2 + $0x120] sm:$0xff]  ;;  %v13784_v32 = vld [vmem:[#allocation29_spill] sm:$0xff] }
  0xa3   : > { %13776 = vst [vmem:[#allocation22_spill] sm:$0xff] %v8372_v30  ;;  %13777 = vst [vmem:[#allocation107_spill] sm:$0xff] %v8375_v33  ;;  %v8383_v61 = vpack.i.bf16 %v8352_v39, %v8342_v29  ;;  %v677_v28 = vrot.slane %v13779_v10, 1  ;;  %v678_v38 = vrot.slane %v13780_v62, 1  ;;  %v8388_v26 = vsel %vm661_vm4, %v692_v50, %v693_v1  ;;  %v13783_v41 = vld [vmem:[#allocation26_spill] sm:$0xff] }
  0xa4   : > { %13781 = vst [vmem:[#allocation6_spill] sm:$0xff] %v8388_v26  ;;  %v8391_v3 = vsel %vm661_vm4, %v707_v5, %v708_v9  ;;  %v701_v14 = vrot.slane %v7817_v43, 1  ;;  %v702_v21 = vrot.slane %v7819_v46, 1  ;;  %v704_v63 = vrot.slane %v13783_v41, 1  ;;  %v8407_v43 = vld [vmem:[#allocation2 + $0x128] sm:$0xf] }
  0xa5   : > { %13778 = vst [vmem:[#allocation108_spill] sm:$0xff] %v8383_v61  ;;  %13782 = vst [vmem:[#allocation7_spill] sm:$0xff] %v8391_v3  ;;  %v705_v52 = vrot.slane %v13784_v32, 1  ;;  %v719_v10 = vrot.slane %v7835_v2, 1  ;;  %5312 = vrot.lane.b32.xlu1 %v8332_v8, %s7314_s11  ;;  %v5321_v50 = vpack.i.bf16 %v8311_v12, %v8304_v42  ;;  %v8405_v1 = vsel %vm661_vm4, %v992_v11, %v993_v22 }
  0xa6   : > { %v8410_v46 = vsel %vm661_vm4, %v701_v14, %v702_v21  ;;  %v720_v5 = vrot.slane %v7844_v17, 1  ;;  %5307 = vrot.lane.b32.xlu0 %v8383_v61, %s7314_s11  ;;  %v8416_v2 = vsel %vm661_vm4, %v677_v28, %v678_v38  ;;  %v713_v9 = vrot.slane %v7848_v24, 1  ;;  %v13833_v61 = vld [vmem:[#allocation20_spill] sm:$0xff] }
  0xa7   : > { %13785 = vst [vmem:[#allocation26_spill] sm:$0xff] %v8410_v46  ;;  %13786 = vst [vmem:[#allocation29_spill] sm:$0xff] %v8416_v2  ;;  %v8419_v32 = vsel %vm661_vm4, %v704_v63, %v705_v52  ;;  %v714_v22 = vrot.slane %v7860_v6, 1  ;;  %v995_v11 = vrot.slane %v8395_v40, 1  ;;  %v716_v17 = vrot.slane %v7821_v48, 1 }
  0xa8   : > { %13787 = vst [vmem:[#allocation109_spill] sm:$0xff] %v8419_v32  ;;  %v8425_v62 = vsel %vm661_vm4, %v719_v10, %v720_v5  ;;  %v717_v14 = vrot.slane %v7833_v60, 1  ;;  %v996_v21 = vrot.slane %v8407_v43, 1  ;;  %v731_v52 = vrot.slane %v7959_v34, 1  ;;  %v13793_v10 = vld [vmem:[#allocation50_spill] sm:$0xff]  ;;  %v13794_v5 = vld [vmem:[#allocation55_spill] sm:$0xff] }
  0xa9   : > { %13788 = vst [vmem:[#allocation110_spill] sm:$0xff] %v8425_v62  ;;  %v8431_v28 = vsel %vm661_vm4, %v713_v9, %v714_v22  ;;  %v732_v24 = vrot.slane %v7967_v47, 1  ;;  %5322 = vrot.lane.b32.xlu1 %v5321_v50, %s7315_s12  ;;  %v5331_v6 = vpack.i.bf16 %v8405_v1, %v8337_v45  ;;  %v5326_v48 = vpack.i.bf16 %v8358_v31, %v8416_v2  ;;  %v13795_v22 = vld [vmem:[#allocation39_spill] sm:$0xff] }
  0xaa   : > { %13789 = vst [vmem:[#allocation111_spill] sm:$0xff] %v8431_v28  ;;  %v8439_v38 = vsel %vm661_vm4, %v716_v17, %v717_v14  ;;  %5317 = vrot.lane.b32.xlu0 %v5316_v44, %s7315_s12  ;;  %v725_v34 = vrot.slane %v13742_v7, 1  ;;  %v726_v47 = vrot.slane %v13743_v25, 1  ;;  %v8451_v41 = vpack.i.bf16 %v8372_v30, %v8365_v35  ;;  %v13797_v7 = vld [vmem:[#allocation59_spill] sm:$0xff] }
  0xab   : > { %13790 = vst [vmem:[#allocation112_spill] sm:$0xff] %v8439_v38  ;;  %v8445_v60 = vsel %vm661_vm4, %v731_v52, %v732_v24  ;;  %v728_v63 = vrot.slane %v7955_v36, 1  ;;  %v729_v50 = vrot.slane %v13793_v10, 1  ;;  %v743_v44 = vrot.slane %v13794_v5, 1  ;;  %v13798_v52 = vld [vmem:[#allocation40_spill] sm:$0xff] }
  0xac   : > { %13791 = vst [vmem:[#allocation113_spill] sm:$0xff] %v8445_v60  ;;  %13792 = vst [vmem:[#allocation114_spill] sm:$0xff] %v8451_v41  ;;  %v8457_v9 = vsel %vm661_vm4, %v995_v11, %v996_v21  ;;  %v722_v17 = vrot.slane %v13795_v22, 1  ;;  %v8461_v14 = vsel %vm661_vm4, %v725_v34, %v726_v47  ;;  %v744_v25 = vrot.slane %v13797_v7, 1  ;;  %v13802_v34 = vld [vmem:[#allocation54_spill] sm:$0xff] }
  0xad   : > { %13796 = vst [vmem:[#allocation50_spill] sm:$0xff] %v8461_v14  ;;  %5332 = vrot.lane.b32.xlu1 %v5331_v6, %s7315_s12  ;;  %v723_v24 = vrot.slane %v13798_v52, 1  ;;  %v8467_v36 = vsel %vm661_vm4, %v728_v63, %v729_v50  ;;  %v737_v10 = vrot.slane %v13752_v23, 1  ;;  %v738_v5 = vrot.slane %v13753_v56, 1  ;;  %v13803_v47 = vld [vmem:[#allocation58_spill] sm:$0xff] }
  0xae   : > { %13799 = vst [vmem:[#allocation55_spill] sm:$0xff] %v8467_v36  ;;  %5327 = vrot.lane.b32.xlu0 %v5326_v48, %s7315_s12  ;;  %v8474_v11 = vpack.i.bf16 %v8388_v26, %v8375_v33  ;;  %v8477_v21 = vsel %vm661_vm4, %v743_v44, %v744_v25  ;;  %v740_v6 = vrot.slane %v13802_v34, 1  ;;  %v741_v22 = vrot.slane %v13803_v47, 1  ;;  %v8481_v7 = vld [vmem:[#allocation2 + $0x1c0] sm:$0xff]  ;;  %v8483_v63 = vld [vmem:[#allocation2 + $0x1c8] sm:$0xf] }
  0xaf   : > { %13801 = vst [vmem:[#allocation59_spill] sm:$0xff] %v8477_v21  ;;  %v8486_v23 = vsel %vm661_vm4, %v737_v10, %v738_v5  ;;  %v755_v56 = vrot.slane %v13759_v51, 1  ;;  %v756_v48 = vrot.slane %v8036_v54, 1  ;;  %v8492_v50 = vpack.i.bf16 %v8457_v9, %v8391_v3  ;;  %v13810_v47 = vld [vmem:[#allocation66_spill] sm:$0xff]  ;;  %v13816_v33 = vld [vmem:[#allocation19_spill] sm:$0xff] }
  0xb0   : > { %13800 = vst [vmem:[#allocation39_spill] sm:$0xff] %v8474_v11  ;;  %13804 = vst [vmem:[#allocation40_spill] sm:$0xff] %v8486_v23  ;;  %v8496_v44 = vpack.i.bf16 %v8419_v32, %v8410_v46  ;;  %v8499_v25 = vsel %vm661_vm4, %v740_v6, %v741_v22  ;;  %v8504_v52 = vsel %vm661_vm4, %v722_v17, %v723_v24  ;;  %v749_v54 = vrot.slane %v8054_v37, 1  ;;  %v13812_v24 = vld [vmem:[#allocation8_spill] sm:$0xff] }
  0xb1   : > { %13805 = vst [vmem:[#allocation54_spill] sm:$0xff] %v8492_v50  ;;  %13807 = vst [vmem:[#allocation115_spill] sm:$0xff] %v8499_v25  ;;  %5342 = vrot.lane.b32.xlu1 %v8451_v41, %s7315_s12  ;;  %v8507_v51 = vsel %vm661_vm4, %v755_v56, %v756_v48  ;;  %v750_v10 = vrot.slane %v8056_v4, 1  ;;  %v998_v5 = vrot.slane %v8481_v7, 1  ;;  %v999_v34 = vrot.slane %v8483_v63, 1  ;;  %v13813_v48 = vld [vmem:[#allocation12_spill] sm:$0xff] }
  0xb2   : > { %13806 = vst [vmem:[#allocation58_spill] sm:$0xff] %v8496_v44  ;;  %13808 = vst [vmem:[#allocation116_spill] sm:$0xff] %v8504_v52  ;;  %5337 = vrot.lane.b32.xlu0 %v8474_v11, %s7315_s12  ;;  %v752_v6 = vrot.slane %v13755_v0, 1  ;;  %v753_v22 = vrot.slane %v13810_v47, 1  ;;  %v663_v56 = vrot.slane %v13812_v24, 1  ;;  %v662_v37 = vrot.slane %v13813_v48, 1 }
  0xb3   : > { %13809 = vst [vmem:[#allocation117_spill] sm:$0xff] %v8507_v51  ;;  %v8518_v17 = vsel %vm661_vm4, %v749_v54, %v750_v10  ;;  %v13815_v41 = vld [vmem:[#allocation18_spill] sm:$0xff]  ;;  %v687_v8 = vrot.slane %v13816_v33, 1  ;;  %v8531_v0 = vpack.i.bf16 %v8504_v52, %v8425_v62  ;;  %v8537_v54 = vpack.i.bf16 %v8439_v38, %v8431_v28  ;;  %v8546_v47 = vld [vmem:[#allocation2 + $0x268] sm:$0xf]  ;;  %v8571_v48 = vld [vmem:[#allocation2 + $0x90] sm:$0xff] }
  0xb4   : > { %13811 = vst [vmem:[#allocation66_spill] sm:$0xff] %v8518_v17  ;;  %v8523_v4 = vsel %vm661_vm4, %v752_v6, %v753_v22  ;;  %v686_v11 = vrot.slane %v13815_v41, 1  ;;  %v8540_v10 = vsel %vm661_vm4, %v998_v5, %v999_v34  ;;  %v746_v41 = vrot.slane %v13761_v27, 1  ;;  %v8544_v6 = vld [vmem:[#allocation2 + $0x260] sm:$0xff] }
  0xb5   : > { %13814 = vst [vmem:[#allocation8_spill] sm:$0xff] %v8523_v4  ;;  %5352 = vrot.lane.b32.xlu1 %v8492_v50, %s7315_s12  ;;  %13817 = vst [vmem:[#allocation12_spill] sm:$0xff] %v8531_v0  ;;  %v747_v33 = vrot.slane %v8041_v58, 1  ;;  %v8549_v22 = vsel %vm661_vm4, %v662_v37, %v663_v56  ;;  %v8555_v24 = vpack.i.bf16 %v8540_v10, %v8445_v60  ;;  %v1001_v27 = vrot.slane %v8544_v6, 1  ;;  %v8573_v37 = vld [vmem:[#allocation2 + $0x98] sm:$0xf] }
  0xb6   : > { %5347 = vrot.lane.b32.xlu0 %v8496_v44, %s7315_s12  ;;  %13818 = vst [vmem:[#allocation18_spill] sm:$0xff] %v8537_v54  ;;  %13819 = vst [vmem:[#allocation19_spill] sm:$0xff] %v8549_v22  ;;  %v8559_v5 = vpack.i.bf16 %v8467_v36, %v8461_v14  ;;  %v1002_v34 = vrot.slane %v8546_v47, 1  ;;  %v8569_v56 = vsel %vm661_vm4, %v686_v11, %v687_v8  ;;  %v1016_v22 = vrot.slane %v8325_v53, 3 }
  0xb7   : > { %13820 = vst [vmem:[#allocation118_spill] sm:$0xff] %v8555_v24  ;;  %v8564_v58 = vsel %vm661_vm4, %v746_v41, %v747_v33  ;;  %13823 = vst [vmem:[#allocation121_spill] sm:$0xff] %v8569_v56  ;;  %v1017_v33 = vrot.slane %v8344_v59, 3  ;;  %v1061_v8 = vrot.slane %v8573_v37, 3  ;;  %v8589_v11 = vpack.i.bf16 %v8499_v25, %v8486_v23  ;;  %v13831_v23 = vld [vmem:[#allocation10_spill] sm:$0xff] }
  0xb8   : > { %13821 = vst [vmem:[#allocation119_spill] sm:$0xff] %v8559_v5  ;;  %13822 = vst [vmem:[#allocation120_spill] sm:$0xff] %v8564_v58  ;;  %v8580_v41 = vpack.i.bf16 %v8564_v58, %v8477_v21  ;;  %v1019_v28 = vrot.slane %v8395_v40, 3  ;;  %v1023_v50 = vrot.slane %v8483_v63, 3  ;;  %v1014_v57 = vrot.slane %v8546_v47, 2 }
  0xb9   : > { %5362 = vrot.lane.b32.xlu1 %v8531_v0, %s7315_s12  ;;  %13825 = vst [vmem:[#allocation123_spill] sm:$0xff] %v8589_v11  ;;  %v8592_v0 = vsel %vm661_vm4, %v1001_v27, %v1002_v34  ;;  %v1005_v34 = vrot.slane %v8344_v59, 2  ;;  %v1026_v59 = vrot.slane %v8546_v47, 3  ;;  %v13872_v47 = vld [vmem:[#allocation69_spill] sm:$0xff] }
  0xba   : > { %5357 = vrot.lane.b32.xlu0 %v8537_v54, %s7315_s12  ;;  %13824 = vst [vmem:[#allocation122_spill] sm:$0xff] %v8580_v41  ;;  %v1060_v54 = vrot.slane %v8571_v48, 3  ;;  %v8608_v27 = vpack.i.bf16 %v8592_v0, %v8507_v51 }
  0xbc   : > { %v8598_v44 = vsel %vm887_vm3, %v1060_v54, %v1061_v8  ;;  %13827 = vst [vmem:[#allocation125_spill] sm:$0xff] %v8608_v27  ;;  %v8616_v54 = vpack.i.bf16 %v8523_v4, %v8518_v17  ;;  %v1022_v8 = vrot.slane %v8481_v7, 3 }
  0xbd   : > { %5372 = vrot.lane.b32.xlu1 %v8555_v24, %s7315_s12  ;;  %v8595_v24 = vsel %vm887_vm3, %v1016_v22, %v1017_v33  ;;  %13826 = vst [vmem:[#allocation124_spill] sm:$0xff] %v8598_v44  ;;  %v1004_v22 = vrot.slane %v8325_v53, 2  ;;  %v1025_v53 = vrot.slane %v8544_v6, 3  ;;  %v8755_v44 = vld [vmem:[#allocation2 + $0x270] sm:$0xff] }
  0xbe   : > { %5367 = vrot.lane.b32.xlu0 %v8559_v5, %s7315_s12  ;;  %v1020_v5 = vrot.slane %v8407_v43, 3  ;;  %13828 = vst [vmem:[#allocation126_spill] sm:$0xff] %v8616_v54 }
  0xc0   : > { %v8619_v33 = vsel %vm887_vm3, %v1019_v28, %v1020_v5  ;;  %v13832_v5 = vld [vmem:[#allocation15_spill] sm:$0xff] }
  0xc1   : > { %5382 = vrot.lane.b32.xlu1 %v8580_v41, %s7315_s12  ;;  %13829 = vst [vmem:[#allocation127_spill] sm:$0xff] %v8619_v33  ;;  %v8624_v41 = vsel %vm887_vm3, %v1022_v8, %v1023_v50  ;;  %v5396_v20 = vpack.i.bf16 %v13833_v61, %v13832_v5  ;;  %v8639_v50 = vsel %vm790_vm2, %v1004_v22, %v1005_v34  ;;  %v13835_v61 = vld [vmem:[#allocation13_spill] sm:$0xff]  ;;  %v1007_v22 = vrot.slane %v8395_v40, 2  ;;  %v13844_v40 = vld [vmem:[#allocation35_spill] sm:$0xff] }
  0xc2   : > { %5377 = vrot.lane.b32.xlu0 %v8589_v11, %s7315_s12  ;;  %v13830_v11 = vld [vmem:[#allocation25_spill] sm:$0xff]  ;;  %v8642_v8 = vsel %vm887_vm3, %v1025_v53, %v1026_v59  ;;  %v1008_v34 = vrot.slane %v8407_v43, 2  ;;  %v13837_v53 = vld [vmem:[#allocation30_spill] sm:$0xff]  ;;  %v13838_v59 = vld [vmem:[#allocation36_spill] sm:$0xff] }
  0xc3   : > { %v5401_v56 = vpack.i.bf16 %v13831_v23, %v13830_v11  ;;  %v13834_v23 = vld [vmem:[#allocation23_spill] sm:$0xff]  ;;  %v13836_v5 = vld [vmem:[#allocation21_spill] sm:$0xff] }
  0xc4   : > { %v5411_v11 = vpack.i.bf16 %v8639_v50, %v13834_v23  ;;  %v5406_v28 = vpack.i.bf16 %v13836_v5, %v13835_v61  ;;  %v13847_v61 = vld [vmem:[#allocation34_spill] sm:$0xff]  ;;  %v8679_v5 = vpop.permute.xlu1 %5167 }
  0xc5   : > { %5392 = vrot.lane.b32.xlu1 %v8608_v27, %s7315_s12  ;;  %v8657_v27 = vpack.i.bf16 %v13838_v59, %v13837_v53  ;;  %13849 = vst [vmem:[#allocation13_spill] sm:$0xff] %v8679_v5  ;;  %v8691_v59 = vpop.permute.xlu0 %5157 }
  0xc6   : > { %5387 = vrot.lane.b32.xlu0 %v8616_v54, %s7315_s12  ;;  %v13841_v54 = vld [vmem:[#allocation28_spill] sm:$0xff] }
  0xc7   : > { %13839 = vst [vmem:[#allocation25_spill] sm:$0xff] %v8657_v27 }
  0xc9   : > { %5402 = vrot.lane.b32.xlu1 %v5401_v56, %s7316_s13  ;;  %v13840_v56 = vld [vmem:[#allocation32_spill] sm:$0xff] }
  0xca   : > { %5397 = vrot.lane.b32.xlu0 %v5396_v20, %s7316_s13  ;;  %v8662_v23 = vpack.i.bf16 %v13841_v54, %v13840_v56  ;;  %v8665_v20 = vsel %vm790_vm2, %v1007_v22, %v1008_v34  ;;  %v1010_v56 = vrot.slane %v8481_v7, 2  ;;  %v1011_v22 = vrot.slane %v8483_v63, 2  ;;  %v8683_v34 = vld [vmem:[#allocation2 + $0x130] sm:$0xff]  ;;  %v13851_v54 = vld [vmem:[#allocation49_spill] sm:$0xff]  ;;  %13853 = vst [vmem:[#allocation32_spill] sm:$0xff] %v8691_v59  ;;  %v13855_v63 = vld [vmem:[#allocation42_spill] sm:$0xff] }
  0xcb   : > { %13843 = vst [vmem:[#allocation15_spill] sm:$0xff] %v8665_v20  ;;  %v8671_v43 = vpack.i.bf16 %v8665_v20, %v13844_v40  ;;  %v13850_v40 = vld [vmem:[#allocation43_spill] sm:$0xff]  ;;  %v13854_v7 = vld [vmem:[#allocation45_spill] sm:$0xff]  ;;  %v13859_v59 = vld [vmem:[#allocation60_spill] sm:$0xff] }
  0xcc   : > { %13842 = vst [vmem:[#allocation10_spill] sm:$0xff] %v8662_v23  ;;  %v8689_v53 = vpack.i.bf16 %v13851_v54, %v13850_v40  ;;  %v8703_v5 = vsel %vm790_vm2, %v1010_v56, %v1011_v22  ;;  %v8706_v54 = vpop.permute.xlu1 %5172  ;;  %v8708_v40 = vld [vmem:[#allocation2 + $0x1d0] sm:$0xff] }
  0xcd   : > { %5412 = vrot.lane.b32.xlu1 %v5411_v11, %s7316_s13  ;;  %13845 = vst [vmem:[#allocation20_spill] sm:$0xff] %v8671_v43  ;;  %v13846_v11 = vld [vmem:[#allocation38_spill] sm:$0xff]  ;;  %13857 = vst [vmem:[#allocation128_spill] sm:$0xff] %v8703_v5  ;;  %v1066_v56 = vrot.slane %v8708_v40, 3  ;;  %v13863_v22 = vld [vmem:[#allocation64_spill] sm:$0xff] }
  0xce   : > { %5407 = vrot.lane.b32.xlu0 %v5406_v28, %s7316_s13  ;;  %v8677_v28 = vpack.i.bf16 %v13847_v61, %v13846_v11  ;;  %13852 = vst [vmem:[#allocation21_spill] sm:$0xff] %v8689_v53  ;;  %v1063_v61 = vrot.slane %v8683_v34, 3  ;;  %v8700_v11 = vpack.i.bf16 %v13855_v63, %v13854_v7  ;;  %13858 = vst [vmem:[#allocation129_spill] sm:$0xff] %v8706_v54  ;;  %v13864_v63 = vld [vmem:[#allocation57_spill] sm:$0xff] }
  0xcf   : > { %v8726_v54 = vpack.i.bf16 %v13864_v63, %v13863_v22 }
  0xd0   : > { %13848 = vst [vmem:[#allocation23_spill] sm:$0xff] %v8677_v28  ;;  %13856 = vst [vmem:[#allocation45_spill] sm:$0xff] %v8700_v11 }
  0xd1   : > { %5422 = vrot.lane.b32.xlu1 %v8657_v27, %s7316_s13  ;;  %v8714_v27 = vpack.i.bf16 %v8703_v5, %v13859_v59  ;;  %13865 = vst [vmem:[#allocation133_spill] sm:$0xff] %v8726_v54  ;;  %v8730_v59 = vld [vmem:[#allocation2 + $0x1d8] sm:$0xf] }
  0xd2   : > { %5417 = vrot.lane.b32.xlu0 %v8662_v23, %s7316_s13  ;;  %v8693_v23 = vld [vmem:[#allocation2 + $0x138] sm:$0xf] }
  0xd3   : > { %13860 = vst [vmem:[#allocation130_spill] sm:$0xff] %v8714_v27 }
  0xd5   : > { %5432 = vrot.lane.b32.xlu1 %v8671_v43, %s7316_s13  ;;  %v1064_v43 = vrot.slane %v8693_v23, 3 }
  0xd6   : > { %5427 = vrot.lane.b32.xlu0 %v8677_v28, %s7316_s13  ;;  %v8716_v28 = vpop.permute.xlu0 %5162 }
  0xd7   : > { %13861 = vst [vmem:[#allocation131_spill] sm:$0xff] %v8716_v28  ;;  %v8719_v7 = vsel %vm887_vm3, %v1063_v61, %v1064_v43  ;;  %v1067_v28 = vrot.slane %v8730_v59, 3  ;;  %v13866_v43 = vld [vmem:[#allocation70_spill] sm:$0xff]  ;;  %v13867_v61 = vld [vmem:[#allocation77_spill] sm:$0xff] }
  0xd8   : > { %13862 = vst [vmem:[#allocation132_spill] sm:$0xff] %v8719_v7  ;;  %v8737_v7 = vpack.i.bf16 %v13867_v61, %v13866_v43  ;;  %v8757_v43 = vld [vmem:[#allocation2 + $0x278] sm:$0xf]  ;;  %v1069_v61 = vrot.slane %v8755_v44, 3 }
  0xd9   : > { %5442 = vrot.lane.b32.xlu1 %v8689_v53, %s7316_s13  ;;  %v1013_v53 = vrot.slane %v8544_v6, 2  ;;  %v8742_v63 = vsel %vm887_vm3, %v1066_v56, %v1067_v28  ;;  %v13871_v6 = vld [vmem:[#allocation73_spill] sm:$0xff]  ;;  %v13876_v28 = vld [vmem:[#allocation76_spill] sm:$0xff] }
  0xda   : > { %5437 = vrot.lane.b32.xlu0 %v8700_v11, %s7316_s13  ;;  %13868 = vst [vmem:[#allocation134_spill] sm:$0xff] %v8737_v7  ;;  %v8739_v11 = vpop.permute.xlu1 %5182  ;;  %13870 = vst [vmem:[#allocation136_spill] sm:$0xff] %v8742_v63  ;;  %v8748_v22 = vpack.i.bf16 %v13872_v47, %v13871_v6  ;;  %v8750_v19 = vpop.permute.xlu0 %5177  ;;  %v1070_v6 = vrot.slane %v8757_v43, 3 }
  0xdb   : > { %13869 = vst [vmem:[#allocation135_spill] sm:$0xff] %v8739_v11  ;;  %13874 = vst [vmem:[#allocation137_spill] sm:$0xff] %v8750_v19 }
  0xdc   : > { %13873 = vst [vmem:[#allocation73_spill] sm:$0xff] %v8748_v22  ;;  %v8776_v11 = vsel %vm887_vm3, %v1069_v61, %v1070_v6  ;;  %v13889_v6 = vld [vmem:[#allocation83_spill] sm:$0xff] }
  0xdd   : > { %5452 = vrot.lane.b32.xlu1 %v8714_v27, %s7316_s13  ;;  %v8753_v27 = vsel %vm790_vm2, %v1013_v53, %v1014_v57  ;;  %v13878_v57 = vld [vmem:[#allocation79_spill] sm:$0xff]  ;;  %13882 = vst [vmem:[#allocation142_spill] sm:$0xff] %v8776_v11 }
  0xde   : > { %5447 = vrot.lane.b32.xlu0 %v8726_v54, %s7316_s13  ;;  %13875 = vst [vmem:[#allocation138_spill] sm:$0xff] %v8753_v27  ;;  %v8763_v56 = vpack.i.bf16 %v8753_v27, %v13876_v28  ;;  %v13879_v53 = vld [vmem:[#allocation75_spill] sm:$0xff]  ;;  %v8773_v19 = vpop.permute.xlu1 %5192  ;;  %v13884_v28 = vld [vmem:[#allocation56_spill] sm:$0xff] }
  0xdf   : > { %v8771_v47 = vpack.i.bf16 %v13879_v53, %v13878_v57  ;;  %13881 = vst [vmem:[#allocation141_spill] sm:$0xff] %v8773_v19  ;;  %v13885_v54 = vld [vmem:[#allocation84_spill] sm:$0xff]  ;;  %v13887_v27 = vld [vmem:[#allocation51_spill] sm:$0xff]  ;;  %v5491_v57 = vpack.i.bf16 %v8595_v24, %v13889_v6 }
  0xe0   : > { %13877 = vst [vmem:[#allocation139_spill] sm:$0xff] %v8763_v56  ;;  %v5481_v63 = vpack.i.bf16 %v13885_v54, %v13884_v28  ;;  %v13891_v54 = vld [vmem:[#allocation85_spill] sm:$0xff] }
  0xe1   : > { %5462 = vrot.lane.b32.xlu1 %v8737_v7, %s7316_s13  ;;  %13880 = vst [vmem:[#allocation140_spill] sm:$0xff] %v8771_v47  ;;  %v8778_v7 = vpop.permute.xlu0 %5187  ;;  %v13892_v28 = vld [vmem:[#allocation81_spill] sm:$0xff] }
  0xe2   : > { %5457 = vrot.lane.b32.xlu0 %v8748_v22, %s7316_s13  ;;  %13883 = vst [vmem:[#allocation143_spill] sm:$0xff] %v8778_v7  ;;  %v13886_v22 = vld [vmem:[#allocation80_spill] sm:$0xff]  ;;  %v8789_v61 = vpop.permute.xlu1 %5202  ;;  %v5486_v19 = vpack.i.bf16 %v13892_v28, %v13891_v54  ;;  %v13901_v54 = vld [vmem:[#allocation93_spill] sm:$0xff] }
  0xe3   : > { %v5476_v53 = vpack.i.bf16 %v13887_v27, %v13886_v22  ;;  %13888 = vst [vmem:[#allocation56_spill] sm:$0xff] %v8789_v61  ;;  %v13893_v27 = vld [vmem:[#allocation90_spill] sm:$0xff]  ;;  %v13897_v61 = vld [vmem:[#allocation89_spill] sm:$0xff]  ;;  %v13904_v28 = vld [vmem:[#allocation92_spill] sm:$0xff] }
  0xe4   : > { %v13894_v22 = vld [vmem:[#allocation94_spill] sm:$0xff] }
  0xe5   : > { %5472 = vrot.lane.b32.xlu1 %v8763_v56, %s7316_s13  ;;  %v8794_v7 = vpop.permute.xlu0 %5197 }
  0xe6   : > { %5467 = vrot.lane.b32.xlu0 %v8771_v47, %s7316_s13  ;;  %13890 = vst [vmem:[#allocation84_spill] sm:$0xff] %v8794_v7  ;;  %v8801_v47 = vpack.i.bf16 %v13894_v22, %v13893_v27  ;;  %v5069_v27 = vld [vmem:[%s7659_s9 + $0x60] sm:$0xff]   ;;  %v5070_v22 = vld [vmem:[%s7659_s9 + $0x68] sm:$0xff]  }
  0xe8   : > { %13895 = vst [vmem:[#allocation80_spill] sm:$0xff] %v8801_v47 }
  0xe9   : > { %5482 = vrot.lane.b32.xlu1 %v5481_v63, %s7317_s14  ;;  %v13896_v63 = vld [vmem:[#allocation91_spill] sm:$0xff] }
  0xea   : > { %5477 = vrot.lane.b32.xlu0 %v5476_v53, %s7317_s14  ;;  %v8806_v56 = vpack.i.bf16 %v13897_v61, %v13896_v63 }
  0xec   : > { %13898 = vst [vmem:[#allocation51_spill] sm:$0xff] %v8806_v56 }
  0xed   : > { %5492 = vrot.lane.b32.xlu1 %v5491_v57, %s7317_s14  ;;  %v8808_v6 = vpop.permute.xlu1 %5212  ;;  %v8816_v57 = vpack.i.bf16 %v8619_v33, %v13901_v54  ;;  %v13908_v54 = vld [vmem:[#allocation101_spill] sm:$0xff] }
  0xee   : > { %5487 = vrot.lane.b32.xlu0 %v5486_v19, %s7317_s14  ;;  %13899 = vst [vmem:[#allocation83_spill] sm:$0xff] %v8808_v6  ;;  %v13903_v19 = vld [vmem:[#allocation95_spill] sm:$0xff]  ;;  %v5048_v6 = vunpack.c.l.bf16 %v5070_v22  ;;  %v8846_v33 = vld [vmem:[%s7659_s9 + $0x78] sm:$0xff]  }
  0xef   : > { %v8810_v53 = vpop.permute.xlu0 %5207  ;;  %13902 = vst [vmem:[#allocation81_spill] sm:$0xff] %v8816_v57  ;;  %v8822_v61 = vpack.i.bf16 %v13904_v28, %v13903_v19  ;;  %v5044_v19 = vunpack.c.l.bf16 %v5069_v27  ;;  %v13911_v28 = vld [vmem:[#allocation102_spill] sm:$0xff] }
  0xf0   : > { %13900 = vst [vmem:[#allocation85_spill] sm:$0xff] %v8810_v53  ;;  %v5045_v53 = vunpack.c.h.bf16 %v5069_v27  ;;  %471 = vst.msk [vmem:[#allocation2 + $0x2b2] sm:$0xff] %vm258_vm0, %v5048_v6  ;;  %v13916_v6 = vld [vmem:[#allocation53_spill] sm:$0xff] }
  0xf1   : > { %5502 = vrot.lane.b32.xlu1 %v8801_v47, %s7317_s14  ;;  %13905 = vst [vmem:[#allocation90_spill] sm:$0xff] %v8822_v61  ;;  %v8826_v63 = vpop.permute.xlu1 %5222  ;;  %v13909_v47 = vld [vmem:[#allocation47_spill] sm:$0xff]  ;;  %469 = vst.msk [vmem:[#allocation2 + $0x292] sm:$0xff] %vm258_vm0, %v5044_v19  ;;  %v8858_v27 = vpack.i.bf16 %v8624_v41, %v13916_v6  ;;  %v13918_v19 = vld [vmem:[#allocation48_spill] sm:$0xff] }
  0xf2   : > { %5497 = vrot.lane.b32.xlu0 %v8806_v56, %s7317_s14  ;;  %13906 = vst [vmem:[#allocation94_spill] sm:$0xff] %v8826_v63  ;;  %v8834_v11 = vpack.i.bf16 %v13909_v47, %v13908_v54  ;;  %470 = vst.msk [vmem:[#allocation2 + $0x2a2] sm:$0xff] %vm258_vm0, %v5045_v53  ;;  %v13912_v56 = vld [vmem:[#allocation100_spill] sm:$0xff]  ;;  %v5056_v53 = vunpack.c.l.bf16 %v8846_v33 }
  0xf3   : > { %v8842_v63 = vpack.i.bf16 %v13912_v56, %v13911_v28  ;;  %13917 = vst [vmem:[#allocation101_spill] sm:$0xff] %v8858_v27  ;;  %v5049_v56 = vunpack.c.h.bf16 %v5070_v22 }
  0xf4   : > { %v8828_v7 = vpop.permute.xlu0 %5217  ;;  %13910 = vst [vmem:[#allocation89_spill] sm:$0xff] %v8834_v11  ;;  %475 = vst.msk [vmem:[#allocation2 + $0x2f2] sm:$0xff] %vm258_vm0, %v5056_v53  ;;  %v8894_v53 = vpack.i.bf16 %v8642_v8, %v8291_v16  ;;  %v5556_v16 = vpack.i.bf16 %v8304_v42, %v8323_v15  ;;  %v1049_v42 = vrot.slane %v8573_v37, 2 }
  0xf5   : > { %13907 = vst [vmem:[#allocation91_spill] sm:$0xff] %v8828_v7  ;;  %5512 = vrot.lane.b32.xlu1 %v8816_v57, %s7317_s14  ;;  %13913 = vst [vmem:[#allocation93_spill] sm:$0xff] %v8842_v63  ;;  %v5071_v7 = vld [vmem:[%s7659_s9 + $0x70] sm:$0xff]   ;;  %v8848_v57 = vpop.permute.xlu1 %5232  ;;  %s7327_s9 = smov 60  }
  0xf6   : > { %5507 = vrot.lane.b32.xlu0 %v8822_v61, %s7317_s14  ;;  %13914 = vst [vmem:[#allocation95_spill] sm:$0xff] %v8848_v57  ;;  %v5053_v47 = vunpack.c.h.bf16 %v5071_v7  ;;  %v5052_v28 = vunpack.c.l.bf16 %v5071_v7  ;;  %v13919_v61 = vld [vmem:[#allocation52_spill] sm:$0xff]  ;;  %472 = vst.msk [vmem:[#allocation2 + $0x2c2] sm:$0xff] %vm258_vm0, %v5049_v56  ;;  %v8878_v7 = vpack.i.bf16 %v8342_v29, %v8277_v18  ;;  %v8900_v18 = vpack.i.bf16 %v8286_v49, %v8352_v39 }
  0xf7   : > { %v8866_v57 = vpack.i.bf16 %v13919_v61, %v13918_v19  ;;  %v8884_v61 = vpack.i.bf16 %v8274_v55, %v8283_v13  ;;  %13927 = vst [vmem:[#allocation145_spill] sm:$0xff] %v8894_v53  ;;  %v1036_v55 = vrot.slane %v8571_v48, 1  ;;  %v1037_v13 = vrot.slane %v8573_v37, 1 }
  0xf8   : > { %v8852_v54 = vpop.permute.xlu0 %5227  ;;  %474 = vst.msk [vmem:[#allocation2 + $0x2e2] sm:$0xff] %vm258_vm0, %v5053_v47  ;;  %473 = vst.msk [vmem:[#allocation2 + $0x2d2] sm:$0xff] %vm258_vm0, %v5052_v28  ;;  %v13933_v19 = vpack.i.bf16 %v8416_v2, %v8311_v12  ;;  %v13967_v12 = vld [vmem:[#allocation24_spill] sm:$0xff] }
  0xf9   : > { %13915 = vst [vmem:[#allocation92_spill] sm:$0xff] %v8852_v54  ;;  %5522 = vrot.lane.b32.xlu1 %v8834_v11, %s7317_s14  ;;  %13920 = vst [vmem:[#allocation47_spill] sm:$0xff] %v8866_v57  ;;  %v1038_v49 = vsel %vm661_vm4, %v1036_v55, %v1037_v13  ;;  %v8934_v13 = vpack.i.bf16 %v8410_v46, %v8372_v30  ;;  %v9102_v2 = vld [vmem:[#allocation2 + $0x2a8] sm:$0xf] }
  0xfa   : > { %5517 = vrot.lane.b32.xlu0 %v8842_v63, %s7317_s14  ;;  %v8868_v54 = vpop.permute.xlu1 %5242  ;;  %13923 = vst [vmem:[#allocation53_spill] sm:$0xff] %v8878_v7  ;;  %13924 = vst [vmem:[#allocation48_spill] sm:$0xff] %v8884_v61 }
  0xfb   : > { %13921 = vst [vmem:[#allocation102_spill] sm:$0xff] %v8868_v54  ;;  %13928 = vst [vmem:[#allocation146_spill] sm:$0xff] %v8900_v18 }
  0xfc   : > { %v8872_v6 = vpop.permute.xlu0 %5237  ;;  %13936 = vst [vmem:[#allocation153_spill] sm:$0xff] %v8934_v13 }
  0xfd   : > { %13922 = vst [vmem:[#allocation100_spill] sm:$0xff] %v8872_v6  ;;  %5532 = vrot.lane.b32.xlu1 %v8858_v27, %s7317_s14  ;;  %v13988_v27 = vld [vmem:[#allocation82_spill] sm:$0xff] }
  0xfe   : > { %5527 = vrot.lane.b32.xlu0 %v8866_v57, %s7317_s14  ;;  %v8886_v22 = vpop.permute.xlu1 %5252  ;;  %v9131_v57 = vld [vmem:[#allocation2 + $0x290] sm:$0xff] }
  0xff   : > { %13925 = vst [vmem:[#allocation52_spill] sm:$0xff] %v8886_v22  ;;  %v1040_v22 = vrot.slane %v8693_v23, 1  ;;  %v9148_v63 = vld [vmem:[#allocation2 + $0x2e0] sm:$0xff] }
 0x100   : > { %v8888_v47 = vpop.permute.xlu0 %5247 }
 0x101   : > { %13926 = vst [vmem:[#allocation144_spill] sm:$0xff] %v8888_v47  ;;  %5542 = vrot.lane.b32.xlu1 %v8878_v7, %s7317_s14  ;;  %v1039_v47 = vrot.slane %v8683_v34, 1 }
 0x102   : > { %5537 = vrot.lane.b32.xlu0 %v8884_v61, %s7317_s14  ;;  %v8904_v29 = vpop.permute.xlu1 %5262 }
 0x103   : > { %13929 = vst [vmem:[#allocation147_spill] sm:$0xff] %v8904_v29 }
 0x104   : > { %v8906_v56 = vpop.permute.xlu0 %5257 }
 0x105   : > { %13930 = vst [vmem:[#allocation148_spill] sm:$0xff] %v8906_v56  ;;  %5552 = vrot.lane.b32.xlu1 %v8894_v53, %s7317_s14  ;;  %v5571_v56 = vpack.i.bf16 %v1038_v49, %v8405_v1  ;;  %v13937_v1 = vpack.i.bf16 %v8337_v45, %v8358_v31  ;;  %v1041_v49 = vsel %vm661_vm4, %v1039_v47, %v1040_v22  ;;  %v1043_v22 = vrot.slane %v8730_v59, 1 }
 0x106   : > { %5547 = vrot.lane.b32.xlu0 %v8900_v18, %s7317_s14  ;;  %v8915_v39 = vpop.permute.xlu1 %5272  ;;  %v1051_v31 = vrot.slane %v8683_v34, 2  ;;  %v13971_v34 = vld [vmem:[#allocation41_spill] sm:$0xff]  ;;  %v9123_v18 = vld [vmem:[#allocation2 + $0x288] sm:$0xf] }
 0x107   : > { %13931 = vst [vmem:[#allocation149_spill] sm:$0xff] %v8915_v39  ;;  %v14033_v39 = vld [vmem:[#allocation107_spill] sm:$0xff] }
 0x108   : > { %v8917_v28 = vpop.permute.xlu0 %5267 }
 0x109   : > { %13932 = vst [vmem:[#allocation150_spill] sm:$0xff] %v8917_v28  ;;  %5562 = vrot.lane.b32.xlu1 %v13933_v19, %s7318_s15 }
 0x10a   : > { %5557 = vrot.lane.b32.xlu0 %v5556_v16, %s7318_s15  ;;  %v8927_v6 = vpop.permute.xlu1 %5282  ;;  %v8942_v16 = vpack.i.bf16 %v8365_v35, %v8388_v26 }
 0x10b   : > { %13934 = vst [vmem:[#allocation151_spill] sm:$0xff] %v8927_v6  ;;  %v1042_v6 = vrot.slane %v8708_v40, 1 }
 0x10c   : > { %v8929_v55 = vpop.permute.xlu0 %5277  ;;  %13938 = vst [vmem:[#allocation154_spill] sm:$0xff] %v8942_v16 }
 0x10d   : > { %13935 = vst [vmem:[#allocation152_spill] sm:$0xff] %v8929_v55  ;;  %5572 = vrot.lane.b32.xlu1 %v5571_v56, %s7318_s15  ;;  %v8952_v56 = vpack.i.bf16 %v1041_v49, %v8457_v9  ;;  %v8970_v9 = vpack.i.bf16 %v8461_v14, %v8504_v52  ;;  %v8976_v49 = vpack.i.bf16 %v8425_v62, %v8439_v38  ;;  %v1045_v14 = vrot.slane %v8755_v44, 1 }
 0x10e   : > { %5567 = vrot.lane.b32.xlu0 %v13937_v1, %s7318_s15  ;;  %v8958_v1 = vpack.i.bf16 %v8391_v3, %v8419_v32  ;;  %v8992_v52 = vpack.i.bf16 %v8445_v60, %v8467_v36  ;;  %v1048_v62 = vrot.slane %v8571_v48, 2  ;;  %v7243_v3 = vld [vmem:[#allocation2 + $0x148] sm:$0xf] }
 0x10f   : > { %v8945_v19 = vpop.permute.xlu1 %5292  ;;  %13941 = vst [vmem:[#allocation157_spill] sm:$0xff] %v8952_v56  ;;  %13945 = vst [vmem:[#allocation161_spill] sm:$0xff] %v8970_v9  ;;  %v711_v26 = vrot.slane %v7243_v3, 1  ;;  %v14039_v3 = vld [vmem:[#allocation111_spill] sm:$0xff] }
 0x110   : > { %13939 = vst [vmem:[#allocation155_spill] sm:$0xff] %v8945_v19  ;;  %v8947_v55 = vpop.permute.xlu0 %5287  ;;  %13942 = vst [vmem:[#allocation158_spill] sm:$0xff] %v8958_v1  ;;  %v1044_v19 = vsel %vm661_vm4, %v1042_v6, %v1043_v22  ;;  %v1046_v6 = vrot.slane %v8757_v43, 1 }
 0x111   : > { %13940 = vst [vmem:[#allocation156_spill] sm:$0xff] %v8947_v55  ;;  %5582 = vrot.lane.b32.xlu1 %v8934_v13, %s7318_s15  ;;  %13946 = vst [vmem:[#allocation162_spill] sm:$0xff] %v8976_v49 }
 0x112   : > { %5577 = vrot.lane.b32.xlu0 %v8942_v16, %s7318_s15  ;;  %13950 = vst [vmem:[#allocation166_spill] sm:$0xff] %v8992_v52  ;;  %v1047_v36 = vsel %vm661_vm4, %v1045_v14, %v1046_v6  ;;  %v9028_v14 = vpack.i.bf16 %v8507_v51, %v8523_v4  ;;  %v13997_v51 = vld [vmem:[#allocation88_spill] sm:$0xff] }
 0x113   : > { %v8962_v47 = vpop.permute.xlu1 %5302 }
 0x114   : > { %13943 = vst [vmem:[#allocation159_spill] sm:$0xff] %v8962_v47  ;;  %v8964_v55 = vpop.permute.xlu0 %5297  ;;  %13958 = vst [vmem:[#allocation174_spill] sm:$0xff] %v9028_v14 }
 0x115   : > { %13944 = vst [vmem:[#allocation160_spill] sm:$0xff] %v8964_v55  ;;  %5592 = vrot.lane.b32.xlu1 %v8952_v56, %s7318_s15  ;;  %v8986_v55 = vpack.i.bf16 %v1044_v19, %v8540_v10  ;;  %v9004_v10 = vpack.i.bf16 %v8518_v17, %v8564_v58  ;;  %v9010_v19 = vpack.i.bf16 %v8477_v21, %v8499_v25 }
 0x116   : > { %5587 = vrot.lane.b32.xlu0 %v8958_v1, %s7318_s15 }
 0x117   : > { %v8979_v54 = vpop.permute.xlu1 %5312  ;;  %13949 = vst [vmem:[#allocation165_spill] sm:$0xff] %v8986_v55  ;;  %13953 = vst [vmem:[#allocation169_spill] sm:$0xff] %v9004_v10 }
 0x118   : > { %13947 = vst [vmem:[#allocation163_spill] sm:$0xff] %v8979_v54  ;;  %v8981_v15 = vpop.permute.xlu0 %5307  ;;  %13954 = vst [vmem:[#allocation170_spill] sm:$0xff] %v9010_v19  ;;  %v9179_v54 = vld [vmem:[#allocation2 + $0x2c8] sm:$0xf] }
 0x119   : > { %13948 = vst [vmem:[#allocation164_spill] sm:$0xff] %v8981_v15  ;;  %5602 = vrot.lane.b32.xlu1 %v8970_v9, %s7318_s15  ;;  %v13994_v15 = vld [vmem:[#allocation78_spill] sm:$0xff]  ;;  %v1149_v17 = vrot.slane %v9179_v54, 3 }
 0x11a   : > { %5597 = vrot.lane.b32.xlu0 %v8976_v49, %s7318_s15 }
 0x11b   : > { %v8996_v22 = vpop.permute.xlu1 %5322 }
 0x11c   : > { %13951 = vst [vmem:[#allocation167_spill] sm:$0xff] %v8996_v22  ;;  %v8998_v38 = vpop.permute.xlu0 %5317 }
 0x11d   : > { %13952 = vst [vmem:[#allocation168_spill] sm:$0xff] %v8998_v38  ;;  %5612 = vrot.lane.b32.xlu1 %v8986_v55, %s7318_s15  ;;  %v9020_v38 = vpack.i.bf16 %v1047_v36, %v8592_v0  ;;  %v1050_v36 = vsel %vm790_vm2, %v1048_v62, %v1049_v42  ;;  %v1052_v42 = vrot.slane %v8693_v23, 2 }
 0x11e   : > { %5607 = vrot.lane.b32.xlu0 %v8992_v52, %s7318_s15  ;;  %v5651_v37 = vpack.i.bf16 %v1050_v36, %v8639_v50 }
 0x11f   : > { %v9013_v60 = vpop.permute.xlu1 %5332  ;;  %13957 = vst [vmem:[#allocation173_spill] sm:$0xff] %v9020_v38  ;;  %v9058_v50 = vsel %vm790_vm2, %v1051_v31, %v1052_v42  ;;  %v13975_v42 = vld [vmem:[#allocation37_spill] sm:$0xff] }
 0x120   : > { %13955 = vst [vmem:[#allocation171_spill] sm:$0xff] %v9013_v60  ;;  %v9015_v22 = vpop.permute.xlu0 %5327  ;;  %v13963_v60 = vld [vmem:[#allocation14_spill] sm:$0xff]  ;;  %13968 = vst [vmem:[#allocation24_spill] sm:$0xff] %v9058_v50  ;;  %v5671_v23 = vpack.i.bf16 %v9058_v50, %v8665_v20 }
 0x121   : > { %13956 = vst [vmem:[#allocation172_spill] sm:$0xff] %v9015_v22  ;;  %5622 = vrot.lane.b32.xlu1 %v9004_v10, %s7318_s15 }
 0x122   : > { %5617 = vrot.lane.b32.xlu0 %v9010_v19, %s7318_s15 }
 0x123   : > { %v9030_v6 = vpop.permute.xlu1 %5342 }
 0x124   : > { %13959 = vst [vmem:[#allocation175_spill] sm:$0xff] %v9030_v6  ;;  %v9032_v22 = vpop.permute.xlu0 %5337 }
 0x125   : > { %13960 = vst [vmem:[#allocation176_spill] sm:$0xff] %v9032_v22  ;;  %5632 = vrot.lane.b32.xlu1 %v9020_v38, %s7318_s15  ;;  %v13964_v22 = vld [vmem:[#allocation27_spill] sm:$0xff] }
 0x126   : > { %5627 = vrot.lane.b32.xlu0 %v9028_v14, %s7318_s15 }
 0x127   : > { %v9039_v0 = vpop.permute.xlu1 %5352 }
 0x128   : > { %13961 = vst [vmem:[#allocation177_spill] sm:$0xff] %v9039_v0  ;;  %v9041_v48 = vpop.permute.xlu0 %5347 }
 0x129   : > { %13962 = vst [vmem:[#allocation178_spill] sm:$0xff] %v9041_v48  ;;  %5642 = vrot.lane.b32.xlu1 %v13963_v60, %s7319_s16 }
 0x12a   : > { %5637 = vrot.lane.b32.xlu0 %v13964_v22, %s7319_s16  ;;  %v13972_v22 = vld [vmem:[#allocation31_spill] sm:$0xff] }
 0x12b   : > { %v9050_v62 = vpop.permute.xlu1 %5362 }
 0x12c   : > { %13965 = vst [vmem:[#allocation14_spill] sm:$0xff] %v9050_v62  ;;  %v9052_v45 = vpop.permute.xlu0 %5357  ;;  %v9100_v62 = vld [vmem:[#allocation2 + $0x2a0] sm:$0xff] }
 0x12d   : > { %13966 = vst [vmem:[#allocation27_spill] sm:$0xff] %v9052_v45  ;;  %5652 = vrot.lane.b32.xlu1 %v5651_v37, %s7319_s16  ;;  %v1054_v37 = vrot.slane %v8708_v40, 2  ;;  %v13979_v40 = vld [vmem:[#allocation68_spill] sm:$0xff]  ;;  %v1142_v38 = vrot.slane %v9100_v62, 3 }
 0x12e   : > { %5647 = vrot.lane.b32.xlu0 %v13967_v12, %s7319_s16  ;;  %v1055_v12 = vrot.slane %v8730_v59, 2 }
 0x12f   : > { %v9060_v60 = vpop.permute.xlu1 %5372 }
 0x130   : > { %13969 = vst [vmem:[#allocation179_spill] sm:$0xff] %v9060_v60  ;;  %v9062_v36 = vpop.permute.xlu0 %5367  ;;  %v1058_v60 = vrot.slane %v8757_v43, 2  ;;  %v13984_v43 = vld [vmem:[#allocation63_spill] sm:$0xff] }
 0x131   : > { %13970 = vst [vmem:[#allocation180_spill] sm:$0xff] %v9062_v36  ;;  %5662 = vrot.lane.b32.xlu1 %v13971_v34, %s7319_s16  ;;  %v9080_v36 = vsel %vm790_vm2, %v1054_v37, %v1055_v12 }
 0x132   : > { %5657 = vrot.lane.b32.xlu0 %v13972_v22, %s7319_s16  ;;  %13976 = vst [vmem:[#allocation37_spill] sm:$0xff] %v9080_v36  ;;  %v9090_v59 = vpack.i.bf16 %v9080_v36, %v8703_v5  ;;  %v9106_v5 = vld [vmem:[#allocation2 + $0x2b0] sm:$0xff]  ;;  %v9108_v36 = vld [vmem:[#allocation2 + $0x2b8] sm:$0xf] }
 0x133   : > { %v9072_v45 = vpop.permute.xlu1 %5382  ;;  %v1145_v55 = vrot.slane %v9106_v5, 3 }
 0x134   : > { %13973 = vst [vmem:[#allocation41_spill] sm:$0xff] %v9072_v45  ;;  %v9074_v31 = vpop.permute.xlu0 %5377  ;;  %13980 = vst [vmem:[#allocation183_spill] sm:$0xff] %v9090_v59 }
 0x135   : > { %13974 = vst [vmem:[#allocation31_spill] sm:$0xff] %v9074_v31  ;;  %5672 = vrot.lane.b32.xlu1 %v5671_v23, %s7319_s16  ;;  %v13981_v31 = vld [vmem:[#allocation44_spill] sm:$0xff]  ;;  %v1057_v23 = vrot.slane %v8755_v44, 2  ;;  %v1143_v44 = vrot.slane %v9102_v2, 3 }
 0x136   : > { %5667 = vrot.lane.b32.xlu0 %v13975_v42, %s7319_s16 }
 0x137   : > { %v9082_v20 = vpop.permute.xlu1 %5392  ;;  %v9126_v53 = vsel %vm887_vm3, %v1142_v38, %v1143_v44  ;;  %v9143_v38 = vld [vmem:[#allocation2 + $0x298] sm:$0xf]  ;;  %v1139_v44 = vrot.slane %v9131_v57, 3 }
 0x138   : > { %13977 = vst [vmem:[#allocation181_spill] sm:$0xff] %v9082_v20  ;;  %v9084_v50 = vpop.permute.xlu0 %5387  ;;  %v1140_v11 = vrot.slane %v9143_v38, 3 }
 0x139   : > { %13978 = vst [vmem:[#allocation182_spill] sm:$0xff] %v9084_v50  ;;  %5682 = vrot.lane.b32.xlu1 %v13979_v40, %s7319_s16 }
 0x13a   : > { %5677 = vrot.lane.b32.xlu0 %v13981_v31, %s7319_s16  ;;  %v9165_v0 = vsel %vm887_vm3, %v1139_v44, %v1140_v11 }
 0x13b   : > { %v9096_v37 = vpop.permute.xlu1 %5402 }
 0x13c   : > { %13982 = vst [vmem:[#allocation184_spill] sm:$0xff] %v9096_v37  ;;  %v9098_v12 = vpop.permute.xlu0 %5397  ;;  %v9117_v37 = vld [vmem:[#allocation2 + $0x280] sm:$0xff] }
 0x13d   : > { %13983 = vst [vmem:[#allocation185_spill] sm:$0xff] %v9098_v12  ;;  %5692 = vrot.lane.b32.xlu1 %v9090_v59, %s7319_s16  ;;  %v9115_v12 = vsel %vm790_vm2, %v1057_v23, %v1058_v60  ;;  %v1146_v59 = vrot.slane %v9108_v36, 3  ;;  %v1136_v61 = vrot.slane %v9117_v37, 3  ;;  %v1137_v23 = vrot.slane %v9123_v18, 3 }
 0x13e   : > { %5687 = vrot.lane.b32.xlu0 %v13984_v43, %s7319_s16  ;;  %13985 = vst [vmem:[#allocation186_spill] sm:$0xff] %v9115_v12 }
 0x13f   : > { %v9121_v56 = vpop.permute.xlu1 %5412  ;;  %v9134_v60 = vsel %vm887_vm3, %v1145_v55, %v1146_v59  ;;  %v9150_v55 = vld [vmem:[#allocation2 + $0x2e8] sm:$0xf]  ;;  %v9153_v59 = vsel %vm887_vm3, %v1136_v61, %v1137_v23  ;;  %v9170_v61 = vld [vmem:[#allocation2 + $0x2f8] sm:$0xf]  ;;  %v9172_v23 = vld [vmem:[#allocation2 + $0x2c0] sm:$0xff] }
 0x140   : > { %13986 = vst [vmem:[#allocation187_spill] sm:$0xff] %v9121_v56  ;;  %v9129_v7 = vpop.permute.xlu0 %5407  ;;  %v13989_v56 = vld [vmem:[#allocation138_spill] sm:$0xff]  ;;  %v1155_v45 = vrot.slane %v9150_v55, 3  ;;  %v1158_v11 = vrot.slane %v9170_v61, 3  ;;  %v1148_v44 = vrot.slane %v9172_v23, 3 }
 0x141   : > { %13987 = vst [vmem:[#allocation188_spill] sm:$0xff] %v9129_v7  ;;  %5702 = vrot.lane.b32.xlu1 %v13988_v27, %s7319_s16  ;;  %v9141_v50 = vpack.i.bf16 %v9115_v12, %v13989_v56  ;;  %v13991_v7 = vld [vmem:[#allocation72_spill] sm:$0xff]  ;;  %v1154_v12 = vrot.slane %v9148_v63, 3 }
 0x142   : > { %5697 = vrot.lane.b32.xlu0 %v13991_v7, %s7319_s16  ;;  %v9158_v56 = vld [vmem:[#allocation2 + $0x2f0] sm:$0xff]  ;;  %v9200_v25 = vsel %vm887_vm3, %v1148_v44, %v1149_v17 }
 0x143   : > { %13990 = vst [vmem:[#allocation189_spill] sm:$0xff] %v9141_v50  ;;  %v9156_v20 = vpop.permute.xlu1 %5422  ;;  %v1157_v6 = vrot.slane %v9158_v56, 3 }
 0x144   : > { %13992 = vst [vmem:[#allocation190_spill] sm:$0xff] %v9156_v20  ;;  %v9162_v48 = vpop.permute.xlu0 %5417  ;;  %v9175_v20 = vsel %vm887_vm3, %v1154_v12, %v1155_v45 }
 0x145   : > { %13993 = vst [vmem:[#allocation191_spill] sm:$0xff] %v9162_v48  ;;  %5712 = vrot.lane.b32.xlu1 %v9141_v50, %s7319_s16  ;;  %v9181_v48 = vld [vmem:[#allocation2 + $0x2d0] sm:$0xff]  ;;  %v9187_v50 = vld [vmem:[#allocation2 + $0x2d8] sm:$0xf]  ;;  %v9194_v4 = vsel %vm887_vm3, %v1157_v6, %v1158_v11 }
 0x146   : > { %5707 = vrot.lane.b32.xlu0 %v13994_v15, %s7319_s16  ;;  %v1151_v45 = vrot.slane %v9181_v48, 3  ;;  %v1152_v47 = vrot.slane %v9187_v50, 3  ;;  %v14001_v6 = vld [vmem:[#allocation124_spill] sm:$0xff] }
 0x147   : > { %v9185_v58 = vpop.permute.xlu1 %5432  ;;  %v14002_v11 = vpack.i.bf16 %v14001_v6, %v8595_v24  ;;  %v14013_v6 = vld [vmem:[#allocation98_spill] sm:$0xff] }
 0x148   : > { %13995 = vst [vmem:[#allocation192_spill] sm:$0xff] %v9185_v58  ;;  %v9191_v12 = vpop.permute.xlu0 %5427  ;;  %v13998_v58 = vld [vmem:[#allocation86_spill] sm:$0xff]  ;;  %v9205_v28 = vsel %vm887_vm3, %v1151_v45, %v1152_v47  ;;  %v14007_v47 = vld [vmem:[#allocation127_spill] sm:$0xff]  ;;  %v14008_v45 = vld [vmem:[#allocation132_spill] sm:$0xff] }
 0x149   : > { %13996 = vst [vmem:[#allocation193_spill] sm:$0xff] %v9191_v12  ;;  %5722 = vrot.lane.b32.xlu1 %v13997_v51, %s7320_s17  ;;  %v14003_v51 = vld [vmem:[#allocation87_spill] sm:$0xff] }
 0x14a   : > { %5717 = vrot.lane.b32.xlu0 %v13998_v58, %s7320_s17  ;;  %v14006_v58 = vld [vmem:[#allocation99_spill] sm:$0xff] }
 0x14b   : > { %v9207_v21 = vpop.permute.xlu1 %5442 }
 0x14c   : > { %13999 = vst [vmem:[#allocation88_spill] sm:$0xff] %v9207_v21  ;;  %v9209_v12 = vpop.permute.xlu0 %5437  ;;  %v9225_v21 = vpack.i.bf16 %v14008_v45, %v14007_v47  ;;  %v14016_v47 = vld [vmem:[#allocation67_spill] sm:$0xff]  ;;  %v14017_v45 = vld [vmem:[#allocation136_spill] sm:$0xff] }
 0x14d   : > { %14000 = vst [vmem:[#allocation86_spill] sm:$0xff] %v9209_v12  ;;  %5732 = vrot.lane.b32.xlu1 %v14002_v11, %s7320_s17  ;;  %v14010_v12 = vld [vmem:[#allocation96_spill] sm:$0xff] }
 0x14e   : > { %5727 = vrot.lane.b32.xlu0 %v14003_v51, %s7320_s17  ;;  %14009 = vst [vmem:[#allocation127_spill] sm:$0xff] %v9225_v21  ;;  %v5057_v51 = vunpack.c.h.bf16 %v8846_v33  ;;  %v14022_v33 = vld [vmem:[#allocation65_spill] sm:$0xff] }
 0x14f   : > { %v9217_v17 = vpop.permute.xlu1 %5452 }
 0x150   : > { %14004 = vst [vmem:[#allocation124_spill] sm:$0xff] %v9217_v17  ;;  %v9219_v44 = vpop.permute.xlu0 %5447  ;;  %v9246_v17 = vpack.i.bf16 %v14017_v45, %v8624_v41  ;;  %476 = vst.msk [vmem:[#allocation2 + $0x302] sm:$0xff] %vm258_vm0, %v5057_v51  ;;  %v14025_v41 = vld [vmem:[#allocation108_spill] sm:$0xff]  ;;  %v14026_v51 = vld [vmem:[#allocation142_spill] sm:$0xff] }
 0x151   : > { %14005 = vst [vmem:[#allocation87_spill] sm:$0xff] %v9219_v44  ;;  %5742 = vrot.lane.b32.xlu1 %v14006_v58, %s7320_s17  ;;  %v9267_v45 = vpack.i.bf16 %v14026_v51, %v8642_v8  ;;  %v7242_v51 = vld [vmem:[#allocation2 + $0x140] sm:$0xff] }
 0x152   : > { %5737 = vrot.lane.b32.xlu0 %v14010_v12, %s7320_s17  ;;  %14018 = vst [vmem:[#allocation136_spill] sm:$0xff] %v9246_v17  ;;  %v710_v32 = vrot.slane %v7242_v51, 1 }
 0x153   : > { %v9229_v30 = vpop.permute.xlu1 %5462  ;;  %14027 = vst [vmem:[#allocation142_spill] sm:$0xff] %v9267_v45 }
 0x154   : > { %14011 = vst [vmem:[#allocation132_spill] sm:$0xff] %v9229_v30  ;;  %v9231_v24 = vpop.permute.xlu0 %5457 }
 0x155   : > { %14012 = vst [vmem:[#allocation194_spill] sm:$0xff] %v9231_v24  ;;  %5752 = vrot.lane.b32.xlu1 %v9225_v21, %s7320_s17  ;;  %v14019_v24 = vld [vmem:[#allocation61_spill] sm:$0xff] }
 0x156   : > { %5747 = vrot.lane.b32.xlu0 %v14013_v6, %s7320_s17 }
 0x157   : > { %v9237_v11 = vpop.permute.xlu1 %5472 }
 0x158   : > { %14014 = vst [vmem:[#allocation195_spill] sm:$0xff] %v9237_v11  ;;  %v9240_v44 = vpop.permute.xlu0 %5467 }
 0x159   : > { %14015 = vst [vmem:[#allocation196_spill] sm:$0xff] %v9240_v44  ;;  %5762 = vrot.lane.b32.xlu1 %v14016_v47, %s7320_s17 }
 0x15a   : > { %5757 = vrot.lane.b32.xlu0 %v14019_v24, %s7320_s17 }
 0x15b   : > { %v9251_v21 = vpop.permute.xlu1 %5482 }
 0x15c   : > { %14020 = vst [vmem:[#allocation197_spill] sm:$0xff] %v9251_v21  ;;  %v9253_v30 = vpop.permute.xlu0 %5477  ;;  %v14028_v21 = vld [vmem:[#allocation9_spill] sm:$0xff] }
 0x15d   : > { %14021 = vst [vmem:[#allocation198_spill] sm:$0xff] %v9253_v30  ;;  %5772 = vrot.lane.b32.xlu1 %v9246_v17, %s7320_s17 }
 0x15e   : > { %5767 = vrot.lane.b32.xlu0 %v14022_v33, %s7320_s17 }
 0x15f   : > { %v9259_v44 = vpop.permute.xlu1 %5492 }
 0x160   : > { %14023 = vst [vmem:[#allocation199_spill] sm:$0xff] %v9259_v44  ;;  %v9261_v11 = vpop.permute.xlu0 %5487  ;;  %v14031_v44 = vld [vmem:[#allocation104_spill] sm:$0xff] }
 0x161   : > { %14024 = vst [vmem:[#allocation200_spill] sm:$0xff] %v9261_v11  ;;  %5782 = vrot.lane.b32.xlu1 %v14025_v41, %s7320_s17  ;;  %v14032_v11 = vld [vmem:[#allocation121_spill] sm:$0xff] }
 0x162   : > { %5777 = vrot.lane.b32.xlu0 %v14028_v21, %s7320_s17  ;;  %v5796_v29 = vpack.i.bf16 %v14033_v39, %v14032_v11  ;;  %v9293_v39 = vsel %vm661_vm4, %v710_v32, %v711_v26 }
 0x163   : > { %v9271_v30 = vpop.permute.xlu1 %5502  ;;  %14038 = vst [vmem:[#allocation207_spill] sm:$0xff] %v9293_v39  ;;  %v9301_v51 = vpack.i.bf16 %v14039_v3, %v9293_v39  ;;  %v1088_v3 = vrot.slane %v9117_v37, 1 }
 0x164   : > { %14029 = vst [vmem:[#allocation201_spill] sm:$0xff] %v9271_v30  ;;  %v9273_v17 = vpop.permute.xlu0 %5497 }
 0x165   : > { %14030 = vst [vmem:[#allocation202_spill] sm:$0xff] %v9273_v17  ;;  %5792 = vrot.lane.b32.xlu1 %v9267_v45, %s7320_s17  ;;  %14040 = vst [vmem:[#allocation208_spill] sm:$0xff] %v9301_v51 }
 0x166   : > { %5787 = vrot.lane.b32.xlu0 %v14031_v44, %s7320_s17 }
 0x167   : > { %v9281_v46 = vpop.permute.xlu1 %5512 }
 0x168   : > { %14034 = vst [vmem:[#allocation203_spill] sm:$0xff] %v9281_v46  ;;  %v9283_v8 = vpop.permute.xlu0 %5507 }
 0x169   : > { %14035 = vst [vmem:[#allocation204_spill] sm:$0xff] %v9283_v8  ;;  %5802 = vrot.lane.b32.xlu1 %v8942_v16, %s7321_s23 }
 0x16a   : > { %5797 = vrot.lane.b32.xlu0 %v5796_v29, %s7321_s23  ;;  %v7244_v29 = vld [vmem:[#allocation2 + $0x1e0] sm:$0xff] }
 0x16b   : > { %v9288_v17 = vpop.permute.xlu1 %5522  ;;  %v734_v16 = vrot.slane %v7244_v29, 1  ;;  %v1095_v29 = vrot.slane %v9102_v2, 1 }
 0x16c   : > { %14036 = vst [vmem:[#allocation205_spill] sm:$0xff] %v9288_v17  ;;  %v9290_v45 = vpop.permute.xlu0 %5517  ;;  %v7245_v17 = vld [vmem:[#allocation2 + $0x1e8] sm:$0xf] }
 0x16d   : > { %14037 = vst [vmem:[#allocation206_spill] sm:$0xff] %v9290_v45  ;;  %5812 = vrot.lane.b32.xlu1 %v8958_v1, %s7321_s23  ;;  %v735_v8 = vrot.slane %v7245_v17, 1  ;;  %v1097_v17 = vrot.slane %v9106_v5, 1 }
 0x16e   : > { %5807 = vrot.lane.b32.xlu0 %v8934_v13, %s7321_s23 }
 0x16f   : > { %v9303_v11 = vpop.permute.xlu1 %5532  ;;  %v9314_v32 = vsel %vm661_vm4, %v734_v16, %v735_v8  ;;  %v14046_v16 = vld [vmem:[#allocation40_spill] sm:$0xff] }
 0x170   : > { %14041 = vst [vmem:[#allocation209_spill] sm:$0xff] %v9303_v11  ;;  %v9305_v45 = vpop.permute.xlu0 %5527  ;;  %14044 = vst [vmem:[#allocation212_spill] sm:$0xff] %v9314_v32  ;;  %v1094_v11 = vrot.slane %v9100_v62, 1  ;;  %v9330_v8 = vpack.i.bf16 %v14046_v16, %v9314_v32  ;;  %v1106_v16 = vrot.slane %v9148_v63, 1 }
 0x171   : > { %14042 = vst [vmem:[#allocation210_spill] sm:$0xff] %v9305_v45  ;;  %5822 = vrot.lane.b32.xlu1 %v8976_v49, %s7321_s23  ;;  %v1098_v45 = vrot.slane %v9108_v36, 1  ;;  %v1092_v49 = vrot.slane %v9143_v38, 1 }
 0x172   : > { %5817 = vrot.lane.b32.xlu0 %v9301_v51, %s7321_s23  ;;  %v1089_v51 = vrot.slane %v9123_v18, 1  ;;  %14047 = vst [vmem:[#allocation214_spill] sm:$0xff] %v9330_v8  ;;  %v9341_v13 = vsel %vm661_vm4, %v1094_v11, %v1095_v29  ;;  %v1110_v11 = vrot.slane %v9170_v61, 1 }
 0x173   : > { %v9311_v26 = vpop.permute.xlu1 %5542 }
 0x174   : > { %14043 = vst [vmem:[#allocation211_spill] sm:$0xff] %v9311_v26  ;;  %v9316_v39 = vpop.permute.xlu0 %5537  ;;  %v1090_v32 = vsel %vm661_vm4, %v1088_v3, %v1089_v51  ;;  %v1101_v3 = vrot.slane %v9179_v54, 1  ;;  %v1103_v51 = vrot.slane %v9181_v48, 1 }
 0x175   : > { %14045 = vst [vmem:[#allocation213_spill] sm:$0xff] %v9316_v39  ;;  %5832 = vrot.lane.b32.xlu1 %v8992_v52, %s7321_s23  ;;  %v1091_v39 = vrot.slane %v9131_v57, 1 }
 0x176   : > { %5827 = vrot.lane.b32.xlu0 %v8970_v9, %s7321_s23  ;;  %v9344_v9 = vsel %vm661_vm4, %v1097_v17, %v1098_v45  ;;  %v1100_v45 = vrot.slane %v9172_v23, 1  ;;  %v1104_v17 = vrot.slane %v9187_v50, 1 }
 0x177   : > { %v9334_v52 = vpop.permute.xlu1 %5552 }
 0x178   : > { %14048 = vst [vmem:[#allocation215_spill] sm:$0xff] %v9334_v52  ;;  %v9336_v1 = vpop.permute.xlu0 %5547  ;;  %v9351_v52 = vsel %vm661_vm4, %v1091_v39, %v1092_v49  ;;  %v9368_v39 = vpack.i.bf16 %v9344_v9, %v9341_v13  ;;  %v9387_v46 = vsel %vm661_vm4, %v1103_v51, %v1104_v17 }
 0x179   : > { %14049 = vst [vmem:[#allocation216_spill] sm:$0xff] %v9336_v1  ;;  %5842 = vrot.lane.b32.xlu1 %v9010_v19, %s7321_s23  ;;  %v1107_v1 = vrot.slane %v9150_v55, 1  ;;  %v1109_v19 = vrot.slane %v9158_v56, 1  ;;  %v9373_v49 = vpack.i.bf16 %v9351_v52, %v1090_v32 }
 0x17a   : > { %5837 = vrot.lane.b32.xlu0 %v9330_v8, %s7321_s23  ;;  %14052 = vst [vmem:[#allocation219_spill] sm:$0xff] %v9368_v39 }
 0x17b   : > { %v9356_v29 = vpop.permute.xlu1 %5562  ;;  %14053 = vst [vmem:[#allocation220_spill] sm:$0xff] %v9373_v49  ;;  %v9379_v26 = vsel %vm661_vm4, %v1109_v19, %v1110_v11 }
 0x17c   : > { %14050 = vst [vmem:[#allocation217_spill] sm:$0xff] %v9356_v29  ;;  %v9362_v8 = vpop.permute.xlu0 %5557  ;;  %v9376_v29 = vsel %vm661_vm4, %v1106_v16, %v1107_v1 }
 0x17d   : > { %14051 = vst [vmem:[#allocation218_spill] sm:$0xff] %v9362_v8  ;;  %5852 = vrot.lane.b32.xlu1 %v9028_v14, %s7321_s23  ;;  %v9384_v14 = vsel %vm661_vm4, %v1100_v45, %v1101_v3  ;;  %v9395_v1 = vpack.i.bf16 %v9379_v26, %v9376_v29  ;;  %v14059_v3 = vld [vmem:[#allocation33_spill] sm:$0xff] }
 0x17e   : > { %5847 = vrot.lane.b32.xlu0 %v9004_v10, %s7321_s23  ;;  %v9401_v19 = vpack.i.bf16 %v9387_v46, %v9384_v14 }
 0x17f   : > { %v9381_v8 = vpop.permute.xlu1 %5572  ;;  %14056 = vst [vmem:[#allocation223_spill] sm:$0xff] %v9395_v1 }
 0x180   : > { %14054 = vst [vmem:[#allocation221_spill] sm:$0xff] %v9381_v8  ;;  %v9389_v30 = vpop.permute.xlu0 %5567  ;;  %14057 = vst [vmem:[#allocation224_spill] sm:$0xff] %v9401_v19  ;;  %v1113_v8 = vrot.slane %v9123_v18, 2 }
 0x181   : > { %14055 = vst [vmem:[#allocation222_spill] sm:$0xff] %v9389_v30  ;;  %5862 = vrot.lane.b32.xlu1 %v9368_v39, %s7321_s23  ;;  %v14180_v39 = vld [vmem:[#allocation120_spill] sm:$0xff] }
 0x182   : > { %5857 = vrot.lane.b32.xlu0 %v9373_v49, %s7321_s23 }
 0x183   : > { %v9403_v32 = vpop.permute.xlu1 %5582 }
 0x184   : > { %v9405_v16 = vpop.permute.xlu0 %5577 }
 0x185   : > { %14058 = vst [vmem:[#allocation225_spill] sm:$0xff] %v9405_v16  ;;  %5872 = vrot.lane.b32.xlu1 %v9395_v1, %s7321_s23 }
 0x186   : > { %5867 = vrot.lane.b32.xlu0 %v9401_v19, %s7321_s23 }
 0x187   : > { %v9411_v11 = vpop.permute.xlu1 %5592 }
 0x188   : > { %v9413_v45 = vpop.permute.xlu0 %5587 }
 0x189   : > { %5882 = vrot.lane.b32.xlu1 %v13972_v22, %s7322_s25  ;;  %v14064_v22 = vld [vmem:[#allocation46_spill] sm:$0xff] }
 0x18a   : > { %5877 = vrot.lane.b32.xlu0 %v14059_v3, %s7322_s25 }
 0x18b   : > { %v9419_v51 = vpop.permute.xlu1 %5602 }
 0x18c   : > { %14060 = vst [vmem:[#allocation33_spill] sm:$0xff] %v9419_v51  ;;  %v9421_v17 = vpop.permute.xlu0 %5597 }
 0x18d   : > { %14061 = vst [vmem:[#allocation226_spill] sm:$0xff] %v9421_v17  ;;  %5892 = vrot.lane.b32.xlu1 %v13975_v42, %s7322_s25  ;;  %v1118_v17 = vrot.slane %v9100_v62, 2  ;;  %v1119_v42 = vrot.slane %v9102_v2, 2  ;;  %v1116_v62 = vrot.slane %v9143_v38, 2 }
 0x18e   : > { %5887 = vrot.lane.b32.xlu0 %v13971_v34, %s7322_s25  ;;  %v1121_v34 = vrot.slane %v9106_v5, 2 }
 0x18f   : > { %v9427_v16 = vpop.permute.xlu1 %5612  ;;  %v9458_v5 = vsel %vm790_vm2, %v1118_v17, %v1119_v42  ;;  %v1134_v17 = vrot.slane %v9170_v61, 2 }
 0x190   : > { %14062 = vst [vmem:[#allocation227_spill] sm:$0xff] %v9427_v16  ;;  %v9429_v30 = vpop.permute.xlu0 %5607  ;;  %v1112_v16 = vrot.slane %v9117_v37, 2  ;;  %14066 = vst [vmem:[#allocation230_spill] sm:$0xff] %v9458_v5  ;;  %v1130_v37 = vrot.slane %v9148_v63, 2  ;;  %v1127_v63 = vrot.slane %v9181_v48, 2 }
 0x191   : > { %14063 = vst [vmem:[#allocation228_spill] sm:$0xff] %v9429_v30  ;;  %5902 = vrot.lane.b32.xlu1 %v13981_v31, %s7322_s25  ;;  %v1122_v30 = vrot.slane %v9108_v36, 2 }
 0x192   : > { %5897 = vrot.lane.b32.xlu0 %v14064_v22, %s7322_s25  ;;  %v1114_v18 = vsel %vm790_vm2, %v1112_v16, %v1113_v8  ;;  %v1125_v8 = vrot.slane %v9179_v54, 2  ;;  %v1128_v16 = vrot.slane %v9187_v50, 2 }
 0x193   : > { %v9435_v3 = vpop.permute.xlu1 %5622  ;;  %v9461_v36 = vsel %vm790_vm2, %v1121_v34, %v1122_v30  ;;  %v1124_v30 = vrot.slane %v9172_v23, 2 }
 0x194   : > { %v9437_v51 = vpop.permute.xlu0 %5617  ;;  %14067 = vst [vmem:[#allocation231_spill] sm:$0xff] %v9461_v36  ;;  %v9504_v23 = vsel %vm790_vm2, %v1127_v63, %v1128_v16 }
 0x195   : > { %14065 = vst [vmem:[#allocation229_spill] sm:$0xff] %v9437_v51  ;;  %5912 = vrot.lane.b32.xlu1 %v13984_v43, %s7322_s25  ;;  %v1115_v51 = vrot.slane %v9131_v57, 2  ;;  %v14068_v57 = vld [vmem:[#allocation74_spill] sm:$0xff]  ;;  %v9501_v61 = vsel %vm790_vm2, %v1124_v30, %v1125_v8  ;;  %14077 = vst [vmem:[#allocation240_spill] sm:$0xff] %v9504_v23 }
 0x196   : > { %5907 = vrot.lane.b32.xlu0 %v13979_v40, %s7322_s25  ;;  %v1131_v40 = vrot.slane %v9150_v55, 2  ;;  %14076 = vst [vmem:[#allocation239_spill] sm:$0xff] %v9501_v61  ;;  %v14104_v43 = vld [vmem:[#allocation58_spill] sm:$0xff] }
 0x197   : > { %v9451_v22 = vpop.permute.xlu1 %5632  ;;  %v9468_v38 = vsel %vm790_vm2, %v1115_v51, %v1116_v62  ;;  %v9508_v62 = vld [vmem:[#allocation2 + $0x300] sm:$0xff] }
 0x198   : > { %v9453_v2 = vpop.permute.xlu0 %5627  ;;  %v9490_v55 = vpack.i.bf16 %v9468_v38, %v1114_v18  ;;  %v9493_v54 = vsel %vm790_vm2, %v1130_v37, %v1131_v40  ;;  %v9510_v18 = vld [vmem:[#allocation2 + $0x308] sm:$0xf]  ;;  %v1168_v40 = vrot.slane %v9508_v62, 3 }
 0x199   : > { %5922 = vrot.lane.b32.xlu1 %v13991_v7, %s7322_s25  ;;  %v1133_v7 = vrot.slane %v9158_v56, 2  ;;  %v9485_v56 = vpack.i.bf16 %v9461_v36, %v9458_v5  ;;  %14073 = vst [vmem:[#allocation236_spill] sm:$0xff] %v9493_v54  ;;  %v1169_v37 = vrot.slane %v9510_v18, 3 }
 0x19a   : > { %5917 = vrot.lane.b32.xlu0 %v14068_v57, %s7322_s25  ;;  %14072 = vst [vmem:[#allocation235_spill] sm:$0xff] %v9490_v55  ;;  %v14103_v57 = vld [vmem:[#allocation54_spill] sm:$0xff] }
 0x19b   : > { %v9473_v42 = vpop.permute.xlu1 %5642  ;;  %14071 = vst [vmem:[#allocation234_spill] sm:$0xff] %v9485_v56  ;;  %v9496_v48 = vsel %vm790_vm2, %v1133_v7, %v1134_v17  ;;  %v9524_v17 = vpack.i.bf16 %v9504_v23, %v9501_v61  ;;  %v9529_v8 = vsel %vm887_vm3, %v1168_v40, %v1169_v37 }
 0x19c   : > { %14069 = vst [vmem:[#allocation232_spill] sm:$0xff] %v9473_v42  ;;  %v9479_v34 = vpop.permute.xlu0 %5637  ;;  %14074 = vst [vmem:[#allocation237_spill] sm:$0xff] %v9496_v48  ;;  %v9516_v7 = vpack.i.bf16 %v9496_v48, %v9493_v54  ;;  %v14087_v42 = vld [vmem:[#allocation62_spill] sm:$0xff] }
 0x19d   : > { %14070 = vst [vmem:[#allocation233_spill] sm:$0xff] %v9479_v34  ;;  %5932 = vrot.lane.b32.xlu1 %v13994_v15, %s7322_s25  ;;  %14080 = vst [vmem:[#allocation243_spill] sm:$0xff] %v9524_v17 }
 0x19e   : > { %5927 = vrot.lane.b32.xlu0 %v13988_v27, %s7322_s25  ;;  %14079 = vst [vmem:[#allocation242_spill] sm:$0xff] %v9516_v7  ;;  %v14100_v27 = vld [vmem:[#allocation39_spill] sm:$0xff] }
 0x19f   : > { %v9498_v50 = vpop.permute.xlu1 %5652 }
 0x1a0   : > { %14075 = vst [vmem:[#allocation238_spill] sm:$0xff] %v9498_v50  ;;  %v9506_v51 = vpop.permute.xlu0 %5647  ;;  %v14082_v50 = vld [vmem:[#allocation97_spill] sm:$0xff] }
 0x1a1   : > { %14078 = vst [vmem:[#allocation241_spill] sm:$0xff] %v9506_v51  ;;  %5942 = vrot.lane.b32.xlu1 %v9485_v56, %s7322_s25 }
 0x1a2   : > { %5937 = vrot.lane.b32.xlu0 %v9490_v55, %s7322_s25 }
 0x1a3   : > { %v9526_v30 = vpop.permute.xlu1 %5662 }
 0x1a4   : > { %v9531_v63 = vpop.permute.xlu0 %5657 }
 0x1a5   : > { %14081 = vst [vmem:[#allocation244_spill] sm:$0xff] %v9531_v63  ;;  %5952 = vrot.lane.b32.xlu1 %v9516_v7, %s7322_s25  ;;  %v9591_v7 = vpack.i.bf16 %v9165_v0, %v9153_v59 }
 0x1a6   : > { %5947 = vrot.lane.b32.xlu0 %v9524_v17, %s7322_s25 }
 0x1a7   : > { %v9537_v16 = vpop.permute.xlu1 %5672  ;;  %14093 = vst [vmem:[#allocation252_spill] sm:$0xff] %v9591_v7 }
 0x1a8   : > { %v9539_v51 = vpop.permute.xlu0 %5667 }
 0x1a9   : > { %5962 = vrot.lane.b32.xlu1 %v14010_v12, %s7323_s26 }
 0x1aa   : > { %5957 = vrot.lane.b32.xlu0 %v14082_v50, %s7323_s26 }
 0x1ab   : > { %v9545_v40 = vpop.permute.xlu1 %5682 }
 0x1ac   : > { %14083 = vst [vmem:[#allocation97_spill] sm:$0xff] %v9545_v40  ;;  %v9547_v37 = vpop.permute.xlu0 %5677 }
 0x1ad   : > { %14084 = vst [vmem:[#allocation245_spill] sm:$0xff] %v9547_v37  ;;  %5972 = vrot.lane.b32.xlu1 %v14013_v6, %s7323_s26  ;;  %v14172_v6 = vld [vmem:[#allocation150_spill] sm:$0xff] }
 0x1ae   : > { %5967 = vrot.lane.b32.xlu0 %v14006_v58, %s7323_s26  ;;  %v14176_v58 = vld [vmem:[#allocation159_spill] sm:$0xff] }
 0x1af   : > { %v9553_v63 = vpop.permute.xlu1 %5692  ;;  %v5304_v1 = vunpack.i.l.bf16 %v14176_v58 }
 0x1b0   : > { %14085 = vst [vmem:[#allocation246_spill] sm:$0xff] %v9553_v63  ;;  %v9555_v34 = vpop.permute.xlu0 %5687 }
 0x1b1   : > { %14086 = vst [vmem:[#allocation247_spill] sm:$0xff] %v9555_v34  ;;  %5982 = vrot.lane.b32.xlu1 %v14019_v24, %s7323_s26  ;;  %v14089_v34 = vld [vmem:[#allocation103_spill] sm:$0xff] }
 0x1b2   : > { %5977 = vrot.lane.b32.xlu0 %v14087_v42, %s7323_s26 }
 0x1b3   : > { %v9561_v50 = vpop.permute.xlu1 %5702 }
 0x1b4   : > { %v9563_v40 = vpop.permute.xlu0 %5697 }
 0x1b5   : > { %14088 = vst [vmem:[#allocation248_spill] sm:$0xff] %v9563_v40  ;;  %5992 = vrot.lane.b32.xlu1 %v14022_v33, %s7323_s26  ;;  %v9585_v40 = vpack.i.bf16 %v9134_v60, %v9126_v53 }
 0x1b6   : > { %5987 = vrot.lane.b32.xlu0 %v14016_v47, %s7323_s26 }
 0x1b7   : > { %v9569_v37 = vpop.permute.xlu1 %5712  ;;  %14092 = vst [vmem:[#allocation251_spill] sm:$0xff] %v9585_v40 }
 0x1b8   : > { %v9571_v63 = vpop.permute.xlu0 %5707 }
 0x1b9   : > { %6002 = vrot.lane.b32.xlu1 %v14028_v21, %s7323_s26  ;;  %v14150_v21 = vld [vmem:[#allocation140_spill] sm:$0xff] }
 0x1ba   : > { %5997 = vrot.lane.b32.xlu0 %v14089_v34, %s7323_s26 }
 0x1bb   : > { %v9577_v42 = vpop.permute.xlu1 %5722 }
 0x1bc   : > { %14090 = vst [vmem:[#allocation249_spill] sm:$0xff] %v9577_v42  ;;  %v9579_v17 = vpop.permute.xlu0 %5717  ;;  %v9607_v42 = vpack.i.bf16 %v9205_v28, %v9200_v25 }
 0x1bd   : > { %14091 = vst [vmem:[#allocation250_spill] sm:$0xff] %v9579_v17  ;;  %6012 = vrot.lane.b32.xlu1 %v14031_v44, %s7323_s26  ;;  %v9601_v17 = vpack.i.bf16 %v9194_v4, %v9175_v20 }
 0x1be   : > { %6007 = vrot.lane.b32.xlu0 %v14025_v41, %s7323_s26  ;;  %14097 = vst [vmem:[#allocation256_spill] sm:$0xff] %v9607_v42 }
 0x1bf   : > { %v9593_v55 = vpop.permute.xlu1 %5732  ;;  %14096 = vst [vmem:[#allocation255_spill] sm:$0xff] %v9601_v17 }
 0x1c0   : > { %14094 = vst [vmem:[#allocation253_spill] sm:$0xff] %v9593_v55  ;;  %v9595_v34 = vpop.permute.xlu0 %5727 }
 0x1c1   : > { %14095 = vst [vmem:[#allocation254_spill] sm:$0xff] %v9595_v34  ;;  %6022 = vrot.lane.b32.xlu1 %v9585_v40, %s7323_s26 }
 0x1c2   : > { %6017 = vrot.lane.b32.xlu0 %v9591_v7, %s7323_s26  ;;  %v14099_v7 = vld [vmem:[#allocation114_spill] sm:$0xff] }
 0x1c3   : > { %v9609_v59 = vpop.permute.xlu1 %5742 }
 0x1c4   : > { %v9611_v56 = vpop.permute.xlu0 %5737 }
 0x1c5   : > { %14098 = vst [vmem:[#allocation257_spill] sm:$0xff] %v9611_v56  ;;  %6032 = vrot.lane.b32.xlu1 %v9601_v17, %s7323_s26  ;;  %v14107_v17 = vld [vmem:[#allocation12_spill] sm:$0xff] }
 0x1c6   : > { %6027 = vrot.lane.b32.xlu0 %v9607_v42, %s7323_s26  ;;  %v9667_v42 = vpack.i.bf16 %v9384_v14, %v9344_v9 }
 0x1c7   : > { %v9617_v34 = vpop.permute.xlu1 %5752 }
 0x1c8   : > { %v9619_v55 = vpop.permute.xlu0 %5747  ;;  %14119 = vst [vmem:[#allocation263_spill] sm:$0xff] %v9667_v42 }
 0x1c9   : > { %6042 = vrot.lane.b32.xlu1 %v14099_v7, %s7324_s6  ;;  %v14108_v7 = vld [vmem:[#allocation18_spill] sm:$0xff] }
 0x1ca   : > { %6037 = vrot.lane.b32.xlu0 %v14100_v27, %s7324_s6 }
 0x1cb   : > { %v9625_v15 = vpop.permute.xlu1 %5762 }
 0x1cc   : > { %14101 = vst [vmem:[#allocation114_spill] sm:$0xff] %v9625_v15  ;;  %v9627_v56 = vpop.permute.xlu0 %5757 }
 0x1cd   : > { %14102 = vst [vmem:[#allocation39_spill] sm:$0xff] %v9627_v56  ;;  %6052 = vrot.lane.b32.xlu1 %v14103_v57, %s7324_s6  ;;  %v14110_v56 = vld [vmem:[#allocation118_spill] sm:$0xff]  ;;  %v14111_v57 = vld [vmem:[#allocation119_spill] sm:$0xff] }
 0x1ce   : > { %6047 = vrot.lane.b32.xlu0 %v14104_v43, %s7324_s6 }
 0x1cf   : > { %v9633_v31 = vpop.permute.xlu1 %5772 }
 0x1d0   : > { %14105 = vst [vmem:[#allocation54_spill] sm:$0xff] %v9633_v31  ;;  %v9635_v49 = vpop.permute.xlu0 %5767 }
 0x1d1   : > { %14106 = vst [vmem:[#allocation58_spill] sm:$0xff] %v9635_v49  ;;  %6062 = vrot.lane.b32.xlu1 %v14107_v17, %s7324_s6  ;;  %v14114_v49 = vld [vmem:[#allocation122_spill] sm:$0xff]  ;;  %v14115_v17 = vld [vmem:[#allocation123_spill] sm:$0xff] }
 0x1d2   : > { %6057 = vrot.lane.b32.xlu0 %v14108_v7, %s7324_s6  ;;  %v1162_v7 = vrot.slane %v9508_v62, 1 }
 0x1d3   : > { %v9641_v27 = vpop.permute.xlu1 %5782 }
 0x1d4   : > { %v9643_v15 = vpop.permute.xlu0 %5777 }
 0x1d5   : > { %14109 = vst [vmem:[#allocation258_spill] sm:$0xff] %v9643_v15  ;;  %6072 = vrot.lane.b32.xlu1 %v14110_v56, %s7324_s6  ;;  %v1163_v15 = vrot.slane %v9510_v18, 1 }
 0x1d6   : > { %6067 = vrot.lane.b32.xlu0 %v14111_v57, %s7324_s6  ;;  %v14118_v57 = vld [vmem:[#allocation125_spill] sm:$0xff] }
 0x1d7   : > { %v9649_v43 = vpop.permute.xlu1 %5792  ;;  %v9676_v44 = vsel %vm661_vm4, %v1162_v7, %v1163_v15  ;;  %v14127_v7 = vld [vmem:[#allocation25_spill] sm:$0xff] }
 0x1d8   : > { %14112 = vst [vmem:[#allocation259_spill] sm:$0xff] %v9649_v43  ;;  %v9651_v31 = vpop.permute.xlu0 %5787  ;;  %v9686_v9 = vpack.i.bf16 %v9676_v44, %v9379_v26 }
 0x1d9   : > { %14113 = vst [vmem:[#allocation260_spill] sm:$0xff] %v9651_v31  ;;  %6082 = vrot.lane.b32.xlu1 %v14114_v49, %s7324_s6  ;;  %v14120_v49 = vld [vmem:[#allocation126_spill] sm:$0xff]  ;;  %v14175_v31 = vld [vmem:[#allocation117_spill] sm:$0xff] }
 0x1da   : > { %6077 = vrot.lane.b32.xlu0 %v14115_v17, %s7324_s6  ;;  %v9673_v17 = vpack.i.bf16 %v9341_v13, %v9351_v52  ;;  %14124 = vst [vmem:[#allocation267_spill] sm:$0xff] %v9686_v9  ;;  %v9692_v52 = vpack.i.bf16 %v9376_v29, %v9387_v46  ;;  %v14128_v46 = vld [vmem:[#allocation10_spill] sm:$0xff] }
 0x1db   : > { %v9659_v40 = vpop.permute.xlu1 %5802 }
 0x1dc   : > { %14116 = vst [vmem:[#allocation261_spill] sm:$0xff] %v9659_v40  ;;  %v9661_v56 = vpop.permute.xlu0 %5797  ;;  %14121 = vst [vmem:[#allocation264_spill] sm:$0xff] %v9673_v17 }
 0x1dd   : > { %14117 = vst [vmem:[#allocation262_spill] sm:$0xff] %v9661_v56  ;;  %6092 = vrot.lane.b32.xlu1 %v14118_v57, %s7324_s6  ;;  %14125 = vst [vmem:[#allocation268_spill] sm:$0xff] %v9692_v52  ;;  %v14131_v57 = vld [vmem:[#allocation20_spill] sm:$0xff] }
 0x1de   : > { %6087 = vrot.lane.b32.xlu0 %v14120_v49, %s7324_s6  ;;  %v14132_v49 = vld [vmem:[#allocation23_spill] sm:$0xff] }
 0x1df   : > { %v9678_v40 = vpop.permute.xlu1 %5812 }
 0x1e0   : > { %14122 = vst [vmem:[#allocation265_spill] sm:$0xff] %v9678_v40  ;;  %v9680_v56 = vpop.permute.xlu0 %5807 }
 0x1e1   : > { %14123 = vst [vmem:[#allocation266_spill] sm:$0xff] %v9680_v56  ;;  %6102 = vrot.lane.b32.xlu1 %v9667_v42, %s7324_s6 }
 0x1e2   : > { %6097 = vrot.lane.b32.xlu0 %v9673_v17, %s7324_s6  ;;  %v14149_v17 = vld [vmem:[#allocation135_spill] sm:$0xff] }
 0x1e3   : > { %v9694_v15 = vpop.permute.xlu1 %5822 }
 0x1e4   : > { %v9696_v13 = vpop.permute.xlu0 %5817 }
 0x1e5   : > { %14126 = vst [vmem:[#allocation269_spill] sm:$0xff] %v9696_v13  ;;  %6112 = vrot.lane.b32.xlu1 %v9686_v9, %s7324_s6  ;;  %v14135_v9 = vld [vmem:[#allocation21_spill] sm:$0xff] }
 0x1e6   : > { %6107 = vrot.lane.b32.xlu0 %v9692_v52, %s7324_s6  ;;  %v14144_v52 = vld [vmem:[#allocation73_spill] sm:$0xff]  ;;  %s241_s6 = sand.u32 1, %s7302_s19  }
 0x1e7   : > { %v9702_v14 = vpop.permute.xlu1 %5832 }
 0x1e8   : > { %v9704_v26 = vpop.permute.xlu0 %5827 }
 0x1e9   : > { %6122 = vrot.lane.b32.xlu1 %v14127_v7, %s7325_s7  ;;  %v14136_v7 = vld [vmem:[#allocation45_spill] sm:$0xff] }
 0x1ea   : > { %6117 = vrot.lane.b32.xlu0 %v14128_v46, %s7325_s7 }
 0x1eb   : > { %v9710_v29 = vpop.permute.xlu1 %5842 }
 0x1ec   : > { %14129 = vst [vmem:[#allocation25_spill] sm:$0xff] %v9710_v29  ;;  %v9712_v13 = vpop.permute.xlu0 %5837 }
 0x1ed   : > { %14130 = vst [vmem:[#allocation10_spill] sm:$0xff] %v9712_v13  ;;  %6132 = vrot.lane.b32.xlu1 %v14131_v57, %s7325_s7  ;;  %v14139_v13 = vld [vmem:[#allocation130_spill] sm:$0xff]  ;;  %v14140_v57 = vld [vmem:[#allocation133_spill] sm:$0xff] }
 0x1ee   : > { %6127 = vrot.lane.b32.xlu0 %v14132_v49, %s7325_s7 }
 0x1ef   : > { %v9718_v56 = vpop.permute.xlu1 %5852 }
 0x1f0   : > { %14133 = vst [vmem:[#allocation20_spill] sm:$0xff] %v9718_v56  ;;  %v9720_v40 = vpop.permute.xlu0 %5847 }
 0x1f1   : > { %14134 = vst [vmem:[#allocation23_spill] sm:$0xff] %v9720_v40  ;;  %6142 = vrot.lane.b32.xlu1 %v14135_v9, %s7325_s7  ;;  %v14143_v40 = vld [vmem:[#allocation134_spill] sm:$0xff]  ;;  %v1165_v9 = vrot.slane %v9508_v62, 2  ;;  %v9759_v62 = vpack.i.bf16 %v9458_v5, %v9468_v38  ;;  %v14160_v5 = vld [vmem:[#allocation7_spill] sm:$0xff] }
 0x1f2   : > { %6137 = vrot.lane.b32.xlu0 %v14136_v7, %s7325_s7  ;;  %v9752_v7 = vpack.i.bf16 %v9501_v61, %v9461_v36  ;;  %v14155_v36 = vld [vmem:[#allocation143_spill] sm:$0xff] }
 0x1f3   : > { %v9726_v46 = vpop.permute.xlu1 %5862  ;;  %14151 = vst [vmem:[#allocation135_spill] sm:$0xff] %v9759_v62  ;;  %v5190_v41 = vunpack.i.h.bf16 %v14155_v36 }
 0x1f4   : > { %14137 = vst [vmem:[#allocation270_spill] sm:$0xff] %v9726_v46  ;;  %v9728_v29 = vpop.permute.xlu0 %5857  ;;  %14148 = vst [vmem:[#allocation276_spill] sm:$0xff] %v9752_v7  ;;  %v14174_v46 = vld [vmem:[#allocation115_spill] sm:$0xff] }
 0x1f5   : > { %14138 = vst [vmem:[#allocation271_spill] sm:$0xff] %v9728_v29  ;;  %6152 = vrot.lane.b32.xlu1 %v14139_v13, %s7325_s7  ;;  %v1166_v29 = vrot.slane %v9510_v18, 2 }
 0x1f6   : > { %6147 = vrot.lane.b32.xlu0 %v14140_v57, %s7325_s7  ;;  %v14147_v57 = vld [vmem:[#allocation139_spill] sm:$0xff] }
 0x1f7   : > { %v9734_v49 = vpop.permute.xlu1 %5872  ;;  %v9762_v18 = vsel %vm790_vm2, %v1165_v9, %v1166_v29  ;;  %v9784_v9 = vpack.i.bf16 %v9493_v54, %v9504_v23  ;;  %v14165_v23 = vld [vmem:[#allocation95_spill] sm:$0xff] }
 0x1f8   : > { %14141 = vst [vmem:[#allocation272_spill] sm:$0xff] %v9734_v49  ;;  %v9736_v56 = vpop.permute.xlu0 %5867  ;;  %14152 = vst [vmem:[#allocation277_spill] sm:$0xff] %v9762_v18  ;;  %v9776_v38 = vpack.i.bf16 %v9762_v18, %v9496_v48  ;;  %v5189_v48 = vunpack.i.l.bf16 %v14155_v36  ;;  %v5235_v24 = vunpack.i.h.bf16 %v14165_v23  ;;  %v5269_v49 = vunpack.i.l.bf16 %v14172_v6 }
 0x1f9   : > { %14142 = vst [vmem:[#allocation273_spill] sm:$0xff] %v9736_v56  ;;  %6162 = vrot.lane.b32.xlu1 %v14143_v40, %s7325_s7  ;;  %v5185_v40 = vunpack.i.h.bf16 %v14149_v17  ;;  %14158 = vst [vmem:[#allocation279_spill] sm:$0xff] %v9784_v9  ;;  %v14168_v56 = vld [vmem:[#allocation147_spill] sm:$0xff] }
 0x1fa   : > { %6157 = vrot.lane.b32.xlu0 %v14144_v52, %s7325_s7  ;;  %v5184_v52 = vunpack.i.l.bf16 %v14149_v17  ;;  %14157 = vst [vmem:[#allocation278_spill] sm:$0xff] %v9776_v38  ;;  %v2795_v12 = vsel %vm258_vm0, %v14175_v31, %v5235_v24 }
 0x1fb   : > { %v9744_v42 = vpop.permute.xlu1 %5882  ;;  %v2775_v17 = vsel %vm258_vm0, %v8365_v35, %v5185_v40  ;;  %v14163_v35 = vld [vmem:[#allocation109_spill] sm:$0xff] }
 0x1fc   : > { %14145 = vst [vmem:[#allocation274_spill] sm:$0xff] %v9744_v42  ;;  %v9746_v13 = vpop.permute.xlu0 %5877 }
 0x1fd   : > { %14146 = vst [vmem:[#allocation275_spill] sm:$0xff] %v9746_v13  ;;  %6172 = vrot.lane.b32.xlu1 %v14147_v57, %s7325_s7  ;;  %v14153_v13 = vld [vmem:[#allocation141_spill] sm:$0xff] }
 0x1fe   : > { %6167 = vrot.lane.b32.xlu0 %v14150_v21, %s7325_s7  ;;  %v5195_v57 = vunpack.i.h.bf16 %v14153_v13  ;;  %v5194_v61 = vunpack.i.l.bf16 %v14153_v13  ;;  %v14159_v13 = vld [vmem:[#allocation6_spill] sm:$0xff] }
 0x1ff   : > { %v9766_v42 = vpop.permute.xlu1 %5892  ;;  %v2774_v29 = vsel %vm258_vm0, %v14159_v13, %v5184_v52 }
 0x200   : > { %14154 = vst [vmem:[#allocation141_spill] sm:$0xff] %v9766_v42  ;;  %v9770_v33 = vpop.permute.xlu0 %5887  ;;  %v2779_v21 = vsel %vm258_vm0, %v14160_v5, %v5195_v57  ;;  %v2778_v40 = vsel %vm258_vm0, %v14163_v35, %v5194_v61  ;;  %v5234_v5 = vunpack.i.l.bf16 %v14165_v23  ;;  %v14167_v57 = vld [vmem:[#allocation92_spill] sm:$0xff]  ;;  %v5265_v61 = vunpack.i.h.bf16 %v14168_v56  ;;  %v14171_v23 = vld [vmem:[#allocation59_spill] sm:$0xff] }
 0x201   : > { %14156 = vst [vmem:[#allocation143_spill] sm:$0xff] %v9770_v33  ;;  %6182 = vrot.lane.b32.xlu1 %v9752_v7, %s7325_s7  ;;  %v14161_v33 = vld [vmem:[#allocation94_spill] sm:$0xff]  ;;  %v5230_v36 = vunpack.i.h.bf16 %v14167_v57  ;;  %v5229_v13 = vunpack.i.l.bf16 %v14167_v57  ;;  %v5264_v35 = vunpack.i.l.bf16 %v14168_v56 }
 0x202   : > { %6177 = vrot.lane.b32.xlu0 %v9759_v62, %s7325_s7  ;;  %v5225_v42 = vunpack.i.h.bf16 %v14161_v33  ;;  %v14164_v7 = vld [vmem:[#allocation26_spill] sm:$0xff]  ;;  %v5224_v54 = vunpack.i.l.bf16 %v14161_v33  ;;  %v2808_v24 = vsel %vm2796_vm5, %v2775_v17, %v5265_v61 }
 0x203   : > { %v9792_v18 = vpop.permute.xlu1 %5902  ;;  %v2777_v62 = vsel %vm258_vm0, %v14164_v7, %v5190_v41  ;;  %v14169_v41 = vld [vmem:[#allocation149_spill] sm:$0xff]  ;;  %v14170_v33 = vld [vmem:[#allocation22_spill] sm:$0xff]  ;;  %v2792_v19 = vsel %vm258_vm0, %v14180_v39, %v5229_v13  ;;  %v2807_v31 = vsel %vm2796_vm5, %v2774_v29, %v5264_v35  ;;  %v14183_v39 = vld [vmem:[#allocation163_spill] sm:$0xff] }
 0x204   : > { %14162 = vst [vmem:[#allocation6_spill] sm:$0xff] %v9792_v18  ;;  %v9800_v52 = vpop.permute.xlu0 %5897  ;;  %v5274_v7 = vunpack.i.l.bf16 %v14169_v41  ;;  %v2791_v47 = vsel %vm258_vm0, %v14171_v23, %v5225_v42  ;;  %v5275_v57 = vunpack.i.h.bf16 %v14169_v41  ;;  %v2790_v56 = vsel %vm258_vm0, %v14174_v46, %v5224_v54  ;;  %v14178_v42 = vld [vmem:[#allocation8_spill] sm:$0xff]  ;;  %v14182_v46 = vld [vmem:[#allocation51_spill] sm:$0xff]  ;;  %v14194_v18 = vld [vmem:[#allocation181_spill] sm:$0xff] }
 0x205   : > { %14166 = vst [vmem:[#allocation7_spill] sm:$0xff] %v9800_v52  ;;  %6192 = vrot.lane.b32.xlu1 %v9776_v38, %s7325_s7  ;;  %v2776_v52 = vsel %vm258_vm0, %v14170_v33, %v5189_v48  ;;  %v2794_v41 = vsel %vm258_vm0, %v14178_v42, %v5234_v5  ;;  %v14179_v33 = vld [vmem:[#allocation66_spill] sm:$0xff]  ;;  %v14181_v54 = vld [vmem:[#allocation80_spill] sm:$0xff]  ;;  %v5305_v42 = vunpack.i.h.bf16 %v14176_v58  ;;  %v5314_v13 = vunpack.i.l.bf16 %v14183_v39 }
 0x206   : > { %6187 = vrot.lane.b32.xlu0 %v9784_v9, %s7325_s7  ;;  %v5270_v9 = vunpack.i.h.bf16 %v14172_v6  ;;  %v2793_v23 = vsel %vm258_vm0, %v14179_v33, %v5230_v36  ;;  %v2811_v6 = vsel %vm2796_vm5, %v2778_v40, %v5274_v7  ;;  %v2812_v5 = vsel %vm2796_vm5, %v2779_v21, %v5275_v57  ;;  %v14185_v40 = vld [vmem:[#allocation164_spill] sm:$0xff]  ;;  %v14187_v7 = vld [vmem:[#allocation175_spill] sm:$0xff]  ;;  %v14189_v57 = vld [vmem:[#allocation177_spill] sm:$0xff]  ;;  %s4981_s7 = sshll.u32 %s241_s6, 4 }
 0x207   : > { %v9818_v38 = vpop.permute.xlu1 %5912  ;;  %v2809_v36 = vsel %vm2796_vm5, %v2776_v52, %v5269_v49  ;;  %v2823_v29 = vsel %vm2796_vm5, %v2790_v56, %v5304_v1  ;;  %v5315_v17 = vunpack.i.h.bf16 %v14183_v39  ;;  %v5309_v61 = vunpack.i.l.bf16 %v14185_v40  ;;  %v14188_v52 = vld [vmem:[#allocation81_spill] sm:$0xff]  ;;  %v14190_v1 = vld [vmem:[#allocation178_spill] sm:$0xff] }
 0x208   : > { %14173 = vst [vmem:[#allocation94_spill] sm:$0xff] %v9818_v38  ;;  %v9826_v48 = vpop.permute.xlu0 %5907  ;;  %v5310_v21 = vunpack.i.h.bf16 %v14185_v40  ;;  %v5345_v49 = vunpack.i.h.bf16 %v14187_v7  ;;  %v5344_v58 = vunpack.i.l.bf16 %v14187_v7  ;;  %v14191_v56 = vld [vmem:[#allocation90_spill] sm:$0xff]  ;;  %v2824_v39 = vsel %vm2796_vm5, %v2791_v47, %v5305_v42 }
 0x209   : > { %14177 = vst [vmem:[#allocation109_spill] sm:$0xff] %v9826_v48  ;;  %6202 = vrot.lane.b32.xlu1 %v14181_v54, %s7326_s8  ;;  %v2810_v54 = vsel %vm2796_vm5, %v2777_v62, %v5270_v9  ;;  %v5354_v62 = vunpack.i.l.bf16 %v14189_v57  ;;  %v5350_v9 = vunpack.i.h.bf16 %v14190_v1  ;;  %v2827_v40 = vsel %vm2796_vm5, %v2794_v41, %v5314_v13  ;;  %v14196_v13 = vld [vmem:[#allocation89_spill] sm:$0xff] }
 0x20a   : > { %6197 = vrot.lane.b32.xlu0 %v14182_v46, %s7326_s8  ;;  %v5355_v46 = vunpack.i.h.bf16 %v14189_v57  ;;  %v2825_v57 = vsel %vm2796_vm5, %v2792_v19, %v5309_v61  ;;  %v5394_v43 = vunpack.i.l.bf16 %v14194_v18  ;;  %v2826_v47 = vsel %vm2796_vm5, %v2793_v23, %v5310_v21  ;;  %v14198_v61 = vld [vmem:[#allocation182_spill] sm:$0xff] }
 0x20b   : > { %v9845_v33 = vpop.permute.xlu1 %5922  ;;  %v2840_v41 = vsel %vm2829_vm6, %v2807_v31, %v5344_v58  ;;  %v2841_v42 = vsel %vm2829_vm6, %v2808_v24, %v5345_v49  ;;  %v2843_v19 = vsel %vm2829_vm6, %v2810_v54, %v5350_v9  ;;  %v5395_v31 = vunpack.i.h.bf16 %v14194_v18  ;;  %v14200_v54 = vld [vmem:[#allocation190_spill] sm:$0xff]  ;;  %v14204_v9 = vld [vmem:[#allocation193_spill] sm:$0xff] }
 0x20c   : > { %14184 = vst [vmem:[#allocation26_spill] sm:$0xff] %v9845_v33  ;;  %v9851_v35 = vpop.permute.xlu0 %5917  ;;  %v14192_v33 = vld [vmem:[#allocation41_spill] sm:$0xff]  ;;  %v5390_v24 = vunpack.i.h.bf16 %v14198_v61  ;;  %v5424_v58 = vunpack.i.l.bf16 %v14200_v54 }
 0x20d   : > { %14186 = vst [vmem:[#allocation95_spill] sm:$0xff] %v9851_v35  ;;  %6212 = vrot.lane.b32.xlu1 %v14188_v52, %s7326_s8  ;;  %v5349_v35 = vunpack.i.l.bf16 %v14190_v1  ;;  %v5384_v7 = vunpack.i.l.bf16 %v14192_v33  ;;  %v2828_v52 = vsel %vm2796_vm5, %v2795_v12, %v5315_v17  ;;  %v5385_v38 = vunpack.i.h.bf16 %v14192_v33  ;;  %v14197_v33 = vld [vmem:[#allocation93_spill] sm:$0xff] }
 0x20e   : > { %6207 = vrot.lane.b32.xlu0 %v14191_v56, %s7326_s8  ;;  %v2844_v1 = vsel %vm2829_vm6, %v2811_v6, %v5354_v62  ;;  %v2845_v12 = vsel %vm2829_vm6, %v2812_v5, %v5355_v46  ;;  %v2860_v6 = vsel %vm2829_vm6, %v2827_v40, %v5394_v43  ;;  %v5389_v5 = vunpack.i.l.bf16 %v14198_v61  ;;  %v14203_v62 = vld [vmem:[#allocation101_spill] sm:$0xff]  ;;  %v14205_v43 = vld [vmem:[#allocation132_spill] sm:$0xff]  ;;  %v14206_v40 = vld [vmem:[#allocation47_spill] sm:$0xff] }
 0x20f   : > { %v9867_v48 = vpop.permute.xlu1 %5932  ;;  %v2842_v17 = vsel %vm2829_vm6, %v2809_v36, %v5349_v35  ;;  %v2856_v23 = vsel %vm2829_vm6, %v2823_v29, %v5384_v7  ;;  %v2857_v49 = vsel %vm2829_vm6, %v2824_v39, %v5385_v38  ;;  %v5425_v36 = vunpack.i.h.bf16 %v14200_v54  ;;  %v14202_v35 = vld [vmem:[#allocation192_spill] sm:$0xff] }
 0x210   : > { %14193 = vst [vmem:[#allocation92_spill] sm:$0xff] %v9867_v48  ;;  %v9873_v56 = vpop.permute.xlu0 %5927  ;;  %v5435_v29 = vunpack.i.h.bf16 %v14202_v35  ;;  %v5434_v18 = vunpack.i.l.bf16 %v14202_v35  ;;  %v5430_v7 = vunpack.i.h.bf16 %v14204_v9  ;;  %v5429_v38 = vunpack.i.l.bf16 %v14204_v9  ;;  %v14207_v35 = vld [vmem:[#allocation195_spill] sm:$0xff] }
 0x211   : > { %14195 = vst [vmem:[#allocation147_spill] sm:$0xff] %v9873_v56  ;;  %6222 = vrot.lane.b32.xlu1 %v14196_v13, %s7326_s8  ;;  %v5464_v39 = vunpack.i.l.bf16 %v14205_v43  ;;  %v2861_v61 = vsel %vm2829_vm6, %v2828_v52, %v5395_v31  ;;  %v2859_v54 = vsel %vm2829_vm6, %v2826_v47, %v5390_v24  ;;  %v5474_v56 = vunpack.i.l.bf16 %v14207_v35  ;;  %v14209_v24 = vld [vmem:[#allocation53_spill] sm:$0xff] }
 0x212   : > { %6217 = vrot.lane.b32.xlu0 %v14197_v33, %s7326_s8  ;;  %v2873_v9 = vsel %vm2862_vm7, %v2840_v41, %v5424_v58  ;;  %v5475_v13 = vunpack.i.h.bf16 %v14207_v35  ;;  %v14208_v33 = vld [vmem:[#allocation196_spill] sm:$0xff]  ;;  %v2874_v52 = vsel %vm2862_vm7, %v2841_v42, %v5425_v36  ;;  %v2877_v47 = vsel %vm2862_vm7, %v2844_v1, %v5434_v18  ;;  %v14211_v36 = vld [vmem:[#allocation201_spill] sm:$0xff]  ;;  %v14213_v18 = vld [vmem:[#allocation203_spill] sm:$0xff] }
 0x213   : > { %v9889_v21 = vpop.permute.xlu1 %5942  ;;  %v2878_v31 = vsel %vm2862_vm7, %v2845_v12, %v5435_v29  ;;  %v2889_v41 = vsel %vm2862_vm7, %v2856_v23, %v5464_v39  ;;  %v2893_v42 = vsel %vm2862_vm7, %v2860_v6, %v5474_v56  ;;  %v5470_v1 = vunpack.i.h.bf16 %v14208_v33  ;;  %v14215_v56 = vld [vmem:[#allocation204_spill] sm:$0xff] }
 0x214   : > { %14199 = vst [vmem:[#allocation149_spill] sm:$0xff] %v9889_v21  ;;  %v9895_v46 = vpop.permute.xlu0 %5937  ;;  %v5469_v21 = vunpack.i.l.bf16 %v14208_v33  ;;  %v5504_v12 = vunpack.i.l.bf16 %v14211_v36  ;;  %v5505_v23 = vunpack.i.h.bf16 %v14211_v36  ;;  %v5510_v6 = vunpack.i.h.bf16 %v14215_v56  ;;  %v14220_v36 = vld [vmem:[#allocation146_spill] sm:$0xff] }
 0x215   : > { %14201 = vst [vmem:[#allocation22_spill] sm:$0xff] %v9895_v46  ;;  %6232 = vrot.lane.b32.xlu1 %v14203_v62, %s7326_s8  ;;  %v5465_v46 = vunpack.i.h.bf16 %v14205_v43  ;;  %v2858_v62 = vsel %vm2829_vm6, %v2825_v57, %v5389_v5  ;;  %v2875_v43 = vsel %vm2862_vm7, %v2842_v17, %v5429_v38  ;;  %v2876_v57 = vsel %vm2862_vm7, %v2843_v19, %v5430_v7  ;;  %v14210_v5 = vld [vmem:[#allocation48_spill] sm:$0xff] }
 0x216   : > { %6227 = vrot.lane.b32.xlu0 %v14206_v40, %s7326_s8  ;;  %v2894_v17 = vsel %vm2862_vm7, %v2861_v61, %v5475_v13  ;;  %v2891_v19 = vsel %vm2862_vm7, %v2858_v62, %v5469_v21  ;;  %v5514_v7 = vunpack.i.l.bf16 %v14213_v18  ;;  %v5509_v33 = vunpack.i.l.bf16 %v14215_v56  ;;  %v14218_v21 = vld [vmem:[#allocation211_spill] sm:$0xff] }
 0x217   : > { %v9911_v48 = vpop.permute.xlu1 %5952  ;;  %v2890_v58 = vsel %vm2862_vm7, %v2857_v49, %v5465_v46  ;;  %v5515_v49 = vunpack.i.h.bf16 %v14213_v18  ;;  %v14216_v46 = vld [vmem:[#allocation145_spill] sm:$0xff]  ;;  %v9948_v13 = vpack.i.bf16 %v9200_v25, %v9134_v60  ;;  %v5545_v62 = vunpack.i.h.bf16 %v14218_v21  ;;  %v14219_v61 = vld [vmem:[#allocation215_spill] sm:$0xff]  ;;  %v14222_v60 = vld [vmem:[#allocation216_spill] sm:$0xff] }
 0x218   : > { %v9917_v10 = vpop.permute.xlu0 %5947  ;;  %v5544_v39 = vunpack.i.l.bf16 %v14218_v21  ;;  %v5554_v35 = vunpack.i.l.bf16 %v14219_v61  ;;  %v9957_v18 = vpack.i.bf16 %v9126_v53, %v9165_v0  ;;  %v2892_v56 = vsel %vm2862_vm7, %v2859_v54, %v5470_v1 }
 0x219   : > { %6242 = vrot.lane.b32.xlu1 %v14209_v24, %s7326_s8  ;;  %14217 = vst [vmem:[#allocation115_spill] sm:$0xff] %v9948_v13  ;;  %v5555_v25 = vunpack.i.h.bf16 %v14219_v61  ;;  %v5549_v24 = vunpack.i.l.bf16 %v14222_v60  ;;  %v2907_v21 = vsel %vm2895_vm8, %v2874_v52, %v5505_v23  ;;  %v2911_v0 = vsel %vm2895_vm8, %v2878_v31, %v5515_v49 }
 0x21a   : > { %6237 = vrot.lane.b32.xlu0 %v14210_v5, %s7326_s8  ;;  %14221 = vst [vmem:[#allocation117_spill] sm:$0xff] %v9957_v18  ;;  %v2908_v54 = vsel %vm2895_vm8, %v2875_v43, %v5509_v33  ;;  %v9978_v52 = vpack.i.bf16 %v9529_v8, %v9194_v4  ;;  %v2923_v1 = vsel %vm2895_vm8, %v2890_v58, %v5545_v62  ;;  %v5585_v4 = vunpack.i.h.bf16 %v9403_v32 }
 0x21b   : > { %v9933_v29 = vpop.permute.xlu1 %5962  ;;  %v9987_v31 = vpack.i.bf16 %v9175_v20, %v9205_v28  ;;  %v2927_v43 = vsel %vm2895_vm8, %v2894_v17, %v5555_v25  ;;  %v5589_v49 = vunpack.i.l.bf16 %v9413_v45  ;;  %v5590_v28 = vunpack.i.h.bf16 %v9413_v45 }
 0x21c   : > { %14212 = vst [vmem:[#allocation59_spill] sm:$0xff] %v9933_v29  ;;  %v9939_v38 = vpop.permute.xlu0 %5957  ;;  %v5584_v29 = vunpack.i.l.bf16 %v9403_v32  ;;  %14225 = vst [vmem:[#allocation66_spill] sm:$0xff] %v9978_v52  ;;  %v5624_v32 = vunpack.i.l.bf16 %v9435_v3  ;;  %v5635_v17 = vunpack.i.h.bf16 %v9451_v22 }
 0x21d   : > { %14214 = vst [vmem:[#allocation150_spill] sm:$0xff] %v9939_v38  ;;  %6252 = vrot.lane.b32.xlu1 %v14216_v46, %s7326_s8  ;;  %v2906_v46 = vsel %vm2895_vm8, %v2873_v9, %v5504_v12  ;;  %v2910_v38 = vsel %vm2895_vm8, %v2877_v47, %v5514_v7  ;;  %v2909_v9 = vsel %vm2895_vm8, %v2876_v57, %v5510_v6  ;;  %14226 = vst [vmem:[#allocation120_spill] sm:$0xff] %v9987_v31 }
 0x21e   : > { %6247 = vrot.lane.b32.xlu0 %v14220_v36, %s7326_s8  ;;  %v5550_v36 = vunpack.i.h.bf16 %v14222_v60  ;;  %v2922_v47 = vsel %vm2895_vm8, %v2889_v41, %v5544_v39  ;;  %v2926_v12 = vsel %vm2895_vm8, %v2893_v42, %v5554_v35  ;;  %v2924_v57 = vsel %vm2895_vm8, %v2891_v19, %v5549_v24 }
 0x21f   : > { %v9963_v5 = vpop.permute.xlu1 %5972  ;;  %v5594_v41 = vunpack.i.l.bf16 %v9411_v11  ;;  %v2939_v42 = vsel %vm2928_vm9, %v2906_v46, %v5584_v29  ;;  %v5595_v7 = vunpack.i.h.bf16 %v9411_v11  ;;  %v5625_v24 = vunpack.i.h.bf16 %v9435_v3 }
 0x220   : > { %14223 = vst [vmem:[#allocation159_spill] sm:$0xff] %v9963_v5  ;;  %v9969_v53 = vpop.permute.xlu0 %5967  ;;  %v2925_v58 = vsel %vm2895_vm8, %v2892_v56, %v5550_v36  ;;  %v5634_v19 = vunpack.i.l.bf16 %v9451_v22  ;;  %v5629_v29 = vunpack.i.l.bf16 %v9453_v2  ;;  %v2940_v11 = vsel %vm2928_vm9, %v2907_v21, %v5585_v4  ;;  %v14228_v56 = vld [vmem:[#allocation153_spill] sm:$0xff]  ;;  %v14229_v21 = vld [vmem:[#allocation154_spill] sm:$0xff] }
 0x221   : > { %14224 = vst [vmem:[#allocation8_spill] sm:$0xff] %v9969_v53  ;;  %6262 = vrot.lane.b32.xlu1 %v9948_v13, %s7326_s8  ;;  %v2943_v45 = vsel %vm2928_vm9, %v2910_v38, %v5594_v41  ;;  %v5630_v6 = vunpack.i.h.bf16 %v9453_v2  ;;  %v5664_v3 = vunpack.i.l.bf16 %v9526_v30  ;;  %v2944_v46 = vsel %vm2928_vm9, %v2911_v0, %v5595_v7  ;;  %v14232_v7 = vld [vmem:[#allocation157_spill] sm:$0xff] }
 0x222   : > { %6257 = vrot.lane.b32.xlu0 %v9957_v18, %s7326_s8  ;;  %v2941_v62 = vsel %vm2928_vm9, %v2908_v54, %v5589_v49  ;;  %v5665_v22 = vunpack.i.h.bf16 %v9526_v30  ;;  %v5674_v39 = vunpack.i.l.bf16 %v9537_v16  ;;  %v2942_v35 = vsel %vm2928_vm9, %v2909_v9, %v5590_v28  ;;  %v10222_v13 = vld [vmem:[#allocation2 + $0x398] sm:$0xf]  ;;  %v10224_v18 = vld [vmem:[#allocation2 + $0x360] sm:$0xff] }
 0x223   : > { %v9993_v23 = vpop.permute.xlu1 %5982  ;;  %v2955_v38 = vsel %vm2928_vm9, %v2922_v47, %v5624_v32  ;;  %v2956_v2 = vsel %vm2928_vm9, %v2923_v1, %v5625_v24  ;;  %v5675_v36 = vunpack.i.h.bf16 %v9537_v16  ;;  %v2959_v25 = vsel %vm2928_vm9, %v2926_v12, %v5634_v19  ;;  %v10040_v1 = vld [vmem:[#allocation2 + $0x310] sm:$0xff]  ;;  %v10042_v12 = vld [vmem:[#allocation2 + $0x318] sm:$0xf]  ;;  %v14233_v24 = vld [vmem:[#allocation158_spill] sm:$0xff] }
 0x224   : > { %v9999_v20 = vpop.permute.xlu0 %5977  ;;  %v2960_v30 = vsel %vm2928_vm9, %v2927_v43, %v5635_v17  ;;  %v2957_v60 = vsel %vm2928_vm9, %v2924_v57, %v5629_v29  ;;  %v2958_v0 = vsel %vm2928_vm9, %v2925_v58, %v5630_v6  ;;  %v2972_v54 = vsel %vm2961_vm10, %v2939_v42, %v5664_v3 }
 0x225   : > { %14227 = vst [vmem:[#allocation80_spill] sm:$0xff] %v9999_v20  ;;  %6272 = vrot.lane.b32.xlu1 %v9978_v52, %s7326_s8  ;;  %v5670_v9 = vunpack.i.h.bf16 %v9539_v51  ;;  %v5669_v16 = vunpack.i.l.bf16 %v9539_v51  ;;  %v2973_v43 = vsel %vm2961_vm10, %v2940_v11, %v5665_v22  ;;  %v2976_v57 = vsel %vm2961_vm10, %v2943_v45, %v5674_v39 }
 0x226   : > { %6267 = vrot.lane.b32.xlu0 %v9987_v31, %s7326_s8  ;;  %v5705_v4 = vunpack.i.h.bf16 %v9561_v50  ;;  %v5704_v41 = vunpack.i.l.bf16 %v9561_v50  ;;  %v2977_v42 = vsel %vm2961_vm10, %v2944_v46, %v5675_v36  ;;  %v5714_v51 = vunpack.i.l.bf16 %v9569_v37  ;;  %s4993_s8 = sshll.u32 %s7382_s22, 8  ;;  %s4880_s22 = scalar_lea.sflag [#allocation4], %s241_s6 }
 0x227   : > { %v10015_v33 = vpop.permute.xlu1 %5992  ;;  %v5715_v49 = vunpack.i.h.bf16 %v9569_v37  ;;  %v5709_v28 = vunpack.i.l.bf16 %v9571_v63  ;;  %v1173_v32 = vrot.slane %v10040_v1, 1  ;;  %v1174_v50 = vrot.slane %v10042_v12, 1 }
 0x228   : > { %v10021_v61 = vpop.permute.xlu0 %5987  ;;  %v2974_v17 = vsel %vm2961_vm10, %v2941_v62, %v5669_v16  ;;  %v2975_v19 = vsel %vm2961_vm10, %v2942_v35, %v5670_v9  ;;  %v5710_v29 = vunpack.i.h.bf16 %v9571_v63  ;;  %v10066_v45 = vsel %vm2961_vm10, %v2955_v38, %v5704_v41  ;;  %v14236_v63 = vld [vmem:[#allocation161_spill] sm:$0xff]  ;;  %v14237_v38 = vld [vmem:[#allocation162_spill] sm:$0xff] }
 0x229   : > { %6282 = vrot.lane.b32.xlu1 %v14228_v56, %s7327_s9  ;;  %v10069_v37 = vsel %vm2961_vm10, %v2956_v2, %v5705_v4  ;;  %v10074_v3 = vsel %vm2961_vm10, %v2959_v25, %v5714_v51  ;;  %v5745_v46 = vunpack.i.h.bf16 %v9609_v59  ;;  %v5744_v62 = vunpack.i.l.bf16 %v9609_v59  ;;  %v14239_v16 = vld [vmem:[#allocation165_spill] sm:$0xff]  ;;  %v14241_v41 = vld [vmem:[#allocation166_spill] sm:$0xff] }
 0x22a   : > { %6277 = vrot.lane.b32.xlu0 %v14229_v21, %s7327_s9  ;;  %v10081_v22 = vsel %vm2961_vm10, %v2960_v30, %v5715_v49  ;;  %v10084_v39 = vsel %vm2961_vm10, %v2957_v60, %v5709_v28  ;;  %v5754_v35 = vunpack.i.l.bf16 %v9617_v34  ;;  %v1175_v2 = vsel %vm661_vm4, %v1173_v32, %v1174_v50  ;;  %v14243_v32 = vld [vmem:[#allocation259_spill] sm:$0xff] }
 0x22b   : > { %v10038_v47 = vpop.permute.xlu1 %6002  ;;  %v10091_v36 = vsel %vm2961_vm10, %v2958_v0, %v5710_v29  ;;  %v5755_v59 = vunpack.i.h.bf16 %v9617_v34  ;;  %v5749_v56 = vunpack.i.l.bf16 %v9619_v55  ;;  %v5750_v30 = vunpack.i.h.bf16 %v9619_v55 }
 0x22c   : > { %14230 = vst [vmem:[#allocation51_spill] sm:$0xff] %v10038_v47  ;;  %v10048_v58 = vpop.permute.xlu0 %5997  ;;  %v3005_v21 = vsel %vm2994_vm11, %v2972_v54, %v5744_v62  ;;  %v3006_v9 = vsel %vm2994_vm11, %v2973_v43, %v5745_v46  ;;  %v10105_v0 = vpack.i.bf16 %v1175_v2, %v9676_v44  ;;  %v3009_v34 = vsel %vm2994_vm11, %v2976_v57, %v5754_v35  ;;  %v14245_v35 = vld [vmem:[#allocation6_spill] sm:$0xff] }
 0x22d   : > { %14231 = vst [vmem:[#allocation163_spill] sm:$0xff] %v10048_v58  ;;  %6292 = vrot.lane.b32.xlu1 %v14232_v7, %s7327_s9  ;;  %v5825_v4 = vunpack.i.h.bf16 %v9694_v15  ;;  %v3010_v55 = vsel %vm2994_vm11, %v2977_v42, %v5755_v59  ;;  %v3007_v54 = vsel %vm2994_vm11, %v2974_v17, %v5749_v56  ;;  %v5824_v43 = vunpack.i.l.bf16 %v9694_v15  ;;  %v14242_v42 = vld [vmem:[#allocation169_spill] sm:$0xff] }
 0x22e   : > { %6287 = vrot.lane.b32.xlu0 %v14233_v24, %s7327_s9  ;;  %14240 = vst [vmem:[#allocation177_spill] sm:$0xff] %v10105_v0  ;;  %v5835_v51 = vunpack.i.h.bf16 %v9702_v14  ;;  %v3008_v44 = vsel %vm2994_vm11, %v2975_v19, %v5750_v30  ;;  %v5834_v57 = vunpack.i.l.bf16 %v9702_v14  ;;  %v5829_v49 = vunpack.i.l.bf16 %v9704_v26  ;;  %v14244_v14 = vld [vmem:[#allocation170_spill] sm:$0xff] }
 0x22f   : > { %v10063_v11 = vpop.permute.xlu1 %6012  ;;  %v3039_v19 = vsel %vm13633_vm12, %v3006_v9, %v5825_v4  ;;  %v3038_v29 = vsel %vm13633_vm12, %v3005_v21, %v5824_v43  ;;  %v5830_v62 = vunpack.i.h.bf16 %v9704_v26  ;;  %v5904_v2 = vunpack.i.l.bf16 %v14245_v35  ;;  %v14247_v9 = vld [vmem:[#allocation94_spill] sm:$0xff]  ;;  %v10145_v21 = vld [vmem:[#allocation2 + $0x348] sm:$0xf] }
 0x230   : > { %14234 = vst [vmem:[#allocation164_spill] sm:$0xff] %v10063_v11  ;;  %v10071_v6 = vpop.permute.xlu0 %6007  ;;  %v3043_v46 = vsel %vm13633_vm12, %v3010_v55, %v5835_v51  ;;  %v3042_v56 = vsel %vm13633_vm12, %v3009_v34, %v5834_v57  ;;  %v3040_v30 = vsel %vm13633_vm12, %v3007_v54, %v5829_v49  ;;  %v5905_v50 = vunpack.i.h.bf16 %v14245_v35  ;;  %v10143_v24 = vld [vmem:[#allocation2 + $0x340] sm:$0xff]  ;;  %v14249_v55 = vld [vmem:[#allocation109_spill] sm:$0xff]  ;;  %v10151_v34 = vld [vmem:[#allocation2 + $0x350] sm:$0xff] }
 0x231   : > { %14235 = vst [vmem:[#allocation175_spill] sm:$0xff] %v10071_v6  ;;  %6302 = vrot.lane.b32.xlu1 %v14236_v63, %s7327_s9  ;;  %v5914_v4 = vunpack.i.l.bf16 %v14247_v9  ;;  %v5915_v26 = vunpack.i.h.bf16 %v14247_v9  ;;  %v5909_v43 = vunpack.i.l.bf16 %v14249_v55  ;;  %v14250_v51 = vld [vmem:[#allocation173_spill] sm:$0xff]  ;;  %v1284_v57 = vrot.slane %v10143_v24, 3  ;;  %v14251_v9 = vld [vmem:[#allocation174_spill] sm:$0xff]  ;;  %v10169_v6 = vld [vmem:[#allocation2 + $0x328] sm:$0xf] }
 0x232   : > { %6297 = vrot.lane.b32.xlu0 %v14237_v38, %s7327_s9  ;;  %v10153_v54 = vld [vmem:[#allocation2 + $0x358] sm:$0xf]  ;;  %v1285_v49 = vrot.slane %v10145_v21, 3  ;;  %v5910_v35 = vunpack.i.h.bf16 %v14249_v55  ;;  %v5984_v15 = vunpack.i.l.bf16 %v9993_v23  ;;  %v1287_v20 = vrot.slane %v10151_v34, 3 }
 0x233   : > { %v10095_v25 = vpop.permute.xlu1 %6022  ;;  %v3041_v11 = vsel %vm13633_vm12, %v3008_v44, %v5830_v62  ;;  %v3072_v47 = vsel %vm13632_vm13, %v3039_v19, %v5905_v50  ;;  %v3075_v53 = vsel %vm13632_vm13, %v3042_v56, %v5914_v4  ;;  %v3076_v62 = vsel %vm13632_vm13, %v3043_v46, %v5915_v26  ;;  %v10190_v50 = vld [vmem:[#allocation2 + $0x338] sm:$0xf]  ;;  %v14257_v4 = vld [vmem:[#allocation219_spill] sm:$0xff] }
 0x234   : > { %v10098_v60 = vpop.permute.xlu0 %6017  ;;  %v10172_v55 = vsel %vm887_vm3, %v1284_v57, %v1285_v49  ;;  %v5985_v57 = vunpack.i.h.bf16 %v9993_v23  ;;  %v14256_v49 = vld [vmem:[#allocation224_spill] sm:$0xff]  ;;  %v3074_v56 = vsel %vm13632_vm13, %v3041_v11, %v5910_v35  ;;  %v10199_v46 = vld [vmem:[#allocation2 + $0x388] sm:$0xf]  ;;  %v5995_v26 = vunpack.i.h.bf16 %v10015_v33 }
 0x235   : > { %14238 = vst [vmem:[#allocation81_spill] sm:$0xff] %v10098_v60  ;;  %6312 = vrot.lane.b32.xlu1 %v14239_v16, %s7327_s9  ;;  %v10161_v60 = vld [vmem:[#allocation2 + $0x320] sm:$0xff]  ;;  %14253 = vst [vmem:[#allocation181_spill] sm:$0xff] %v10172_v55  ;;  %v10179_v16 = vld [vmem:[#allocation2 + $0x330] sm:$0xff]  ;;  %v5989_v31 = vunpack.i.l.bf16 %v10021_v61 }
 0x236   : > { %6307 = vrot.lane.b32.xlu0 %v14241_v41, %s7327_s9  ;;  %v1278_v58 = vrot.slane %v10161_v60, 3  ;;  %v1281_v19 = vrot.slane %v10179_v16, 3  ;;  %v10207_v11 = vld [vmem:[#allocation2 + $0x390] sm:$0xff]  ;;  %v3105_v40 = vsel %vm13631_vm14, %v3072_v47, %v5985_v57  ;;  %v14262_v47 = vld [vmem:[#allocation223_spill] sm:$0xff] }
 0x237   : > { %v10115_v7 = vpop.permute.xlu1 %6032  ;;  %v10239_v57 = vld [vmem:[#allocation2 + $0x370] sm:$0xff] }
 0x238   : > { %v10120_v28 = vpop.permute.xlu0 %6027 }
 0x239   : > { %6322 = vrot.lane.b32.xlu1 %v14242_v42, %s7327_s9 }
 0x23a   : > { %6317 = vrot.lane.b32.xlu0 %v14244_v14, %s7327_s9 }
 0x23b   : > { %v10135_v59 = vpop.permute.xlu1 %6042 }
 0x23c   : > { %14246 = vst [vmem:[#allocation178_spill] sm:$0xff] %v10135_v59  ;;  %v10141_v17 = vpop.permute.xlu0 %6037 }
 0x23d   : > { %14248 = vst [vmem:[#allocation90_spill] sm:$0xff] %v10141_v17  ;;  %6332 = vrot.lane.b32.xlu1 %v14250_v51, %s7327_s9  ;;  %v1288_v51 = vrot.slane %v10153_v54, 3  ;;  %v3071_v17 = vsel %vm13632_vm13, %v3038_v29, %v5904_v2  ;;  %v1279_v29 = vrot.slane %v10169_v6, 3  ;;  %v3073_v2 = vsel %vm13632_vm13, %v3040_v30, %v5909_v43 }
 0x23e   : > { %6327 = vrot.lane.b32.xlu0 %v14251_v9, %s7327_s9  ;;  %v1282_v30 = vrot.slane %v10190_v50, 3  ;;  %v5994_v43 = vunpack.i.l.bf16 %v10015_v33  ;;  %v5990_v33 = vunpack.i.h.bf16 %v10021_v61  ;;  %v10237_v61 = vld [vmem:[#allocation2 + $0x368] sm:$0xf] }
 0x23f   : > { %v10167_v59 = vpop.permute.xlu1 %6052  ;;  %v10182_v44 = vsel %vm887_vm3, %v1287_v20, %v1288_v51  ;;  %v3104_v20 = vsel %vm13631_vm14, %v3071_v17, %v5984_v15  ;;  %v10197_v51 = vld [vmem:[#allocation2 + $0x380] sm:$0xff]  ;;  %v10202_v23 = vsel %vm887_vm3, %v1278_v58, %v1279_v29  ;;  %v1297_v17 = vrot.slane %v10199_v46, 3 }
 0x240   : > { %14252 = vst [vmem:[#allocation41_spill] sm:$0xff] %v10167_v59  ;;  %v10177_v5 = vpop.permute.xlu0 %6047  ;;  %14255 = vst [vmem:[#allocation190_spill] sm:$0xff] %v10182_v44  ;;  %v1296_v15 = vrot.slane %v10197_v51, 3  ;;  %v10214_v58 = vsel %vm887_vm3, %v1281_v19, %v1282_v30  ;;  %v1299_v29 = vrot.slane %v10207_v11, 3 }
 0x241   : > { %14254 = vst [vmem:[#allocation182_spill] sm:$0xff] %v10177_v5  ;;  %6342 = vrot.lane.b32.xlu1 %v14256_v49, %s7327_s9  ;;  %14258 = vst [vmem:[#allocation192_spill] sm:$0xff] %v10202_v23  ;;  %v3106_v49 = vsel %vm13631_vm14, %v3073_v2, %v5989_v31  ;;  %v14268_v2 = vld [vmem:[#allocation260_spill] sm:$0xff] }
 0x242   : > { %6337 = vrot.lane.b32.xlu0 %v14257_v4, %s7327_s9  ;;  %14260 = vst [vmem:[#allocation132_spill] sm:$0xff] %v10214_v58 }
 0x243   : > { %v6063_v59 = vpop.permute.xlu1 %6062 }
 0x244   : > { %v6065_v35 = vunpack.i.h.bf16 %v6063_v59  ;;  %v6064_v5 = vunpack.i.l.bf16 %v6063_v59  ;;  %v10211_v52 = vpop.permute.xlu0 %6057  ;;  %v10227_v59 = vsel %vm887_vm3, %v1296_v15, %v1297_v17  ;;  %v3108_v15 = vsel %vm13631_vm14, %v3075_v53, %v5994_v43 }
 0x245   : > { %14259 = vst [vmem:[#allocation193_spill] sm:$0xff] %v10211_v52  ;;  %6352 = vrot.lane.b32.xlu1 %v10105_v0, %s7327_s9  ;;  %14261 = vst [vmem:[#allocation195_spill] sm:$0xff] %v10227_v59  ;;  %v1300_v52 = vrot.slane %v10222_v13, 3  ;;  %v1290_v0 = vrot.slane %v10224_v18, 3  ;;  %v3109_v17 = vsel %vm13631_vm14, %v3076_v62, %v5995_v26  ;;  %v14264_v62 = vld [vmem:[#allocation99_spill] sm:$0xff] }
 0x246   : > { %v10230_v19 = vsel %vm13634_vm15, %v3104_v20, %v6064_v5  ;;  %v10233_v30 = vsel %vm13634_vm15, %v3105_v40, %v6065_v35  ;;  %6347 = vrot.lane.b32.xlu0 %v14262_v47, %s7327_s9  ;;  %v10245_v20 = vld [vmem:[#allocation2 + $0x378] sm:$0xf]  ;;  %v1291_v40 = vrot.slane %v10237_v61, 3  ;;  %v1293_v35 = vrot.slane %v10239_v57, 3  ;;  %s243_s9 = scalar_lea.vmem [#allocation3], %s4981_s7 }
 0x247   : > { %v6073_v5 = vpop.permute.xlu1 %6072  ;;  %v10250_v44 = vsel %vm887_vm3, %v1299_v29, %v1300_v52  ;;  %v1294_v55 = vrot.slane %v10245_v20, 3  ;;  %v3107_v47 = vsel %vm13631_vm14, %v3074_v56, %v5990_v33  ;;  %v14266_v29 = vld [vmem:[#allocation96_spill] sm:$0xff]  ;;  %v14270_v33 = vunpack.i.l.bf16 %v9641_v27 }
 0x248   : > { %v6075_v59 = vunpack.i.h.bf16 %v6073_v5  ;;  %v6074_v58 = vunpack.i.l.bf16 %v6073_v5  ;;  %v6068_v23 = vpop.permute.xlu0 %6067  ;;  %14263 = vst [vmem:[#allocation196_spill] sm:$0xff] %v10250_v44  ;;  %v10257_v26 = vsel %vm887_vm3, %v1290_v0, %v1291_v40  ;;  %v14273_v40 = vld [vmem:[#allocation270_spill] sm:$0xff] }
 0x249   : > { %v6070_v53 = vunpack.i.h.bf16 %v6068_v23  ;;  %v6069_v43 = vunpack.i.l.bf16 %v6068_v23  ;;  %6362 = vrot.lane.b32.xlu1 %v14264_v62, %s7313_s10  ;;  %14265 = vst [vmem:[#allocation201_spill] sm:$0xff] %v10257_v26  ;;  %v10269_v31 = vsel %vm887_vm3, %v1293_v35, %v1294_v55  ;;  %v5790_v23 = vunpack.i.h.bf16 %v14268_v2 }
 0x24a   : > { %v10261_v5 = vsel %vm13634_vm15, %v3108_v15, %v6074_v58  ;;  %v10264_v52 = vsel %vm13634_vm15, %v3109_v17, %v6075_v59  ;;  %6357 = vrot.lane.b32.xlu0 %v14266_v29, %s7313_s10  ;;  %14267 = vst [vmem:[#allocation203_spill] sm:$0xff] %v10269_v31  ;;  %v5789_v62 = vunpack.i.l.bf16 %v14268_v2  ;;  %v3021_v59 = vsel %vm2994_vm11, %v10066_v45, %v14270_v33  ;;  %v14278_v33 = vld [vmem:[#allocation98_spill] sm:$0xff] }
 0x24b   : > { %v10274_v0 = vsel %vm13634_vm15, %v3106_v49, %v6069_v43  ;;  %v10277_v56 = vsel %vm13634_vm15, %v3107_v47, %v6070_v53  ;;  %v10279_v58 = vpop.permute.xlu1 %6082  ;;  %v14271_v55 = vunpack.i.h.bf16 %v9641_v27  ;;  %v5865_v49 = vunpack.i.h.bf16 %v14273_v40  ;;  %v14274_v47 = vld [vmem:[#allocation127_spill] sm:$0xff] }
 0x24c   : > { %14269 = vst [vmem:[#allocation204_spill] sm:$0xff] %v10279_v58  ;;  %v10289_v17 = vpop.permute.xlu0 %6077  ;;  %v5864_v35 = vunpack.i.l.bf16 %v14273_v40  ;;  %v14275_v53 = vunpack.i.l.bf16 %v14243_v32  ;;  %v14276_v45 = vunpack.i.h.bf16 %v14243_v32  ;;  %v3024_v40 = vsel %vm2994_vm11, %v10091_v36, %v5790_v23  ;;  %v14282_v23 = vld [vmem:[#allocation67_spill] sm:$0xff] }
 0x24d   : > { %v3022_v15 = vsel %vm2994_vm11, %v10069_v37, %v14271_v55  ;;  %14272 = vst [vmem:[#allocation211_spill] sm:$0xff] %v10289_v17  ;;  %6372 = vrot.lane.b32.xlu1 %v14274_v47, %s7313_s10  ;;  %v14277_v37 = vld [vmem:[#allocation272_spill] sm:$0xff]  ;;  %v3023_v55 = vsel %vm2994_vm11, %v10084_v39, %v5789_v62  ;;  %v14279_v47 = vld [vmem:[#allocation149_spill] sm:$0xff]  ;;  %v6025_v39 = vunpack.i.h.bf16 %v10095_v25  ;;  %v6024_v36 = vunpack.i.l.bf16 %v10095_v25 }
 0x24e   : > { %v3025_v43 = vsel %vm2994_vm11, %v10074_v3, %v14275_v53  ;;  %v3026_v27 = vsel %vm2994_vm11, %v10081_v22, %v14276_v45  ;;  %v5875_v29 = vunpack.i.h.bf16 %v14277_v37  ;;  %v5874_v2 = vunpack.i.l.bf16 %v14277_v37  ;;  %6367 = vrot.lane.b32.xlu0 %v14278_v33, %s7313_s10 }
 0x24f   : > { %v5945_v3 = vunpack.i.h.bf16 %v14279_v47  ;;  %v5944_v32 = vunpack.i.l.bf16 %v14279_v47  ;;  %v10313_v53 = vpop.permute.xlu1 %6092  ;;  %v1211_v45 = vrot.slane %v10040_v1, 3  ;;  %v1212_v37 = vrot.slane %v10042_v12, 3  ;;  %v14284_v12 = vld [vmem:[#allocation61_spill] sm:$0xff] }
 0x250   : > { %14280 = vst [vmem:[#allocation215_spill] sm:$0xff] %v10313_v53  ;;  %v10315_v22 = vpop.permute.xlu0 %6087  ;;  %v3055_v33 = vsel %vm13633_vm12, %v3022_v15, %v5865_v49  ;;  %v3054_v17 = vsel %vm13633_vm12, %v3021_v59, %v5864_v35  ;;  %v3059_v62 = vsel %vm13633_vm12, %v3026_v27, %v5875_v29  ;;  %v3058_v47 = vsel %vm13633_vm12, %v3025_v43, %v5874_v2  ;;  %v14283_v53 = vld [vmem:[#allocation273_spill] sm:$0xff] }
 0x251   : > { %14281 = vst [vmem:[#allocation216_spill] sm:$0xff] %v10315_v22  ;;  %6382 = vrot.lane.b32.xlu1 %v14282_v23, %s7313_s10  ;;  %v5870_v22 = vunpack.i.h.bf16 %v14283_v53  ;;  %v5869_v1 = vunpack.i.l.bf16 %v14283_v53  ;;  %v3087_v59 = vsel %vm13632_vm13, %v3054_v17, %v5944_v32  ;;  %v3088_v15 = vsel %vm13632_vm13, %v3055_v33, %v5945_v3  ;;  %v14286_v32 = vld [vmem:[#allocation136_spill] sm:$0xff] }
 0x252   : > { %6377 = vrot.lane.b32.xlu0 %v14284_v12, %s7313_s10  ;;  %v5955_v25 = vunpack.i.h.bf16 %v9911_v48  ;;  %v5954_v49 = vunpack.i.l.bf16 %v9911_v48  ;;  %v5950_v27 = vunpack.i.h.bf16 %v9917_v10  ;;  %v5949_v43 = vunpack.i.l.bf16 %v9917_v10 }
 0x253   : > { %v6103_v35 = vpop.permute.xlu1 %6102  ;;  %v3120_v53 = vsel %vm13631_vm14, %v3087_v59, %v6024_v36  ;;  %v3121_v31 = vsel %vm13631_vm14, %v3088_v15, %v6025_v39  ;;  %v6035_v17 = vunpack.i.h.bf16 %v10115_v7  ;;  %v6034_v3 = vunpack.i.l.bf16 %v10115_v7  ;;  %v14287_v36 = vld [vmem:[#allocation65_spill] sm:$0xff] }
 0x254   : > { %v6105_v29 = vunpack.i.h.bf16 %v6103_v35  ;;  %v6104_v2 = vunpack.i.l.bf16 %v6103_v35  ;;  %v10337_v58 = vpop.permute.xlu0 %6097  ;;  %v6030_v48 = vunpack.i.h.bf16 %v10120_v28  ;;  %v6029_v33 = vunpack.i.l.bf16 %v10120_v28 }
 0x255   : > { %14285 = vst [vmem:[#allocation153_spill] sm:$0xff] %v10337_v58  ;;  %6392 = vrot.lane.b32.xlu1 %v14286_v32, %s7313_s10  ;;  %v3056_v39 = vsel %vm13633_vm12, %v3023_v55, %v5869_v1  ;;  %v3057_v7 = vsel %vm13633_vm12, %v3024_v40, %v5870_v22  ;;  %v3091_v59 = vsel %vm13632_vm13, %v3058_v47, %v5954_v49  ;;  %v14288_v40 = vld [vmem:[#allocation108_spill] sm:$0xff] }
 0x256   : > { %v10348_v10 = vsel %vm13634_vm15, %v3120_v53, %v6104_v2  ;;  %v10351_v35 = vsel %vm13634_vm15, %v3121_v31, %v6105_v29  ;;  %6387 = vrot.lane.b32.xlu0 %v14287_v36, %s7313_s10  ;;  %v3092_v15 = vsel %vm13632_vm13, %v3059_v62, %v5955_v25  ;;  %v3089_v28 = vsel %vm13632_vm13, %v3056_v39, %v5949_v43  ;;  %v14297_v39 = vld [vmem:[#allocation251_spill] sm:$0xff] }
 0x257   : > { %v6113_v58 = vpop.permute.xlu1 %6112  ;;  %v3090_v2 = vsel %vm13632_vm13, %v3057_v7, %v5950_v27  ;;  %v3124_v29 = vsel %vm13631_vm14, %v3091_v59, %v6034_v3  ;;  %v3125_v26 = vsel %vm13631_vm14, %v3092_v15, %v6035_v17  ;;  %v3122_v22 = vsel %vm13631_vm14, %v3089_v28, %v6029_v33  ;;  %v14292_v17 = vld [vmem:[#allocation142_spill] sm:$0xff]  ;;  %v14293_v3 = vld [vmem:[#allocation104_spill] sm:$0xff] }
 0x258   : > { %v6115_v53 = vunpack.i.h.bf16 %v6113_v58  ;;  %v6114_v32 = vunpack.i.l.bf16 %v6113_v58  ;;  %v6108_v31 = vpop.permute.xlu0 %6107  ;;  %v3123_v62 = vsel %vm13631_vm14, %v3090_v2, %v6030_v48  ;;  %v14289_v58 = vld [vmem:[#allocation9_spill] sm:$0xff]  ;;  %v14296_v33 = vld [vmem:[#allocation256_spill] sm:$0xff] }
 0x259   : > { %v6110_v44 = vunpack.i.h.bf16 %v6108_v31  ;;  %v6109_v55 = vunpack.i.l.bf16 %v6108_v31  ;;  %6402 = vrot.lane.b32.xlu1 %v14288_v40, %s7313_s10 }
 0x25a   : > { %v10368_v47 = vsel %vm13634_vm15, %v3124_v29, %v6114_v32  ;;  %v10371_v1 = vsel %vm13634_vm15, %v3125_v26, %v6115_v53  ;;  %6397 = vrot.lane.b32.xlu0 %v14289_v58, %s7313_s10  ;;  %v1213_v26 = vsel %vm887_vm3, %v1211_v45, %v1212_v37  ;;  %v14299_v37 = vld [vmem:[#allocation255_spill] sm:$0xff] }
 0x25b   : > { %v10376_v25 = vsel %vm13634_vm15, %v3122_v22, %v6109_v55  ;;  %v10379_v49 = vsel %vm13634_vm15, %v3123_v62, %v6110_v44  ;;  %v10381_v27 = vpop.permute.xlu1 %6122  ;;  %v10397_v44 = vpack.i.bf16 %v1213_v26, %v9529_v8  ;;  %v14300_v62 = vld [vmem:[#allocation208_spill] sm:$0xff] }
 0x25c   : > { %14290 = vst [vmem:[#allocation154_spill] sm:$0xff] %v10381_v27  ;;  %v10383_v43 = vpop.permute.xlu0 %6117 }
 0x25d   : > { %14291 = vst [vmem:[#allocation157_spill] sm:$0xff] %v10383_v43  ;;  %6412 = vrot.lane.b32.xlu1 %v14292_v17, %s7313_s10  ;;  %v1248_v17 = vrot.slane %v10197_v51, 1 }
 0x25e   : > { %6407 = vrot.lane.b32.xlu0 %v14293_v3, %s7313_s10 }
 0x25f   : > { %v10390_v32 = vpop.permute.xlu1 %6132 }
 0x260   : > { %14294 = vst [vmem:[#allocation158_spill] sm:$0xff] %v10390_v32  ;;  %v10392_v48 = vpop.permute.xlu0 %6127  ;;  %v1233_v32 = vrot.slane %v10179_v16, 1 }
 0x261   : > { %14295 = vst [vmem:[#allocation161_spill] sm:$0xff] %v10392_v48  ;;  %6422 = vrot.lane.b32.xlu1 %v14296_v33, %s7313_s10 }
 0x262   : > { %6417 = vrot.lane.b32.xlu0 %v14297_v39, %s7313_s10 }
 0x263   : > { %v6143_v7 = vpop.permute.xlu1 %6142 }
 0x264   : > { %v6145_v59 = vunpack.i.h.bf16 %v6143_v7  ;;  %v6144_v15 = vunpack.i.l.bf16 %v6143_v7  ;;  %v10401_v28 = vpop.permute.xlu0 %6137 }
 0x265   : > { %14298 = vst [vmem:[#allocation162_spill] sm:$0xff] %v10401_v28  ;;  %6432 = vrot.lane.b32.xlu1 %v10397_v44, %s7313_s10 }
 0x266   : > { %v10407_v45 = vsel %vm13521_vm1, %v10230_v19, %v6144_v15  ;;  %v10411_v8 = vsel %vm13521_vm1, %v10233_v30, %v6145_v59  ;;  %6427 = vrot.lane.b32.xlu0 %v14299_v37, %s7313_s10  ;;  %s7328_s10 = smov 64  }
 0x267   : > { %v6153_v2 = vpop.permute.xlu1 %6152 }
 0x268   : > { %v6155_v53 = vunpack.i.h.bf16 %v6153_v2  ;;  %v6154_v31 = vunpack.i.l.bf16 %v6153_v2  ;;  %v6148_v29 = vpop.permute.xlu0 %6147  ;;  %v1237_v2 = vrot.slane %v10145_v21, 1 }
 0x269   : > { %v6150_v55 = vunpack.i.h.bf16 %v6148_v29  ;;  %v6149_v22 = vunpack.i.l.bf16 %v6148_v29  ;;  %6442 = vrot.lane.b32.xlu1 %v14237_v38, %s7314_s11  ;;  %v1240_v29 = vrot.slane %v10153_v54, 1 }
 0x26a   : > { %v10419_v19 = vsel %vm13521_vm1, %v10261_v5, %v6154_v31  ;;  %v10423_v30 = vsel %vm13521_vm1, %v10264_v52, %v6155_v53  ;;  %6437 = vrot.lane.b32.xlu0 %v14300_v62, %s7314_s11  ;;  %v1239_v31 = vrot.slane %v10151_v34, 1 }
 0x26b   : > { %v10429_v26 = vsel %vm13521_vm1, %v10274_v0, %v6149_v22  ;;  %v10433_v7 = vsel %vm13521_vm1, %v10277_v56, %v6150_v55  ;;  %v10435_v59 = vpop.permute.xlu1 %6162  ;;  %v14305_v0 = vld [vmem:[#allocation214_spill] sm:$0xff]  ;;  %v1236_v56 = vrot.slane %v10143_v24, 1  ;;  %v1230_v55 = vrot.slane %v10161_v60, 1 }
 0x26c   : > { %14301 = vst [vmem:[#allocation166_spill] sm:$0xff] %v10435_v59  ;;  %v10437_v15 = vpop.permute.xlu0 %6157  ;;  %v1231_v22 = vrot.slane %v10169_v6, 1  ;;  %v10477_v59 = vsel %vm661_vm4, %v1239_v31, %v1240_v29 }
 0x26d   : > { %14302 = vst [vmem:[#allocation259_spill] sm:$0xff] %v10437_v15  ;;  %6452 = vrot.lane.b32.xlu1 %v14241_v41, %s7314_s11  ;;  %14307 = vst [vmem:[#allocation219_spill] sm:$0xff] %v10477_v59 }
 0x26e   : > { %6447 = vrot.lane.b32.xlu0 %v14236_v63, %s7314_s11  ;;  %v1232_v48 = vsel %vm661_vm4, %v1230_v55, %v1231_v22  ;;  %v1243_v55 = vrot.slane %v10237_v61, 1 }
 0x26f   : > { %v10443_v5 = vpop.permute.xlu1 %6172 }
 0x270   : > { %14303 = vst [vmem:[#allocation6_spill] sm:$0xff] %v10443_v5  ;;  %v10445_v52 = vpop.permute.xlu0 %6167 }
 0x271   : > { %14304 = vst [vmem:[#allocation94_spill] sm:$0xff] %v10445_v52  ;;  %6462 = vrot.lane.b32.xlu1 %v14244_v14, %s7314_s11 }
 0x272   : > { %6457 = vrot.lane.b32.xlu0 %v14305_v0, %s7314_s11  ;;  %v1234_v0 = vrot.slane %v10190_v50, 1 }
 0x273   : > { %v6183_v53 = vpop.permute.xlu1 %6182 }
 0x274   : > { %v6185_v62 = vunpack.i.h.bf16 %v6183_v53  ;;  %v6184_v28 = vunpack.i.l.bf16 %v6183_v53  ;;  %v10457_v5 = vpop.permute.xlu0 %6177 }
 0x275   : > { %14306 = vst [vmem:[#allocation109_spill] sm:$0xff] %v10457_v5  ;;  %6472 = vrot.lane.b32.xlu1 %v14251_v9, %s7314_s11  ;;  %v10474_v5 = vsel %vm661_vm4, %v1236_v56, %v1237_v2  ;;  %v1251_v56 = vrot.slane %v10207_v11, 1  ;;  %v1252_v2 = vrot.slane %v10222_v13, 1 }
 0x276   : > { %v10465_v52 = vsel %vm13521_vm1, %v10348_v10, %v6184_v28  ;;  %v10469_v15 = vsel %vm13521_vm1, %v10351_v35, %v6185_v62  ;;  %6467 = vrot.lane.b32.xlu0 %v14242_v42, %s7314_s11  ;;  %v10482_v35 = vsel %vm661_vm4, %v1233_v32, %v1234_v0  ;;  %v1249_v62 = vrot.slane %v10199_v46, 1  ;;  %v14308_v32 = vld [vmem:[#allocation220_spill] sm:$0xff] }
 0x277   : > { %v6193_v53 = vpop.permute.xlu1 %6192 }
 0x278   : > { %v6195_v10 = vunpack.i.h.bf16 %v6193_v53  ;;  %v6194_v28 = vunpack.i.l.bf16 %v6193_v53  ;;  %v6188_v9 = vpop.permute.xlu0 %6187  ;;  %v1246_v53 = vrot.slane %v10245_v20, 1 }
 0x279   : > { %v6190_v42 = vunpack.i.h.bf16 %v6188_v9  ;;  %v6189_v43 = vunpack.i.l.bf16 %v6188_v9  ;;  %6482 = vrot.lane.b32.xlu1 %v14257_v4, %s7314_s11  ;;  %v1242_v9 = vrot.slane %v10224_v18, 1 }
 0x27a   : > { %v10491_v31 = vsel %vm13521_vm1, %v10368_v47, %v6194_v28  ;;  %v10495_v29 = vsel %vm13521_vm1, %v10371_v1, %v6195_v10  ;;  %6477 = vrot.lane.b32.xlu0 %v14308_v32, %s7314_s11  ;;  %v1245_v1 = vrot.slane %v10239_v57, 1  ;;  %v14311_v28 = vld [vmem:[#allocation223_spill] sm:$0xff]  ;;  %v10519_v32 = vpack.i.bf16 %v10477_v59, %v10474_v5 }
 0x27b   : > { %v10503_v22 = vsel %vm13521_vm1, %v10376_v25, %v6189_v43  ;;  %v10507_v0 = vsel %vm13521_vm1, %v10379_v49, %v6190_v42  ;;  %v10509_v47 = vpop.permute.xlu1 %6202  ;;  %v14313_v25 = vld [vmem:[#allocation224_spill] sm:$0xff]  ;;  %v6496_v42 = vpack.i.bf16 %v10482_v35, %v1232_v48  ;;  %v10525_v49 = vsel %vm661_vm4, %v1248_v17, %v1249_v62 }
 0x27c   : > { %14309 = vst [vmem:[#allocation99_spill] sm:$0xff] %v10509_v47  ;;  %v10513_v10 = vpop.permute.xlu0 %6197  ;;  %14312 = vst [vmem:[#allocation260_spill] sm:$0xff] %v10519_v32  ;;  %v10528_v43 = vsel %vm661_vm4, %v1251_v56, %v1252_v2  ;;  %v10536_v27 = vsel %vm661_vm4, %v1245_v1, %v1246_v53  ;;  %vm13539_vm1 = vcmask 457728  }
 0x27d   : > { %14310 = vst [vmem:[#allocation96_spill] sm:$0xff] %v10513_v10  ;;  %6492 = vrot.lane.b32.xlu1 %v14311_v28, %s7314_s11  ;;  %14314 = vst [vmem:[#allocation270_spill] sm:$0xff] %v10525_v49  ;;  %v10533_v10 = vsel %vm661_vm4, %v1242_v9, %v1243_v55  ;;  %v10544_v17 = vpack.i.bf16 %v10528_v43, %v10525_v49 }
 0x27e   : > { %6487 = vrot.lane.b32.xlu0 %v14313_v25, %s7314_s11  ;;  %14315 = vst [vmem:[#allocation127_spill] sm:$0xff] %v10528_v43  ;;  %14317 = vst [vmem:[#allocation98_spill] sm:$0xff] %v10533_v10  ;;  %v10549_v48 = vpack.i.bf16 %v10536_v27, %v10533_v10  ;;  %v14323_v43 = vld [vmem:[#allocation44_spill] sm:$0xff]  ;;  %v1257_v10 = vrot.slane %v10179_v16, 2 }
 0x27f   : > { %v10530_v47 = vpop.permute.xlu1 %6212  ;;  %14318 = vst [vmem:[#allocation149_spill] sm:$0xff] %v10536_v27  ;;  %14320 = vst [vmem:[#allocation273_spill] sm:$0xff] %v10544_v17 }
 0x280   : > { %14316 = vst [vmem:[#allocation272_spill] sm:$0xff] %v10530_v47  ;;  %v10538_v59 = vpop.permute.xlu0 %6207  ;;  %14321 = vst [vmem:[#allocation61_spill] sm:$0xff] %v10549_v48 }
 0x281   : > { %14319 = vst [vmem:[#allocation67_spill] sm:$0xff] %v10538_v59  ;;  %6502 = vrot.lane.b32.xlu1 %v10519_v32, %s7314_s11 }
 0x282   : > { %6497 = vrot.lane.b32.xlu0 %v6496_v42, %s7314_s11 }
 0x283   : > { %v6223_v62 = vpop.permute.xlu1 %6222 }
 0x284   : > { %v6225_v56 = vunpack.i.h.bf16 %v6223_v62  ;;  %v6224_v2 = vunpack.i.l.bf16 %v6223_v62  ;;  %v10551_v9 = vpop.permute.xlu0 %6217 }
 0x285   : > { %14322 = vst [vmem:[#allocation65_spill] sm:$0xff] %v10551_v9  ;;  %6512 = vrot.lane.b32.xlu1 %v10544_v17, %s7314_s11 }
 0x286   : > { %v10557_v55 = vsel %vm13539_vm1, %v10407_v45, %v6224_v2  ;;  %v10561_v1 = vsel %vm13539_vm1, %v10411_v8, %v6225_v56  ;;  %6507 = vrot.lane.b32.xlu0 %v10549_v48, %s7314_s11  ;;  %v14324_v56 = vld [vmem:[#allocation46_spill] sm:$0xff]  ;;  %v1254_v48 = vrot.slane %v10161_v60, 2 }
 0x287   : > { %v6233_v53 = vpop.permute.xlu1 %6232 }
 0x288   : > { %v6235_v42 = vunpack.i.h.bf16 %v6233_v53  ;;  %v6234_v62 = vunpack.i.l.bf16 %v6233_v53  ;;  %v6228_v47 = vpop.permute.xlu0 %6227 }
 0x289   : > { %v6230_v9 = vunpack.i.h.bf16 %v6228_v47  ;;  %v6229_v59 = vunpack.i.l.bf16 %v6228_v47  ;;  %6522 = vrot.lane.b32.xlu1 %v14323_v43, %s7315_s12 }
 0x28a   : > { %v10569_v45 = vsel %vm13539_vm1, %v10419_v19, %v6234_v62  ;;  %v10573_v8 = vsel %vm13539_vm1, %v10423_v30, %v6235_v42  ;;  %6517 = vrot.lane.b32.xlu0 %v14324_v56, %s7315_s12  ;;  %v14327_v19 = vld [vmem:[#allocation63_spill] sm:$0xff]  ;;  %v14328_v30 = vld [vmem:[#allocation68_spill] sm:$0xff] }
 0x28b   : > { %v10579_v2 = vsel %vm13539_vm1, %v10429_v26, %v6229_v59  ;;  %v10583_v47 = vsel %vm13539_vm1, %v10433_v7, %v6230_v9  ;;  %v10585_v53 = vpop.permute.xlu1 %6242  ;;  %v14331_v26 = vld [vmem:[#allocation72_spill] sm:$0xff]  ;;  %v14332_v7 = vld [vmem:[#allocation74_spill] sm:$0xff]  ;;  %v1260_v59 = vrot.slane %v10143_v24, 2  ;;  %v1261_v9 = vrot.slane %v10145_v21, 2 }
 0x28c   : > { %14325 = vst [vmem:[#allocation256_spill] sm:$0xff] %v10585_v53  ;;  %v10587_v17 = vpop.permute.xlu0 %6237  ;;  %v1264_v53 = vrot.slane %v10153_v54, 2  ;;  %v14334_v24 = vld [vmem:[#allocation78_spill] sm:$0xff] }
 0x28d   : > { %14326 = vst [vmem:[#allocation251_spill] sm:$0xff] %v10587_v17  ;;  %6532 = vrot.lane.b32.xlu1 %v14327_v19, %s7315_s12  ;;  %v1263_v17 = vrot.slane %v10151_v34, 2  ;;  %v10624_v54 = vsel %vm790_vm2, %v1260_v59, %v1261_v9  ;;  %v14337_v59 = vld [vmem:[#allocation234_spill] sm:$0xff] }
 0x28e   : > { %6527 = vrot.lane.b32.xlu0 %v14328_v30, %s7315_s12 }
 0x28f   : > { %v10593_v42 = vpop.permute.xlu1 %6252  ;;  %v10627_v16 = vsel %vm790_vm2, %v1263_v17, %v1264_v53  ;;  %v1275_v17 = vrot.slane %v10207_v11, 2  ;;  %v1276_v53 = vrot.slane %v10222_v13, 2 }
 0x290   : > { %14329 = vst [vmem:[#allocation255_spill] sm:$0xff] %v10593_v42  ;;  %v10595_v62 = vpop.permute.xlu0 %6247  ;;  %v1255_v42 = vrot.slane %v10169_v6, 2  ;;  %v14335_v6 = vld [vmem:[#allocation82_spill] sm:$0xff]  ;;  %14336 = vst [vmem:[#allocation220_spill] sm:$0xff] %v10627_v16 }
 0x291   : > { %14330 = vst [vmem:[#allocation208_spill] sm:$0xff] %v10595_v62  ;;  %6542 = vrot.lane.b32.xlu1 %v14331_v26, %s7315_s12 }
 0x292   : > { %6537 = vrot.lane.b32.xlu0 %v14332_v7, %s7315_s12  ;;  %v1258_v7 = vrot.slane %v10190_v50, 2  ;;  %v1256_v50 = vsel %vm790_vm2, %v1254_v48, %v1255_v42  ;;  %v1270_v42 = vrot.slane %v10245_v20, 2 }
 0x293   : > { %v6263_v56 = vpop.permute.xlu1 %6262 }
 0x294   : > { %v6265_v62 = vunpack.i.h.bf16 %v6263_v56  ;;  %v6264_v49 = vunpack.i.l.bf16 %v6263_v56  ;;  %v10607_v27 = vpop.permute.xlu0 %6257  ;;  %v1272_v56 = vrot.slane %v10197_v51, 2 }
 0x295   : > { %14333 = vst [vmem:[#allocation214_spill] sm:$0xff] %v10607_v27  ;;  %6552 = vrot.lane.b32.xlu1 %v14334_v24, %s7315_s12 }
 0x296   : > { %v10615_v21 = vsel %vm13539_vm1, %v10465_v52, %v6264_v49  ;;  %v10619_v60 = vsel %vm13539_vm1, %v10469_v15, %v6265_v62  ;;  %6547 = vrot.lane.b32.xlu0 %v14335_v6, %s7315_s12  ;;  %v10632_v15 = vsel %vm790_vm2, %v1257_v10, %v1258_v7  ;;  %v1273_v62 = vrot.slane %v10199_v46, 2  ;;  %v14338_v10 = vld [vmem:[#allocation235_spill] sm:$0xff] }
 0x297   : > { %v6273_v34 = vpop.permute.xlu1 %6272  ;;  %v1266_v46 = vrot.slane %v10224_v18, 2  ;;  %v14341_v18 = vld [vmem:[#allocation242_spill] sm:$0xff] }
 0x298   : > { %v6275_v52 = vunpack.i.h.bf16 %v6273_v34  ;;  %v6274_v49 = vunpack.i.l.bf16 %v6273_v34  ;;  %v6268_v27 = vpop.permute.xlu0 %6267  ;;  %v10675_v7 = vsel %vm790_vm2, %v1272_v56, %v1273_v62 }
 0x299   : > { %v6270_v24 = vunpack.i.h.bf16 %v6268_v27  ;;  %v6269_v6 = vunpack.i.l.bf16 %v6268_v27  ;;  %6562 = vrot.lane.b32.xlu1 %v14337_v59, %s7315_s12  ;;  %v1267_v27 = vrot.slane %v10237_v61, 2  ;;  %v10669_v61 = vpack.i.bf16 %v10627_v16, %v10624_v54  ;;  %14344 = vst [vmem:[#allocation46_spill] sm:$0xff] %v10675_v7 }
 0x29a   : > { %v10641_v51 = vsel %vm13539_vm1, %v10491_v31, %v6274_v49  ;;  %v10645_v48 = vsel %vm13539_vm1, %v10495_v29, %v6275_v52  ;;  %6557 = vrot.lane.b32.xlu0 %v14338_v10, %s7315_s12  ;;  %v1269_v29 = vrot.slane %v10239_v57, 2  ;;  %v10678_v57 = vsel %vm790_vm2, %v1275_v17, %v1276_v53 }
 0x29b   : > { %v10653_v11 = vsel %vm13539_vm1, %v10503_v22, %v6269_v6  ;;  %v10657_v13 = vsel %vm13539_vm1, %v10507_v0, %v6270_v24  ;;  %v10659_v31 = vpop.permute.xlu1 %6282  ;;  %14342 = vst [vmem:[#allocation44_spill] sm:$0xff] %v10669_v61  ;;  %v14343_v22 = vld [vmem:[#allocation243_spill] sm:$0xff]  ;;  %v6576_v0 = vpack.i.bf16 %v10632_v15, %v1256_v50  ;;  %14345 = vst [vmem:[#allocation63_spill] sm:$0xff] %v10678_v57  ;;  %vm3225_vm1 = vcmask 490496  }
 0x29c   : > { %14339 = vst [vmem:[#allocation223_spill] sm:$0xff] %v10659_v31  ;;  %v10663_v9 = vpop.permute.xlu0 %6277  ;;  %v10683_v24 = vsel %vm790_vm2, %v1266_v46, %v1267_v27  ;;  %v10686_v6 = vsel %vm790_vm2, %v1269_v29, %v1270_v42  ;;  %v10694_v50 = vpack.i.bf16 %v10678_v57, %v10675_v7 }
 0x29d   : > { %14340 = vst [vmem:[#allocation224_spill] sm:$0xff] %v10663_v9  ;;  %6572 = vrot.lane.b32.xlu1 %v14341_v18, %s7315_s12  ;;  %14347 = vst [vmem:[#allocation74_spill] sm:$0xff] %v10683_v24  ;;  %v10699_v56 = vpack.i.bf16 %v10686_v6, %v10683_v24  ;;  %v14393_v9 = vld [vmem:[#allocation131_spill] sm:$0xff] }
 0x29e   : > { %6567 = vrot.lane.b32.xlu0 %v14343_v22, %s7315_s12  ;;  %14348 = vst [vmem:[#allocation234_spill] sm:$0xff] %v10686_v6  ;;  %14350 = vst [vmem:[#allocation242_spill] sm:$0xff] %v10694_v50  ;;  %v5165_v31 = vunpack.i.h.bf16 %v14393_v9  ;;  %v14415_v24 = vld [vmem:[#allocation107_spill] sm:$0xff] }
 0x29f   : > { %v10680_v20 = vpop.permute.xlu1 %6292  ;;  %14351 = vst [vmem:[#allocation243_spill] sm:$0xff] %v10699_v56 }
 0x2a0   : > { %14346 = vst [vmem:[#allocation68_spill] sm:$0xff] %v10680_v20  ;;  %v10688_v34 = vpop.permute.xlu0 %6287  ;;  %v14391_v20 = vld [vmem:[#allocation32_spill] sm:$0xff] }
 0x2a1   : > { %14349 = vst [vmem:[#allocation235_spill] sm:$0xff] %v10688_v34  ;;  %6582 = vrot.lane.b32.xlu1 %v10669_v61, %s7315_s12 }
 0x2a2   : > { %6577 = vrot.lane.b32.xlu0 %v6576_v0, %s7315_s12 }
 0x2a3   : > { %v6303_v52 = vpop.permute.xlu1 %6302 }
 0x2a4   : > { %v6305_v49 = vunpack.i.h.bf16 %v6303_v52  ;;  %v6304_v62 = vunpack.i.l.bf16 %v6303_v52  ;;  %v10701_v17 = vpop.permute.xlu0 %6297 }
 0x2a5   : > { %14352 = vst [vmem:[#allocation280_spill] sm:$0xff] %v10701_v17  ;;  %6592 = vrot.lane.b32.xlu1 %v10694_v50, %s7315_s12  ;;  %v14355_v17 = vld [vmem:[#allocation62_spill] sm:$0xff] }
 0x2a6   : > { %6587 = vrot.lane.b32.xlu0 %v10699_v56, %s7315_s12  ;;  %v10709_v53 = vsel %vm3225_vm1, %v10557_v55, %v6304_v62  ;;  %v10713_v10 = vsel %vm3225_vm1, %v10561_v1, %v6305_v49  ;;  %v14403_v56 = vld [vmem:[#allocation18_spill] sm:$0xff] }
 0x2a7   : > { %14353 = vst [vmem:[#allocation281_spill] sm:$0xff] %v10709_v53  ;;  %14354 = vst [vmem:[#allocation282_spill] sm:$0xff] %v10713_v10  ;;  %v6313_v46 = vpop.permute.xlu1 %6312 }
 0x2a8   : > { %v6315_v27 = vunpack.i.h.bf16 %v6313_v46  ;;  %v6314_v29 = vunpack.i.l.bf16 %v6313_v46  ;;  %v6308_v42 = vpop.permute.xlu0 %6307 }
 0x2a9   : > { %v6310_v0 = vunpack.i.h.bf16 %v6308_v42  ;;  %v6309_v52 = vunpack.i.l.bf16 %v6308_v42  ;;  %6602 = vrot.lane.b32.xlu1 %v14284_v12, %s7316_s13 }
 0x2aa   : > { %6597 = vrot.lane.b32.xlu0 %v14355_v17, %s7316_s13  ;;  %v10721_v55 = vsel %vm3225_vm1, %v10569_v45, %v6314_v29  ;;  %v10725_v1 = vsel %vm3225_vm1, %v10573_v8, %v6315_v27 }
 0x2ab   : > { %14356 = vst [vmem:[#allocation62_spill] sm:$0xff] %v10721_v55  ;;  %14357 = vst [vmem:[#allocation283_spill] sm:$0xff] %v10725_v1  ;;  %v10727_v49 = vpop.permute.xlu1 %6322  ;;  %v10731_v62 = vsel %vm3225_vm1, %v10579_v2, %v6309_v52  ;;  %v10735_v46 = vsel %vm3225_vm1, %v10583_v47, %v6310_v0  ;;  %v14364_v2 = vld [vmem:[#allocation103_spill] sm:$0xff] }
 0x2ac   : > { %14358 = vst [vmem:[#allocation284_spill] sm:$0xff] %v10727_v49  ;;  %14359 = vst [vmem:[#allocation285_spill] sm:$0xff] %v10731_v62  ;;  %v10737_v42 = vpop.permute.xlu0 %6317 }
 0x2ad   : > { %14360 = vst [vmem:[#allocation286_spill] sm:$0xff] %v10735_v46  ;;  %14361 = vst [vmem:[#allocation287_spill] sm:$0xff] %v10737_v42  ;;  %6612 = vrot.lane.b32.xlu1 %v14287_v36, %s7316_s13  ;;  %v5159_v42 = vunpack.i.l.bf16 %v14391_v20 }
 0x2ae   : > { %6607 = vrot.lane.b32.xlu0 %v14282_v23, %s7316_s13 }
 0x2af   : > { %v10743_v45 = vpop.permute.xlu1 %6332 }
 0x2b0   : > { %14362 = vst [vmem:[#allocation288_spill] sm:$0xff] %v10743_v45  ;;  %v10745_v8 = vpop.permute.xlu0 %6327 }
 0x2b1   : > { %14363 = vst [vmem:[#allocation289_spill] sm:$0xff] %v10745_v8  ;;  %6622 = vrot.lane.b32.xlu1 %v14289_v58, %s7316_s13  ;;  %v5160_v8 = vunpack.i.h.bf16 %v14391_v20  ;;  %v14397_v20 = vld [vmem:[#allocation16_spill] sm:$0xff] }
 0x2b2   : > { %6617 = vrot.lane.b32.xlu0 %v14364_v2, %s7316_s13 }
 0x2b3   : > { %v6343_v47 = vpop.permute.xlu1 %6342 }
 0x2b4   : > { %v6345_v17 = vunpack.i.h.bf16 %v6343_v47  ;;  %v6344_v27 = vunpack.i.l.bf16 %v6343_v47  ;;  %v10751_v29 = vpop.permute.xlu0 %6337 }
 0x2b5   : > { %14365 = vst [vmem:[#allocation103_spill] sm:$0xff] %v10751_v29  ;;  %6632 = vrot.lane.b32.xlu1 %v14293_v3, %s7316_s13  ;;  %v5164_v3 = vunpack.i.l.bf16 %v14393_v9 }
 0x2b6   : > { %v10757_v0 = vsel %vm3225_vm1, %v10615_v21, %v6344_v27  ;;  %v10761_v52 = vsel %vm3225_vm1, %v10619_v60, %v6345_v17  ;;  %6627 = vrot.lane.b32.xlu0 %v14288_v40, %s7316_s13  ;;  %v14370_v17 = vld [vmem:[#allocation252_spill] sm:$0xff] }
 0x2b7   : > { %14366 = vst [vmem:[#allocation290_spill] sm:$0xff] %v10757_v0  ;;  %14367 = vst [vmem:[#allocation291_spill] sm:$0xff] %v10761_v52  ;;  %v6353_v2 = vpop.permute.xlu1 %6352 }
 0x2b8   : > { %v6355_v1 = vunpack.i.h.bf16 %v6353_v2  ;;  %v6354_v55 = vunpack.i.l.bf16 %v6353_v2  ;;  %v6348_v47 = vpop.permute.xlu0 %6347 }
 0x2b9   : > { %v6350_v46 = vunpack.i.h.bf16 %v6348_v47  ;;  %v6349_v62 = vunpack.i.l.bf16 %v6348_v47  ;;  %6642 = vrot.lane.b32.xlu1 %v14297_v39, %s7316_s13 }
 0x2ba   : > { %v10769_v21 = vsel %vm3225_vm1, %v10641_v51, %v6354_v55  ;;  %v10773_v60 = vsel %vm3225_vm1, %v10645_v48, %v6355_v1  ;;  %6637 = vrot.lane.b32.xlu0 %v14370_v17, %s7316_s13  ;;  %v14375_v51 = vld [vmem:[#allocation181_spill] sm:$0xff]  ;;  %v14376_v48 = vld [vmem:[#allocation190_spill] sm:$0xff]  ;;  %v14379_v1 = vld [vmem:[#allocation132_spill] sm:$0xff] }
 0x2bb   : > { %14368 = vst [vmem:[#allocation292_spill] sm:$0xff] %v10769_v21  ;;  %14369 = vst [vmem:[#allocation293_spill] sm:$0xff] %v10773_v60  ;;  %v10779_v27 = vsel %vm3225_vm1, %v10653_v11, %v6349_v62  ;;  %v10783_v2 = vsel %vm3225_vm1, %v10657_v13, %v6350_v46  ;;  %v10785_v47 = vpop.permute.xlu1 %6362  ;;  %v10793_v55 = vpack.i.bf16 %v14376_v48, %v14375_v51  ;;  %v14378_v11 = vld [vmem:[#allocation192_spill] sm:$0xff]  ;;  %v14382_v46 = vld [vmem:[#allocation195_spill] sm:$0xff] }
 0x2bc   : > { %14371 = vst [vmem:[#allocation252_spill] sm:$0xff] %v10779_v27  ;;  %14372 = vst [vmem:[#allocation294_spill] sm:$0xff] %v10783_v2  ;;  %v10787_v10 = vpop.permute.xlu0 %6357  ;;  %v6656_v62 = vpack.i.bf16 %v14379_v1, %v14378_v11  ;;  %v14383_v21 = vld [vmem:[#allocation196_spill] sm:$0xff]  ;;  %v14385_v2 = vld [vmem:[#allocation201_spill] sm:$0xff] }
 0x2bd   : > { %14373 = vst [vmem:[#allocation295_spill] sm:$0xff] %v10785_v47  ;;  %14374 = vst [vmem:[#allocation296_spill] sm:$0xff] %v10787_v10  ;;  %6652 = vrot.lane.b32.xlu1 %v14299_v37, %s7316_s13  ;;  %v10807_v60 = vpack.i.bf16 %v14383_v21, %v14382_v46  ;;  %v14386_v27 = vld [vmem:[#allocation203_spill] sm:$0xff]  ;;  %v14389_v11 = vld [vmem:[#allocation13_spill] sm:$0xff] }
 0x2be   : > { %14377 = vst [vmem:[#allocation181_spill] sm:$0xff] %v10793_v55  ;;  %6647 = vrot.lane.b32.xlu0 %v14296_v33, %s7316_s13  ;;  %v10812_v53 = vpack.i.bf16 %v14386_v27, %v14385_v2  ;;  %v5170_v52 = vunpack.i.h.bf16 %v14389_v11  ;;  %v5169_v45 = vunpack.i.l.bf16 %v14389_v11  ;;  %v14398_v21 = vld [vmem:[#allocation17_spill] sm:$0xff]  ;;  %v14406_v46 = vld [vmem:[#allocation56_spill] sm:$0xff]  ;;  %v14414_v48 = vld [vmem:[#allocation135_spill] sm:$0xff] }
 0x2bf   : > { %v10799_v17 = vpop.permute.xlu1 %6372  ;;  %14384 = vst [vmem:[#allocation297_spill] sm:$0xff] %v10807_v60  ;;  %v2765_v57 = vsel %vm258_vm0, %v14398_v21, %v5160_v8  ;;  %v14405_v8 = vld [vmem:[#allocation71_spill] sm:$0xff]  ;;  %v5205_v27 = vunpack.i.h.bf16 %v14406_v46  ;;  %v14424_v10 = vld [vmem:[#allocation113_spill] sm:$0xff] }
 0x2c0   : > { %14380 = vst [vmem:[#allocation192_spill] sm:$0xff] %v10799_v17  ;;  %v10801_v13 = vpop.permute.xlu0 %6367  ;;  %14387 = vst [vmem:[#allocation298_spill] sm:$0xff] %v10812_v53  ;;  %v10840_v50 = vsel %vm258_vm0, %v14397_v20, %v5169_v45  ;;  %v14404_v45 = vld [vmem:[#allocation106_spill] sm:$0xff]  ;;  %v2767_v21 = vsel %vm258_vm0, %v14405_v8, %v5165_v31  ;;  %v14413_v8 = vld [vmem:[#allocation85_spill] sm:$0xff] }
 0x2c1   : > { %14381 = vst [vmem:[#allocation132_spill] sm:$0xff] %v10801_v13  ;;  %6662 = vrot.lane.b32.xlu1 %v10793_v55, %s7316_s13  ;;  %v14420_v55 = vld [vmem:[#allocation102_spill] sm:$0xff] }
 0x2c2   : > { %6657 = vrot.lane.b32.xlu0 %v6656_v62, %s7316_s13  ;;  %v14392_v62 = vld [vmem:[#allocation129_spill] sm:$0xff] }
 0x2c3   : > { %v10814_v0 = vpop.permute.xlu1 %6382  ;;  %v5175_v49 = vunpack.i.h.bf16 %v14392_v62  ;;  %v5174_v34 = vunpack.i.l.bf16 %v14392_v62  ;;  %v14399_v62 = vld [vmem:[#allocation137_spill] sm:$0xff] }
 0x2c4   : > { %14388 = vst [vmem:[#allocation299_spill] sm:$0xff] %v10814_v0  ;;  %v10817_v29 = vpop.permute.xlu0 %6377  ;;  %v5179_v40 = vunpack.i.l.bf16 %v14399_v62 }
 0x2c5   : > { %14390 = vst [vmem:[#allocation13_spill] sm:$0xff] %v10817_v29  ;;  %6672 = vrot.lane.b32.xlu1 %v10807_v60, %s7316_s13  ;;  %v14395_v29 = vld [vmem:[#allocation29_spill] sm:$0xff]  ;;  %v2770_v20 = vsel %vm258_vm0, %v14404_v45, %v5174_v34 }
 0x2c6   : > { %6667 = vrot.lane.b32.xlu0 %v10812_v53, %s7316_s13  ;;  %v10833_v11 = vsel %vm258_vm0, %v14395_v29, %v5170_v52  ;;  %v14400_v53 = vld [vmem:[#allocation264_spill] sm:$0xff]  ;;  %v14402_v52 = vld [vmem:[#allocation105_spill] sm:$0xff]  ;;  %s4984_s13 = sshll.u32 %s7653_s30, 3 }
 0x2c7   : > { %v10829_v0 = vpop.permute.xlu1 %6392  ;;  %v2771_v9 = vsel %vm258_vm0, %v14402_v52, %v5175_v49  ;;  %v14412_v34 = vld [vmem:[#allocation121_spill] sm:$0xff]  ;;  %s252_s30 = scalar_lea.vmem %s12989_s3, %s4984_s13  ;;  %s256_s26 = scalar_lea.vmem %s12990_s4, %s4984_s13 }
 0x2c8   : > { %14394 = vst [vmem:[#allocation32_spill] sm:$0xff] %v10829_v0  ;;  %v10836_v60 = vpop.permute.xlu0 %6387  ;;  %v14401_v0 = vld [vmem:[#allocation19_spill] sm:$0xff]  ;;  %v2772_v31 = vsel %vm258_vm0, %v14412_v34, %v5179_v40  ;;  %v14419_v34 = vld [vmem:[#allocation112_spill] sm:$0xff]  ;;  %s12944_s13 = scalar_lea.hbm %s12991_s5, %s4993_s8 }
 0x2c9   : > { %14396 = vst [vmem:[#allocation129_spill] sm:$0xff] %v10836_v60  ;;  %6682 = vrot.lane.b32.xlu1 %v14400_v53, %s7317_s14  ;;  %v2764_v29 = vsel %vm258_vm0, %v14401_v0, %v5159_v42  ;;  %v5180_v60 = vunpack.i.h.bf16 %v14399_v62  ;;  %v5204_v53 = vunpack.i.l.bf16 %v14406_v46  ;;  %v14408_v42 = vld [vmem:[#allocation11_spill] sm:$0xff]  ;;  %v14409_v0 = vld [vmem:[#allocation84_spill] sm:$0xff]  ;;  %v5210_v46 = vunpack.i.h.bf16 %v14413_v8 }
 0x2ca   : > { %6677 = vrot.lane.b32.xlu0 %v14403_v56, %s7317_s14  ;;  %v2766_v49 = vsel %vm258_vm0, %v14408_v42, %v5164_v3  ;;  %v5200_v62 = vunpack.i.h.bf16 %v14409_v0  ;;  %v5199_v52 = vunpack.i.l.bf16 %v14409_v0  ;;  %v14410_v56 = vld [vmem:[#allocation83_spill] sm:$0xff]  ;;  %v5209_v42 = vunpack.i.l.bf16 %v14413_v8 }
 0x2cb   : > { %v10860_v7 = vpop.permute.xlu1 %6402  ;;  %v5215_v6 = vunpack.i.h.bf16 %v14410_v56  ;;  %v5214_v45 = vunpack.i.l.bf16 %v14410_v56  ;;  %v2773_v3 = vsel %vm258_vm0, %v14415_v24, %v5180_v60  ;;  %v14416_v0 = vld [vmem:[#allocation91_spill] sm:$0xff]  ;;  %v2782_v56 = vsel %vm258_vm0, %v14419_v34, %v5204_v53  ;;  %v14427_v34 = vld [vmem:[#allocation50_spill] sm:$0xff] }
 0x2cc   : > { %14407 = vst [vmem:[#allocation131_spill] sm:$0xff] %v10860_v7  ;;  %v10867_v2 = vpop.permute.xlu0 %6397  ;;  %v5220_v16 = vunpack.i.h.bf16 %v14416_v0  ;;  %v14417_v7 = vld [vmem:[#allocation45_spill] sm:$0xff]  ;;  %v5219_v58 = vunpack.i.l.bf16 %v14416_v0  ;;  %v14422_v24 = vld [vmem:[#allocation111_spill] sm:$0xff]  ;;  %v2785_v47 = vsel %vm258_vm0, %v14427_v34, %v5210_v46  ;;  %v14434_v34 = vld [vmem:[#allocation52_spill] sm:$0xff] }
 0x2cd   : > { %14411 = vst [vmem:[#allocation29_spill] sm:$0xff] %v10867_v2  ;;  %6692 = vrot.lane.b32.xlu1 %v14414_v48, %s7318_s15  ;;  %v14418_v2 = vld [vmem:[#allocation110_spill] sm:$0xff]  ;;  %v5245_v48 = vunpack.i.h.bf16 %v14420_v55  ;;  %v2781_v60 = vsel %vm258_vm0, %v14422_v24, %v5200_v62  ;;  %v14423_v8 = vld [vmem:[#allocation207_spill] sm:$0xff]  ;;  %v14429_v62 = vld [vmem:[#allocation117_spill] sm:$0xff] }
 0x2ce   : > { %6687 = vrot.lane.b32.xlu0 %v14417_v7, %s7318_s15  ;;  %v2783_v40 = vsel %vm258_vm0, %v14418_v2, %v5205_v27  ;;  %v2780_v17 = vsel %vm258_vm0, %v14423_v8, %v5199_v52  ;;  %v2787_v7 = vsel %vm258_vm0, %v14424_v10, %v5215_v6  ;;  %v5244_v27 = vunpack.i.l.bf16 %v14420_v55  ;;  %v14426_v53 = vld [vmem:[#allocation55_spill] sm:$0xff]  ;;  %v14430_v24 = vld [vmem:[#allocation116_spill] sm:$0xff]  ;;  %v14432_v55 = vld [vmem:[#allocation93_spill] sm:$0xff] }
 0x2cf   : > { %v10887_v13 = vpop.permute.xlu1 %6412  ;;  %v2786_v0 = vsel %vm258_vm0, %v14426_v53, %v5214_v45  ;;  %v2784_v52 = vsel %vm258_vm0, %v14430_v24, %v5209_v42  ;;  %v14431_v8 = vld [vmem:[#allocation40_spill] sm:$0xff]  ;;  %v2800_v46 = vsel %vm2796_vm5, %v2767_v21, %v5245_v48  ;;  %v14439_v48 = vld [vmem:[#allocation151_spill] sm:$0xff] }
 0x2d0   : > { %14421 = vst [vmem:[#allocation16_spill] sm:$0xff] %v10887_v13  ;;  %v10896_v2 = vpop.permute.xlu0 %6407  ;;  %v14428_v13 = vld [vmem:[#allocation100_spill] sm:$0xff]  ;;  %v2789_v6 = vsel %vm258_vm0, %v14431_v8, %v5220_v16  ;;  %v2799_v42 = vsel %vm2796_vm5, %v2766_v49, %v5244_v27  ;;  %v5285_v49 = vunpack.i.h.bf16 %v14439_v48 }
 0x2d1   : > { %14425 = vst [vmem:[#allocation17_spill] sm:$0xff] %v10896_v2  ;;  %v5240_v26 = vunpack.i.h.bf16 %v14428_v13  ;;  %6702 = vrot.lane.b32.xlu1 %v14429_v62, %s7319_s16  ;;  %v5239_v10 = vunpack.i.l.bf16 %v14428_v13  ;;  %v14433_v45 = vld [vmem:[#allocation212_spill] sm:$0xff]  ;;  %v5255_v2 = vunpack.i.h.bf16 %v14434_v34  ;;  %v5254_v62 = vunpack.i.l.bf16 %v14434_v34 }
 0x2d2   : > { %6697 = vrot.lane.b32.xlu0 %v14432_v55, %s7319_s16  ;;  %v2788_v53 = vsel %vm258_vm0, %v14433_v45, %v5219_v58  ;;  %v14436_v24 = vld [vmem:[#allocation144_spill] sm:$0xff]  ;;  %v5284_v45 = vunpack.i.l.bf16 %v14439_v48 }
 0x2d3   : > { %v10917_v61 = vpop.permute.xlu1 %6422  ;;  %v5250_v16 = vunpack.i.h.bf16 %v14436_v24  ;;  %v5249_v13 = vunpack.i.l.bf16 %v14436_v24  ;;  %v14437_v8 = vld [vmem:[#allocation148_spill] sm:$0xff]  ;;  %v2798_v58 = vsel %vm2796_vm5, %v2765_v57, %v5240_v26  ;;  %v2797_v34 = vsel %vm2796_vm5, %v2764_v29, %v5239_v10 }
 0x2d4   : > { %14435 = vst [vmem:[#allocation137_spill] sm:$0xff] %v10917_v61  ;;  %v5259_v14 = vunpack.i.l.bf16 %v14437_v8  ;;  %v10923_v55 = vpop.permute.xlu0 %6417  ;;  %v5260_v21 = vunpack.i.h.bf16 %v14437_v8  ;;  %v14440_v27 = vld [vmem:[#allocation152_spill] sm:$0xff]  ;;  %v2804_v24 = vsel %vm2796_vm5, %v2771_v9, %v5255_v2  ;;  %v2803_v26 = vsel %vm2796_vm5, %v2770_v20, %v5254_v62  ;;  %v14441_v8 = vld [vmem:[#allocation155_spill] sm:$0xff] }
 0x2d5   : > { %14438 = vst [vmem:[#allocation264_spill] sm:$0xff] %v10923_v55  ;;  %6712 = vrot.lane.b32.xlu1 %v14257_v4, %s7320_s17  ;;  %v5279_v61 = vunpack.i.l.bf16 %v14440_v27  ;;  %v5280_v57 = vunpack.i.h.bf16 %v14440_v27  ;;  %v5294_v55 = vunpack.i.l.bf16 %v14441_v8  ;;  %v2802_v4 = vsel %vm2796_vm5, %v10833_v11, %v5250_v16  ;;  %v14444_v2 = vld [vmem:[#allocation156_spill] sm:$0xff] }
 0x2d6   : > { %6707 = vrot.lane.b32.xlu0 %v14237_v38, %s7320_s17  ;;  %v2801_v29 = vsel %vm2796_vm5, %v10840_v50, %v5249_v13  ;;  %v2805_v10 = vsel %vm2796_vm5, %v2772_v31, %v5259_v14  ;;  %v5295_v38 = vunpack.i.h.bf16 %v14441_v8  ;;  %v2806_v9 = vsel %vm2796_vm5, %v2773_v3, %v5260_v21  ;;  %v14445_v3 = vld [vmem:[#allocation160_spill] sm:$0xff] }
 0x2d7   : > { %v10939_v32 = vpop.permute.xlu1 %6432  ;;  %v2815_v20 = vsel %vm2796_vm5, %v2782_v56, %v5284_v45  ;;  %v5289_v62 = vunpack.i.l.bf16 %v14444_v2  ;;  %v2816_v11 = vsel %vm2796_vm5, %v2783_v40, %v5285_v49  ;;  %v2813_v16 = vsel %vm2796_vm5, %v2780_v17, %v5279_v61  ;;  %v14446_v40 = vld [vmem:[#allocation167_spill] sm:$0xff]  ;;  %v14447_v17 = vld [vmem:[#allocation168_spill] sm:$0xff] }
 0x2d8   : > { %14442 = vst [vmem:[#allocation19_spill] sm:$0xff] %v10939_v32  ;;  %v10947_v48 = vpop.permute.xlu0 %6427  ;;  %v5290_v50 = vunpack.i.h.bf16 %v14444_v2  ;;  %v2814_v14 = vsel %vm2796_vm5, %v2781_v60, %v5280_v57  ;;  %v2819_v31 = vsel %vm2796_vm5, %v2786_v0, %v5294_v55  ;;  %v5300_v56 = vunpack.i.h.bf16 %v14445_v3  ;;  %v14448_v0 = vld [vmem:[#allocation171_spill] sm:$0xff]  ;;  %v14449_v8 = vld [vmem:[#allocation172_spill] sm:$0xff] }
 0x2d9   : > { %14443 = vst [vmem:[#allocation105_spill] sm:$0xff] %v10947_v48  ;;  %6722 = vrot.lane.b32.xlu1 %v14337_v59, %s7321_s23  ;;  %v5299_v13 = vunpack.i.l.bf16 %v14445_v3  ;;  %v2820_v59 = vsel %vm2796_vm5, %v2787_v7, %v5295_v38  ;;  %v5325_v45 = vunpack.i.h.bf16 %v14446_v40  ;;  %v5324_v61 = vunpack.i.l.bf16 %v14446_v40  ;;  %v14450_v3 = vld [vmem:[#allocation176_spill] sm:$0xff] }
 0x2da   : > { %6717 = vrot.lane.b32.xlu0 %v14323_v43, %s7321_s23  ;;  %v5319_v49 = vunpack.i.l.bf16 %v14447_v17  ;;  %v2817_v43 = vsel %vm2796_vm5, %v2784_v52, %v5289_v62  ;;  %v5320_v60 = vunpack.i.h.bf16 %v14447_v17  ;;  %v5334_v55 = vunpack.i.l.bf16 %v14448_v0 }
 0x2db   : > { %v10963_v21 = vpop.permute.xlu1 %6442  ;;  %v2818_v57 = vsel %vm2796_vm5, %v2785_v47, %v5290_v50  ;;  %v5335_v7 = vunpack.i.h.bf16 %v14448_v0  ;;  %v5329_v38 = vunpack.i.l.bf16 %v14449_v8  ;;  %v2821_v2 = vsel %vm2796_vm5, %v2788_v53, %v5299_v13  ;;  %v14451_v53 = vld [vmem:[#allocation14_spill] sm:$0xff]  ;;  %v14452_v13 = vld [vmem:[#allocation263_spill] sm:$0xff] }
 0x2dc   : > { %v10969_v27 = vpop.permute.xlu0 %6437  ;;  %v2822_v52 = vsel %vm2796_vm5, %v2789_v6, %v5300_v56  ;;  %v5330_v62 = vunpack.i.h.bf16 %v14449_v8  ;;  %v5339_v40 = vunpack.i.l.bf16 %v14450_v3  ;;  %v2833_v47 = vsel %vm2829_vm6, %v2800_v46, %v5325_v45 }
 0x2dd   : > { %6732 = vrot.lane.b32.xlu1 %v14297_v39, %s7322_s25  ;;  %v2832_v39 = vsel %vm2829_vm6, %v2799_v42, %v5324_v61  ;;  %v2830_v50 = vsel %vm2829_vm6, %v2797_v34, %v5319_v49  ;;  %v5340_v0 = vunpack.i.h.bf16 %v14450_v3  ;;  %v2836_v6 = vsel %vm2829_vm6, %v2803_v26, %v5334_v55  ;;  %v14453_v34 = vld [vmem:[#allocation12_spill] sm:$0xff]  ;;  %v14454_v61 = vld [vmem:[#allocation27_spill] sm:$0xff] }
 0x2de   : > { %6727 = vrot.lane.b32.xlu0 %v14284_v12, %s7322_s25  ;;  %v2831_v12 = vsel %vm2829_vm6, %v2798_v58, %v5320_v60  ;;  %v5364_v56 = vunpack.i.l.bf16 %v14451_v53  ;;  %v2837_v8 = vsel %vm2829_vm6, %v2804_v24, %v5335_v7  ;;  %v2834_v42 = vsel %vm2829_vm6, %v2801_v29, %v5329_v38  ;;  %v14457_v24 = vld [vmem:[#allocation179_spill] sm:$0xff]  ;;  %v14458_v38 = vld [vmem:[#allocation180_spill] sm:$0xff] }
 0x2df   : > { %v10985_v17 = vpop.permute.xlu1 %6452  ;;  %v5365_v46 = vunpack.i.h.bf16 %v14451_v53  ;;  %v2835_v45 = vsel %vm2829_vm6, %v2802_v4, %v5330_v62  ;;  %v2838_v58 = vsel %vm2829_vm6, %v2805_v10, %v5339_v40  ;;  %v5360_v26 = vunpack.i.h.bf16 %v14454_v61  ;;  %v14460_v62 = vld [vmem:[#allocation31_spill] sm:$0xff] }
 0x2e0   : > { %v10991_v32 = vpop.permute.xlu0 %6447  ;;  %v5359_v49 = vunpack.i.l.bf16 %v14454_v61  ;;  %v11010_v55 = vsel %vm2829_vm6, %v2806_v9, %v5340_v0  ;;  %v5375_v29 = vunpack.i.h.bf16 %v14457_v24  ;;  %v5374_v7 = vunpack.i.l.bf16 %v14457_v24  ;;  %v14463_v24 = vld [vmem:[#allocation21_spill] sm:$0xff] }
 0x2e1   : > { %6742 = vrot.lane.b32.xlu1 %v14452_v13, %s7317_s14  ;;  %14456 = vst [vmem:[#allocation106_spill] sm:$0xff] %v11010_v55  ;;  %v5370_v3 = vunpack.i.h.bf16 %v14458_v38  ;;  %v2848_v4 = vsel %vm2829_vm6, %v2815_v20, %v5364_v56  ;;  %v5369_v10 = vunpack.i.l.bf16 %v14458_v38  ;;  %v5380_v40 = vunpack.i.h.bf16 %v14460_v62  ;;  %v14461_v13 = vld [vmem:[#allocation276_spill] sm:$0xff]  ;;  %v14464_v38 = vld [vmem:[#allocation185_spill] sm:$0xff] }
 0x2e2   : > { %6737 = vrot.lane.b32.xlu0 %v14453_v34, %s7317_s14  ;;  %v2849_v9 = vsel %vm2829_vm6, %v2816_v11, %v5365_v46  ;;  %v5379_v0 = vunpack.i.l.bf16 %v14460_v62  ;;  %v14462_v34 = vld [vmem:[#allocation184_spill] sm:$0xff]  ;;  %v2847_v55 = vsel %vm2829_vm6, %v2814_v14, %v5360_v26  ;;  %v2846_v20 = vsel %vm2829_vm6, %v2813_v16, %v5359_v49  ;;  %v14468_v26 = vld [vmem:[#allocation187_spill] sm:$0xff] }
 0x2e3   : > { %v11007_v60 = vpop.permute.xlu1 %6462  ;;  %v5404_v61 = vunpack.i.l.bf16 %v14462_v34  ;;  %v5405_v56 = vunpack.i.h.bf16 %v14462_v34  ;;  %v5400_v48 = vunpack.i.h.bf16 %v14464_v38  ;;  %v2853_v11 = vsel %vm2829_vm6, %v2820_v59, %v5375_v29  ;;  %v14469_v34 = vld [vmem:[#allocation115_spill] sm:$0xff]  ;;  %v14471_v29 = vld [vmem:[#allocation89_spill] sm:$0xff] }
 0x2e4   : > { %14455 = vst [vmem:[#allocation18_spill] sm:$0xff] %v11007_v60  ;;  %v11015_v53 = vpop.permute.xlu0 %6457  ;;  %v2851_v46 = vsel %vm2829_vm6, %v2818_v57, %v5370_v3  ;;  %v5399_v62 = vunpack.i.l.bf16 %v14464_v38  ;;  %v2850_v14 = vsel %vm2829_vm6, %v2817_v43, %v5369_v10  ;;  %v11041_v16 = vsel %vm2829_vm6, %v2822_v52, %v5380_v40 }
 0x2e5   : > { %14459 = vst [vmem:[#allocation71_spill] sm:$0xff] %v11015_v53  ;;  %6752 = vrot.lane.b32.xlu1 %v14461_v13, %s7318_s15  ;;  %v2852_v13 = vsel %vm2829_vm6, %v2819_v31, %v5374_v7  ;;  %14467 = vst [vmem:[#allocation84_spill] sm:$0xff] %v11041_v16  ;;  %v5414_v49 = vunpack.i.l.bf16 %v14468_v26  ;;  %v11047_v31 = vsel %vm2829_vm6, %v2821_v2, %v5379_v0  ;;  %v5415_v57 = vunpack.i.h.bf16 %v14468_v26  ;;  %v14472_v7 = vld [vmem:[#allocation188_spill] sm:$0xff]  ;;  %v14473_v0 = vld [vmem:[#allocation191_spill] sm:$0xff] }
 0x2e6   : > { %6747 = vrot.lane.b32.xlu0 %v14463_v24, %s7318_s15  ;;  %14470 = vst [vmem:[#allocation83_spill] sm:$0xff] %v11047_v31  ;;  %v2865_v59 = vsel %vm2862_vm7, %v2832_v39, %v5404_v61  ;;  %v2866_v43 = vsel %vm2862_vm7, %v2833_v47, %v5405_v56  ;;  %v2864_v52 = vsel %vm2862_vm7, %v2831_v12, %v5400_v48  ;;  %v5410_v3 = vunpack.i.h.bf16 %v14472_v7  ;;  %v14474_v39 = vld [vmem:[#allocation88_spill] sm:$0xff]  ;;  %v14475_v56 = vld [vmem:[#allocation86_spill] sm:$0xff] }
 0x2e7   : > { %v11031_v60 = vpop.permute.xlu1 %6472  ;;  %v5409_v10 = vunpack.i.l.bf16 %v14472_v7  ;;  %v2863_v2 = vsel %vm2862_vm7, %v2830_v50, %v5399_v62  ;;  %v5419_v24 = vunpack.i.l.bf16 %v14473_v0  ;;  %v5445_v61 = vunpack.i.h.bf16 %v14474_v39  ;;  %v14476_v50 = vld [vmem:[#allocation124_spill] sm:$0xff] }
 0x2e8   : > { %14465 = vst [vmem:[#allocation56_spill] sm:$0xff] %v11031_v60  ;;  %v11037_v53 = vpop.permute.xlu0 %6467  ;;  %v5444_v38 = vunpack.i.l.bf16 %v14474_v39  ;;  %v2869_v47 = vsel %vm2862_vm7, %v2836_v6, %v5414_v49  ;;  %v5440_v48 = vunpack.i.h.bf16 %v14475_v56  ;;  %v5439_v12 = vunpack.i.l.bf16 %v14475_v56  ;;  %v14477_v49 = vld [vmem:[#allocation87_spill] sm:$0xff] }
 0x2e9   : > { %14466 = vst [vmem:[#allocation11_spill] sm:$0xff] %v11037_v53  ;;  %6762 = vrot.lane.b32.xlu1 %v14469_v34, %s7319_s16  ;;  %v2870_v34 = vsel %vm2862_vm7, %v2837_v8, %v5415_v57  ;;  %v5455_v62 = vunpack.i.h.bf16 %v14476_v50  ;;  %v2868_v7 = vsel %vm2862_vm7, %v2835_v45, %v5410_v3  ;;  %v2867_v6 = vsel %vm2862_vm7, %v2834_v42, %v5409_v10  ;;  %v14479_v3 = vld [vmem:[#allocation197_spill] sm:$0xff] }
 0x2ea   : > { %6757 = vrot.lane.b32.xlu0 %v14471_v29, %s7319_s16  ;;  %v5454_v29 = vunpack.i.l.bf16 %v14476_v50  ;;  %v5450_v39 = vunpack.i.h.bf16 %v14477_v49  ;;  %v5449_v56 = vunpack.i.l.bf16 %v14477_v49  ;;  %v11083_v8 = vsel %vm2862_vm7, %v2838_v58, %v5419_v24 }
 0x2eb   : > { %v11057_v40 = vpop.permute.xlu1 %6482  ;;  %14478 = vst [vmem:[#allocation121_spill] sm:$0xff] %v11083_v8  ;;  %v2881_v57 = vsel %vm2862_vm7, %v2848_v4, %v5444_v38  ;;  %v2882_v50 = vsel %vm2862_vm7, %v2849_v9, %v5445_v61  ;;  %v2879_v45 = vsel %vm2862_vm7, %v2846_v20, %v5439_v12  ;;  %v2880_v42 = vsel %vm2862_vm7, %v2847_v55, %v5440_v48  ;;  %v14480_v20 = vld [vmem:[#allocation198_spill] sm:$0xff] }
 0x2ec   : > { %v11063_v26 = vpop.permute.xlu0 %6477  ;;  %v5484_v10 = vunpack.i.l.bf16 %v14479_v3  ;;  %v2885_v49 = vsel %vm2862_vm7, %v2852_v13, %v5454_v29  ;;  %v2886_v58 = vsel %vm2862_vm7, %v2853_v11, %v5455_v62  ;;  %v5485_v24 = vunpack.i.h.bf16 %v14479_v3  ;;  %v14483_v13 = vld [vmem:[#allocation199_spill] sm:$0xff]  ;;  %v14484_v62 = vld [vmem:[#allocation200_spill] sm:$0xff] }
 0x2ed   : > { %6772 = vrot.lane.b32.xlu1 %v14313_v25, %s7320_s17  ;;  %v2883_v4 = vsel %vm2862_vm7, %v2850_v14, %v5449_v56  ;;  %v2884_v9 = vsel %vm2862_vm7, %v2851_v46, %v5450_v39  ;;  %v5480_v55 = vunpack.i.h.bf16 %v14480_v20  ;;  %v5479_v61 = vunpack.i.l.bf16 %v14480_v20  ;;  %v14486_v56 = vld [vmem:[#allocation205_spill] sm:$0xff]  ;;  %v14487_v25 = vld [vmem:[#allocation206_spill] sm:$0xff] }
 0x2ee   : > { %6767 = vrot.lane.b32.xlu0 %v14236_v63, %s7320_s17  ;;  %v5495_v12 = vunpack.i.h.bf16 %v14483_v13  ;;  %v5494_v11 = vunpack.i.l.bf16 %v14483_v13  ;;  %v5489_v29 = vunpack.i.l.bf16 %v14484_v62  ;;  %v2898_v46 = vsel %vm2895_vm8, %v2865_v59, %v5484_v10 }
 0x2ef   : > { %v11079_v16 = vpop.permute.xlu1 %6492  ;;  %v5490_v14 = vunpack.i.h.bf16 %v14484_v62  ;;  %v2899_v39 = vsel %vm2895_vm8, %v2866_v43, %v5485_v24  ;;  %v5525_v20 = vunpack.i.h.bf16 %v14486_v56  ;;  %v5524_v48 = vunpack.i.l.bf16 %v14486_v56  ;;  %v14489_v56 = vld [vmem:[#allocation209_spill] sm:$0xff] }
 0x2f0   : > { %v11087_v63 = vpop.permute.xlu0 %6487  ;;  %v2896_v13 = vsel %vm2895_vm8, %v2863_v2, %v5479_v61  ;;  %v5520_v59 = vunpack.i.h.bf16 %v14487_v25  ;;  %v5519_v10 = vunpack.i.l.bf16 %v14487_v25  ;;  %v2903_v43 = vsel %vm2895_vm8, %v2870_v34, %v5495_v12  ;;  %v14492_v25 = vld [vmem:[#allocation268_spill] sm:$0xff] }
 0x2f1   : > { %6782 = vrot.lane.b32.xlu1 %v14343_v22, %s7321_s23  ;;  %v2900_v24 = vsel %vm2895_vm8, %v2867_v6, %v5489_v29  ;;  %v5534_v8 = vunpack.i.l.bf16 %v14489_v56  ;;  %v2914_v61 = vsel %vm2895_vm8, %v2881_v57, %v5524_v48  ;;  %v5535_v34 = vunpack.i.h.bf16 %v14489_v56  ;;  %v14493_v6 = vld [vmem:[#allocation119_spill] sm:$0xff]  ;;  %v14495_v57 = vld [vmem:[#allocation217_spill] sm:$0xff] }
 0x2f2   : > { %6777 = vrot.lane.b32.xlu0 %v14328_v30, %s7321_s23  ;;  %v2897_v30 = vsel %vm2895_vm8, %v2864_v52, %v5480_v55  ;;  %v2912_v12 = vsel %vm2895_vm8, %v2879_v45, %v5519_v10  ;;  %v5565_v48 = vunpack.i.h.bf16 %v14495_v57  ;;  %v14497_v10 = vld [vmem:[#allocation221_spill] sm:$0xff] }
 0x2f3   : > { %v11103_v38 = vpop.permute.xlu1 %6502 }
 0x2f4   : > { %14481 = vst [vmem:[#allocation85_spill] sm:$0xff] %v11103_v38  ;;  %v11109_v3 = vpop.permute.xlu0 %6497 }
 0x2f5   : > { %14485 = vst [vmem:[#allocation135_spill] sm:$0xff] %v11109_v3  ;;  %6792 = vrot.lane.b32.xlu1 %v14296_v33, %s7322_s25  ;;  %v2902_v33 = vsel %vm2895_vm8, %v2869_v47, %v5494_v11  ;;  %v2915_v47 = vsel %vm2895_vm8, %v2882_v50, %v5525_v20  ;;  %v14494_v11 = vld [vmem:[#allocation210_spill] sm:$0xff]  ;;  %v5564_v50 = vunpack.i.l.bf16 %v14495_v57  ;;  %v14500_v57 = vld [vmem:[#allocation133_spill] sm:$0xff] }
 0x2f6   : > { %6787 = vrot.lane.b32.xlu0 %v14282_v23, %s7322_s25  ;;  %v2901_v23 = vsel %vm2895_vm8, %v2868_v7, %v5490_v14  ;;  %v2913_v7 = vsel %vm2895_vm8, %v2880_v42, %v5520_v59  ;;  %v5530_v29 = vunpack.i.h.bf16 %v14494_v11  ;;  %v5529_v14 = vunpack.i.l.bf16 %v14494_v11  ;;  %v14496_v20 = vld [vmem:[#allocation218_spill] sm:$0xff] }
 0x2f7   : > { %v11125_v62 = vpop.permute.xlu1 %6512  ;;  %v5559_v56 = vunpack.i.l.bf16 %v14496_v20  ;;  %v5560_v45 = vunpack.i.h.bf16 %v14496_v20  ;;  %v5575_v42 = vunpack.i.h.bf16 %v14497_v10  ;;  %v5574_v59 = vunpack.i.l.bf16 %v14497_v10 }
 0x2f8   : > { %14488 = vst [vmem:[#allocation107_spill] sm:$0xff] %v11125_v62  ;;  %v11131_v31 = vpop.permute.xlu0 %6507  ;;  %v2919_v11 = vsel %vm2895_vm8, %v2886_v58, %v5535_v34  ;;  %v2916_v22 = vsel %vm2895_vm8, %v2883_v4, %v5529_v14  ;;  %v2917_v20 = vsel %vm2895_vm8, %v2884_v9, %v5530_v29  ;;  %v2932_v58 = vsel %vm2928_vm9, %v2899_v39, %v5565_v48  ;;  %v14503_v14 = vld [vmem:[#allocation120_spill] sm:$0xff]  ;;  %v14513_v48 = vld [vmem:[#allocation238_spill] sm:$0xff] }
 0x2f9   : > { %14490 = vst [vmem:[#allocation91_spill] sm:$0xff] %v11131_v31  ;;  %6802 = vrot.lane.b32.xlu1 %v14492_v25, %s7317_s14  ;;  %v2918_v25 = vsel %vm2895_vm8, %v2885_v49, %v5534_v8  ;;  %v14499_v8 = vld [vmem:[#allocation222_spill] sm:$0xff]  ;;  %v2929_v34 = vsel %vm2928_vm9, %v2896_v13, %v5559_v56  ;;  %v2930_v4 = vsel %vm2928_vm9, %v2897_v30, %v5560_v45  ;;  %v14504_v13 = vld [vmem:[#allocation47_spill] sm:$0xff] }
 0x2fa   : > { %6797 = vrot.lane.b32.xlu0 %v14493_v6, %s7317_s14  ;;  %v14498_v6 = vld [vmem:[#allocation279_spill] sm:$0xff]  ;;  %v5570_v49 = vunpack.i.h.bf16 %v14499_v8  ;;  %v5569_v2 = vunpack.i.l.bf16 %v14499_v8  ;;  %v14502_v8 = vld [vmem:[#allocation33_spill] sm:$0xff]  ;;  %v2935_v9 = vsel %vm2928_vm9, %v2902_v33, %v5574_v59  ;;  %v2936_v29 = vsel %vm2928_vm9, %v2903_v43, %v5575_v42  ;;  %v14506_v56 = vld [vmem:[#allocation226_spill] sm:$0xff] }
 0x2fb   : > { %v11147_v52 = vpop.permute.xlu1 %6522  ;;  %v5604_v31 = vunpack.i.l.bf16 %v14502_v8  ;;  %v5605_v39 = vunpack.i.h.bf16 %v14502_v8  ;;  %v5600_v30 = vunpack.i.h.bf16 %v14506_v56  ;;  %v5599_v33 = vunpack.i.l.bf16 %v14506_v56  ;;  %v14507_v45 = vld [vmem:[#allocation227_spill] sm:$0xff]  ;;  %v14512_v59 = vld [vmem:[#allocation233_spill] sm:$0xff] }
 0x2fc   : > { %v11153_v55 = vpop.permute.xlu0 %6517  ;;  %v5614_v43 = vunpack.i.l.bf16 %v14507_v45  ;;  %v5640_v10 = vunpack.i.h.bf16 %v14512_v59 }
 0x2fd   : > { %6812 = vrot.lane.b32.xlu1 %v14498_v6, %s7318_s15  ;;  %v2931_v6 = vsel %vm2928_vm9, %v2898_v46, %v5564_v50  ;;  %v2934_v46 = vsel %vm2928_vm9, %v2901_v23, %v5570_v49  ;;  %v5615_v23 = vunpack.i.h.bf16 %v14507_v45  ;;  %v2948_v62 = vsel %vm2928_vm9, %v2915_v47, %v5605_v39 }
 0x2fe   : > { %6807 = vrot.lane.b32.xlu0 %v14500_v57, %s7318_s15  ;;  %v2933_v57 = vsel %vm2928_vm9, %v2900_v24, %v5569_v2  ;;  %v2947_v24 = vsel %vm2928_vm9, %v2914_v61, %v5604_v31  ;;  %v14509_v2 = vld [vmem:[#allocation228_spill] sm:$0xff]  ;;  %v5639_v31 = vunpack.i.l.bf16 %v14512_v59  ;;  %v2945_v61 = vsel %vm2928_vm9, %v2912_v12, %v5599_v33  ;;  %v14515_v59 = vld [vmem:[#allocation241_spill] sm:$0xff] }
 0x2ff   : > { %v11169_v60 = vpop.permute.xlu1 %6532  ;;  %v5609_v49 = vunpack.i.l.bf16 %v14509_v2  ;;  %v2946_v45 = vsel %vm2928_vm9, %v2913_v7, %v5600_v30  ;;  %v5655_v39 = vunpack.i.h.bf16 %v14513_v48  ;;  %v14517_v30 = vld [vmem:[#allocation97_spill] sm:$0xff] }
 0x300   : > { %v11175_v53 = vpop.permute.xlu0 %6527  ;;  %v14518_v33 = vld [vmem:[#allocation245_spill] sm:$0xff] }
 0x301   : > { %6822 = vrot.lane.b32.xlu1 %v14503_v14, %s7319_s16  ;;  %v5610_v14 = vunpack.i.h.bf16 %v14509_v2  ;;  %v2951_v2 = vsel %vm2928_vm9, %v2918_v25, %v5614_v43  ;;  %v2949_v47 = vsel %vm2928_vm9, %v2916_v22, %v5609_v49  ;;  %v2962_v25 = vsel %vm2961_vm10, %v2929_v34, %v5639_v31 }
 0x302   : > { %6817 = vrot.lane.b32.xlu0 %v14504_v13, %s7319_s16  ;;  %v14511_v13 = vld [vmem:[#allocation232_spill] sm:$0xff]  ;;  %v5650_v22 = vunpack.i.h.bf16 %v14515_v59 }
 0x303   : > { %v11191_v42 = vpop.permute.xlu1 %6542  ;;  %v5645_v50 = vunpack.i.h.bf16 %v14511_v13  ;;  %v5644_v56 = vunpack.i.l.bf16 %v14511_v13  ;;  %v5654_v13 = vunpack.i.l.bf16 %v14513_v48 }
 0x304   : > { %14508 = vst [vmem:[#allocation45_spill] sm:$0xff] %v11191_v42  ;;  %v11197_v8 = vpop.permute.xlu0 %6537  ;;  %v5649_v42 = vunpack.i.l.bf16 %v14515_v59  ;;  %v14522_v59 = vld [vmem:[#allocation250_spill] sm:$0xff] }
 0x305   : > { %14510 = vst [vmem:[#allocation110_spill] sm:$0xff] %v11197_v8  ;;  %6832 = vrot.lane.b32.xlu1 %v14311_v28, %s7320_s17  ;;  %v2952_v28 = vsel %vm2928_vm9, %v2919_v11, %v5615_v23  ;;  %v2964_v12 = vsel %vm2961_vm10, %v2931_v6, %v5644_v56  ;;  %v2965_v7 = vsel %vm2961_vm10, %v2932_v58, %v5645_v50  ;;  %v5684_v6 = vunpack.i.l.bf16 %v14517_v30 }
 0x306   : > { %6827 = vrot.lane.b32.xlu0 %v14241_v41, %s7320_s17  ;;  %v2950_v41 = vsel %vm2928_vm9, %v2917_v20, %v5610_v14  ;;  %v2963_v11 = vsel %vm2961_vm10, %v2930_v4, %v5640_v10  ;;  %v2968_v48 = vsel %vm2961_vm10, %v2935_v9, %v5654_v13  ;;  %v5685_v20 = vunpack.i.h.bf16 %v14517_v30  ;;  %v14519_v4 = vld [vmem:[#allocation246_spill] sm:$0xff]  ;;  %v14520_v9 = vld [vmem:[#allocation247_spill] sm:$0xff] }
 0x307   : > { %v11213_v0 = vpop.permute.xlu1 %6552  ;;  %v5679_v58 = vunpack.i.l.bf16 %v14518_v33  ;;  %v2966_v34 = vsel %vm2961_vm10, %v2933_v57, %v5649_v42  ;;  %v5680_v10 = vunpack.i.h.bf16 %v14518_v33  ;;  %v5694_v43 = vunpack.i.l.bf16 %v14519_v4 }
 0x308   : > { %14514 = vst [vmem:[#allocation112_spill] sm:$0xff] %v11213_v0  ;;  %v11219_v38 = vpop.permute.xlu0 %6547  ;;  %v5690_v49 = vunpack.i.h.bf16 %v14520_v9  ;;  %v5689_v14 = vunpack.i.l.bf16 %v14520_v9  ;;  %v2967_v56 = vsel %vm2961_vm10, %v2934_v46, %v5650_v22  ;;  %v2980_v42 = vsel %vm2961_vm10, %v2947_v24, %v5684_v6  ;;  %v14526_v6 = vld [vmem:[#allocation118_spill] sm:$0xff]  ;;  %v14536_v0 = vld [vmem:[#allocation261_spill] sm:$0xff] }
 0x309   : > { %14516 = vst [vmem:[#allocation102_spill] sm:$0xff] %v11219_v38  ;;  %6842 = vrot.lane.b32.xlu1 %v14341_v18, %s7321_s23  ;;  %v2969_v18 = vsel %vm2961_vm10, %v2936_v29, %v5655_v39  ;;  %v14521_v29 = vld [vmem:[#allocation249_spill] sm:$0xff]  ;;  %v2981_v13 = vsel %vm2961_vm10, %v2948_v62, %v5685_v20  ;;  %v2978_v39 = vsel %vm2961_vm10, %v2945_v61, %v5679_v58  ;;  %v5719_v30 = vunpack.i.l.bf16 %v14522_v59  ;;  %v14525_v61 = vld [vmem:[#allocation267_spill] sm:$0xff] }
 0x30a   : > { %6837 = vrot.lane.b32.xlu0 %v14327_v19, %s7321_s23  ;;  %v5695_v19 = vunpack.i.h.bf16 %v14519_v4  ;;  %v5725_v31 = vunpack.i.h.bf16 %v14521_v29  ;;  %v5724_v57 = vunpack.i.l.bf16 %v14521_v29  ;;  %v2984_v46 = vsel %vm2961_vm10, %v2951_v2, %v5694_v43  ;;  %v14524_v4 = vld [vmem:[#allocation253_spill] sm:$0xff]  ;;  %v14528_v43 = vld [vmem:[#allocation114_spill] sm:$0xff] }
 0x30b   : > { %v11235_v50 = vpop.permute.xlu1 %6562  ;;  %v5720_v22 = vunpack.i.h.bf16 %v14522_v59  ;;  %v5734_v9 = vunpack.i.l.bf16 %v14524_v4  ;;  %v2982_v62 = vsel %vm2961_vm10, %v2949_v47, %v5689_v14  ;;  %v2983_v24 = vsel %vm2961_vm10, %v2950_v41, %v5690_v49  ;;  %v14530_v14 = vld [vmem:[#allocation39_spill] sm:$0xff]  ;;  %v14532_v59 = vld [vmem:[#allocation54_spill] sm:$0xff] }
 0x30c   : > { %v11241_v23 = vpop.permute.xlu0 %6557  ;;  %v2997_v20 = vsel %vm2994_vm11, %v2964_v12, %v5724_v57  ;;  %v5735_v2 = vunpack.i.h.bf16 %v14524_v4  ;;  %v2995_v58 = vsel %vm2994_vm11, %v2962_v25, %v5719_v30  ;;  %v5764_v41 = vunpack.i.l.bf16 %v14528_v43 }
 0x30d   : > { %6852 = vrot.lane.b32.xlu1 %v14299_v37, %s7322_s25  ;;  %v2979_v37 = vsel %vm2961_vm10, %v2946_v45, %v5680_v10  ;;  %v2998_v45 = vsel %vm2994_vm11, %v2965_v7, %v5725_v31  ;;  %v14527_v10 = vld [vmem:[#allocation254_spill] sm:$0xff]  ;;  %v2996_v49 = vsel %vm2994_vm11, %v2963_v11, %v5720_v22  ;;  %v3001_v12 = vsel %vm2994_vm11, %v2968_v48, %v5734_v9 }
 0x30e   : > { %6847 = vrot.lane.b32.xlu0 %v14287_v36, %s7322_s25  ;;  %v2985_v36 = vsel %vm2961_vm10, %v2952_v28, %v5695_v19  ;;  %v5730_v28 = vunpack.i.h.bf16 %v14527_v10  ;;  %v5729_v47 = vunpack.i.l.bf16 %v14527_v10  ;;  %v5765_v7 = vunpack.i.h.bf16 %v14528_v43  ;;  %v14534_v11 = vld [vmem:[#allocation58_spill] sm:$0xff] }
 0x30f   : > { %v11257_v33 = vpop.permute.xlu1 %6572  ;;  %v5759_v31 = vunpack.i.l.bf16 %v14530_v14  ;;  %v5760_v25 = vunpack.i.h.bf16 %v14530_v14  ;;  %v5775_v30 = vunpack.i.h.bf16 %v14532_v59  ;;  %v5774_v4 = vunpack.i.l.bf16 %v14532_v59  ;;  %v14535_v9 = vld [vmem:[#allocation130_spill] sm:$0xff] }
 0x310   : > { %14523 = vst [vmem:[#allocation111_spill] sm:$0xff] %v11257_v33  ;;  %v11263_v29 = vpop.permute.xlu0 %6567  ;;  %v5770_v22 = vunpack.i.h.bf16 %v14534_v11  ;;  %v5769_v48 = vunpack.i.l.bf16 %v14534_v11  ;;  %v2999_v10 = vsel %vm2994_vm11, %v2966_v34, %v5729_v47  ;;  %v3000_v43 = vsel %vm2994_vm11, %v2967_v56, %v5730_v28  ;;  %v7247_v11 = vld [vmem:[#allocation2 + $0x318] sm:$0xf]  ;;  %v14539_v28 = vld [vmem:[#allocation66_spill] sm:$0xff]  ;;  %v14552_v33 = vld [vmem:[#allocation23_spill] sm:$0xff] }
 0x311   : > { %6862 = vrot.lane.b32.xlu1 %v14525_v61, %s7317_s14  ;;  %v14533_v61 = vld [vmem:[#allocation278_spill] sm:$0xff]  ;;  %v3013_v14 = vsel %vm2994_vm11, %v2980_v42, %v5764_v41  ;;  %v5805_v59 = vunpack.i.h.bf16 %v14536_v0  ;;  %v3012_v34 = vsel %vm2994_vm11, %v2979_v37, %v5760_v25  ;;  %v3017_v56 = vsel %vm2994_vm11, %v2984_v46, %v5774_v4  ;;  %v14540_v41 = vld [vmem:[#allocation101_spill] sm:$0xff] }
 0x312   : > { %6857 = vrot.lane.b32.xlu0 %v14526_v6, %s7317_s14  ;;  %v3002_v6 = vsel %vm2994_vm11, %v2969_v18, %v5735_v2  ;;  %v3011_v18 = vsel %vm2994_vm11, %v2978_v39, %v5759_v31  ;;  %v7246_v2 = vld [vmem:[#allocation2 + $0x310] sm:$0xff]  ;;  %v3018_v42 = vsel %vm2994_vm11, %v2985_v36, %v5775_v30  ;;  %v3015_v47 = vsel %vm2994_vm11, %v2982_v62, %v5769_v48  ;;  %v14541_v31 = vld [vmem:[#allocation262_spill] sm:$0xff]  ;;  %v14542_v25 = vld [vmem:[#allocation265_spill] sm:$0xff] }
 0x313   : > { %v11279_v19 = vpop.permute.xlu1 %6582  ;;  %v5804_v39 = vunpack.i.l.bf16 %v14536_v0  ;;  %v5800_v37 = vunpack.i.h.bf16 %v14541_v31  ;;  %v5799_v46 = vunpack.i.l.bf16 %v14541_v31  ;;  %v5815_v36 = vunpack.i.h.bf16 %v14542_v25  ;;  %v14543_v62 = vld [vmem:[#allocation266_spill] sm:$0xff] }
 0x314   : > { %14529 = vst [vmem:[#allocation207_spill] sm:$0xff] %v11279_v19  ;;  %v11285_v57 = vpop.permute.xlu0 %6577  ;;  %v1176_v19 = vrot.slane %v7246_v2, 2  ;;  %v5814_v4 = vunpack.i.l.bf16 %v14542_v25  ;;  %v5810_v48 = vunpack.i.h.bf16 %v14543_v62  ;;  %v14547_v2 = vld [vmem:[#allocation10_spill] sm:$0xff] }
 0x315   : > { %14531 = vst [vmem:[#allocation113_spill] sm:$0xff] %v11285_v57  ;;  %6872 = vrot.lane.b32.xlu1 %v14533_v61, %s7318_s15  ;;  %v3014_v61 = vsel %vm2994_vm11, %v2981_v13, %v5765_v7  ;;  %v1177_v57 = vrot.slane %v7247_v11, 2  ;;  %v3016_v13 = vsel %vm2994_vm11, %v2983_v24, %v5770_v22  ;;  %v3031_v7 = vsel %vm13633_vm12, %v2998_v45, %v5805_v59  ;;  %v14546_v45 = vld [vmem:[#allocation25_spill] sm:$0xff] }
 0x316   : > { %6867 = vrot.lane.b32.xlu0 %v14535_v9, %s7318_s15  ;;  %v5809_v24 = vunpack.i.l.bf16 %v14543_v62  ;;  %v5845_v9 = vunpack.i.h.bf16 %v14546_v45  ;;  %v5844_v59 = vunpack.i.l.bf16 %v14546_v45  ;;  %v5839_v11 = vunpack.i.l.bf16 %v14547_v2 }
 0x317   : > { %v11301_v38 = vpop.permute.xlu1 %6592  ;;  %v11327_v0 = vsel %vm790_vm2, %v1176_v19, %v1177_v57  ;;  %v3030_v25 = vsel %vm13633_vm12, %v2997_v20, %v5804_v39  ;;  %v5840_v62 = vunpack.i.h.bf16 %v14547_v2  ;;  %v14550_v19 = vld [vmem:[#allocation20_spill] sm:$0xff]  ;;  %v3029_v45 = vsel %vm13633_vm12, %v2996_v49, %v5800_v37 }
 0x318   : > { %14537 = vst [vmem:[#allocation55_spill] sm:$0xff] %v11301_v38  ;;  %v11305_v8 = vpop.permute.xlu0 %6587  ;;  %14544 = vst [vmem:[#allocation100_spill] sm:$0xff] %v11327_v0  ;;  %v5855_v57 = vunpack.i.h.bf16 %v14550_v19  ;;  %v14551_v38 = vld [vmem:[#allocation165_spill] sm:$0xff]  ;;  %v5854_v3 = vunpack.i.l.bf16 %v14550_v19  ;;  %v3034_v20 = vsel %vm13633_vm12, %v3001_v12, %v5814_v4  ;;  %v3032_v39 = vsel %vm13633_vm12, %v2999_v10, %v5809_v24  ;;  %v14553_v10 = vld [vmem:[#allocation183_spill] sm:$0xff] }
 0x319   : > { %14538 = vst [vmem:[#allocation50_spill] sm:$0xff] %v11305_v8  ;;  %6882 = vrot.lane.b32.xlu1 %v14539_v28, %s7319_s16  ;;  %v14548_v28 = vld [vmem:[#allocation177_spill] sm:$0xff]  ;;  %v3028_v8 = vsel %vm13633_vm12, %v2995_v58, %v5799_v46  ;;  %v3033_v2 = vsel %vm13633_vm12, %v3000_v43, %v5810_v48  ;;  %v3046_v58 = vsel %vm13633_vm12, %v3013_v14, %v5844_v59  ;;  %v5850_v12 = vunpack.i.h.bf16 %v14552_v33  ;;  %v14556_v4 = vld [vmem:[#allocation275_spill] sm:$0xff] }
 0x31a   : > { %6877 = vrot.lane.b32.xlu0 %v14540_v41, %s7319_s16  ;;  %v14549_v41 = vld [vmem:[#allocation277_spill] sm:$0xff]  ;;  %v3044_v49 = vsel %vm13633_vm12, %v3011_v18, %v5839_v11  ;;  %v3045_v37 = vsel %vm13633_vm12, %v3012_v34, %v5840_v62  ;;  %v3050_v43 = vsel %vm13633_vm12, %v3017_v56, %v5854_v3  ;;  %v5880_v48 = vunpack.i.h.bf16 %v14556_v4  ;;  %v14559_v59 = vld [vmem:[#allocation143_spill] sm:$0xff] }
 0x31b   : > { %v11321_v30 = vpop.permute.xlu1 %6602  ;;  %v6901_v31 = vpack.i.bf16 %v11327_v0, %v14549_v41  ;;  %v3035_v41 = vsel %vm13633_vm12, %v3002_v6, %v5815_v36  ;;  %v3051_v6 = vsel %vm13633_vm12, %v3018_v42, %v5855_v57  ;;  %v5879_v34 = vunpack.i.l.bf16 %v14556_v4  ;;  %v14557_v42 = vld [vmem:[#allocation141_spill] sm:$0xff]  ;;  %v14561_v57 = vld [vmem:[#allocation95_spill] sm:$0xff] }
 0x31c   : > { %v11329_v22 = vpop.permute.xlu0 %6597  ;;  %v5895_v24 = vunpack.i.h.bf16 %v14557_v42  ;;  %v5890_v3 = vunpack.i.h.bf16 %v14559_v59  ;;  %v5889_v56 = vunpack.i.l.bf16 %v14559_v59  ;;  %v3049_v62 = vsel %vm13633_vm12, %v3016_v13, %v5850_v12  ;;  %v14563_v59 = vld [vmem:[#allocation92_spill] sm:$0xff] }
 0x31d   : > { %14545 = vst [vmem:[#allocation117_spill] sm:$0xff] %v11329_v22  ;;  %6892 = vrot.lane.b32.xlu1 %v14548_v28, %s7320_s17  ;;  %v5849_v28 = vunpack.i.l.bf16 %v14552_v33  ;;  %v5894_v33 = vunpack.i.l.bf16 %v14557_v42  ;;  %v5920_v42 = vunpack.i.h.bf16 %v14561_v57 }
 0x31e   : > { %6887 = vrot.lane.b32.xlu0 %v14551_v38, %s7320_s17  ;;  %v3047_v38 = vsel %vm13633_vm12, %v3014_v61, %v5845_v9  ;;  %v14554_v61 = vld [vmem:[#allocation274_spill] sm:$0xff]  ;;  %v3068_v12 = vsel %vm13632_vm13, %v3035_v41, %v5895_v24  ;;  %v14566_v41 = vld [vmem:[#allocation123_spill] sm:$0xff] }
 0x31f   : > { %v11347_v22 = vpop.permute.xlu1 %6612  ;;  %v3048_v46 = vsel %vm13633_vm12, %v3015_v47, %v5849_v28  ;;  %v5885_v36 = vunpack.i.h.bf16 %v14554_v61  ;;  %v5884_v14 = vunpack.i.l.bf16 %v14554_v61  ;;  %v14560_v47 = vld [vmem:[#allocation26_spill] sm:$0xff]  ;;  %v5919_v28 = vunpack.i.l.bf16 %v14561_v57 }
 0x320   : > { %v11353_v0 = vpop.permute.xlu0 %6607  ;;  %v5924_v11 = vunpack.i.l.bf16 %v14560_v47  ;;  %v5925_v19 = vunpack.i.h.bf16 %v14560_v47  ;;  %v3067_v13 = vsel %vm13632_vm13, %v3034_v20, %v5894_v33  ;;  %v5935_v20 = vunpack.i.h.bf16 %v14563_v59 }
 0x321   : > { %6902 = vrot.lane.b32.xlu1 %v6901_v31, %s7321_s23  ;;  %v6921_v31 = vpack.i.bf16 %v10474_v5, %v10482_v35  ;;  %v3063_v61 = vsel %vm13632_vm13, %v3030_v25, %v5884_v14  ;;  %v3064_v4 = vsel %vm13632_vm13, %v3031_v7, %v5885_v36  ;;  %v3061_v5 = vsel %vm13632_vm13, %v3028_v8, %v5879_v34 }
 0x322   : > { %6897 = vrot.lane.b32.xlu0 %v14553_v10, %s7321_s23  ;;  %v14562_v10 = vld [vmem:[#allocation136_spill] sm:$0xff]  ;;  %v3062_v35 = vsel %vm13632_vm13, %v3029_v45, %v5880_v48  ;;  %v3065_v25 = vsel %vm13632_vm13, %v3032_v39, %v5889_v56  ;;  %v3066_v7 = vsel %vm13632_vm13, %v3033_v2, %v5890_v3  ;;  %v3079_v36 = vsel %vm13632_vm13, %v3046_v58, %v5924_v11  ;;  %v14568_v58 = vld [vmem:[#allocation147_spill] sm:$0xff] }
 0x323   : > { %v11368_v18 = vpop.permute.xlu1 %6622  ;;  %v6931_v14 = vpack.i.bf16 %v10624_v54, %v10632_v15  ;;  %v3080_v8 = vsel %vm13632_vm13, %v3047_v38, %v5925_v19  ;;  %v3077_v45 = vsel %vm13632_vm13, %v3044_v49, %v5919_v28  ;;  %v3078_v39 = vsel %vm13632_vm13, %v3045_v37, %v5920_v42  ;;  %v14569_v54 = vld [vmem:[#allocation59_spill] sm:$0xff]  ;;  %v14570_v49 = vld [vmem:[#allocation150_spill] sm:$0xff] }
 0x324   : > { %14555 = vst [vmem:[#allocation116_spill] sm:$0xff] %v11368_v18  ;;  %v11374_v9 = vpop.permute.xlu0 %6617  ;;  %v5930_v48 = vunpack.i.h.bf16 %v14568_v58  ;;  %v5929_v34 = vunpack.i.l.bf16 %v14568_v58  ;;  %v5965_v15 = vunpack.i.h.bf16 %v14569_v54  ;;  %v5964_v38 = vunpack.i.l.bf16 %v14569_v54  ;;  %v14571_v37 = vld [vmem:[#allocation159_spill] sm:$0xff] }
 0x325   : > { %14558 = vst [vmem:[#allocation40_spill] sm:$0xff] %v11374_v9  ;;  %6912 = vrot.lane.b32.xlu1 %v10397_v44, %s7322_s25  ;;  %v5934_v44 = vunpack.i.l.bf16 %v14563_v59  ;;  %v5960_v33 = vunpack.i.h.bf16 %v14570_v49  ;;  %v5959_v3 = vunpack.i.l.bf16 %v14570_v49  ;;  %v5975_v11 = vunpack.i.h.bf16 %v14571_v37  ;;  %v14574_v42 = vld [vmem:[#allocation51_spill] sm:$0xff]  ;;  %v14642_v9 = vld [vmem:[#allocation70_spill] sm:$0xff] }
 0x326   : > { %6907 = vrot.lane.b32.xlu0 %v14562_v10, %s7322_s25  ;;  %v6941_v57 = vpack.i.bf16 %v14375_v51, %v14379_v1  ;;  %v11432_v28 = vsel %vm13632_vm13, %v3051_v6, %v5935_v20  ;;  %v6004_v59 = vunpack.i.l.bf16 %v14574_v42  ;;  %v3082_v58 = vsel %vm13632_vm13, %v3049_v62, %v5930_v48 }
 0x327   : > { %v11392_v18 = vpop.permute.xlu1 %6632  ;;  %v11413_v2 = vsel %vm13632_vm13, %v3050_v43, %v5934_v44  ;;  %v5974_v43 = vunpack.i.l.bf16 %v14571_v37  ;;  %14573 = vst [vmem:[#allocation144_spill] sm:$0xff] %v11432_v28  ;;  %v14575_v44 = vld [vmem:[#allocation73_spill] sm:$0xff]  ;;  %v6005_v54 = vunpack.i.h.bf16 %v14574_v42  ;;  %v3096_v51 = vsel %vm13631_vm14, %v3063_v61, %v5964_v38 }
 0x328   : > { %14564 = vst [vmem:[#allocation93_spill] sm:$0xff] %v11392_v18  ;;  %v11398_v47 = vpop.permute.xlu0 %6627  ;;  %14567 = vst [vmem:[#allocation52_spill] sm:$0xff] %v11413_v2  ;;  %v3097_v1 = vsel %vm13631_vm14, %v3064_v4, %v5965_v15  ;;  %v3094_v6 = vsel %vm13631_vm14, %v3061_v5, %v5959_v3  ;;  %v3095_v20 = vsel %vm13631_vm14, %v3062_v35, %v5960_v33  ;;  %v14580_v35 = vld [vmem:[#allocation48_spill] sm:$0xff]  ;;  %v14581_v15 = vld [vmem:[#allocation175_spill] sm:$0xff] }
 0x329   : > { %14565 = vst [vmem:[#allocation212_spill] sm:$0xff] %v11398_v47  ;;  %6922 = vrot.lane.b32.xlu1 %v6921_v31, %s7317_s14  ;;  %v14572_v31 = vld [vmem:[#allocation8_spill] sm:$0xff]  ;;  %v11454_v62 = vsel %vm13631_vm14, %v3068_v12, %v5975_v11  ;;  %v3112_v4 = vsel %vm13631_vm14, %v3079_v36, %v6004_v59  ;;  %v6010_v12 = vunpack.i.h.bf16 %v14581_v15  ;;  %v6009_v38 = vunpack.i.l.bf16 %v14581_v15  ;;  %v14583_v33 = vld [vmem:[#allocation178_spill] sm:$0xff]  ;;  %v14625_v2 = vld [vmem:[#allocation15_spill] sm:$0xff] }
 0x32a   : > { %6917 = vrot.lane.b32.xlu0 %v14566_v41, %s7317_s14  ;;  %v5969_v19 = vunpack.i.l.bf16 %v14572_v31  ;;  %v5970_v10 = vunpack.i.h.bf16 %v14572_v31  ;;  %v3081_v41 = vsel %vm13632_vm13, %v3048_v46, %v5929_v34  ;;  %v11451_v46 = vsel %vm13631_vm14, %v3067_v13, %v5974_v43  ;;  %14579 = vst [vmem:[#allocation152_spill] sm:$0xff] %v11454_v62  ;;  %v14584_v36 = vld [vmem:[#allocation90_spill] sm:$0xff]  ;;  %v14588_v59 = vld [vmem:[#allocation260_spill] sm:$0xff] }
 0x32b   : > { %v11417_v24 = vpop.permute.xlu1 %6642  ;;  %14578 = vst [vmem:[#allocation151_spill] sm:$0xff] %v11451_v46  ;;  %v3113_v34 = vsel %vm13631_vm14, %v3080_v8, %v6005_v54  ;;  %v6045_v3 = vunpack.i.h.bf16 %v14583_v33  ;;  %v6040_v11 = vunpack.i.h.bf16 %v14584_v36  ;;  %v6039_v43 = vunpack.i.l.bf16 %v14584_v36  ;;  %v14589_v54 = vld [vmem:[#allocation211_spill] sm:$0xff]  ;;  %v14616_v46 = vld [vmem:[#allocation98_spill] sm:$0xff]  ;;  %v14622_v47 = vld [vmem:[#allocation28_spill] sm:$0xff] }
 0x32c   : > { %v11423_v56 = vpop.permute.xlu0 %6637  ;;  %v3098_v48 = vsel %vm13631_vm14, %v3065_v25, %v5969_v19  ;;  %v3099_v61 = vsel %vm13631_vm14, %v3066_v7, %v5970_v10  ;;  %v6044_v7 = vunpack.i.l.bf16 %v14583_v33  ;;  %v14587_v10 = vld [vmem:[#allocation204_spill] sm:$0xff]  ;;  %v11491_v62 = vsel %vm13631_vm14, %v3082_v58, %v6010_v12  ;;  %v14615_v36 = vld [vmem:[#allocation219_spill] sm:$0xff]  ;;  %v14618_v33 = vld [vmem:[#allocation9_spill] sm:$0xff] }
 0x32d   : > { %6932 = vrot.lane.b32.xlu1 %v6931_v14, %s7318_s15  ;;  %v14576_v14 = vld [vmem:[#allocation163_spill] sm:$0xff]  ;;  %v6084_v42 = vunpack.i.l.bf16 %v14587_v10  ;;  %14593 = vst [vmem:[#allocation167_spill] sm:$0xff] %v11491_v62 }
 0x32e   : > { %6927 = vrot.lane.b32.xlu0 %v14575_v44, %s7318_s15  ;;  %v5999_v49 = vunpack.i.l.bf16 %v14576_v14  ;;  %v6000_v5 = vunpack.i.h.bf16 %v14576_v14  ;;  %v6085_v44 = vunpack.i.h.bf16 %v14587_v10  ;;  %v6080_v14 = vunpack.i.h.bf16 %v14589_v54  ;;  %v594_v62 = vld [vmem:[#allocation2 + $0x3a8] sm:$0xf] }
 0x32f   : > { %v11442_v37 = vpop.permute.xlu1 %6652  ;;  %v11496_v10 = vsel %vm13634_vm15, %v3096_v51, %v6044_v7  ;;  %v11516_v51 = vsel %vm13634_vm15, %v3112_v4, %v6084_v42 }
 0x330   : > { %14577 = vst [vmem:[#allocation148_spill] sm:$0xff] %v11442_v37  ;;  %v11448_v31 = vpop.permute.xlu0 %6647  ;;  %v3110_v13 = vsel %vm13631_vm14, %v3077_v45, %v5999_v49  ;;  %v6079_v49 = vunpack.i.l.bf16 %v14589_v54  ;;  %v3111_v15 = vsel %vm13631_vm14, %v3078_v39, %v6000_v5  ;;  %14595 = vst [vmem:[#allocation171_spill] sm:$0xff] %v11496_v10  ;;  %v11499_v54 = vsel %vm13634_vm15, %v3097_v1, %v6045_v3  ;;  %v14603_v1 = vld [vmem:[#allocation44_spill] sm:$0xff]  ;;  %v14655_v10 = vld [vmem:[#allocation46_spill] sm:$0xff] }
 0x331   : > { %6942 = vrot.lane.b32.xlu1 %v6941_v57, %s7319_s16  ;;  %v14586_v57 = vld [vmem:[#allocation182_spill] sm:$0xff]  ;;  %14596 = vst [vmem:[#allocation172_spill] sm:$0xff] %v11499_v54  ;;  %v11505_v39 = vsel %vm13634_vm15, %v3095_v20, %v6040_v11  ;;  %14602 = vst [vmem:[#allocation179_spill] sm:$0xff] %v11516_v51  ;;  %v11527_v12 = vsel %vm13634_vm15, %v3111_v15, %v6080_v14  ;;  %v14609_v3 = vld [vmem:[#allocation296_spill] sm:$0xff] }
 0x332   : > { %6937 = vrot.lane.b32.xlu0 %v14580_v35, %s7319_s16  ;;  %v6050_v8 = vunpack.i.h.bf16 %v14586_v57  ;;  %v6049_v45 = vunpack.i.l.bf16 %v14586_v57  ;;  %v14590_v35 = vld [vmem:[#allocation170_spill] sm:$0xff]  ;;  %v11488_v57 = vsel %vm13631_vm14, %v3081_v41, %v6009_v38  ;;  %14598 = vst [vmem:[#allocation14_spill] sm:$0xff] %v11505_v39  ;;  %v11524_v20 = vsel %vm13634_vm15, %v3110_v13, %v6079_v49  ;;  %14606 = vst [vmem:[#allocation276_spill] sm:$0xff] %v11527_v12  ;;  %v14624_v13 = vld [vmem:[#allocation24_spill] sm:$0xff] }
 0x333   : > { %v11467_v25 = vpop.permute.xlu1 %6662  ;;  %14592 = vst [vmem:[#allocation160_spill] sm:$0xff] %v11488_v57  ;;  %14605 = vst [vmem:[#allocation31_spill] sm:$0xff] %v11524_v20  ;;  %v6360_v7 = vunpack.i.h.bf16 %v14609_v3  ;;  %v6359_v11 = vunpack.i.l.bf16 %v14609_v3  ;;  %v14614_v3 = vld [vmem:[#allocation181_spill] sm:$0xff]  ;;  %v14619_v15 = vld [vmem:[#allocation38_spill] sm:$0xff] }
 0x334   : > { %14582 = vst [vmem:[#allocation155_spill] sm:$0xff] %v11467_v25  ;;  %v11473_v19 = vpop.permute.xlu0 %6657  ;;  %v11510_v41 = vsel %vm13634_vm15, %v3098_v48, %v6049_v45  ;;  %v11513_v58 = vsel %vm13634_vm15, %v3099_v61, %v6050_v8  ;;  %v14607_v48 = vld [vmem:[#allocation72_spill] sm:$0xff]  ;;  %v14608_v61 = vld [vmem:[#allocation295_spill] sm:$0xff]  ;;  %v6981_v8 = vpack.i.bf16 %v14616_v46, %v14615_v36  ;;  %v14632_v20 = vld [vmem:[#allocation34_spill] sm:$0xff] }
 0x335   : > { %14585 = vst [vmem:[#allocation156_spill] sm:$0xff] %v11473_v19  ;;  %6952 = vrot.lane.b32.xlu1 %v14588_v59, %s7320_s17  ;;  %14600 = vst [vmem:[#allocation12_spill] sm:$0xff] %v11510_v41  ;;  %v6365_v38 = vunpack.i.h.bf16 %v14608_v61  ;;  %v6364_v4 = vunpack.i.l.bf16 %v14608_v61  ;;  %v14611_v45 = vld [vmem:[#allocation192_spill] sm:$0xff]  ;;  %v4218_v46 = vsel %vm258_vm0, %v14622_v47, %v6359_v11  ;;  %v14626_v25 = vld [vmem:[#allocation131_spill] sm:$0xff] }
 0x336   : > { %6947 = vrot.lane.b32.xlu0 %v14590_v35, %s7320_s17  ;;  %v11502_v35 = vsel %vm13634_vm15, %v3094_v6, %v6039_v43  ;;  %14601 = vst [vmem:[#allocation27_spill] sm:$0xff] %v11513_v58  ;;  %v11521_v6 = vsel %vm13634_vm15, %v3113_v34, %v6085_v44  ;;  %v6375_v42 = vunpack.i.h.bf16 %v14611_v45  ;;  %v6374_v44 = vunpack.i.l.bf16 %v14611_v45  ;;  %v14630_v11 = vld [vmem:[#allocation220_spill] sm:$0xff]  ;;  %v14634_v51 = vld [vmem:[#allocation122_spill] sm:$0xff]  ;;  %v14638_v41 = vld [vmem:[#allocation201_spill] sm:$0xff] }
 0x337   : > { %v11493_v59 = vpop.permute.xlu1 %6672  ;;  %14597 = vst [vmem:[#allocation176_spill] sm:$0xff] %v11502_v35  ;;  %14604 = vst [vmem:[#allocation180_spill] sm:$0xff] %v11521_v6  ;;  %v6405_v12 = vunpack.i.h.bf16 %v14626_v25  ;;  %v14643_v39 = vld [vmem:[#allocation69_spill] sm:$0xff]  ;;  %v14644_v35 = vld [vmem:[#allocation186_spill] sm:$0xff]  ;;  %v1305_v34 = vrot.slane %v594_v62, 1 }
 0x338   : > { %14594 = vst [vmem:[#allocation168_spill] sm:$0xff] %v11493_v59  ;;  %v11507_v5 = vpop.permute.xlu0 %6667  ;;  %v14620_v59 = vld [vmem:[#allocation36_spill] sm:$0xff]  ;;  %v14653_v54 = vld [vmem:[#allocation53_spill] sm:$0xff] }
 0x339   : > { %14599 = vst [vmem:[#allocation263_spill] sm:$0xff] %v11507_v5  ;;  %6962 = vrot.lane.b32.xlu1 %v14603_v1, %s7321_s23  ;;  %v4221_v1 = vsel %vm258_vm0, %v14619_v15, %v6365_v38  ;;  %v4220_v18 = vsel %vm258_vm0, %v14620_v59, %v6364_v4  ;;  %v14621_v5 = vld [vmem:[#allocation30_spill] sm:$0xff]  ;;  %v6404_v38 = vunpack.i.l.bf16 %v14626_v25  ;;  %v14628_v59 = vld [vmem:[#allocation35_spill] sm:$0xff]  ;;  %v14629_v4 = vld [vmem:[#allocation29_spill] sm:$0xff] }
 0x33a   : > { %6957 = vrot.lane.b32.xlu0 %v14607_v48, %s7321_s23  ;;  %v14613_v48 = vld [vmem:[#allocation132_spill] sm:$0xff]  ;;  %v6399_v47 = vunpack.i.l.bf16 %v14629_v4  ;;  %v596_v37 = vld [vmem:[#allocation2 + $0x3b8] sm:$0xf] }
 0x33b   : > { %v11535_v43 = vpop.permute.xlu1 %6682  ;;  %v6370_v61 = vunpack.i.h.bf16 %v14613_v48  ;;  %v6369_v45 = vunpack.i.l.bf16 %v14613_v48  ;;  %v4225_v48 = vsel %vm258_vm0, %v14624_v13, %v6375_v42  ;;  %v14631_v13 = vld [vmem:[#allocation74_spill] sm:$0xff] }
 0x33c   : > { %v11541_v14 = vpop.permute.xlu0 %6677  ;;  %v6991_v42 = vpack.i.bf16 %v14631_v13, %v14630_v11  ;;  %v14639_v11 = vld [vmem:[#allocation79_spill] sm:$0xff] }
 0x33d   : > { %6972 = vrot.lane.b32.xlu1 %v14614_v3, %s7322_s25  ;;  %v4219_v3 = vsel %vm258_vm0, %v14621_v5, %v6360_v7  ;;  %v4223_v5 = vsel %vm258_vm0, %v14628_v59, %v6370_v61  ;;  %v6400_v7 = vunpack.i.h.bf16 %v14629_v4  ;;  %v14635_v61 = vld [vmem:[#allocation17_spill] sm:$0xff]  ;;  %v11594_v13 = vsel %vm258_vm0, %v14639_v11, %v6405_v12  ;;  %v14645_v12 = vld [vmem:[#allocation138_spill] sm:$0xff] }
 0x33e   : > { %6967 = vrot.lane.b32.xlu0 %v14618_v33, %s7322_s25  ;;  %v4224_v33 = vsel %vm258_vm0, %v14625_v2, %v6374_v44  ;;  %v4222_v2 = vsel %vm258_vm0, %v14632_v20, %v6369_v45  ;;  %v14633_v44 = vld [vmem:[#allocation16_spill] sm:$0xff]  ;;  %v6410_v59 = vunpack.i.h.bf16 %v14635_v61  ;;  %v6409_v58 = vunpack.i.l.bf16 %v14635_v61  ;;  %v14640_v20 = vld [vmem:[#allocation77_spill] sm:$0xff] }
 0x33f   : > { %v11563_v36 = vpop.permute.xlu1 %6692  ;;  %v6415_v6 = vunpack.i.h.bf16 %v14633_v44  ;;  %v6414_v25 = vunpack.i.l.bf16 %v14633_v44  ;;  %v4236_v45 = vsel %vm258_vm0, %v14640_v20, %v6404_v38  ;;  %v4234_v61 = vsel %vm258_vm0, %v14643_v39, %v6399_v47  ;;  %v14648_v47 = vld [vmem:[#allocation75_spill] sm:$0xff] }
 0x340   : > { %14623 = vst [vmem:[#allocation184_spill] sm:$0xff] %v11563_v36  ;;  %v11571_v15 = vpop.permute.xlu0 %6687  ;;  %v6445_v38 = vunpack.i.h.bf16 %v10963_v21  ;;  %v6444_v11 = vunpack.i.l.bf16 %v10963_v21  ;;  %v6455_v20 = vunpack.i.h.bf16 %v10985_v17  ;;  %v6454_v21 = vunpack.i.l.bf16 %v10985_v17  ;;  %v14654_v17 = vld [vmem:[#allocation234_spill] sm:$0xff] }
 0x341   : > { %14627 = vst [vmem:[#allocation21_spill] sm:$0xff] %v11571_v15  ;;  %6982 = vrot.lane.b32.xlu1 %v6981_v8, %s7317_s14  ;;  %v14637_v8 = vld [vmem:[#allocation190_spill] sm:$0xff]  ;;  %v1316_v15 = vrot.slane %v596_v37, 1 }
 0x342   : > { %6977 = vrot.lane.b32.xlu0 %v14634_v51, %s7317_s14  ;;  %v7001_v19 = vpack.i.bf16 %v14638_v41, %v14637_v8  ;;  %v11602_v51 = vsel %vm258_vm0, %v14642_v9, %v6400_v7  ;;  %v11609_v41 = vsel %vm258_vm0, %v14644_v35, %v6415_v6  ;;  %v11613_v8 = vsel %vm258_vm0, %v14645_v12, %v6414_v25  ;;  %v14646_v9 = vld [vmem:[#allocation134_spill] sm:$0xff]  ;;  %v14647_v7 = vld [vmem:[#allocation76_spill] sm:$0xff] }
 0x343   : > { %v11588_v4 = vpop.permute.xlu1 %6702  ;;  %v11621_v39 = vsel %vm258_vm0, %v14647_v7, %v6410_v59  ;;  %v6440_v35 = vunpack.i.h.bf16 %v10969_v27  ;;  %v6439_v6 = vunpack.i.l.bf16 %v10969_v27  ;;  %v6450_v12 = vunpack.i.h.bf16 %v10991_v32  ;;  %v14651_v59 = vld [vmem:[#allocation149_spill] sm:$0xff] }
 0x344   : > { %14636 = vst [vmem:[#allocation185_spill] sm:$0xff] %v11588_v4  ;;  %v11598_v44 = vpop.permute.xlu0 %6697  ;;  %v11642_v27 = vsel %vm2796_vm5, %v4221_v1, %v6445_v38  ;;  %v11659_v38 = vsel %vm2796_vm5, %v4224_v33, %v6454_v21  ;;  %v6485_v1 = vunpack.i.h.bf16 %v11057_v40  ;;  %v6484_v33 = vunpack.i.l.bf16 %v11057_v40  ;;  %v14665_v4 = vld [vmem:[#allocation82_spill] sm:$0xff] }
 0x345   : > { %14641 = vst [vmem:[#allocation187_spill] sm:$0xff] %v11598_v44  ;;  %6992 = vrot.lane.b32.xlu1 %v6991_v42, %s7318_s15  ;;  %v4238_v42 = vsel %vm258_vm0, %v14648_v47, %v6409_v58  ;;  %v14652_v58 = vld [vmem:[#allocation270_spill] sm:$0xff]  ;;  %v11639_v47 = vsel %vm2796_vm5, %v4220_v18, %v6444_v11  ;;  %v11649_v57 = vsel %vm2796_vm5, %v4218_v46, %v6439_v6  ;;  %v14657_v18 = vld [vmem:[#allocation203_spill] sm:$0xff]  ;;  %v6489_v40 = vunpack.i.l.bf16 %v11087_v63 }
 0x346   : > { %6987 = vrot.lane.b32.xlu0 %v14646_v9, %s7318_s15  ;;  %v6449_v9 = vunpack.i.l.bf16 %v10991_v32  ;;  %v593_v32 = vld [vmem:[#allocation2 + $0x3a0] sm:$0xff]  ;;  %v14658_v11 = vld [vmem:[#allocation195_spill] sm:$0xff]  ;;  %v11668_v46 = vsel %vm2796_vm5, %v4223_v5, %v6450_v12  ;;  %v1308_v12 = vrot.slane %v594_v62, 2  ;;  %v6490_v44 = vunpack.i.h.bf16 %v11087_v63 }
 0x347   : > { %v11627_v25 = vpop.permute.xlu1 %6712  ;;  %v1307_v21 = vrot.slane %v593_v32, 2 }
 0x348   : > { %14649 = vst [vmem:[#allocation115_spill] sm:$0xff] %v11627_v25  ;;  %v11633_v28 = vpop.permute.xlu0 %6707  ;;  %v11665_v49 = vsel %vm2796_vm5, %v4222_v2, %v6449_v9  ;;  %v6480_v2 = vunpack.i.h.bf16 %v11063_v26  ;;  %v595_v9 = vld [vmem:[#allocation2 + $0x3b0] sm:$0xff]  ;;  %v4268_v25 = vsel %vm2796_vm5, %v4236_v45, %v6484_v33  ;;  %v6524_v33 = vunpack.i.l.bf16 %v11147_v52 }
 0x349   : > { %14650 = vst [vmem:[#allocation89_spill] sm:$0xff] %v11633_v28  ;;  %7002 = vrot.lane.b32.xlu1 %v7001_v19, %s7319_s16  ;;  %v11652_v19 = vsel %vm2796_vm5, %v4219_v3, %v6440_v35  ;;  %v14660_v3 = vld [vmem:[#allocation61_spill] sm:$0xff]  ;;  %v1304_v35 = vrot.slane %v593_v32, 1  ;;  %v11708_v45 = vsel %vm790_vm2, %v1307_v21, %v1308_v12 }
 0x34a   : > { %6997 = vrot.lane.b32.xlu0 %v14653_v54, %s7319_s16  ;;  %v11662_v54 = vsel %vm2796_vm5, %v4225_v48, %v6455_v20  ;;  %v14661_v48 = vld [vmem:[#allocation169_spill] sm:$0xff]  ;;  %v6479_v20 = vunpack.i.l.bf16 %v11063_v26  ;;  %v1310_v26 = vrot.slane %v593_v32, 3 }
 0x34b   : > { %v11654_v7 = vpop.permute.xlu1 %6722  ;;  %v11690_v28 = vsel %vm661_vm4, %v1304_v35, %v1305_v34  ;;  %v11703_v34 = vsel %vm2796_vm5, %v11602_v51, %v6480_v2  ;;  %v11723_v51 = vsel %vm2796_vm5, %v4238_v42, %v6489_v40  ;;  %v14668_v2 = vld [vmem:[#allocation108_spill] sm:$0xff]  ;;  %v1322_v40 = vrot.slane %v596_v37, 3 }
 0x34c   : > { %14656 = vst [vmem:[#allocation188_spill] sm:$0xff] %v11654_v7  ;;  %v11670_v6 = vpop.permute.xlu0 %6717  ;;  %v11699_v36 = vsel %vm2796_vm5, %v4234_v61, %v6479_v20  ;;  %v14666_v61 = vld [vmem:[#allocation127_spill] sm:$0xff] }
 0x34d   : > { %14659 = vst [vmem:[#allocation88_spill] sm:$0xff] %v11670_v6  ;;  %7012 = vrot.lane.b32.xlu1 %v14660_v3, %s7320_s17  ;;  %v6495_v3 = vunpack.i.h.bf16 %v11079_v16  ;;  %v6494_v6 = vunpack.i.l.bf16 %v11079_v16  ;;  %v1315_v16 = vrot.slane %v595_v9, 1  ;;  %v14669_v20 = vld [vmem:[#allocation63_spill] sm:$0xff] }
 0x34e   : > { %7007 = vrot.lane.b32.xlu0 %v14661_v48, %s7320_s17  ;;  %v14664_v48 = vld [vmem:[#allocation243_spill] sm:$0xff] }
 0x34f   : > { %v11680_v5 = vpop.permute.xlu1 %6732  ;;  %v11712_v63 = vsel %vm2796_vm5, %v11613_v8, %v6494_v6  ;;  %v1318_v8 = vrot.slane %v595_v9, 2  ;;  %v1319_v6 = vrot.slane %v596_v37, 2  ;;  %v11740_v21 = vsel %vm661_vm4, %v1315_v16, %v1316_v15 }
 0x350   : > { %14662 = vst [vmem:[#allocation86_spill] sm:$0xff] %v11680_v5  ;;  %v11684_v7 = vpop.permute.xlu0 %6727  ;;  %v1311_v5 = vrot.slane %v594_v62, 3  ;;  %v6534_v15 = vunpack.i.l.bf16 %v11169_v60  ;;  %v6530_v16 = vunpack.i.h.bf16 %v11175_v53 }
 0x351   : > { %14663 = vst [vmem:[#allocation124_spill] sm:$0xff] %v11684_v7  ;;  %7022 = vrot.lane.b32.xlu1 %v14664_v48, %s7321_s23  ;;  %v4269_v7 = vsel %vm2796_vm5, %v11594_v13, %v6485_v1  ;;  %v14667_v1 = vld [vmem:[#allocation298_spill] sm:$0xff] }
 0x352   : > { %7017 = vrot.lane.b32.xlu0 %v14665_v4, %s7321_s23  ;;  %v11716_v4 = vsel %vm2796_vm5, %v11609_v41, %v6495_v3  ;;  %v11728_v35 = vsel %vm887_vm3, %v1310_v26, %v1311_v5  ;;  %v11732_v41 = vsel %vm2796_vm5, %v11621_v39, %v6490_v44  ;;  %v6525_v5 = vunpack.i.h.bf16 %v11147_v52  ;;  %v14670_v26 = vld [vmem:[#allocation196_spill] sm:$0xff] }
 0x353   : > { %v11705_v62 = vpop.permute.xlu1 %6742  ;;  %v1321_v3 = vrot.slane %v595_v9, 3  ;;  %v6520_v44 = vunpack.i.h.bf16 %v11153_v55  ;;  %v6519_v39 = vunpack.i.l.bf16 %v11153_v55  ;;  %v14671_v52 = vpack.i.bf16 %v14652_v58, %v14651_v59 }
 0x354   : > { %v11718_v13 = vpop.permute.xlu0 %6737  ;;  %v11760_v9 = vsel %vm790_vm2, %v1318_v8, %v1319_v6  ;;  %v4284_v55 = vsel %vm2829_vm6, %v11639_v47, %v6524_v33  ;;  %v4285_v59 = vsel %vm2829_vm6, %v11642_v27, %v6525_v5  ;;  %v6565_v58 = vunpack.i.h.bf16 %v11235_v50  ;;  %v14690_v27 = vld [vmem:[#allocation89_spill] sm:$0xff] }
 0x355   : > { %7032 = vrot.lane.b32.xlu1 %v14667_v1, %s7322_s25  ;;  %v6529_v1 = vunpack.i.l.bf16 %v11175_v53  ;;  %v11775_v8 = vsel %vm887_vm3, %v1321_v3, %v1322_v40  ;;  %v4282_v47 = vsel %vm2829_vm6, %v11649_v57, %v6519_v39  ;;  %v4283_v53 = vsel %vm2829_vm6, %v11652_v19, %v6520_v44  ;;  %v14676_v40 = vld [vmem:[#allocation140_spill] sm:$0xff] }
 0x356   : > { %7027 = vrot.lane.b32.xlu0 %v14668_v2, %s7322_s25  ;;  %v6535_v2 = vunpack.i.h.bf16 %v11169_v60  ;;  %v14672_v60 = vld [vmem:[#allocation126_spill] sm:$0xff]  ;;  %v11787_v33 = vsel %vm2829_vm6, %v11659_v38, %v6534_v15  ;;  %v6560_v5 = vunpack.i.h.bf16 %v11241_v23  ;;  %v6559_v57 = vunpack.i.l.bf16 %v11241_v23 }
 0x357   : > { %v11743_v12 = vpop.permute.xlu1 %6752  ;;  %14673 = vst [vmem:[#allocation87_spill] sm:$0xff] %v11787_v33  ;;  %v14675_v19 = vpack.i.bf16 %v14655_v10, %v14654_v17  ;;  %v4286_v3 = vsel %vm2829_vm6, %v11665_v49, %v6529_v1  ;;  %v4287_v38 = vsel %vm2829_vm6, %v11668_v46, %v6530_v16  ;;  %v4301_v23 = vsel %vm2829_vm6, %v4269_v7, %v6565_v58  ;;  %v14677_v1 = vld [vmem:[#allocation117_spill] sm:$0xff] }
 0x358   : > { %v11747_v48 = vpop.permute.xlu0 %6747  ;;  %v6570_v39 = vunpack.i.h.bf16 %v11263_v29  ;;  %v6569_v10 = vunpack.i.l.bf16 %v11263_v29  ;;  %v6605_v49 = vunpack.i.h.bf16 %v11321_v30  ;;  %v6604_v46 = vunpack.i.l.bf16 %v11321_v30 }
 0x359   : > { %7042 = vrot.lane.b32.xlu1 %v14671_v52, %s7317_s14  ;;  %v6564_v52 = vunpack.i.l.bf16 %v11235_v50  ;;  %v11791_v50 = vsel %vm2829_vm6, %v11662_v54, %v6535_v2  ;;  %v6600_v2 = vunpack.i.h.bf16 %v14677_v1  ;;  %v6599_v15 = vunpack.i.l.bf16 %v14677_v1 }
 0x35a   : > { %7037 = vrot.lane.b32.xlu0 %v14672_v60, %s7317_s14  ;;  %14674 = vst [vmem:[#allocation197_spill] sm:$0xff] %v11791_v50  ;;  %v4299_v7 = vsel %vm2829_vm6, %v11703_v34, %v6560_v5  ;;  %v6610_v29 = vunpack.i.h.bf16 %v11353_v0  ;;  %v6609_v60 = vunpack.i.l.bf16 %v11353_v0  ;;  %v14678_v30 = vpack.i.bf16 %v14658_v11, %v14657_v18  ;;  %v14680_v34 = vld [vmem:[#allocation111_spill] sm:$0xff] }
 0x35b   : > { %v11772_v37 = vpop.permute.xlu1 %6762  ;;  %v4300_v44 = vsel %vm2829_vm6, %v4268_v25, %v6564_v52  ;;  %v4298_v25 = vsel %vm2829_vm6, %v11699_v36, %v6559_v57  ;;  %v6645_v58 = vunpack.i.h.bf16 %v11417_v24  ;;  %v6644_v52 = vunpack.i.l.bf16 %v11417_v24  ;;  %v14679_v57 = vld [vmem:[#allocation146_spill] sm:$0xff]  ;;  %v14688_v0 = vld [vmem:[#allocation115_spill] sm:$0xff] }
 0x35c   : > { %v11781_v6 = vpop.permute.xlu0 %6757  ;;  %v6639_v36 = vunpack.i.l.bf16 %v11423_v56  ;;  %v11843_v18 = vsel %vm2829_vm6, %v11732_v41, %v6570_v39  ;;  %v11848_v11 = vsel %vm2862_vm7, %v4284_v55, %v6604_v46  ;;  %v4314_v1 = vsel %vm2862_vm7, %v4282_v47, %v6599_v15  ;;  %v14681_v55 = vld [vmem:[#allocation273_spill] sm:$0xff]  ;;  %v14682_v46 = vld [vmem:[#allocation174_spill] sm:$0xff] }
 0x35d   : > { %7052 = vrot.lane.b32.xlu1 %v14675_v19, %s7318_s15  ;;  %v6640_v19 = vunpack.i.h.bf16 %v11423_v56  ;;  %v11851_v56 = vsel %vm2862_vm7, %v4285_v59, %v6605_v49  ;;  %v11860_v41 = vsel %vm2862_vm7, %v4286_v3, %v6609_v60  ;;  %v11863_v39 = vsel %vm2862_vm7, %v4287_v38, %v6610_v29  ;;  %v14689_v3 = vld [vmem:[#allocation78_spill] sm:$0xff] }
 0x35e   : > { %7047 = vrot.lane.b32.xlu0 %v14676_v40, %s7318_s15  ;;  %v11839_v40 = vsel %vm2829_vm6, %v11723_v51, %v6569_v10  ;;  %v11868_v59 = vsel %vm2862_vm7, %v4300_v44, %v6644_v52  ;;  %v11871_v47 = vsel %vm2862_vm7, %v4301_v23, %v6645_v58  ;;  %v6684_v15 = vunpack.i.l.bf16 %v11535_v43  ;;  %v14684_v52 = vld [vmem:[#allocation21_spill] sm:$0xff]  ;;  %v14686_v51 = vld [vmem:[#allocation242_spill] sm:$0xff]  ;;  %v14687_v10 = vld [vmem:[#allocation187_spill] sm:$0xff] }
 0x35f   : > { %v11811_v17 = vpop.permute.xlu1 %6772  ;;  %v4331_v49 = vsel %vm2862_vm7, %v4299_v7, %v6640_v19  ;;  %v6680_v23 = vunpack.i.h.bf16 %v11541_v14  ;;  %v6679_v29 = vunpack.i.l.bf16 %v11541_v14  ;;  %v6690_v19 = vunpack.i.h.bf16 %v14684_v52 }
 0x360   : > { %v11817_v16 = vpop.permute.xlu0 %6767  ;;  %v6700_v5 = vunpack.i.h.bf16 %v14687_v10  ;;  %v6699_v14 = vunpack.i.l.bf16 %v14687_v10  ;;  %v6715_v54 = vunpack.i.h.bf16 %v14688_v0  ;;  %v6709_v42 = vunpack.i.l.bf16 %v14690_v27 }
 0x361   : > { %7062 = vrot.lane.b32.xlu1 %v14678_v30, %s7319_s16  ;;  %v4315_v30 = vsel %vm2862_vm7, %v4283_v53, %v6600_v2  ;;  %v4330_v53 = vsel %vm2862_vm7, %v4298_v25, %v6639_v36  ;;  %v6685_v2 = vunpack.i.h.bf16 %v11535_v43  ;;  %v14683_v25 = vld [vmem:[#allocation184_spill] sm:$0xff]  ;;  %v6689_v36 = vunpack.i.l.bf16 %v14684_v52 }
 0x362   : > { %7057 = vrot.lane.b32.xlu0 %v14679_v57, %s7319_s16  ;;  %v6695_v60 = vunpack.i.h.bf16 %v14683_v25  ;;  %v6694_v7 = vunpack.i.l.bf16 %v14683_v25  ;;  %v6714_v25 = vunpack.i.l.bf16 %v14688_v0  ;;  %v4362_v52 = vsel %vm2895_vm8, %v4330_v53, %v6684_v15 }
 0x363   : > { %v11845_v24 = vpop.permute.xlu1 %6782  ;;  %v4363_v38 = vsel %vm2895_vm8, %v4331_v49, %v6685_v2  ;;  %v4346_v32 = vsel %vm2895_vm8, %v4314_v1, %v6679_v29  ;;  %v4347_v10 = vsel %vm2895_vm8, %v4315_v30, %v6680_v23  ;;  %v14691_v2 = vld [vmem:[#allocation297_spill] sm:$0xff]  ;;  %v14692_v23 = vld [vmem:[#allocation104_spill] sm:$0xff]  ;;  %vm14726_vm2 = vcmask 424960  }
 0x364   : > { %v11855_v57 = vpop.permute.xlu0 %6777  ;;  %v4394_v50 = vsel %vm2928_vm9, %v4362_v52, %v6694_v7  ;;  %v4395_v0 = vsel %vm2928_vm9, %v4363_v38, %v6695_v60  ;;  %v4378_v53 = vsel %vm2928_vm9, %v4346_v32, %v6689_v36  ;;  %v4379_v49 = vsel %vm2928_vm9, %v4347_v10, %v6690_v19  ;;  %v14693_v29 = vld [vmem:[#allocation188_spill] sm:$0xff]  ;;  %vm14729_vm3 = vmmov %vm14726_vm2 }
 0x365   : > { %7072 = vrot.lane.b32.xlu1 %v14681_v55, %s7320_s17  ;;  %v14685_v55 = vld [vmem:[#allocation185_spill] sm:$0xff]  ;;  %v4410_v1 = vsel %vm2961_vm10, %v4378_v53, %v6699_v14  ;;  %v4411_v30 = vsel %vm2961_vm10, %v4379_v49, %v6700_v5  ;;  %v6725_v60 = vunpack.i.h.bf16 %v14693_v29  ;;  %v6724_v7 = vunpack.i.l.bf16 %v14693_v29  ;;  %v14694_v36 = vld [vmem:[#allocation88_spill] sm:$0xff]  ;;  %vm14733_vm4 = vmmov %vm14726_vm2 }
 0x366   : > { %7067 = vrot.lane.b32.xlu0 %v14682_v46, %s7320_s17  ;;  %v6705_v46 = vunpack.i.h.bf16 %v14685_v55  ;;  %v6704_v43 = vunpack.i.l.bf16 %v14685_v55  ;;  %v6710_v55 = vunpack.i.h.bf16 %v14690_v27  ;;  %v4442_v32 = vsel %vm2994_vm11, %v4410_v1, %v6709_v42  ;;  %v14696_v52 = vld [vmem:[#allocation124_spill] sm:$0xff]  ;;  %v14698_v1 = vld [vmem:[#allocation125_spill] sm:$0xff] }
 0x367   : > { %v11881_v44 = vpop.permute.xlu1 %6792  ;;  %v6719_v5 = vunpack.i.l.bf16 %v14694_v36  ;;  %v6730_v42 = vunpack.i.h.bf16 %v14696_v52  ;;  %v6745_v10 = vunpack.i.h.bf16 %v11705_v62  ;;  %v14697_v53 = vpack.i.bf16 %v11690_v28, %v14666_v61 }
 0x368   : > { %v11887_v58 = vpop.permute.xlu0 %6787  ;;  %v4427_v27 = vsel %vm2961_vm10, %v4395_v0, %v6705_v46  ;;  %v6720_v46 = vunpack.i.h.bf16 %v14694_v36  ;;  %v6744_v0 = vunpack.i.l.bf16 %v11705_v62  ;;  %v6740_v49 = vunpack.i.h.bf16 %v11718_v13 }
 0x369   : > { %7082 = vrot.lane.b32.xlu1 %v14686_v51, %s7321_s23  ;;  %v4459_v38 = vsel %vm2994_vm11, %v4427_v27, %v6715_v54  ;;  %v6755_v27 = vunpack.i.h.bf16 %v11743_v12  ;;  %v6749_v61 = vunpack.i.l.bf16 %v11747_v48  ;;  %v4474_v36 = vsel %vm13633_vm12, %v4442_v32, %v6719_v5 }
 0x36a   : > { %7077 = vrot.lane.b32.xlu0 %v14689_v3, %s7321_s23  ;;  %v4426_v3 = vsel %vm2961_vm10, %v4394_v50, %v6704_v43  ;;  %v4443_v50 = vsel %vm2994_vm11, %v4411_v30, %v6710_v55  ;;  %v14695_v43 = vld [vmem:[#allocation86_spill] sm:$0xff]  ;;  %v6729_v55 = vunpack.i.l.bf16 %v14696_v52  ;;  %v4491_v62 = vsel %vm13633_vm12, %v4459_v38, %v6725_v60 }
 0x36b   : > { %v11905_v51 = vpop.permute.xlu1 %6802  ;;  %v4458_v15 = vsel %vm2994_vm11, %v4426_v3, %v6714_v25  ;;  %v6735_v14 = vunpack.i.h.bf16 %v14695_v43  ;;  %v6734_v54 = vunpack.i.l.bf16 %v14695_v43  ;;  %v6739_v3 = vunpack.i.l.bf16 %v11718_v13 }
 0x36c   : > { %v11911_v33 = vpop.permute.xlu0 %6797  ;;  %v4490_v30 = vsel %vm13633_vm12, %v4458_v15, %v6724_v7  ;;  %v4475_v13 = vsel %vm13633_vm12, %v4443_v50, %v6720_v46  ;;  %v11968_v15 = vsel %vm13632_vm13, %v4474_v36, %v6729_v55  ;;  %v4365_v32 = vsel %vm2895_vm8, %v11871_v47, %v6745_v10 }
 0x36d   : > { %7092 = vrot.lane.b32.xlu1 %v14691_v2, %s7322_s25  ;;  %v6754_v2 = vunpack.i.l.bf16 %v11743_v12  ;;  %v11960_v43 = vsel %vm13632_vm13, %v4490_v30, %v6734_v54  ;;  %v11963_v12 = vsel %vm13632_vm13, %v4491_v62, %v6735_v14  ;;  %v11971_v38 = vsel %vm13632_vm13, %v4475_v13, %v6730_v42  ;;  %v14702_v30 = vld [vmem:[#allocation145_spill] sm:$0xff] }
 0x36e   : > { %7087 = vrot.lane.b32.xlu0 %v14692_v23, %s7322_s25  ;;  %v6750_v23 = vunpack.i.h.bf16 %v11747_v48  ;;  %v4364_v48 = vsel %vm2895_vm8, %v11868_v59, %v6744_v0  ;;  %v14699_v50 = vpack.i.bf16 %v11708_v45, %v14669_v20  ;;  %v4349_v60 = vsel %vm2895_vm8, %v11851_v56, %v6740_v49  ;;  %v14700_v59 = vld [vmem:[#allocation139_spill] sm:$0xff] }
 0x36f   : > { %v11929_v19 = vpop.permute.xlu1 %6812  ;;  %v4348_v7 = vsel %vm2895_vm8, %v11848_v11, %v6739_v3  ;;  %v4396_v46 = vsel %vm2928_vm9, %v4364_v48, %v6754_v2  ;;  %v4397_v5 = vsel %vm2928_vm9, %v4365_v32, %v6755_v27  ;;  %v6765_v20 = vunpack.i.h.bf16 %v11772_v37 }
 0x370   : > { %v11935_v25 = vpop.permute.xlu0 %6807  ;;  %v4380_v47 = vsel %vm2928_vm9, %v4348_v7, %v6749_v61  ;;  %v4381_v14 = vsel %vm2928_vm9, %v4349_v60, %v6750_v23  ;;  %v6764_v54 = vunpack.i.l.bf16 %v11772_v37  ;;  %v6760_v56 = vunpack.i.h.bf16 %v11781_v6 }
 0x371   : > { %7102 = vrot.lane.b32.xlu1 %v14697_v53, %s7317_s14  ;;  %v6759_v11 = vunpack.i.l.bf16 %v11781_v6  ;;  %v6775_v55 = vunpack.i.h.bf16 %v11811_v17  ;;  %v6774_v10 = vunpack.i.l.bf16 %v11811_v17  ;;  %v6770_v53 = vunpack.i.h.bf16 %v11817_v16 }
 0x372   : > { %7097 = vrot.lane.b32.xlu0 %v14698_v1, %s7317_s14  ;;  %v6769_v49 = vunpack.i.l.bf16 %v11817_v16  ;;  %v6785_v3 = vunpack.i.h.bf16 %v11845_v24  ;;  %v6784_v37 = vunpack.i.l.bf16 %v11845_v24  ;;  %v14701_v27 = vpack.i.bf16 %v11728_v35, %v14670_v26 }
 0x373   : > { %v11955_v29 = vpop.permute.xlu1 %6822  ;;  %v6780_v6 = vunpack.i.h.bf16 %v11855_v57  ;;  %v6779_v2 = vunpack.i.l.bf16 %v11855_v57  ;;  %v6795_v17 = vunpack.i.h.bf16 %v11881_v44  ;;  %v6794_v1 = vunpack.i.l.bf16 %v11881_v44 }
 0x374   : > { %v11965_v52 = vpop.permute.xlu0 %6817  ;;  %v4428_v16 = vsel %vm2961_vm10, %v4396_v46, %v6764_v54  ;;  %v4429_v24 = vsel %vm2961_vm10, %v4397_v5, %v6765_v20  ;;  %v6790_v62 = vunpack.i.h.bf16 %v11887_v58  ;;  %v6789_v26 = vunpack.i.l.bf16 %v11887_v58 }
 0x375   : > { %7112 = vrot.lane.b32.xlu1 %v14699_v50, %s7318_s15  ;;  %v4412_v61 = vsel %vm2961_vm10, %v4380_v47, %v6759_v11  ;;  %v4413_v57 = vsel %vm2961_vm10, %v4381_v14, %v6760_v56  ;;  %v4460_v36 = vsel %vm2994_vm11, %v4428_v16, %v6774_v10  ;;  %v4461_v44 = vsel %vm2994_vm11, %v4429_v24, %v6775_v55  ;;  %v14704_v47 = vld [vmem:[#allocation173_spill] sm:$0xff] }
 0x376   : > { %7107 = vrot.lane.b32.xlu0 %v14700_v59, %s7318_s15  ;;  %v4444_v48 = vsel %vm2994_vm11, %v4412_v61, %v6769_v49  ;;  %v4445_v32 = vsel %vm2994_vm11, %v4413_v57, %v6770_v53  ;;  %v4492_v50 = vsel %vm13633_vm12, %v4460_v36, %v6784_v37  ;;  %v4493_v58 = vsel %vm13633_vm12, %v4461_v44, %v6785_v3  ;;  %v14705_v49 = vld [vmem:[#allocation148_spill] sm:$0xff]  ;;  %s7330_s15 = smov [#allocation3]  }
 0x377   : > { %v11993_v42 = vpop.permute.xlu1 %6832  ;;  %v14703_v60 = vpack.i.bf16 %v11740_v21, %v11690_v28  ;;  %v4476_v7 = vsel %vm13633_vm12, %v4444_v48, %v6779_v2  ;;  %v4477_v46 = vsel %vm13633_vm12, %v4445_v32, %v6780_v6  ;;  %v12038_v5 = vsel %vm13632_vm13, %v4492_v50, %v6794_v1  ;;  %v14709_v1 = vld [vmem:[#allocation189_spill] sm:$0xff]  ;;  %v14711_v48 = vld [vmem:[#allocation142_spill] sm:$0xff] }
 0x378   : > { %v11999_v0 = vpop.permute.xlu0 %6827  ;;  %v12041_v59 = vsel %vm13632_vm13, %v4493_v58, %v6795_v17  ;;  %v12046_v14 = vsel %vm13632_vm13, %v4476_v7, %v6789_v26  ;;  %v12049_v20 = vsel %vm13632_vm13, %v4477_v46, %v6790_v62  ;;  %v6805_v28 = vunpack.i.h.bf16 %v11905_v51 }
 0x379   : > { %7122 = vrot.lane.b32.xlu1 %v14701_v27, %s7319_s16  ;;  %v6804_v21 = vunpack.i.l.bf16 %v11905_v51  ;;  %v6800_v56 = vunpack.i.h.bf16 %v11911_v33  ;;  %v6799_v11 = vunpack.i.l.bf16 %v11911_v33  ;;  %v6815_v55 = vunpack.i.h.bf16 %v11929_v19 }
 0x37a   : > { %7117 = vrot.lane.b32.xlu0 %v14702_v30, %s7319_s16  ;;  %v6814_v10 = vunpack.i.l.bf16 %v11929_v19  ;;  %v6655_v3 = vunpack.i.h.bf16 %v14705_v49  ;;  %v6654_v37 = vunpack.i.l.bf16 %v14705_v49  ;;  %v6810_v27 = vunpack.i.h.bf16 %v11935_v25  ;;  %s7252_s16 = sshll.u32 %s7330_s15, 4  ;;  %s7253_s16 = int_to_ptr.vmem [resolvable:$false] %s7252_s16 }
 0x37b   : > { %v12019_v23 = vpop.permute.xlu1 %6842  ;;  %v6809_v51 = vunpack.i.l.bf16 %v11935_v25  ;;  %v14706_v6 = vpack.i.bf16 %v11760_v9, %v11708_v45  ;;  %v14707_v33 = vunpack.i.l.bf16 %v11448_v31  ;;  %v14708_v2 = vunpack.i.h.bf16 %v11448_v31 }
 0x37c   : > { %v12025_v13 = vpop.permute.xlu0 %6837  ;;  %v7161_v25 = vpack.i.bf16 %v11963_v12, %v11960_v43  ;;  %v7156_v45 = vpack.i.bf16 %v11971_v38, %v11968_v15  ;;  %v7171_v9 = vpack.i.bf16 %v12041_v59, %v12038_v5  ;;  %v4350_v16 = vsel %vm2895_vm8, %v11860_v41, %v6799_v11 }
 0x37d   : > { %7132 = vrot.lane.b32.xlu1 %v14703_v60, %s7320_s17  ;;  %v4334_v19 = vsel %vm2862_vm7, %v11839_v40, %v14707_v33  ;;  %v4335_v17 = vsel %vm2862_vm7, %v11843_v18, %v14708_v2  ;;  %v7166_v40 = vpack.i.bf16 %v12049_v20, %v12046_v14  ;;  %v4351_v43 = vsel %vm2895_vm8, %v11863_v39, %v6800_v56 }
 0x37e   : > { %7127 = vrot.lane.b32.xlu0 %v14704_v47, %s7320_s17  ;;  %v4366_v31 = vsel %vm2895_vm8, %v4334_v19, %v6804_v21  ;;  %v4367_v30 = vsel %vm2895_vm8, %v4335_v17, %v6805_v28  ;;  %v4382_v24 = vsel %vm2928_vm9, %v4350_v16, %v6809_v51  ;;  %v4383_v62 = vsel %vm2928_vm9, %v4351_v43, %v6810_v27  ;;  %v14717_v43 = vld [vmem:[#allocation197_spill] sm:$0xff]  ;;  %s7254_s17 = scalar_lea.vmem %s7253_s16, 512 }
 0x37f   : > { %v12053_v54 = vpop.permute.xlu1 %6852  ;;  %v4398_v12 = vsel %vm2928_vm9, %v4366_v31, %v6814_v10  ;;  %v4399_v15 = vsel %vm2928_vm9, %v4367_v30, %v6815_v55  ;;  %v6825_v26 = vunpack.i.h.bf16 %v11955_v29  ;;  %v6824_v61 = vunpack.i.l.bf16 %v11955_v29 }
 0x380   : > { %v12059_v53 = vpop.permute.xlu0 %6847  ;;  %v14710_v41 = vpack.i.bf16 %v11775_v8, %v11728_v35  ;;  %v6820_v39 = vunpack.i.h.bf16 %v11965_v52  ;;  %v6819_v57 = vunpack.i.l.bf16 %v11965_v52  ;;  %v6835_v36 = vunpack.i.h.bf16 %v11993_v42 }
 0x381   : > { %7142 = vrot.lane.b32.xlu1 %v14706_v6, %s7321_s23  ;;  %v6834_v44 = vunpack.i.l.bf16 %v11993_v42  ;;  %v6830_v32 = vunpack.i.h.bf16 %v11999_v0  ;;  %v6829_v29 = vunpack.i.l.bf16 %v11999_v0  ;;  %v6845_v50 = vunpack.i.h.bf16 %v12019_v23 }
 0x382   : > { %7137 = vrot.lane.b32.xlu0 %v14709_v1, %s7321_s23  ;;  %v6844_v35 = vunpack.i.l.bf16 %v12019_v23  ;;  %v6840_v58 = vunpack.i.h.bf16 %v12025_v13  ;;  %v6839_v52 = vunpack.i.l.bf16 %v12025_v13  ;;  %v6855_v60 = vunpack.i.h.bf16 %v12053_v54 }
 0x383   : > { %v12089_v18 = vpop.permute.xlu1 %6862  ;;  %v6854_v42 = vunpack.i.l.bf16 %v12053_v54  ;;  %v4430_v46 = vsel %vm2961_vm10, %v4398_v12, %v6824_v61  ;;  %v4431_v0 = vsel %vm2961_vm10, %v4399_v15, %v6825_v26  ;;  %v6850_v5 = vunpack.i.h.bf16 %v12059_v53 }
 0x384   : > { %v12097_v38 = vpop.permute.xlu0 %6857  ;;  %v6849_v23 = vunpack.i.l.bf16 %v12059_v53  ;;  %v4414_v59 = vsel %vm2961_vm10, %v4382_v24, %v6819_v57  ;;  %v4415_v13 = vsel %vm2961_vm10, %v4383_v62, %v6820_v39  ;;  %v4462_v47 = vsel %vm2994_vm11, %v4430_v46, %v6834_v44 }
 0x385   : > { %7152 = vrot.lane.b32.xlu1 %v14710_v41, %s7322_s25  ;;  %v4463_v14 = vsel %vm2994_vm11, %v4431_v0, %v6835_v36  ;;  %v4446_v20 = vsel %vm2994_vm11, %v4414_v59, %v6829_v29  ;;  %v4447_v28 = vsel %vm2994_vm11, %v4415_v13, %v6830_v32  ;;  %v4494_v21 = vsel %vm13633_vm12, %v4462_v47, %v6844_v35 }
 0x386   : > { %7147 = vrot.lane.b32.xlu0 %v14711_v48, %s7322_s25  ;;  %v4495_v54 = vsel %vm13633_vm12, %v4463_v14, %v6845_v50  ;;  %v4478_v11 = vsel %vm13633_vm12, %v4446_v20, %v6839_v52  ;;  %v4479_v55 = vsel %vm13633_vm12, %v4447_v28, %v6840_v58  ;;  %v4526_v10 = vsel %vm13632_vm13, %v4494_v21, %v6854_v42 }
 0x387   : > { %v12117_v8 = vpop.permute.xlu1 %6872  ;;  %v4527_v53 = vsel %vm13632_vm13, %v4495_v54, %v6855_v60  ;;  %v4510_v51 = vsel %vm13632_vm13, %v4478_v11, %v6849_v23  ;;  %v4511_v6 = vsel %vm13632_vm13, %v4479_v55, %v6850_v5  ;;  %v6865_v33 = vunpack.i.h.bf16 %v12089_v18 }
 0x388   : > { %v12123_v7 = vpop.permute.xlu0 %6867  ;;  %v6864_v19 = vunpack.i.l.bf16 %v12089_v18  ;;  %v14712_v2 = vunpack.i.l.bf16 %v14680_v34  ;;  %v14713_v1 = vunpack.i.h.bf16 %v14680_v34  ;;  %v6859_v31 = vunpack.i.l.bf16 %v12097_v38  ;;  %v14715_v18 = vld [vmem:[#allocation87_spill] sm:$0xff] }
 0x389   : > { %7162 = vrot.lane.b32.xlu1 %v7161_v25, %s7328_s10  ;;  %v14714_v30 = vunpack.i.l.bf16 %v11347_v22  ;;  %v14716_v16 = vunpack.i.h.bf16 %v11347_v22  ;;  %v7181_v34 = vpack.i.bf16 %v4527_v53, %v4526_v10  ;;  %v7176_v15 = vpack.i.bf16 %v4511_v6, %v4510_v51 }
 0x38a   : > { %7157 = vrot.lane.b32.xlu0 %v7156_v45, %s7328_s10  ;;  %v4304_v17 = vsel %vm2829_vm6, %v11712_v63, %v14712_v2  ;;  %v4305_v25 = vsel %vm2829_vm6, %v11716_v4, %v14713_v1  ;;  %v6860_v45 = vunpack.i.h.bf16 %v12097_v38  ;;  %v6875_v38 = vunpack.i.h.bf16 %v12117_v8  ;;  %v14718_v2 = vld [vmem:[#allocation216_spill] sm:$0xff] }
 0x38b   : > { %v6883_v56 = vpop.permute.xlu1 %6882  ;;  %v4321_v63 = vsel %vm2862_vm7, %v14717_v43, %v14716_v16  ;;  %v4336_v4 = vsel %vm2862_vm7, %v4304_v17, %v6654_v37  ;;  %v6874_v24 = vunpack.i.l.bf16 %v12117_v8  ;;  %v6870_v61 = vunpack.i.h.bf16 %v12123_v7  ;;  %v14720_v1 = vld [vmem:[#allocation160_spill] sm:$0xff]  ;;  %v14722_v16 = vld [vmem:[#allocation167_spill] sm:$0xff] }
 0x38c   : > { %v6878_v27 = vpop.permute.xlu0 %6877  ;;  %v4368_v22 = vsel %vm2895_vm8, %v4336_v4, %v6864_v19  ;;  %v6869_v37 = vunpack.i.l.bf16 %v12123_v7  ;;  %v4353_v49 = vsel %vm2895_vm8, %v4321_v63, %v6860_v45  ;;  %v6885_v41 = vunpack.i.h.bf16 %v6883_v56  ;;  %v14723_v63 = vld [vmem:[#allocation154_spill] sm:$0xff] }
 0x38d   : > { %7172 = vrot.lane.b32.xlu1 %v7171_v9, %s7328_s10  ;;  %v4320_v9 = vsel %vm2862_vm7, %v14715_v18, %v14714_v30  ;;  %v6884_v39 = vunpack.i.l.bf16 %v6883_v56  ;;  %v6880_v57 = vunpack.i.h.bf16 %v6878_v27  ;;  %v6879_v36 = vunpack.i.l.bf16 %v6878_v27 }
 0x38e   : > { %7167 = vrot.lane.b32.xlu0 %v7166_v40, %s7328_s10  ;;  %v4337_v40 = vsel %vm2862_vm7, %v4305_v25, %v6655_v3  ;;  %v4352_v3 = vsel %vm2895_vm8, %v4320_v9, %v6859_v31  ;;  %v4400_v29 = vsel %vm2928_vm9, %v4368_v22, %v6874_v24  ;;  %v4385_v60 = vsel %vm2928_vm9, %v4353_v49, %v6870_v61  ;;  %v14730_v22 = vld [vmem:[#allocation157_spill] sm:$0xff]  ;;  %v14732_v61 = vld [vmem:[#allocation176_spill] sm:$0xff] }
 0x38f   : > { %v6893_v12 = vpop.permute.xlu1 %6892  ;;  %v4369_v26 = vsel %vm2895_vm8, %v4337_v40, %v6865_v33  ;;  %v4384_v52 = vsel %vm2928_vm9, %v4352_v3, %v6869_v37  ;;  %v4432_v46 = vsel %vm2961_vm10, %v4400_v29, %v6884_v39  ;;  %v4417_v13 = vsel %vm2961_vm10, %v4385_v60, %v6880_v57  ;;  %v14735_v3 = vld [vmem:[#allocation14_spill] sm:$0xff]  ;;  %v14736_v39 = vld [vmem:[#allocation13_spill] sm:$0xff]  ;;  %v14738_v29 = vld [vmem:[#allocation264_spill] sm:$0xff] }
 0x390   : > { %v6888_v62 = vpop.permute.xlu0 %6887  ;;  %v6895_v44 = vunpack.i.h.bf16 %v6893_v12  ;;  %v6894_v48 = vunpack.i.l.bf16 %v6893_v12  ;;  %v4401_v50 = vsel %vm2928_vm9, %v4369_v26, %v6875_v38  ;;  %v4416_v59 = vsel %vm2961_vm10, %v4384_v52, %v6879_v36  ;;  %v14740_v60 = vld [vmem:[#allocation259_spill] sm:$0xff] }
 0x391   : > { %7182 = vrot.lane.b32.xlu1 %v7181_v34, %s7328_s10  ;;  %v6890_v35 = vunpack.i.h.bf16 %v6888_v62  ;;  %v6889_v8 = vunpack.i.l.bf16 %v6888_v62  ;;  %v4433_v0 = vsel %vm2961_vm10, %v4401_v50, %v6885_v41  ;;  %v14719_v17 = vunpack.i.l.bf16 %v14718_v2  ;;  %v14725_v34 = vld [vmem:[#allocation171_spill] sm:$0xff] }
 0x392   : > { %7177 = vrot.lane.b32.xlu0 %v7176_v15, %s7328_s10  ;;  %v4464_v47 = vsel %vm2994_vm11, %v4432_v46, %v6894_v48  ;;  %v4465_v14 = vsel %vm2994_vm11, %v4433_v0, %v6895_v44  ;;  %v14721_v9 = vunpack.i.h.bf16 %v14718_v2  ;;  %v14724_v4 = vunpack.i.l.bf16 %v14723_v63  ;;  %v14728_v15 = vld [vmem:[#allocation172_spill] sm:$0xff]  ;;  %v14737_v44 = vld [vmem:[#allocation161_spill] sm:$0xff]  ;;  %v14741_v0 = vld [vmem:[#allocation94_spill] sm:$0xff] }
 0x393   : > { %v6903_v32 = vpop.permute.xlu1 %6902  ;;  %v4448_v28 = vsel %vm2994_vm11, %v4416_v59, %v6889_v8  ;;  %v4449_v21 = vsel %vm2994_vm11, %v4417_v13, %v6890_v35  ;;  %v12205_v25 = vsel %vm13634_vm15, %v14720_v1, %v14719_v17  ;;  %v14727_v40 = vunpack.i.h.bf16 %v14723_v63  ;;  %v14739_v8 = vld [vmem:[#allocation166_spill] sm:$0xff]  ;;  %v14742_v59 = vld [vmem:[#allocation71_spill] sm:$0xff]  ;;  %v14749_v2 = vld [vmem:[#allocation113_spill] sm:$0xff] }
 0x394   : > { %v6898_v58 = vpop.permute.xlu0 %6897  ;;  %v6905_v42 = vunpack.i.h.bf16 %v6903_v32  ;;  %v6904_v7 = vunpack.i.l.bf16 %v6903_v32  ;;  %v12215_v43 = vsel %vm13634_vm15, %v14722_v16, %v14721_v9  ;;  %v12221_v12 = vsel %vm14726_vm2, %v14725_v34, %v14724_v4  ;;  %v14751_v4 = vld [vmem:[#allocation156_spill] sm:$0xff] }
 0x395   : > { %v6900_v5 = vunpack.i.h.bf16 %v6898_v58  ;;  %v6899_v23 = vunpack.i.l.bf16 %v6898_v58  ;;  %v12227_v38 = vsel %vm14729_vm3, %v14728_v15, %v14727_v40  ;;  %v14731_v26 = vunpack.i.l.bf16 %v14730_v22  ;;  %vm14753_vm3 = vmmov %vm14726_vm2 }
 0x396   : > { %v4496_v55 = vsel %vm13633_vm12, %v4464_v47, %v6904_v7  ;;  %v4497_v10 = vsel %vm13633_vm12, %v4465_v14, %v6905_v42  ;;  %v14734_v49 = vunpack.i.h.bf16 %v14730_v22  ;;  %v6380_v57 = vunpack.i.h.bf16 %v14736_v39 }
 0x397   : > { %v6913_v20 = vpop.permute.xlu1 %6912  ;;  %v4480_v51 = vsel %vm13633_vm12, %v4448_v28, %v6899_v23  ;;  %v4481_v6 = vsel %vm13633_vm12, %v4449_v21, %v6900_v5  ;;  %v12235_v37 = vsel %vm14733_vm4, %v14732_v61, %v14731_v26  ;;  %v6379_v36 = vunpack.i.l.bf16 %v14736_v39  ;;  %v14744_v21 = vld [vmem:[#allocation42_spill] sm:$0xff]  ;;  %vm14755_vm4 = vmmov %vm14726_vm2 }
 0x398   : > { %v6915_v54 = vunpack.i.h.bf16 %v6913_v20  ;;  %v6914_v56 = vunpack.i.l.bf16 %v6913_v20  ;;  %v6908_v11 = vpop.permute.xlu0 %6907  ;;  %v12241_v41 = vsel %vm14726_vm2, %v14735_v3, %v14734_v49  ;;  %v6130_v48 = vunpack.i.h.bf16 %v14737_v44  ;;  %v14743_v20 = vld [vmem:[#allocation43_spill] sm:$0xff] }
 0x399   : > { %v6910_v53 = vunpack.i.h.bf16 %v6908_v11  ;;  %v6909_v27 = vunpack.i.l.bf16 %v6908_v11  ;;  %v6129_v32 = vunpack.i.l.bf16 %v14737_v44  ;;  %v6420_v50 = vunpack.i.h.bf16 %v14738_v29  ;;  %v14759_v44 = vld [vmem:[#allocation31_spill] sm:$0xff] }
 0x39a   : > { %v4528_v33 = vsel %vm13632_vm13, %v4496_v55, %v6914_v56  ;;  %v4529_v19 = vsel %vm13632_vm13, %v4497_v10, %v6915_v54  ;;  %v6419_v35 = vunpack.i.l.bf16 %v14738_v29  ;;  %v6165_v58 = vunpack.i.h.bf16 %v14739_v8  ;;  %v14745_v56 = vld [vmem:[#allocation135_spill] sm:$0xff] }
 0x39b   : > { %v7191_v45 = vpack.i.bf16 %v4529_v19, %v4528_v33  ;;  %v4512_v31 = vsel %vm13632_vm13, %v4480_v51, %v6909_v27  ;;  %v4513_v30 = vsel %vm13632_vm13, %v4481_v6, %v6910_v53  ;;  %v12209_v18 = vpop.permute.xlu1 %6922  ;;  %v6164_v52 = vunpack.i.l.bf16 %v14739_v8  ;;  %v14746_v10 = vld [vmem:[#allocation231_spill] sm:$0xff]  ;;  %v14747_v27 = vld [vmem:[#allocation230_spill] sm:$0xff] }
 0x39c   : > { %v7186_v24 = vpack.i.bf16 %v4513_v30, %v4512_v31  ;;  %v12229_v62 = vpop.permute.xlu0 %6917  ;;  %v6160_v42 = vunpack.i.h.bf16 %v14740_v60  ;;  %v6159_v7 = vunpack.i.l.bf16 %v14740_v60  ;;  %v6170_v5 = vunpack.i.h.bf16 %v14741_v0  ;;  %v14748_v6 = vld [vmem:[#allocation110_spill] sm:$0xff]  ;;  %v14762_v8 = vld [vmem:[#allocation299_spill] sm:$0xff] }
 0x39d   : > { %7192 = vrot.lane.b32.xlu1 %v7191_v45, %s7328_s10  ;;  %v6169_v23 = vunpack.i.l.bf16 %v14741_v0  ;;  %v6460_v13 = vunpack.i.h.bf16 %v14742_v59  ;;  %v6459_v47 = vunpack.i.l.bf16 %v14742_v59  ;;  %v4227_v28 = vsel %vm258_vm0, %v14743_v20, %v6380_v57  ;;  %v14750_v45 = vld [vmem:[#allocation40_spill] sm:$0xff]  ;;  %v14768_v0 = vld [vmem:[#allocation67_spill] sm:$0xff] }
 0x39e   : > { %7187 = vrot.lane.b32.xlu0 %v7186_v24, %s7328_s10  ;;  %v4226_v54 = vsel %vm258_vm0, %v14744_v21, %v6379_v36  ;;  %v6500_v11 = vunpack.i.h.bf16 %v14745_v56  ;;  %v6499_v55 = vunpack.i.l.bf16 %v14745_v56  ;;  %v4243_v53 = vsel %vm258_vm0, %v14746_v10, %v6420_v50 }
 0x39f   : > { %v6933_v46 = vpop.permute.xlu1 %6932  ;;  %v4242_v51 = vsel %vm258_vm0, %v14747_v27, %v6419_v35  ;;  %v6540_v33 = vunpack.i.h.bf16 %v14748_v6  ;;  %v6539_v19 = vunpack.i.l.bf16 %v14748_v6  ;;  %v6580_v17 = vunpack.i.h.bf16 %v14749_v2 }
 0x3a0   : > { %v6928_v14 = vpop.permute.xlu0 %6927  ;;  %v6579_v1 = vunpack.i.l.bf16 %v14749_v2  ;;  %v6620_v31 = vunpack.i.h.bf16 %v14750_v45  ;;  %v6619_v30 = vunpack.i.l.bf16 %v14750_v45  ;;  %v4258_v16 = vsel %vm2796_vm5, %v4226_v54, %v6459_v47 }
 0x3a1   : > { %v4259_v63 = vsel %vm2796_vm5, %v4227_v28, %v6460_v13  ;;  %v6660_v34 = vunpack.i.h.bf16 %v14751_v4  ;;  %v6659_v40 = vunpack.i.l.bf16 %v14751_v4  ;;  %v4274_v24 = vsel %vm2796_vm5, %v4242_v51, %v6499_v55 }
 0x3a2   : > { %v4275_v22 = vsel %vm2796_vm5, %v4243_v53, %v6500_v11  ;;  %v6925_v26 = vunpack.i.h.bf16 %v12209_v18  ;;  %v6924_v61 = vunpack.i.l.bf16 %v12209_v18  ;;  %v4290_v49 = vsel %vm2829_vm6, %v4258_v16, %v6539_v19 }
 0x3a3   : > { %v6943_v9 = vpop.permute.xlu1 %6942  ;;  %v4291_v3 = vsel %vm2829_vm6, %v4259_v63, %v6540_v33  ;;  %v6920_v39 = vunpack.i.h.bf16 %v12229_v62  ;;  %v6919_v57 = vunpack.i.l.bf16 %v12229_v62  ;;  %v4306_v36 = vsel %vm2829_vm6, %v4274_v24, %v6579_v1 }
 0x3a4   : > { %v6938_v15 = vpop.permute.xlu0 %6937  ;;  %v4307_v29 = vsel %vm2829_vm6, %v4275_v22, %v6580_v17  ;;  %v4322_v50 = vsel %vm2862_vm7, %v4290_v49, %v6619_v30  ;;  %v4323_v35 = vsel %vm2862_vm7, %v4291_v3, %v6620_v31  ;;  %v4338_v13 = vsel %vm2862_vm7, %v4306_v36, %v6659_v40 }
 0x3a5   : > { %v4339_v18 = vsel %vm2862_vm7, %v4307_v29, %v6660_v34  ;;  %v6935_v47 = vunpack.i.h.bf16 %v6933_v46  ;;  %v6934_v20 = vunpack.i.l.bf16 %v6933_v46  ;;  %v4370_v21 = vsel %vm2895_vm8, %v4338_v13, %v6924_v61 }
 0x3a6   : > { %v4371_v62 = vsel %vm2895_vm8, %v4339_v18, %v6925_v26  ;;  %v6930_v54 = vunpack.i.h.bf16 %v6928_v14  ;;  %v6929_v56 = vunpack.i.l.bf16 %v6928_v14  ;;  %v4354_v11 = vsel %vm2895_vm8, %v4322_v50, %v6919_v57 }
 0x3a7   : > { %v6953_v59 = vpop.permute.xlu1 %6952  ;;  %v4355_v55 = vsel %vm2895_vm8, %v4323_v35, %v6920_v39  ;;  %v6945_v10 = vunpack.i.h.bf16 %v6943_v9  ;;  %v6944_v53 = vunpack.i.l.bf16 %v6943_v9  ;;  %v6940_v27 = vunpack.i.h.bf16 %v6938_v15 }
 0x3a8   : > { %v6948_v28 = vpop.permute.xlu0 %6947  ;;  %v6939_v51 = vunpack.i.l.bf16 %v6938_v15  ;;  %v6955_v6 = vunpack.i.h.bf16 %v6953_v59  ;;  %v6954_v33 = vunpack.i.l.bf16 %v6953_v59  ;;  %v4402_v46 = vsel %vm2928_vm9, %v4370_v21, %v6934_v20  ;;  %v14752_v20 = vld [vmem:[#allocation12_spill] sm:$0xff] }
 0x3a9   : > { %v4403_v2 = vsel %vm2928_vm9, %v4371_v62, %v6935_v47  ;;  %v6950_v17 = vunpack.i.h.bf16 %v6948_v28  ;;  %v6949_v1 = vunpack.i.l.bf16 %v6948_v28  ;;  %v4386_v14 = vsel %vm2928_vm9, %v4354_v11, %v6929_v56  ;;  %v14754_v11 = vld [vmem:[#allocation27_spill] sm:$0xff] }
 0x3aa   : > { %v4387_v31 = vsel %vm2928_vm9, %v4355_v55, %v6930_v54  ;;  %v4434_v9 = vsel %vm2961_vm10, %v4402_v46, %v6944_v53  ;;  %v4435_v63 = vsel %vm2961_vm10, %v4403_v2, %v6945_v10  ;;  %v4418_v40 = vsel %vm2961_vm10, %v4386_v14, %v6939_v51  ;;  %v14756_v10 = vld [vmem:[#allocation179_spill] sm:$0xff]  ;;  %v14767_v14 = vld [vmem:[#allocation96_spill] sm:$0xff] }
 0x3ab   : > { %v6963_v19 = vpop.permute.xlu1 %6962  ;;  %v4419_v15 = vsel %vm2961_vm10, %v4387_v31, %v6940_v27  ;;  %v4466_v24 = vsel %vm2994_vm11, %v4434_v9, %v6954_v33  ;;  %v4467_v22 = vsel %vm2994_vm11, %v4435_v63, %v6955_v6  ;;  %v4450_v61 = vsel %vm2994_vm11, %v4418_v40, %v6949_v1  ;;  %v14761_v33 = vld [vmem:[#allocation276_spill] sm:$0xff] }
 0x3ac   : > { %v6958_v45 = vpop.permute.xlu0 %6957  ;;  %v6965_v30 = vunpack.i.h.bf16 %v6963_v19  ;;  %v6964_v16 = vunpack.i.l.bf16 %v6963_v19  ;;  %v4451_v49 = vsel %vm2994_vm11, %v4419_v15, %v6950_v17  ;;  %v12319_v28 = vsel %vm14753_vm3, %v14752_v20, %v6129_v32  ;;  %v14757_v32 = vld [vmem:[#allocation180_spill] sm:$0xff]  ;;  %vm14758_vm3 = vmmov %vm14726_vm2  ;;  %v14766_v17 = vld [vmem:[#allocation99_spill] sm:$0xff] }
 0x3ad   : > { %v6960_v4 = vunpack.i.h.bf16 %v6958_v45  ;;  %v6959_v34 = vunpack.i.l.bf16 %v6958_v45  ;;  %v12329_v55 = vsel %vm14755_vm4, %v14754_v11, %v6130_v48  ;;  %v12335_v53 = vsel %vm14726_vm2, %v14756_v10, %v6164_v52  ;;  %vm14760_vm4 = vmmov %vm14726_vm2  ;;  %v14772_v15 = vld [vmem:[#allocation49_spill] sm:$0xff]  ;;  %v14779_v11 = vld [vmem:[#allocation155_spill] sm:$0xff] }
 0x3ae   : > { %v4498_v36 = vsel %vm13633_vm12, %v4466_v24, %v6964_v16  ;;  %v4499_v29 = vsel %vm13633_vm12, %v4467_v22, %v6965_v30  ;;  %v12341_v27 = vsel %vm14758_vm3, %v14757_v32, %v6165_v58  ;;  %v12349_v48 = vsel %vm14760_vm4, %v14759_v44, %v6159_v7  ;;  %vm14763_vm3 = vmmov %vm14726_vm2  ;;  %v14769_v16 = vld [vmem:[#allocation256_spill] sm:$0xff]  ;;  %v14773_v22 = vld [vmem:[#allocation85_spill] sm:$0xff] }
 0x3af   : > { %v6973_v26 = vpop.permute.xlu1 %6972  ;;  %v4482_v59 = vsel %vm13633_vm12, %v4450_v61, %v6959_v34  ;;  %v4483_v13 = vsel %vm13633_vm12, %v4451_v49, %v6960_v4  ;;  %v12355_v52 = vsel %vm14726_vm2, %v14761_v33, %v6160_v42  ;;  %v6385_v19 = vunpack.i.h.bf16 %v14762_v8  ;;  %vm14764_vm4 = vmmov %vm14726_vm2  ;;  %v14765_v42 = vld [vmem:[#allocation137_spill] sm:$0xff]  ;;  %v14771_v34 = vld [vmem:[#allocation64_spill] sm:$0xff] }
 0x3b0   : > { %v6975_v3 = vunpack.i.h.bf16 %v6973_v26  ;;  %v6974_v39 = vunpack.i.l.bf16 %v6973_v26  ;;  %v6968_v57 = vpop.permute.xlu0 %6967  ;;  %v6384_v58 = vunpack.i.l.bf16 %v14762_v8  ;;  %v12364_v46 = vsel %vm14763_vm3, %v12205_v25, %v6169_v23  ;;  %v14774_v49 = vld [vmem:[#allocation240_spill] sm:$0xff] }
 0x3b1   : > { %v6970_v50 = vunpack.i.h.bf16 %v6968_v57  ;;  %v6969_v35 = vunpack.i.l.bf16 %v6968_v57  ;;  %v12370_v60 = vsel %vm14764_vm4, %v12215_v43, %v6170_v5  ;;  %v6425_v7 = vunpack.i.h.bf16 %v14765_v42  ;;  %v14770_v5 = vld [vmem:[#allocation18_spill] sm:$0xff] }
 0x3b2   : > { %v4530_v18 = vsel %vm13632_vm13, %v4498_v36, %v6974_v39  ;;  %v4531_v47 = vsel %vm13632_vm13, %v4499_v29, %v6975_v3  ;;  %v6424_v2 = vunpack.i.l.bf16 %v14765_v42  ;;  %v6205_v1 = vunpack.i.h.bf16 %v14766_v17  ;;  %v14775_v39 = vld [vmem:[#allocation239_spill] sm:$0xff]  ;;  %v14776_v36 = vld [vmem:[#allocation45_spill] sm:$0xff] }
 0x3b3   : > { %v7201_v21 = vpack.i.bf16 %v4531_v47, %v4530_v18  ;;  %v4514_v62 = vsel %vm13632_vm13, %v4482_v59, %v6969_v35  ;;  %v4515_v54 = vsel %vm13632_vm13, %v4483_v13, %v6970_v50  ;;  %v12323_v56 = vpop.permute.xlu1 %6982  ;;  %v6204_v45 = vunpack.i.l.bf16 %v14766_v17  ;;  %v14777_v35 = vld [vmem:[#allocation207_spill] sm:$0xff]  ;;  %v14778_v18 = vld [vmem:[#allocation116_spill] sm:$0xff] }
 0x3b4   : > { %v7196_v51 = vpack.i.bf16 %v4515_v54, %v4514_v62  ;;  %v12343_v6 = vpop.permute.xlu0 %6977  ;;  %v6200_v31 = vunpack.i.h.bf16 %v14767_v14  ;;  %v6199_v25 = vunpack.i.l.bf16 %v14767_v14  ;;  %v6209_v30 = vunpack.i.l.bf16 %v14768_v0  ;;  %v14785_v17 = vld [vmem:[#allocation251_spill] sm:$0xff] }
 0x3b5   : > { %7202 = vrot.lane.b32.xlu1 %v7201_v21, %s7328_s10  ;;  %v6245_v43 = vunpack.i.h.bf16 %v14769_v16  ;;  %v6465_v9 = vunpack.i.h.bf16 %v14770_v5  ;;  %v6464_v63 = vunpack.i.l.bf16 %v14770_v5  ;;  %v4229_v40 = vsel %vm258_vm0, %v14771_v34, %v6385_v19 }
 0x3b6   : > { %7197 = vrot.lane.b32.xlu0 %v7196_v51, %s7328_s10  ;;  %v4228_v24 = vsel %vm258_vm0, %v14772_v15, %v6384_v58  ;;  %v6505_v26 = vunpack.i.h.bf16 %v14773_v22  ;;  %v6504_v61 = vunpack.i.l.bf16 %v14773_v22  ;;  %v4245_v3 = vsel %vm258_vm0, %v14774_v49, %v6425_v7 }
 0x3b7   : > { %v6993_v23 = vpop.permute.xlu1 %6992  ;;  %v4244_v57 = vsel %vm258_vm0, %v14775_v39, %v6424_v2  ;;  %v6545_v29 = vunpack.i.h.bf16 %v14776_v36  ;;  %v6544_v50 = vunpack.i.l.bf16 %v14776_v36  ;;  %v6585_v59 = vunpack.i.h.bf16 %v14777_v35 }
 0x3b8   : > { %v6988_v4 = vpop.permute.xlu0 %6987  ;;  %v6584_v13 = vunpack.i.l.bf16 %v14777_v35  ;;  %v6625_v47 = vunpack.i.h.bf16 %v14778_v18  ;;  %v6624_v20 = vunpack.i.l.bf16 %v14778_v18  ;;  %v4260_v62 = vsel %vm2796_vm5, %v4228_v24, %v6464_v63 }
 0x3b9   : > { %v4261_v54 = vsel %vm2796_vm5, %v4229_v40, %v6465_v9  ;;  %v6665_v10 = vunpack.i.h.bf16 %v14779_v11  ;;  %v6664_v32 = vunpack.i.l.bf16 %v14779_v11  ;;  %v4276_v44 = vsel %vm2796_vm5, %v4244_v57, %v6504_v61 }
 0x3ba   : > { %v4277_v33 = vsel %vm2796_vm5, %v4245_v3, %v6505_v26  ;;  %v6985_v8 = vunpack.i.h.bf16 %v12323_v56  ;;  %v6984_v19 = vunpack.i.l.bf16 %v12323_v56  ;;  %v4292_v58 = vsel %vm2829_vm6, %v4260_v62, %v6544_v50 }
 0x3bb   : > { %v7003_v21 = vpop.permute.xlu1 %7002  ;;  %v4293_v42 = vsel %vm2829_vm6, %v4261_v54, %v6545_v29  ;;  %v6980_v7 = vunpack.i.h.bf16 %v12343_v6  ;;  %v6979_v2 = vunpack.i.l.bf16 %v12343_v6  ;;  %v4308_v5 = vsel %vm2829_vm6, %v4276_v44, %v6584_v13 }
 0x3bc   : > { %v6998_v51 = vpop.permute.xlu0 %6997  ;;  %v4309_v9 = vsel %vm2829_vm6, %v4277_v33, %v6585_v59  ;;  %v4324_v63 = vsel %vm2862_vm7, %v4292_v58, %v6624_v20  ;;  %v4325_v34 = vsel %vm2862_vm7, %v4293_v42, %v6625_v47  ;;  %v4340_v15 = vsel %vm2862_vm7, %v4308_v5, %v6664_v32 }
 0x3bd   : > { %v4341_v56 = vsel %vm2862_vm7, %v4309_v9, %v6665_v10  ;;  %v6995_v24 = vunpack.i.h.bf16 %v6993_v23  ;;  %v6994_v22 = vunpack.i.l.bf16 %v6993_v23  ;;  %v4372_v61 = vsel %vm2895_vm8, %v4340_v15, %v6984_v19 }
 0x3be   : > { %v4373_v6 = vsel %vm2895_vm8, %v4341_v56, %v6985_v8  ;;  %v6990_v49 = vunpack.i.h.bf16 %v6988_v4  ;;  %v6989_v3 = vunpack.i.l.bf16 %v6988_v4  ;;  %v4357_v39 = vsel %vm2895_vm8, %v4325_v34, %v6980_v7 }
 0x3bf   : > { %v7013_v40 = vpop.permute.xlu1 %7012  ;;  %v4356_v57 = vsel %vm2895_vm8, %v4324_v63, %v6979_v2  ;;  %v7005_v36 = vunpack.i.h.bf16 %v7003_v21  ;;  %v7004_v29 = vunpack.i.l.bf16 %v7003_v21  ;;  %v7000_v50 = vunpack.i.h.bf16 %v6998_v51 }
 0x3c0   : > { %v7008_v26 = vpop.permute.xlu0 %7007  ;;  %v6999_v35 = vunpack.i.l.bf16 %v6998_v51  ;;  %v7015_v59 = vunpack.i.h.bf16 %v7013_v40  ;;  %v7014_v13 = vunpack.i.l.bf16 %v7013_v40  ;;  %v4404_v23 = vsel %vm2928_vm9, %v4372_v61, %v6994_v22 }
 0x3c1   : > { %v4405_v47 = vsel %vm2928_vm9, %v4373_v6, %v6995_v24  ;;  %v7010_v20 = vunpack.i.h.bf16 %v7008_v26  ;;  %v7009_v62 = vunpack.i.l.bf16 %v7008_v26  ;;  %v4388_v4 = vsel %vm2928_vm9, %v4356_v57, %v6989_v3 }
 0x3c2   : > { %v4389_v11 = vsel %vm2928_vm9, %v4357_v39, %v6990_v49  ;;  %v4436_v21 = vsel %vm2961_vm10, %v4404_v23, %v7004_v29  ;;  %v4437_v51 = vsel %vm2961_vm10, %v4405_v47, %v7005_v36  ;;  %v4420_v8 = vsel %vm2961_vm10, %v4388_v4, %v6999_v35  ;;  %v14783_v23 = vld [vmem:[#allocation129_spill] sm:$0xff]  ;;  %v14789_v4 = vld [vmem:[#allocation224_spill] sm:$0xff] }
 0x3c3   : > { %v7023_v18 = vpop.permute.xlu1 %7022  ;;  %v4421_v19 = vsel %vm2961_vm10, %v4389_v11, %v7000_v50  ;;  %v4468_v58 = vsel %vm2994_vm11, %v4436_v21, %v7014_v13  ;;  %v4469_v42 = vsel %vm2994_vm11, %v4437_v51, %v7015_v59  ;;  %v4452_v2 = vsel %vm2994_vm11, %v4420_v8, %v7009_v62  ;;  %v14791_v51 = vld [vmem:[#allocation60_spill] sm:$0xff] }
 0x3c4   : > { %v7018_v54 = vpop.permute.xlu0 %7017  ;;  %v7025_v10 = vunpack.i.h.bf16 %v7023_v18  ;;  %v7024_v32 = vunpack.i.l.bf16 %v7023_v18  ;;  %v4453_v5 = vsel %vm2994_vm11, %v4421_v19, %v7010_v20  ;;  %v6244_v49 = vunpack.i.l.bf16 %v14769_v16  ;;  %v14794_v19 = vld [vmem:[#allocation237_spill] sm:$0xff] }
 0x3c5   : > { %v7020_v44 = vunpack.i.h.bf16 %v7018_v54  ;;  %v7019_v33 = vunpack.i.l.bf16 %v7018_v54  ;;  %vm14780_vm2 = vcmask 457728   ;;  %v6210_v18 = vunpack.i.h.bf16 %v14768_v0 }
 0x3c6   : > { %v4500_v40 = vsel %vm13633_vm12, %v4468_v58, %v7024_v32  ;;  %v4501_v15 = vsel %vm13633_vm12, %v4469_v42, %v7025_v10  ;;  %v12448_v29 = vsel %vm14780_vm2, %v12221_v12, %v6204_v45  ;;  %vm14781_vm3 = vmmov %vm14780_vm2  ;;  %v6390_v12 = vunpack.i.h.bf16 %v14783_v23  ;;  %v14790_v10 = vld [vmem:[#allocation11_spill] sm:$0xff]  ;;  %v14795_v42 = vld [vmem:[#allocation236_spill] sm:$0xff] }
 0x3c7   : > { %v7033_v7 = vpop.permute.xlu1 %7032  ;;  %v4484_v22 = vsel %vm13633_vm12, %v4452_v2, %v7019_v33  ;;  %v4485_v26 = vsel %vm13633_vm12, %v4453_v5, %v7020_v44  ;;  %v12454_v50 = vsel %vm14781_vm3, %v12227_v38, %v6205_v1  ;;  %vm14782_vm4 = vmmov %vm14780_vm2  ;;  %v6389_v45 = vunpack.i.l.bf16 %v14783_v23  ;;  %v14792_v44 = vld [vmem:[#allocation57_spill] sm:$0xff]  ;;  %v14796_v2 = vld [vmem:[#allocation102_spill] sm:$0xff] }
 0x3c8   : > { %v7035_v9 = vunpack.i.h.bf16 %v7033_v7  ;;  %v7034_v63 = vunpack.i.l.bf16 %v7033_v7  ;;  %v7028_v34 = vpop.permute.xlu0 %7027  ;;  %v12462_v13 = vsel %vm14782_vm4, %v12235_v37, %v6199_v25  ;;  %v12472_v38 = vsel %vm14780_vm2, %v12241_v41, %v6200_v31  ;;  %vm14784_vm3 = vmmov %vm14780_vm2  ;;  %v14786_v25 = vld [vmem:[#allocation105_spill] sm:$0xff]  ;;  %v14788_v31 = vld [vmem:[#allocation223_spill] sm:$0xff] }
 0x3c9   : > { %v7030_v56 = vunpack.i.h.bf16 %v7028_v34  ;;  %v7029_v24 = vunpack.i.l.bf16 %v7028_v34  ;;  %v12478_v37 = vsel %vm14784_vm3, %v12319_v28, %v6209_v30  ;;  %v6240_v1 = vunpack.i.h.bf16 %v14785_v17  ;;  %vm14787_vm4 = vmmov %vm14780_vm2 }
 0x3ca   : > { %v4532_v61 = vsel %vm13632_vm13, %v4500_v40, %v7034_v63  ;;  %v4533_v6 = vsel %vm13632_vm13, %v4501_v15, %v7035_v9  ;;  %v6430_v47 = vunpack.i.h.bf16 %v14786_v25  ;;  %v6429_v20 = vunpack.i.l.bf16 %v14786_v25  ;;  %v14797_v63 = vld [vmem:[#allocation50_spill] sm:$0xff]  ;;  %v14798_v15 = vld [vmem:[#allocation212_spill] sm:$0xff]  ;;  %vm14801_vm3 = vmmov %vm14780_vm2 }
 0x3cb   : > { %v7211_v3 = vpack.i.bf16 %v4533_v6, %v4532_v61  ;;  %v4516_v39 = vsel %vm13632_vm13, %v4484_v22, %v7029_v24  ;;  %v4517_v57 = vsel %vm13632_vm13, %v4485_v26, %v7030_v56  ;;  %v12442_v36 = vpop.permute.xlu1 %7042  ;;  %v12486_v14 = vsel %vm14787_vm4, %v12335_v53, %v6244_v49  ;;  %v14799_v6 = vld [vmem:[#allocation263_spill] sm:$0xff]  ;;  %vm14802_vm4 = vmmov %vm14780_vm2 }
 0x3cc   : > { %v7206_v35 = vpack.i.bf16 %v4517_v57, %v4516_v39  ;;  %v12456_v59 = vpop.permute.xlu0 %7037  ;;  %v12492_v41 = vsel %vm14780_vm2, %v12341_v27, %v6245_v43  ;;  %v6239_v28 = vunpack.i.l.bf16 %v14785_v17  ;;  %v6285_v30 = vunpack.i.h.bf16 %v14788_v31  ;;  %v14793_v43 = vld [vmem:[#allocation91_spill] sm:$0xff] }
 0x3cd   : > { %7212 = vrot.lane.b32.xlu1 %v7211_v3, %s7328_s10  ;;  %v6284_v54 = vunpack.i.l.bf16 %v14788_v31  ;;  %v6279_v11 = vunpack.i.l.bf16 %v14789_v4  ;;  %v6470_v32 = vunpack.i.h.bf16 %v14790_v10  ;;  %v6469_v53 = vunpack.i.l.bf16 %v14790_v10 }
 0x3ce   : > { %7207 = vrot.lane.b32.xlu0 %v7206_v35, %s7328_s10  ;;  %v4231_v16 = vsel %vm258_vm0, %v14791_v51, %v6390_v12  ;;  %v4230_v27 = vsel %vm258_vm0, %v14792_v44, %v6389_v45  ;;  %v6510_v33 = vunpack.i.h.bf16 %v14793_v43  ;;  %v6509_v8 = vunpack.i.l.bf16 %v14793_v43 }
 0x3cf   : > { %v7053_v62 = vpop.permute.xlu1 %7052  ;;  %v4247_v58 = vsel %vm258_vm0, %v14794_v19, %v6430_v47  ;;  %v4246_v7 = vsel %vm258_vm0, %v14795_v42, %v6429_v20  ;;  %v6550_v5 = vunpack.i.h.bf16 %v14796_v2  ;;  %v6549_v9 = vunpack.i.l.bf16 %v14796_v2 }
 0x3d0   : > { %v7048_v21 = vpop.permute.xlu0 %7047  ;;  %v6590_v34 = vunpack.i.h.bf16 %v14797_v63  ;;  %v6589_v40 = vunpack.i.l.bf16 %v14797_v63  ;;  %v6630_v56 = vunpack.i.h.bf16 %v14798_v15  ;;  %v6629_v24 = vunpack.i.l.bf16 %v14798_v15 }
 0x3d1   : > { %v4262_v26 = vsel %vm2796_vm5, %v4230_v27, %v6469_v53  ;;  %v4263_v61 = vsel %vm2796_vm5, %v4231_v16, %v6470_v32  ;;  %v6670_v49 = vunpack.i.h.bf16 %v14799_v6  ;;  %v6669_v3 = vunpack.i.l.bf16 %v14799_v6 }
 0x3d2   : > { %v4278_v57 = vsel %vm2796_vm5, %v4246_v7, %v6509_v8  ;;  %v4279_v35 = vsel %vm2796_vm5, %v4247_v58, %v6510_v33  ;;  %v7045_v23 = vunpack.i.h.bf16 %v12442_v36  ;;  %v7044_v12 = vunpack.i.l.bf16 %v12442_v36 }
 0x3d3   : > { %v7063_v22 = vpop.permute.xlu1 %7062  ;;  %v4294_v45 = vsel %vm2829_vm6, %v4262_v26, %v6549_v9  ;;  %v4295_v25 = vsel %vm2829_vm6, %v4263_v61, %v6550_v5  ;;  %v7040_v47 = vunpack.i.h.bf16 %v12456_v59  ;;  %v7039_v20 = vunpack.i.l.bf16 %v12456_v59 }
 0x3d4   : > { %v7058_v39 = vpop.permute.xlu0 %7057  ;;  %v4310_v10 = vsel %vm2829_vm6, %v4278_v57, %v6589_v40  ;;  %v4311_v32 = vsel %vm2829_vm6, %v4279_v35, %v6590_v34  ;;  %v4326_v53 = vsel %vm2862_vm7, %v4294_v45, %v6629_v24  ;;  %v4327_v51 = vsel %vm2862_vm7, %v4295_v25, %v6630_v56 }
 0x3d5   : > { %v4342_v44 = vsel %vm2862_vm7, %v4310_v10, %v6669_v3  ;;  %v4343_v36 = vsel %vm2862_vm7, %v4311_v32, %v6670_v49  ;;  %v7055_v27 = vunpack.i.h.bf16 %v7053_v62  ;;  %v7054_v43 = vunpack.i.l.bf16 %v7053_v62 }
 0x3d6   : > { %v4374_v8 = vsel %vm2895_vm8, %v4342_v44, %v7044_v12  ;;  %v4375_v59 = vsel %vm2895_vm8, %v4343_v36, %v7045_v23  ;;  %v7050_v19 = vunpack.i.h.bf16 %v7048_v21  ;;  %v7049_v58 = vunpack.i.l.bf16 %v7048_v21 }
 0x3d7   : > { %v7073_v16 = vpop.permute.xlu1 %7072  ;;  %v4358_v42 = vsel %vm2895_vm8, %v4326_v53, %v7039_v20  ;;  %v4359_v7 = vsel %vm2895_vm8, %v4327_v51, %v7040_v47  ;;  %v7065_v2 = vunpack.i.h.bf16 %v7063_v22  ;;  %v7064_v5 = vunpack.i.l.bf16 %v7063_v22 }
 0x3d8   : > { %v7068_v33 = vpop.permute.xlu0 %7067  ;;  %v7060_v9 = vunpack.i.h.bf16 %v7058_v39  ;;  %v7059_v63 = vunpack.i.l.bf16 %v7058_v39  ;;  %v7075_v34 = vunpack.i.h.bf16 %v7073_v16  ;;  %v7074_v40 = vunpack.i.l.bf16 %v7073_v16 }
 0x3d9   : > { %v4406_v62 = vsel %vm2928_vm9, %v4374_v8, %v7054_v43  ;;  %v4407_v56 = vsel %vm2928_vm9, %v4375_v59, %v7055_v27  ;;  %v7070_v24 = vunpack.i.h.bf16 %v7068_v33  ;;  %v7069_v26 = vunpack.i.l.bf16 %v7068_v33 }
 0x3da   : > { %v4390_v21 = vsel %vm2928_vm9, %v4358_v42, %v7049_v58  ;;  %v4391_v6 = vsel %vm2928_vm9, %v4359_v7, %v7050_v19  ;;  %v4438_v22 = vsel %vm2961_vm10, %v4406_v62, %v7064_v5  ;;  %v4439_v39 = vsel %vm2961_vm10, %v4407_v56, %v7065_v2  ;;  %v14800_v5 = vld [vmem:[#allocation208_spill] sm:$0xff] }
 0x3db   : > { %v7083_v15 = vpop.permute.xlu1 %7082  ;;  %v4422_v23 = vsel %vm2961_vm10, %v4390_v21, %v7059_v63  ;;  %v4423_v12 = vsel %vm2961_vm10, %v4391_v6, %v7060_v9  ;;  %v4470_v45 = vsel %vm2994_vm11, %v4438_v22, %v7074_v40  ;;  %v4471_v25 = vsel %vm2994_vm11, %v4439_v39, %v7075_v34  ;;  %v14803_v56 = vld [vmem:[#allocation32_spill] sm:$0xff] }
 0x3dc   : > { %v7078_v61 = vpop.permute.xlu0 %7077  ;;  %v7085_v49 = vunpack.i.h.bf16 %v7083_v15  ;;  %v7084_v3 = vunpack.i.l.bf16 %v7083_v15  ;;  %v4454_v20 = vsel %vm2994_vm11, %v4422_v23, %v7069_v26  ;;  %v4455_v10 = vsel %vm2994_vm11, %v4423_v12, %v7070_v24  ;;  %v14806_v21 = vld [vmem:[#allocation284_spill] sm:$0xff] }
 0x3dd   : > { %v7080_v57 = vunpack.i.h.bf16 %v7078_v61  ;;  %v7079_v35 = vunpack.i.l.bf16 %v7078_v61  ;;  %v6280_v19 = vunpack.i.h.bf16 %v14789_v4  ;;  %v6250_v9 = vunpack.i.h.bf16 %v14800_v5  ;;  %v14811_v12 = vld [vmem:[#allocation128_spill] sm:$0xff] }
 0x3de   : > { %v4502_v16 = vsel %vm13633_vm12, %v4470_v45, %v7084_v3  ;;  %v4503_v44 = vsel %vm13633_vm12, %v4471_v25, %v7085_v49  ;;  %v12568_v40 = vsel %vm14801_vm3, %v12349_v48, %v6239_v28  ;;  %v12574_v15 = vsel %vm14802_vm4, %v12355_v52, %v6240_v1  ;;  %v14804_v28 = vld [vmem:[#allocation19_spill] sm:$0xff]  ;;  %vm14821_vm3 = vmmov %vm14780_vm2 }
 0x3df   : > { %v7093_v47 = vpop.permute.xlu1 %7092  ;;  %v4486_v43 = vsel %vm13633_vm12, %v4454_v20, %v7079_v35  ;;  %v4487_v33 = vsel %vm13633_vm12, %v4455_v10, %v7080_v57  ;;  %v6249_v62 = vunpack.i.l.bf16 %v14800_v5  ;;  %v6395_v24 = vunpack.i.h.bf16 %v14803_v56  ;;  %v14807_v49 = vld [vmem:[#allocation287_spill] sm:$0xff]  ;;  %v14810_v35 = vld [vmem:[#allocation37_spill] sm:$0xff]  ;;  %v14813_v20 = vld [vmem:[#allocation100_spill] sm:$0xff] }
 0x3e0   : > { %v7095_v32 = vunpack.i.h.bf16 %v7093_v47  ;;  %v7094_v53 = vunpack.i.l.bf16 %v7093_v47  ;;  %v7088_v51 = vpop.permute.xlu0 %7087  ;;  %v6394_v26 = vunpack.i.l.bf16 %v14803_v56  ;;  %v12584_v48 = vsel %vm3225_vm1, %v12448_v29, %v6284_v54  ;;  %v14805_v29 = vld [vmem:[#allocation235_spill] sm:$0xff]  ;;  %v14812_v47 = vld [vmem:[#allocation112_spill] sm:$0xff] }
 0x3e1   : > { %v7090_v36 = vunpack.i.h.bf16 %v7088_v51  ;;  %v7089_v27 = vunpack.i.l.bf16 %v7088_v51  ;;  %v6435_v17 = vunpack.i.h.bf16 %v14804_v28  ;;  %v6434_v61 = vunpack.i.l.bf16 %v14804_v28  ;;  %v14809_v57 = vld [vmem:[#allocation107_spill] sm:$0xff] }
 0x3e2   : > { %v4534_v8 = vsel %vm13632_vm13, %v4502_v16, %v7094_v53  ;;  %v4535_v59 = vsel %vm13632_vm13, %v4503_v44, %v7095_v32  ;;  %v12593_v52 = vsel %vm3225_vm1, %v12462_v13, %v6279_v11  ;;  %v12599_v1 = vsel %vm3225_vm1, %v12454_v50, %v6285_v30  ;;  %v14808_v11 = vld [vmem:[#allocation56_spill] sm:$0xff]  ;;  %v14814_v32 = vld [vmem:[#allocation277_spill] sm:$0xff]  ;;  %v14815_v16 = vld [vmem:[#allocation55_spill] sm:$0xff] }
 0x3e3   : > { %v7221_v58 = vpack.i.bf16 %v4535_v59, %v4534_v8  ;;  %v4518_v42 = vsel %vm13632_vm13, %v4486_v43, %v7089_v27  ;;  %v4519_v7 = vsel %vm13632_vm13, %v4487_v33, %v7090_v36  ;;  %v12559_v2 = vpop.permute.xlu1 %7102  ;;  %v6290_v54 = vunpack.i.h.bf16 %v14805_v29  ;;  %v14816_v27 = vld [vmem:[#allocation93_spill] sm:$0xff]  ;;  %v14817_v8 = vld [vmem:[#allocation168_spill] sm:$0xff] }
 0x3e4   : > { %v7216_v63 = vpack.i.bf16 %v4519_v7, %v4518_v42  ;;  %v12562_v34 = vpop.permute.xlu0 %7097  ;;  %v6324_v6 = vunpack.i.l.bf16 %v14806_v21  ;;  %v6320_v3 = vunpack.i.h.bf16 %v14807_v49  ;;  %v12606_v4 = vsel %vm3225_vm1, %v12472_v38, %v6280_v19 }
 0x3e5   : > { %7222 = vrot.lane.b32.xlu1 %v7221_v58, %s7328_s10  ;;  %v6319_v13 = vunpack.i.l.bf16 %v14807_v49  ;;  %v6475_v39 = vunpack.i.h.bf16 %v14808_v11  ;;  %v6474_v31 = vunpack.i.l.bf16 %v14808_v11  ;;  %v6514_v50 = vunpack.i.l.bf16 %v14809_v57 }
 0x3e6   : > { %7217 = vrot.lane.b32.xlu0 %v7216_v63, %s7328_s10  ;;  %v4233_v23 = vsel %vm258_vm0, %v14810_v35, %v6395_v24  ;;  %v4232_v45 = vsel %vm258_vm0, %v14811_v12, %v6394_v26  ;;  %v6515_v25 = vunpack.i.h.bf16 %v14809_v57  ;;  %v6554_v38 = vunpack.i.l.bf16 %v14812_v47 }
 0x3e7   : > { %v7113_v22 = vpop.permute.xlu1 %7112  ;;  %v4249_v10 = vsel %vm258_vm0, %v14813_v20, %v6435_v17  ;;  %v4248_v53 = vsel %vm258_vm0, %v14814_v32, %v6434_v61  ;;  %v6555_v51 = vunpack.i.h.bf16 %v14812_v47  ;;  %v6594_v44 = vunpack.i.l.bf16 %v14815_v16 }
 0x3e8   : > { %v7108_v30 = vpop.permute.xlu0 %7107  ;;  %v6595_v36 = vunpack.i.h.bf16 %v14815_v16  ;;  %v6635_v43 = vunpack.i.h.bf16 %v14816_v27  ;;  %v6634_v33 = vunpack.i.l.bf16 %v14816_v27  ;;  %v6674_v59 = vunpack.i.l.bf16 %v14817_v8 }
 0x3e9   : > { %v4264_v58 = vsel %vm2796_vm5, %v4232_v45, %v6474_v31  ;;  %v4265_v42 = vsel %vm2796_vm5, %v4233_v23, %v6475_v39  ;;  %v4280_v7 = vsel %vm2796_vm5, %v4248_v53, %v6514_v50  ;;  %v6675_v63 = vunpack.i.h.bf16 %v14817_v8 }
 0x3ea   : > { %v4281_v24 = vsel %vm2796_vm5, %v4249_v10, %v6515_v25  ;;  %v4296_v26 = vsel %vm2829_vm6, %v4264_v58, %v6554_v38  ;;  %v7105_v28 = vunpack.i.h.bf16 %v12559_v2  ;;  %v7104_v17 = vunpack.i.l.bf16 %v12559_v2 }
 0x3eb   : > { %v7123_v19 = vpop.permute.xlu1 %7122  ;;  %v4297_v61 = vsel %vm2829_vm6, %v4265_v42, %v6555_v51  ;;  %v4312_v11 = vsel %vm2829_vm6, %v4280_v7, %v6594_v44  ;;  %v7100_v31 = vunpack.i.h.bf16 %v12562_v34  ;;  %v7099_v39 = vunpack.i.l.bf16 %v12562_v34 }
 0x3ec   : > { %v7118_v56 = vpop.permute.xlu0 %7117  ;;  %v4313_v57 = vsel %vm2829_vm6, %v4281_v24, %v6595_v36  ;;  %v4328_v50 = vsel %vm2862_vm7, %v4296_v26, %v6634_v33  ;;  %v4329_v35 = vsel %vm2862_vm7, %v4297_v61, %v6635_v43  ;;  %v4344_v23 = vsel %vm2862_vm7, %v4312_v11, %v6674_v59  ;;  %vm14820_vm6 = vmmov %vm14780_vm2 }
 0x3ed   : > { %v4345_v45 = vsel %vm2862_vm7, %v4313_v57, %v6675_v63  ;;  %v7115_v2 = vunpack.i.h.bf16 %v7113_v22  ;;  %v7114_v25 = vunpack.i.l.bf16 %v7113_v22  ;;  %vm4722_vm0 = vcmask 883712   ;;  %v12662_v57 = vld [vmem:[%s12987_s1] sm:$0xf] }
 0x3ee   : > { %v4376_v38 = vsel %vm2895_vm8, %v4344_v23, %v7104_v17  ;;  %v4377_v20 = vsel %vm2895_vm8, %v4345_v45, %v7105_v28  ;;  %v7110_v34 = vunpack.i.h.bf16 %v7108_v30  ;;  %v7109_v10 = vunpack.i.l.bf16 %v7108_v30  ;;  %5089 = vmatprep.mubr.msk.bf16.mxu0 %vm4722_vm0, %v12662_v57 }
 0x3ef   : > { %v7133_v12 = vpop.permute.xlu1 %7132  ;;  %v4361_v32 = vsel %vm2895_vm8, %v4329_v35, %v7100_v31  ;;  %v4360_v53 = vsel %vm2895_vm8, %v4328_v50, %v7099_v39  ;;  %v7125_v51 = vunpack.i.h.bf16 %v7123_v19  ;;  %v7124_v16 = vunpack.i.l.bf16 %v7123_v19 }
 0x3f0   : > { %v7128_v47 = vpop.permute.xlu0 %7127  ;;  %v7120_v44 = vunpack.i.h.bf16 %v7118_v56  ;;  %v7119_v36 = vunpack.i.l.bf16 %v7118_v56  ;;  %v7135_v27 = vunpack.i.h.bf16 %v7133_v12  ;;  %v7134_v43 = vunpack.i.l.bf16 %v7133_v12 }
 0x3f1   : > { %v4408_v22 = vsel %vm2928_vm9, %v4376_v38, %v7114_v25  ;;  %v4409_v8 = vsel %vm2928_vm9, %v4377_v20, %v7115_v2  ;;  %v7130_v59 = vunpack.i.h.bf16 %v7128_v47  ;;  %v7129_v58 = vunpack.i.l.bf16 %v7128_v47 }
 0x3f2   : > { %v4392_v30 = vsel %vm2928_vm9, %v4360_v53, %v7109_v10  ;;  %v4393_v7 = vsel %vm2928_vm9, %v4361_v32, %v7110_v34  ;;  %v4440_v19 = vsel %vm2961_vm10, %v4408_v22, %v7124_v16  ;;  %v4441_v56 = vsel %vm2961_vm10, %v4409_v8, %v7125_v51 }
 0x3f3   : > { %v7143_v33 = vpop.permute.xlu1 %7142  ;;  %v4424_v17 = vsel %vm2961_vm10, %v4392_v30, %v7119_v36  ;;  %v4425_v61 = vsel %vm2961_vm10, %v4393_v7, %v7120_v44  ;;  %v4472_v11 = vsel %vm2994_vm11, %v4440_v19, %v7134_v43  ;;  %v4473_v31 = vsel %vm2994_vm11, %v4441_v56, %v7135_v27 }
 0x3f4   : > { %v7138_v42 = vpop.permute.xlu0 %7137  ;;  %v7145_v63 = vunpack.i.h.bf16 %v7143_v33  ;;  %v7144_v24 = vunpack.i.l.bf16 %v7143_v33  ;;  %v4456_v50 = vsel %vm2994_vm11, %v4424_v17, %v7129_v58  ;;  %v4457_v35 = vsel %vm2994_vm11, %v4425_v61, %v7130_v59 }
 0x3f5   : > { %v7140_v26 = vunpack.i.h.bf16 %v7138_v42  ;;  %v7139_v28 = vunpack.i.l.bf16 %v7138_v42  ;;  %vm4666_vm5 = vcmask 523264   ;;  %v6325_v36 = vunpack.i.h.bf16 %v14806_v21 }
 0x3f6   : > { %v4504_v2 = vsel %vm13633_vm12, %v4472_v11, %v7144_v24  ;;  %v4505_v25 = vsel %vm13633_vm12, %v4473_v31, %v7145_v63  ;;  %v3242_v58 = vsel %vm3225_vm1, %v12568_v40, %v6319_v13  ;;  %v3243_v42 = vsel %vm3225_vm1, %v12574_v15, %v6320_v3 }
 0x3f7   : > { %v7153_v39 = vpop.permute.xlu1 %7152  ;;  %v4488_v20 = vsel %vm13633_vm12, %v4456_v50, %v7139_v28  ;;  %v4489_v34 = vsel %vm13633_vm12, %v4457_v35, %v7140_v26  ;;  %v3244_v30 = vsel %vm3225_vm1, %v12486_v14, %v6324_v6  ;;  %v6289_v24 = vunpack.i.l.bf16 %v14805_v29  ;;  %v4716_v14 = vld [vmem:[%s12988_s2] sm:$0xff]  ;;  %v14819_v35 = vld [vmem:[#allocation164_spill] sm:$0xff] }
 0x3f8   : > { %v7155_v23 = vunpack.i.h.bf16 %v7153_v39  ;;  %v7154_v12 = vunpack.i.l.bf16 %v7153_v39  ;;  %v7148_v45 = vpop.permute.xlu0 %7147  ;;  %v7329_v21 = vmov 0   ;;  %v3245_v6 = vsel %vm3225_vm1, %v12492_v41, %v6325_v36  ;;  %v4854_v26 = vld [vmem:[%s252_s30] sm:$0xff] }
 0x3f9   : > { %v7150_v47 = vunpack.i.h.bf16 %v7148_v45  ;;  %v7149_v38 = vunpack.i.l.bf16 %v7148_v45  ;;  %7236 = vset.pattern.permute.xlu0 %v7329_v21  ;;  %7237 = vset.pattern.permute.xlu1 %v7329_v21  ;;  %v4855_v11 = vadd.f32 1.0, %v4854_v26  ;;  %v14824_v29 = vunpack.i.h.bf16 %v14819_v35 }
 0x3fa   : > { %v4536_v10 = vsel %vm13632_vm13, %v4504_v2, %v7154_v12  ;;  %v4537_v32 = vsel %vm13632_vm13, %v4505_v25, %v7155_v23  ;;  %v6014_v23 = vunpack.i.l.bf16 %v14819_v35  ;;  %vm14835_vm4 = vcmask 424960  }
 0x3fb   : > { %v7231_v53 = vpack.i.bf16 %v4537_v32, %v4536_v10  ;;  %v4520_v51 = vsel %vm13632_vm13, %v4488_v20, %v7149_v38  ;;  %v4521_v16 = vsel %vm13632_vm13, %v4489_v34, %v7150_v47  ;;  %v7163_v44 = vpop.permute.xlu1 %7162  ;;  %v3198_v47 = vsel %vm14820_vm6, %v12329_v55, %v6210_v18  ;;  %v4863_v32 = vld [vmem:[%s256_s26] sm:$0xff]  ;;  %vm14836_vm6 = vmmov %vm14835_vm4 }
 0x3fc   : > { %v7226_v27 = vpack.i.bf16 %v4521_v16, %v4520_v51  ;;  %v7165_v43 = vunpack.i.h.bf16 %v7163_v44  ;;  %v7164_v33 = vunpack.i.l.bf16 %v7163_v44  ;;  %v7158_v22 = vpop.permute.xlu0 %7157  ;;  %v3213_v38 = vsel %vm14780_vm2, %v12364_v46, %v6249_v62  ;;  %v14822_v16 = vld [vmem:[#allocation52_spill] sm:$0xff]  ;;  %v14823_v44 = vld [vmem:[#allocation41_spill] sm:$0xff]  ;;  %vm14837_vm2 = vmmov %vm14835_vm4 }
 0x3fd   : > { %v7160_v8 = vunpack.i.h.bf16 %v7158_v22  ;;  %v7159_v59 = vunpack.i.l.bf16 %v7158_v22  ;;  %7232 = vrot.lane.b32.xlu1 %v7231_v53, %s7328_s10  ;;  %v3230_v55 = vsel %vm3225_vm1, %v12478_v37, %v6289_v24  ;;  %v3231_v62 = vsel %vm3225_vm1, %v3198_v47, %v6290_v54  ;;  %v14825_v54 = vld [vmem:[#allocation144_spill] sm:$0xff]  ;;  %v14826_v22 = vld [vmem:[#allocation215_spill] sm:$0xff] }
 0x3fe   : > { %7227 = vrot.lane.b32.xlu0 %v7226_v27, %s7328_s10  ;;  %v4683_v7 = vsel %vm4666_vm5, %v3242_v58, %v7164_v33  ;;  %v4684_v63 = vsel %vm4666_vm5, %v3243_v42, %v7165_v43  ;;  %v3116_v37 = vsel %vm13631_vm14, %v14822_v16, %v6014_v23  ;;  %v6055_v36 = vunpack.i.h.bf16 %v14823_v44  ;;  %v14827_v58 = vld [vmem:[#allocation158_spill] sm:$0xff]  ;;  %s4894_s10 = sshll.u32 %s243_s9, 4  ;;  %s12946_s10 = int_to_ptr.vmem [resolvable:$true] %s4894_s10 }
 0x3ff   : > { %v7173_v40 = vpop.permute.xlu1 %7172  ;;  %v4707_v13 = vpack.c.bf16 %v4684_v63, %v4683_v7  ;;  %v4667_v49 = vsel %vm4666_vm5, %v12593_v52, %v7159_v59  ;;  %v4668_v15 = vsel %vm4666_vm5, %v12606_v4, %v7160_v8  ;;  %v14818_v4 = vld [vmem:[#allocation289_spill] sm:$0xff]  ;;  %v6054_v27 = vunpack.i.l.bf16 %v14823_v44  ;;  %v14828_v7 = vld [vmem:[#allocation6_spill] sm:$0xff]  ;;  %s7248_s14 = scalar_lea.vmem %s12946_s10, 256  ;;  %p7255_p0 = scmp.lt.s32.totalorder %s12946_s10, %s7253_s16 }
 0x400   : > { %v7175_v3 = vunpack.i.h.bf16 %v7173_v40  ;;  %v7174_v19 = vunpack.i.l.bf16 %v7173_v40  ;;  %v7168_v52 = vpop.permute.xlu0 %7167  ;;  %v4699_v56 = vpack.c.bf16 %v4668_v15, %v4667_v49  ;;  %v6330_v28 = vunpack.i.h.bf16 %v14818_v4  ;;  %v14829_v49 = vld [vmem:[#allocation272_spill] sm:$0xff]  ;;  %p7249_p11 = scmp.ne.s32.totalorder %s12946_s10, %s7248_s14  ;;  %p7256_p1 = scmp.lt.s32.totalorder %s7254_s17, %s7248_s14 }
 0x401   : > { %v7170_v17 = vunpack.i.h.bf16 %v7168_v52  ;;  %v7169_v61 = vunpack.i.l.bf16 %v7168_v52  ;;  %5091 = vmatprep.subr.msk.bf16.mxu0 %vm4722_vm0, %v4707_v13  ;;  %v6329_v31 = vunpack.i.l.bf16 %v14818_v4  ;;  %4858 = vperm.xlu1 %7237, %v4855_v11   ;;  %v3117_v33 = vsel %vm13631_vm14, %v14825_v54, %v14824_v29  ;;  %v14832_v52 = vld [vmem:[#allocation152_spill] sm:$0xff] }
 0x402   : > { %v4686_v41 = vsel %vm4666_vm5, %v3245_v6, %v7175_v3  ;;  %v4685_v39 = vsel %vm4666_vm5, %v3244_v30, %v7174_v19  ;;  %v4727_v50 = vsel %vm4722_vm0, %v4699_v56, 0  ;;  %4719 = vperm.xlu0 %7236, %v4716_v14   ;;  %v6095_v8 = vunpack.i.h.bf16 %v14826_v22  ;;  %v14830_v14 = vld [vmem:[#allocation255_spill] sm:$0xff]  ;;  %v14833_v4 = vld [vmem:[#allocation68_spill] sm:$0xff]  ;;  %p7250_p12 = pnand %p7249_p11, %p7399_p5  ;;  %p7257_p2 = por %p7256_p1, %p7255_p0 }
 0x403   : > { %v4708_v12 = vpack.c.bf16 %v4686_v41, %v4685_v39  ;;  %5074 = vmatpush3.bf16.xpose.msra.mxu0 %v4727_v50  ;;  %v7183_v45 = vpop.permute.xlu1 %7182  ;;  %v4669_v2 = vsel %vm4666_vm5, %v12584_v48, %v7169_v61  ;;  %v4670_v25 = vsel %vm4666_vm5, %v12599_v1, %v7170_v17  ;;  %v3214_v48 = vsel %vm14821_vm3, %v12370_v60, %v6250_v9  ;;  %v14831_v3 = vld [vmem:[#allocation151_spill] sm:$0xff]  ;;  %v14834_v11 = vld [vmem:[#allocation288_spill] sm:$0xff]  ;;  %vm14838_vm3 = vmmov %vm14837_vm2 }
 0x404   : > { %v7185_v20 = vunpack.i.h.bf16 %v7183_v45  ;;  %v7184_v34 = vunpack.i.l.bf16 %v7183_v45  ;;  %v7178_v10 = vpop.permute.xlu0 %7177  ;;  %v3246_v0 = vsel %vm3225_vm1, %v3213_v38, %v6329_v31  ;;  %v3247_v46 = vsel %vm3225_vm1, %v3214_v48, %v6330_v28  ;;  %v14847_v54 = vld [vmem:[#allocation244_spill] sm:$0xff]  ;;  %p7251_p13 = pneg %p7250_p12 }
 0x405   : > { %v7180_v1 = vunpack.i.h.bf16 %v7178_v10  ;;  %v7179_v53 = vunpack.i.l.bf16 %v7178_v10  ;;  %5092 = vmatprep.subr.msk.bf16.mxu0 %vm4722_vm0, %v4708_v12  ;;  %v4700_v18 = vpack.c.bf16 %v4670_v25, %v4669_v2  ;;  %4866 = vperm.xlu1 %7237, %v4863_v32   ;;  %v6094_v59 = vunpack.i.l.bf16 %v14826_v22  ;;  %v14848_v22 = vld [vmem:[#allocation194_spill] sm:$0xff] }
 0x406   : > { %v4687_v5 = vsel %vm4666_vm5, %v3246_v0, %v7184_v34  ;;  %v4688_v60 = vsel %vm4666_vm5, %v3247_v46, %v7185_v20  ;;  %v6135_v42 = vunpack.i.h.bf16 %v14827_v58  ;;  %v6134_v30 = vunpack.i.l.bf16 %v14827_v58  ;;  %p7258_p3 = pnand %p7257_p2, %p7251_p13 }
 0x407   : > { %v4671_v9 = vsel %vm4666_vm5, %v3230_v55, %v7179_v53  ;;  %v4672_v51 = vsel %vm4666_vm5, %v3231_v62, %v7180_v1  ;;  %v6174_v63 = vunpack.i.l.bf16 %v14828_v7  ;;  %v4709_v24 = vpack.c.bf16 %v4688_v60, %v4687_v5  ;;  %v14843_v5 = vld [vmem:[#allocation229_spill] sm:$0xff] }
 0x408   : > { %v4701_v43 = vpack.c.bf16 %v4672_v51, %v4671_v9  ;;  %v4730_v40 = vsel %vm4722_vm0, %v4700_v18, 0  ;;  %v6175_v13 = vunpack.i.h.bf16 %v14828_v7  ;;  %v6215_v15 = vunpack.i.h.bf16 %v14829_v49 }
 0x409   : > { %v6214_v21 = vunpack.i.l.bf16 %v14829_v49  ;;  %v6254_v6 = vunpack.i.l.bf16 %v14830_v14  ;;  %v3133_v19 = vsel %vm13634_vm15, %v14831_v3, %v6054_v27  ;;  %v3134_v56 = vsel %vm13634_vm15, %v14832_v52, %v6055_v36  ;;  %v14846_v36 = vld [vmem:[#allocation106_spill] sm:$0xff]  ;;  %v14858_v3 = vld [vmem:[#allocation213_spill] sm:$0xff] }
 0x40a   : > { %v6255_v26 = vunpack.i.h.bf16 %v14830_v14  ;;  %v6294_v28 = vunpack.i.l.bf16 %v14833_v4  ;;  %v3149_v17 = vsel %vm13634_vm15, %v3116_v37, %v6094_v59  ;;  %v3150_v61 = vsel %vm13634_vm15, %v3117_v33, %v6095_v8  ;;  %v14844_v37 = vld [vmem:[#allocation191_spill] sm:$0xff] }
 0x40b   : > { %5076 = vmatpush3.bf16.xpose.msra.mxu0 %v4730_v40  ;;  %v6335_v31 = vunpack.i.h.bf16 %v14834_v11  ;;  %v6334_v41 = vunpack.i.l.bf16 %v14834_v11  ;;  %v3166_v39 = vsel %vm14835_vm4, %v3133_v19, %v6134_v30  ;;  %v3167_v50 = vsel %vm14836_vm6, %v3134_v56, %v6135_v42  ;;  %v14850_v59 = vld [vmem:[#allocation83_spill] sm:$0xff]  ;;  %v14852_v30 = vld [vmem:[#allocation84_spill] sm:$0xff] }
 0x40c   : > { %5093 = vmatprep.subr.msk.bf16.mxu0 %vm4722_vm0, %v4709_v24  ;;  %v3182_v35 = vsel %vm14837_vm2, %v3149_v17, %v6174_v63  ;;  %v6295_v23 = vunpack.i.h.bf16 %v14833_v4  ;;  %v3183_v12 = vsel %vm14838_vm3, %v3150_v61, %v6175_v13  ;;  %vm14839_vm14 = vcmask 457728   ;;  %v14853_v24 = vld [vmem:[#allocation248_spill] sm:$0xff]  ;;  %v14854_v13 = vld [vmem:[#allocation202_spill] sm:$0xff] }
 0x40d   : > { %v3199_v45 = vsel %vm14839_vm14, %v3166_v39, %v6214_v21  ;;  %vm14840_vm13 = vmmov %vm14839_vm14  ;;  %v4733_v18 = vsel %vm4722_vm0, %v4701_v43, 0  ;;  %v5619_v60 = vunpack.i.l.bf16 %v14843_v5  ;;  %v14845_v44 = vunpack.i.h.bf16 %v14844_v37 }
 0x40e   : > { %v3200_v2 = vsel %vm14840_vm13, %v3167_v50, %v6215_v15  ;;  %vm14841_vm12 = vmmov %vm14840_vm13  ;;  %v3232_v32 = vsel %vm3225_vm1, %v3199_v45, %v6294_v28  ;;  %v5620_v29 = vunpack.i.h.bf16 %v14843_v5  ;;  %v5659_v33 = vunpack.i.l.bf16 %v14847_v54  ;;  %v14856_v15 = vld [vmem:[#allocation121_spill] sm:$0xff] }
 0x40f   : > { %v3215_v25 = vsel %vm14841_vm12, %v3182_v35, %v6254_v6  ;;  %v7193_v47 = vpop.permute.xlu1 %7192  ;;  %vm14842_vm15 = vmmov %vm14841_vm12  ;;  %v3233_v62 = vsel %vm3225_vm1, %v3200_v2, %v6295_v23  ;;  %v2872_v27 = vsel %vm2862_vm7, %v14846_v36, %v14845_v44  ;;  %v14849_v8 = vunpack.i.l.bf16 %v14848_v22  ;;  %v14861_v28 = vld [vmem:[#allocation225_spill] sm:$0xff]  ;;  %v14870_v44 = vld [vmem:[#allocation80_spill] sm:$0xff] }
 0x410   : > { %v3216_v38 = vsel %vm14842_vm15, %v3183_v12, %v6255_v26  ;;  %v7195_v20 = vunpack.i.h.bf16 %v7193_v47  ;;  %v7194_v34 = vunpack.i.l.bf16 %v7193_v47  ;;  %v7188_v10 = vpop.permute.xlu0 %7187  ;;  %v3248_v48 = vsel %vm3225_vm1, %v3215_v25, %v6334_v41  ;;  %v14864_v35 = vld [vmem:[#allocation257_spill] sm:$0xff]  ;;  %v14865_v25 = vld [vmem:[#allocation258_spill] sm:$0xff] }
 0x411   : > { %v3249_v1 = vsel %vm3225_vm1, %v3216_v38, %v6335_v31  ;;  %v7190_v53 = vunpack.i.h.bf16 %v7188_v10  ;;  %v7189_v55 = vunpack.i.l.bf16 %v7188_v10  ;;  %v2887_v58 = vsel %vm2862_vm7, %v14850_v59, %v14849_v8 }
 0x412   : > { %v4690_v0 = vsel %vm4666_vm5, %v3249_v1, %v7195_v20  ;;  %v4689_v46 = vsel %vm4666_vm5, %v3248_v48, %v7194_v34  ;;  %v14851_v42 = vunpack.i.h.bf16 %v14848_v22  ;;  %v5660_v63 = vunpack.i.h.bf16 %v14847_v54  ;;  %v14866_v34 = vld [vmem:[#allocation269_spill] sm:$0xff]  ;;  %v14867_v1 = vld [vmem:[#allocation271_spill] sm:$0xff] }
 0x413   : > { %v4710_v9 = vpack.c.bf16 %v4690_v0, %v4689_v46  ;;  %5078 = vmatpush3.bf16.xpose.msra.mxu0 %v4733_v18  ;;  %v4673_v51 = vsel %vm4666_vm5, %v3232_v32, %v7189_v55  ;;  %v4674_v16 = vsel %vm4666_vm5, %v3233_v62, %v7190_v53  ;;  %v5699_v40 = vunpack.i.l.bf16 %v14853_v24  ;;  %v14868_v0 = vld [vmem:[#allocation7_spill] sm:$0xff] }
 0x414   : > { %v4702_v43 = vpack.c.bf16 %v4674_v16, %v4673_v51  ;;  %v2888_v7 = vsel %vm2862_vm7, %v14852_v30, %v14851_v42  ;;  %v14855_v49 = vunpack.i.l.bf16 %v14854_v13  ;;  %v14857_v14 = vunpack.i.h.bf16 %v14854_v13 }
 0x415   : > { %5094 = vmatprep.subr.msk.bf16.mxu0 %vm4722_vm0, %v4710_v9  ;;  %v14859_v19 = vunpack.i.l.bf16 %v14858_v3  ;;  %v5700_v56 = vunpack.i.h.bf16 %v14853_v24  ;;  %v14860_v26 = vunpack.i.h.bf16 %v14858_v3  ;;  %v14862_v17 = vunpack.i.l.bf16 %v14861_v28 }
 0x416   : > { %v2904_v21 = vsel %vm2895_vm8, %v14856_v15, %v14855_v49  ;;  %v2905_v6 = vsel %vm2895_vm8, %v2872_v27, %v14857_v14  ;;  %v14863_v11 = vunpack.i.h.bf16 %v14861_v28  ;;  %v5740_v23 = vunpack.i.h.bf16 %v14864_v35  ;;  %v14883_v15 = vld [vmem:[#allocation153_spill] sm:$0xff] }
 0x417   : > { %v2920_v52 = vsel %vm2895_vm8, %v2887_v58, %v14859_v19  ;;  %v2921_v4 = vsel %vm2895_vm8, %v2888_v7, %v14860_v26  ;;  %v2937_v61 = vsel %vm2928_vm9, %v2904_v21, %v14862_v17  ;;  %v5739_v12 = vunpack.i.l.bf16 %v14864_v35  ;;  %v14886_v19 = vld [vmem:[#allocation162_spill] sm:$0xff]  ;;  %v14887_v26 = vld [vmem:[#allocation109_spill] sm:$0xff] }
 0x418   : > { %v2938_v31 = vsel %vm2928_vm9, %v2905_v6, %v14863_v11  ;;  %v2953_v41 = vsel %vm2928_vm9, %v2920_v52, %v5619_v60  ;;  %v2954_v39 = vsel %vm2928_vm9, %v2921_v4, %v5620_v29  ;;  %v2970_v50 = vsel %vm2961_vm10, %v2937_v61, %v5659_v33  ;;  %v14869_v60 = vld [vmem:[#allocation22_spill] sm:$0xff]  ;;  %v14873_v33 = vld [vmem:[#allocation81_spill] sm:$0xff] }
 0x419   : > { %v2971_v45 = vsel %vm2961_vm10, %v2938_v31, %v5660_v63  ;;  %v2986_v2 = vsel %vm2961_vm10, %v2953_v41, %v5699_v40  ;;  %v5780_v47 = vunpack.i.h.bf16 %v14865_v25  ;;  %v5779_v38 = vunpack.i.l.bf16 %v14865_v25  ;;  %v14880_v63 = vld [vmem:[#allocation193_spill] sm:$0xff] }
 0x41a   : > { %v2987_v20 = vsel %vm2961_vm10, %v2954_v39, %v5700_v56  ;;  %v5820_v10 = vunpack.i.h.bf16 %v14866_v34  ;;  %v5819_v32 = vunpack.i.l.bf16 %v14866_v34  ;;  %v4736_v48 = vsel %vm4722_vm0, %v4702_v43, 0  ;;  %v14888_v17 = vld [vmem:[#allocation65_spill] sm:$0xff]  ;;  %v14891_v39 = vld [vmem:[#allocation214_spill] sm:$0xff] }
 0x41b   : > { %v5860_v53 = vunpack.i.h.bf16 %v14867_v1  ;;  %v5859_v55 = vunpack.i.l.bf16 %v14867_v1  ;;  %v5900_v46 = vunpack.i.h.bf16 %v14868_v0  ;;  %v5899_v18 = vunpack.i.l.bf16 %v14868_v0  ;;  %5080 = vmatpush3.bf16.xpose.msra.mxu0 %v4736_v48 }
 0x41c   : > { %v3003_v62 = vsel %vm2994_vm11, %v2970_v50, %v5739_v12  ;;  %v3004_v5 = vsel %vm2994_vm11, %v2971_v45, %v5740_v23  ;;  %v5940_v9 = vunpack.i.h.bf16 %v14869_v60  ;;  %v5939_v51 = vunpack.i.l.bf16 %v14869_v60  ;;  %v14894_v45 = vld [vmem:[#allocation103_spill] sm:$0xff] }
 0x41d   : > { %v3019_v16 = vsel %vm2994_vm11, %v2986_v2, %v5779_v38  ;;  %v3020_v37 = vsel %vm2994_vm11, %v2987_v20, %v5780_v47  ;;  %v5980_v36 = vunpack.i.h.bf16 %v14870_v44  ;;  %v5979_v27 = vunpack.i.l.bf16 %v14870_v44  ;;  %v14897_v20 = vld [vmem:[#allocation280_spill] sm:$0xff] }
 0x41e   : > { %vm14871_vm7 = vcmask 293888   ;;  %v6020_v43 = vunpack.i.h.bf16 %v14873_v33  ;;  %v6019_v22 = vunpack.i.l.bf16 %v14873_v33  ;;  %vm14876_vm12 = vcmask 326656  }
 0x41f   : > { %v3036_v29 = vsel %vm14871_vm7, %v3003_v62, %v5819_v32  ;;  %vm14872_vm8 = vmmov %vm14871_vm7  ;;  %v6060_v24 = vunpack.i.h.bf16 %v14880_v63  ;;  %v6059_v40 = vunpack.i.l.bf16 %v14880_v63  ;;  %vm14881_vm15 = vcmask 359424   ;;  %v14904_v63 = vld [vmem:[#allocation291_spill] sm:$0xff] }
 0x420   : > { %v3037_v54 = vsel %vm14872_vm8, %v3004_v5, %v5820_v10  ;;  %vm14874_vm9 = vmmov %vm14871_vm7  ;;  %v3069_v58 = vsel %vm14876_vm12, %v3036_v29, %v5899_v18  ;;  %v6100_v21 = vunpack.i.h.bf16 %v14883_v15  ;;  %v6099_v14 = vunpack.i.l.bf16 %v14883_v15  ;;  %v14906_v15 = vld [vmem:[#allocation281_spill] sm:$0xff] }
 0x421   : > { %v3052_v8 = vsel %vm14874_vm9, %v3019_v16, %v5859_v55  ;;  %vm14875_vm10 = vmmov %vm14871_vm7  ;;  %v3102_v13 = vsel %vm14881_vm15, %v3069_v58, %v5979_v27  ;;  %v6140_v52 = vunpack.i.h.bf16 %v14886_v19  ;;  %v6139_v56 = vunpack.i.l.bf16 %v14886_v19 }
 0x422   : > { %v3053_v59 = vsel %vm14875_vm10, %v3020_v37, %v5860_v53  ;;  %vm14877_vm13 = vmmov %vm14876_vm12  ;;  %v6180_v4 = vunpack.i.h.bf16 %v14887_v26  ;;  %v6179_v28 = vunpack.i.l.bf16 %v14887_v26  ;;  %v6220_v61 = vunpack.i.h.bf16 %v14888_v17 }
 0x423   : > { %v3070_v42 = vsel %vm14877_vm13, %v3037_v54, %v5900_v46  ;;  %vm14878_vm11 = vmmov %vm14876_vm12  ;;  %v6219_v11 = vunpack.i.l.bf16 %v14888_v17  ;;  %vm14889_vm3 = vcmask 392192   ;;  %v6260_v50 = vunpack.i.h.bf16 %v14891_v39 }
 0x424   : > { %v3085_v30 = vsel %vm14878_vm11, %v3052_v8, %v5939_v51  ;;  %vm14879_vm14 = vmmov %vm14878_vm11  ;;  %v3135_v31 = vsel %vm14889_vm3, %v3102_v13, %v6059_v40  ;;  %v6259_v35 = vunpack.i.l.bf16 %v14891_v39  ;;  %v6340_v2 = vunpack.i.h.bf16 %v14894_v45  ;;  %v14905_v40 = vld [vmem:[#allocation290_spill] sm:$0xff] }
 0x425   : > { %v3086_v7 = vsel %vm14879_vm14, %v3053_v59, %v5940_v9  ;;  %vm14882_vm4 = vmmov %vm14881_vm15  ;;  %v6339_v25 = vunpack.i.l.bf16 %v14894_v45  ;;  %vm14895_vm10 = vcmask 424960   ;;  %v6300_v34 = vunpack.i.h.bf16 %v14897_v20 }
 0x426   : > { %v3103_v49 = vsel %vm14882_vm4, %v3070_v42, %v5980_v36  ;;  %vm14884_vm6 = vmmov %vm14882_vm4  ;;  %v3168_v47 = vsel %vm14895_vm10, %v3135_v31, %v6139_v56  ;;  %v6299_v10 = vunpack.i.l.bf16 %v14897_v20  ;;  %vm14900_vm14 = vcmask 457728   ;;  %v14909_v31 = vld [vmem:[#allocation294_spill] sm:$0xff] }
 0x427   : > { %v3118_v6 = vsel %vm14884_vm6, %v3085_v30, %v6019_v22  ;;  %vm14885_vm2 = vmmov %vm14882_vm4  ;;  %v3201_v1 = vsel %vm14900_vm14, %v3168_v47, %v6219_v11  ;;  %v7203_v55 = vpop.permute.xlu1 %7202 }
 0x428   : > { %v3119_v3 = vsel %vm14885_vm2, %v3086_v7, %v6020_v43  ;;  %vm14890_vm7 = vmmov %vm14889_vm3  ;;  %v7205_v18 = vunpack.i.h.bf16 %v7203_v55  ;;  %v7204_v62 = vunpack.i.l.bf16 %v7203_v55  ;;  %v7198_v5 = vpop.permute.xlu0 %7197  ;;  %v3234_v36 = vsel %vm3225_vm1, %v3201_v1, %v6299_v10  ;;  %v14913_v1 = vld [vmem:[#allocation292_spill] sm:$0xff] }
 0x429   : > { %v3136_v41 = vsel %vm14890_vm7, %v3103_v49, %v6060_v24  ;;  %vm14892_vm8 = vmmov %vm14889_vm3  ;;  %v7200_v51 = vunpack.i.h.bf16 %v7198_v5  ;;  %v7199_v16 = vunpack.i.l.bf16 %v7198_v5 }
 0x42a   : > { %v3151_v23 = vsel %vm14892_vm8, %v3118_v6, %v6099_v14  ;;  %vm14893_vm9 = vmmov %vm14889_vm3  ;;  %v14907_v14 = vld [vmem:[#allocation282_spill] sm:$0xff] }
 0x42b   : > { %v3152_v12 = vsel %vm14893_vm9, %v3119_v3, %v6100_v21  ;;  %vm14896_vm12 = vmmov %vm14895_vm10  ;;  %v4675_v54 = vsel %vm4666_vm5, %v3234_v36, %v7199_v16 }
 0x42c   : > { %v3169_v38 = vsel %vm14896_vm12, %v3136_v41, %v6140_v52  ;;  %vm14898_vm13 = vmmov %vm14895_vm10 }
 0x42d   : > { %v3184_v32 = vsel %vm14898_vm13, %v3151_v23, %v6179_v28  ;;  %vm14899_vm11 = vmmov %vm14895_vm10  ;;  %v14911_v23 = vld [vmem:[#allocation286_spill] sm:$0xff] }
 0x42e   : > { %v3185_v48 = vsel %vm14899_vm11, %v3152_v12, %v6180_v4  ;;  %vm14901_vm15 = vmmov %vm14900_vm14 }
 0x42f   : > { %v3202_v53 = vsel %vm14901_vm15, %v3169_v38, %v6220_v61  ;;  %vm14902_vm4 = vmmov %vm14900_vm14  ;;  %v14908_v61 = vld [vmem:[#allocation252_spill] sm:$0xff] }
 0x430   : > { %v3217_v0 = vsel %vm14902_vm4, %v3184_v32, %v6259_v35  ;;  %vm14903_vm6 = vmmov %vm14902_vm4  ;;  %v3235_v27 = vsel %vm3225_vm1, %v3202_v53, %v6300_v34  ;;  %v14912_v32 = vld [vmem:[#allocation293_spill] sm:$0xff] }
 0x431   : > { %v3218_v46 = vsel %vm14903_vm6, %v3185_v48, %v6260_v50  ;;  %v3250_v60 = vsel %vm3225_vm1, %v3217_v0, %v6339_v25  ;;  %v4676_v33 = vsel %vm4666_vm5, %v3235_v27, %v7200_v51  ;;  %v14910_v50 = vld [vmem:[#allocation285_spill] sm:$0xff]  ;;  %v14914_v0 = vld [vmem:[#allocation62_spill] sm:$0xff] }
 0x432   : > { %v3251_v9 = vsel %vm3225_vm1, %v3218_v46, %v6340_v2  ;;  %v4691_v37 = vsel %vm4666_vm5, %v3250_v60, %v7204_v62  ;;  %v4703_v43 = vpack.c.bf16 %v4676_v33, %v4675_v54 }
 0x433   : > { %v4692_v44 = vsel %vm4666_vm5, %v3251_v9, %v7205_v18  ;;  %v14915_v18 = vld [vmem:[#allocation283_spill] sm:$0xff] }
 0x434   : > { %v4711_v29 = vpack.c.bf16 %v4692_v44, %v4691_v37  ;;  %v4739_v22 = vsel %vm4722_vm0, %v4703_v43, 0 }
 0x436   : > { %5095 = vmatprep.subr.msk.bf16.mxu0 %vm4722_vm0, %v4711_v29 }
 0x437   : > { %5082 = vmatpush3.bf16.xpose.msra.mxu0 %v4739_v22 }
 0x43f   : > { %v7213_v8 = vpop.permute.xlu1 %7212 }
 0x440   : > { %v7215_v59 = vunpack.i.h.bf16 %v7213_v8  ;;  %v7214_v58 = vunpack.i.l.bf16 %v7213_v8  ;;  %v7208_v42 = vpop.permute.xlu0 %7207 }
 0x441   : > { %v7210_v30 = vunpack.i.h.bf16 %v7208_v42  ;;  %v7209_v7 = vunpack.i.l.bf16 %v7208_v42 }
 0x442   : > { %v4694_v24 = vsel %vm4666_vm5, %v14904_v63, %v7215_v59  ;;  %v4693_v13 = vsel %vm4666_vm5, %v14905_v40, %v7214_v58 }
 0x443   : > { %v4712_v49 = vpack.c.bf16 %v4694_v24, %v4693_v13  ;;  %v4677_v21 = vsel %vm4666_vm5, %v14906_v15, %v7209_v7  ;;  %v4678_v6 = vsel %vm4666_vm5, %v14907_v14, %v7210_v30 }
 0x444   : > { %v4704_v3 = vpack.c.bf16 %v4678_v6, %v4677_v21 }
 0x445   : > { %5096 = vmatprep.subr.msk.bf16.mxu0 %vm4722_vm0, %v4712_v49 }
 0x446   : > { %v4742_v19 = vsel %vm4722_vm0, %v4704_v3, 0 }
 0x447   : > { %5084 = vmatpush3.bf16.xpose.msra.mxu0 %v4742_v19 }
 0x457   : > { %v7223_v52 = vpop.permute.xlu1 %7222 }
 0x458   : > { %v7225_v56 = vunpack.i.h.bf16 %v7223_v52  ;;  %v7224_v26 = vunpack.i.l.bf16 %v7223_v52  ;;  %v7218_v4 = vpop.permute.xlu0 %7217 }
 0x459   : > { %v7220_v28 = vunpack.i.h.bf16 %v7218_v4  ;;  %v7219_v17 = vunpack.i.l.bf16 %v7218_v4 }
 0x45a   : > { %v4695_v11 = vsel %vm4666_vm5, %v14908_v61, %v7224_v26  ;;  %v4696_v41 = vsel %vm4666_vm5, %v14909_v31, %v7225_v56 }
 0x45b   : > { %v4713_v39 = vpack.c.bf16 %v4696_v41, %v4695_v11  ;;  %v4679_v35 = vsel %vm4666_vm5, %v14910_v50, %v7219_v17  ;;  %v4680_v12 = vsel %vm4666_vm5, %v14911_v23, %v7220_v28 }
 0x45c   : > { %v4705_v45 = vpack.c.bf16 %v4680_v12, %v4679_v35 }
 0x45d   : > { %5097 = vmatprep.subr.msk.bf16.mxu0 %vm4722_vm0, %v4713_v39 }
 0x45e   : > { %v4745_v2 = vsel %vm4722_vm0, %v4705_v45, 0 }
 0x45f   : > { %5086 = vmatpush3.bf16.xpose.msra.mxu0 %v4745_v2 }
 0x46f   : > { %v7233_v25 = vpop.permute.xlu1 %7232 }
 0x470   : > { %v7235_v47 = vunpack.i.h.bf16 %v7233_v25  ;;  %v7234_v38 = vunpack.i.l.bf16 %v7233_v25  ;;  %v7228_v20 = vpop.permute.xlu0 %7227 }
 0x471   : > { %v7230_v34 = vunpack.i.h.bf16 %v7228_v20  ;;  %v7229_v10 = vunpack.i.l.bf16 %v7228_v20 }
 0x472   : > { %v4698_v48 = vsel %vm4666_vm5, %v14912_v32, %v7235_v47  ;;  %v4697_v53 = vsel %vm4666_vm5, %v14913_v1, %v7234_v38 }
 0x473   : > { %v4714_v55 = vpack.c.bf16 %v4698_v48, %v4697_v53  ;;  %v4681_v46 = vsel %vm4666_vm5, %v14914_v0, %v7229_v10  ;;  %v4682_v62 = vsel %vm4666_vm5, %v14915_v18, %v7230_v34 }
 0x474   : > { %v4706_v5 = vpack.c.bf16 %v4682_v62, %v4681_v46 }
 0x475   : > { %5098 = vmatprep.subr.msk.bf16.mxu0 %vm4722_vm0, %v4714_v55 }
 0x476   : > { %v4748_v60 = vsel %vm4722_vm0, %v4706_v5, 0 }
 0x477   : > { %5088 = vmatpush3.bf16.xpose.msra.mxu0 %v4748_v60 }
 0x47e   : > { %5090 = vmatmul.mubr.msk.bf16.vlgmr.msra.gmra.mrb[0].mxu0 %vm4722_vm0, %v12662_v57 }
 0x480   : > { %v4859_v50 = vpop.permute.xlu1 %4858 }
 0x481   : > { %v4720_v9 = vpop.permute.xlu0 %4719 }
 0x484   : > { %v4867_v47 = vpop.permute.xlu1 %4866 }
 0x551   : > { %v4808_v51 = vpop.f32.mrb[0].mxu0 }
 0x552   : > { %v4809_v16 = vadd.f32 %v4808_v51, %v4720_v9  ;;  %v4810_v37 = vpop.f32.mrb[1].mxu0 }
 0x553   : > { %v4811_v44 = vadd.f32 %v4810_v37, %v4720_v9  ;;  %v4812_v36 = vpop.f32.mrb[2].mxu0 }
 0x554   : > { %v4815_v27 = vrot.slane %v4809_v16, 4  ;;  %v4813_v29 = vpop.f32.mrb[3].mxu0 }
 0x555   : > { %v4821_v54 = vrot.slane %v4811_v44, 4 }
 0x556   : > { %v4816_v33 = vadd.f32 %v4815_v27, %v4809_v16 }
 0x557   : > { %v4822_v43 = vadd.f32 %v4821_v54, %v4811_v44 }
 0x558   : > { %v4817_v22 = vrot.slane %v4816_v33, 2 }
 0x559   : > { %v4823_v8 = vrot.slane %v4822_v43, 2 }
 0x55a   : > { %v4818_v59 = vadd.f32 %v4817_v22, %v4816_v33 }
 0x55b   : > { %v4824_v58 = vadd.f32 %v4823_v8, %v4822_v43 }
 0x55c   : > { %v4819_v42 = vrot.slane %v4818_v59, 1 }
 0x55d   : > { %v4825_v30 = vrot.slane %v4824_v58, 1 }
 0x55e   : > { %v4820_v7 = vadd.f32 %v4819_v42, %v4818_v59 }
 0x55f   : > { %v4826_v63 = vadd.f32 %v4825_v30, %v4824_v58 }
 0x560   : > { %v4828_v57 = vmul.f32 0.125, %v4820_v7 }
 0x561   : > { %v4829_v24 = vmul.f32 0.125, %v4826_v63 }
 0x562   : > { %v4830_v40 = vsub.f32 %v4809_v16, %v4828_v57 }
 0x563   : > { %v4831_v13 = vsub.f32 %v4811_v44, %v4829_v24 }
 0x564   : > { %v4832_v49 = vmul.f32 %v4830_v40, %v4830_v40 }
 0x565   : > { %v4833_v15 = vmul.f32 %v4831_v13, %v4831_v13 }
 0x566   : > { %v4834_v21 = vrot.slane %v4832_v49, 4 }
 0x567   : > { %v4840_v14 = vrot.slane %v4833_v15, 4 }
 0x568   : > { %v4835_v6 = vadd.f32 %v4834_v21, %v4832_v49 }
 0x569   : > { %v4841_v3 = vadd.f32 %v4840_v14, %v4833_v15 }
 0x56a   : > { %v4836_v19 = vrot.slane %v4835_v6, 2 }
 0x56b   : > { %v4842_v52 = vrot.slane %v4841_v3, 2 }
 0x56c   : > { %v4837_v56 = vadd.f32 %v4836_v19, %v4835_v6 }
 0x56d   : > { %v4843_v26 = vadd.f32 %v4842_v52, %v4841_v3 }
 0x56e   : > { %v4838_v4 = vrot.slane %v4837_v56, 1 }
 0x56f   : > { %v4844_v28 = vrot.slane %v4843_v26, 1 }
 0x570   : > { %v4839_v17 = vadd.f32 %v4838_v4, %v4837_v56 }
 0x571   : > { %v4845_v61 = vadd.f32 %v4844_v28, %v4843_v26 }
 0x572   : > { %v4846_v11 = vmul.f32 0.125, %v4839_v17 }
 0x573   : > { %v4847_v31 = vmul.f32 0.125, %v4845_v61 }
 0x574   : > { %v4848_v41 = vadd.f32 1e-05, %v4846_v11 }
 0x575   : > { %v4849_v39 = vadd.f32 1e-05, %v4847_v31 }
 0x576   : > { %7238 = vrsqrt.f32 %v4848_v41 }
 0x577   : > { %7240 = vrsqrt.f32 %v4849_v39 }
 0x580   : > { %v7239_v35 = vpop.eup %7238 }
 0x581   : > { %v7241_v23 = vpop.eup %7240  ;;  %v4852_v12 = vmul.f32 %v7239_v35, %v4830_v40 }
 0x582   : > { %v4853_v45 = vmul.f32 %v7241_v23, %v4831_v13 }
 0x583   : > { %v4861_v2 = vmul.f32 %v4859_v50, %v4852_v12 }
 0x584   : > { %v4862_v25 = vmul.f32 %v4859_v50, %v4853_v45 }
 0x585   : > { %v4869_v38 = vadd.f32 %v4867_v47, %v4861_v2 }
 0x586   : > { %v4870_v20 = vadd.f32 %v4867_v47, %v4862_v25 }
 0x587   : > { %vm4871_vm1 = vcmp.gt.f32.partialorder %v4869_v38, 0.0  ;;  %v4873_v34 = vmul.f32 0.01, %v4869_v38 }
 0x588   : > { %vm4872_vm0 = vcmp.gt.f32.partialorder %v4870_v20, 0.0  ;;  %v4874_v10 = vmul.f32 0.01, %v4870_v20 }
 0x589   : > { %v4875_v32 = vsel %vm4871_vm1, %v4869_v38, %v4873_v34 }
 0x58a   : > { %v4876_v48 = vsel %vm4872_vm0, %v4870_v20, %v4874_v10  ;;  %4877 = vst [vmem:[%s243_s9] sm:$0xff] %v4875_v32 }
 0x58b   : > { %4878 = vst [vmem:[%s243_s9 + $0x8] sm:$0xff] %v4876_v48 }
 0x58c   : > { %7261 = shalt.err (!%p7258_p3)
}
 0x58d   : > { %s7262_s30 = scalar_lea.hbm %s12944_s13, 256  ;;  %s7266_s26 = scalar_lea.hbm %s12991_s5, 512 }
 0x58e   : > { %p7263_p4 = scmp.ne.s32.totalorder %s12944_s13, %s7262_s30  ;;  %p7267_p9 = scmp.lt.u32.totalorder %s12944_s13, %s12991_s5 }
 0x58f   : > { %p7268_p10 = scmp.lt.u32.totalorder %s7266_s26, %s7262_s30  ;;  %p7270_p12 = scmp.lt.u32.totalorder %s7262_s30, %s12944_s13 }
 0x590   : > { %p7264_p7 = pnand %p7263_p4, %p7399_p5 }
 0x591   : > { %p7269_p11 = por %p7268_p10, %p7267_p9 }
 0x592   : > { %p7265_p8 = pneg %p7264_p7 }
 0x593   : > { %p7271_p13 = por %p7270_p12, %p7269_p11 }
 0x595   : > { %p7272_p0 = pnand %p7271_p13, %p7265_p8 }
 0x597   : > { %7275 = shalt.err (!%p7272_p0)
}
 0x598   : > { %5099 = dma.vmem_to_hbm [thread:$0]  (%p7399_p5), %s12946_s10, 256, %s12944_s13, %s4880_s22  }
 0x599 PF: > { %p5105_p1 = scmp.ge.s32.totalorder %s7310_s21, 2  ;;  %s4906_s8 = sand.u32 1, %s7298_s18  }
 0x59a   : > { %s4907_s9 = scalar_lea.sflag [#allocation4], %s4906_s8 }
 0x59b   : > { %p5102_p2 = pnand %p5105_p1, %p7403_p6 }
 0x59d   : > { %7293 = dma.done.wait (!%p5102_p2), %s4907_s9, 256  }
 0x59e   : > { %7295 = vsyncadd (!%p5102_p2), %s4907_s9, 4294967040  ;;  %p15_p3 = scmp.ge.s32.totalorder %s7386_s24, 4   ;;  %s14916_s18 = smov %s7302_s19 }
 0x59f   : > { %s14917_s19 = smov %s7306_s20  ;;  %s14918_s20 = smov %s7397_s27 }
 0x5a0   : > { %s14919_s21 = smov %s7386_s24  ;;  %17 = sbr.rel (!%p15_p3) target bundleno = 3 (0x3), region = 82 }
 0x5a7   :  { %4912 = vsyncpa [#allocation4], 1 }
 0x5a8   :  { %4914 = vsyncpa [#allocation4 + $0x1], 1 }

</bundles_post_ra>
